<compile_context>
chip_gen: v5e
topology: v5e:2x2
jax: 0.10.0
libtpu: 0.0.40
codegen_flags: <defaults>
</compile_context>

<pallas_src>
import functools

import jax
import jax.numpy as jnp
from jax.experimental import pallas as pl
from jax.experimental.pallas import tpu as pltpu


def edgeconv_kernel(x_ref, xj_ref, d2_ref, wxi_ref, wxj_ref, bias_ref, wr_ref,
                    ms_ref, o_ref, *, K, C, chunk, out_w):
    """One grid step = one [block_n, ...] row block, processed in row chunks."""
    KK = K * K
    n_chunks = x_ref.shape[0] // chunk

    @pl.loop(0, n_chunks)
    def _(ci):
        r0 = pl.multiple_of(ci * chunk, chunk)
        x = x_ref[pl.ds(r0, chunk), :]        # [CH, F]
        xj = xj_ref[pl.ds(r0, chunk), :]      # [CH, K*F]   k-major
        d2 = d2_ref[pl.ds(r0, chunk), :]      # [CH, K*K]   d2[b] repeated over a

        # Conv1d(2F->C, 1) on cat([x_i, x_j - x_i]) for all K neighbours:
        # two accumulated MXU matmuls (x_i part + block-diagonal x_j part),
        # bias added once; feat stays in the flat k-major layout [CH, K*C].
        feat = jnp.dot(x, wxi_ref[...], preferred_element_type=jnp.float32)
        feat = feat + jnp.dot(xj, wxj_ref[...],
                              preferred_element_type=jnp.float32)
        feat = jnp.maximum(feat + bias_ref[...], 0.0)          # [CH, K*C]

        # 1-channel K / Q projections, emitted directly in the [b*K+a] layout:
        #   kvt[:, b*K+a] = kv[a],   qvr[:, b*K+a] = qv[b]
        kvqv = jnp.dot(feat, wr_ref[...], preferred_element_type=jnp.float32)
        kvt = kvqv[:, :KK]
        qvr = kvqv[:, KK:]

        # Exact per-query logit max: max_a kv[a]*qv[b] = max(qv[b]*maxK,
        # qv[b]*minK) — no per-b reduction passes needed.
        maxk = jnp.max(kvt, axis=-1, keepdims=True)
        mink = jnp.min(kvt, axis=-1, keepdims=True)
        m_rep = jnp.maximum(qvr * maxk, qvr * mink)            # [CH, K*K]

        # Softmax numerators for every (a, b) pair in ONE exp pass, values in
        # (0, 1] so the denominators are >= 1 (numerically safe).
        e_all = jnp.exp(kvt * qvr - m_rep)                     # [CH, K*K]

        # Per-query denominators, already broadcast back over a, via one tiny
        # block-diagonal MXU matmul (the MXU has large slack here).
        s_rep = jnp.dot(e_all, ms_ref[...], preferred_element_type=jnp.float32)
        inv = pl.reciprocal(s_rep, approx=True)                # EUP
        inv = inv * (2.0 - s_rep * inv)                        # one Newton step

        # Distance scale (per query b, already repeated over a) folded into the
        # mixing weights:  w_mix[:, b*K+a] = scale[b] * softmax_a(r)[a, b].
        scale = 2.0 * jax.nn.sigmoid(-jnp.sqrt(d2))
        w_mix = e_all * inv * scale                            # [CH, K*K]

        # Attention mixing + max over queries b.  The feat group slices are
        # hoisted out of the b loop (one lane extraction per a, not per (a,b));
        # the per-(a,b) scalar broadcasts + FMAs run on the VPU.
        feat_g = [feat[:, a * C:(a + 1) * C] for a in range(K)]
        out = None
        for b in range(K):
            acc = w_mix[:, b * K:b * K + 1] * feat_g[0]
            for a in range(1, K):
                acc = acc + w_mix[:, b * K + a:b * K + a + 1] * feat_g[a]
            out = acc if out is None else jnp.maximum(out, acc)

        # Lane-dense (128-wide) store; the wrapper slices [:, :C].
        if out_w > C:
            out = jnp.concatenate(
                [out, jnp.zeros((chunk, out_w - C), jnp.float32)], axis=1)
        o_ref[pl.ds(r0, chunk), :] = out.astype(o_ref.dtype)


def edgeconv_forward(x, index, pos, w1, b1, wk, wq, *, block_n=None):
    """x:[N,F,1], index:[N,K] int32, pos:[N,P,1] -> [N,C,1] (PyTorch semantics)."""
    N, F, _ = x.shape
    _, K = index.shape
    C = w1.shape[1]
    KK = K * K

    x2 = x[:, :, 0]                       # [N, F]
    pos2 = pos[:, :, 0]                   # [N, P]

    # TODO(synk): the neighbour gather (index_select) stays as XLA glue; a
    # fully in-kernel gather would need a manual DMA row-gather over HBM.
    xj_flat = jnp.take(x2, index, axis=0).reshape(N, K * F)            # [N, K*F]
    pj = jnp.take(pos2, index, axis=0)                                 # [N, K, P]
    d2 = jnp.sum(jnp.square(pj - pos2[:, None, :]), axis=-1)           # [N, K]
    d2_rep = jnp.repeat(d2, K, axis=1)                                 # [N, K*K]

    # Conv1d(2F->C,1) over [x_i, x_j - x_i] for all K neighbours, split into an
    # x_i part and a block-diagonal x_j part (no wrapper concat of the inputs):
    #   feat[n, k*C+c] = x_i @ (w1a - w1b) + x_j(k) @ w1b + b1
    w1a, w1b = w1[:F, :], w1[F:, :]
    w_xi = jnp.tile(w1a - w1b, (1, K))                                 # [F, K*C]
    w_xj = jnp.kron(jnp.eye(K, dtype=w1.dtype), w1b)                   # [K*F, K*C]
    bias = jnp.tile(b1, K).reshape(1, K * C)

    # K/Q projections emitted directly in the repeated [b*K + a] layout:
    #   kvt[:, b*K+a] = kv[a]  (tiled block-diag wk)
    #   qvr[:, b*K+a] = qv[b]  (repeated block-diag wq)
    w_kv = jnp.tile(jnp.kron(jnp.eye(K, dtype=wk.dtype), wk.reshape(C, 1)),
                    (1, K))
    w_qv = jnp.repeat(jnp.kron(jnp.eye(K, dtype=wq.dtype), wq.reshape(C, 1)),
                      K, axis=1)
    w_r = jnp.concatenate([w_kv, w_qv], axis=1)                        # [K*C, 2*K*K]

    # Segment-sum matrix: s_rep = e_all @ m_sum gives the per-query softmax
    # denominators already broadcast over a.
    m_sum = jnp.kron(jnp.eye(K, dtype=x.dtype),
                     jnp.ones((K, K), x.dtype))                        # [K*K, K*K]

    CHUNK = 64
    if block_n is None:
        # Largest multiple of CHUNK (<= 256) that still yields >= 4 grid steps,
        # so v7x's two TensorCores each get >= 2 software-pipelined steps.
        block_n = max(CHUNK, min(256, (N // (4 * CHUNK)) * CHUNK))
    chunk = CHUNK if block_n % CHUNK == 0 else block_n

    out_w = ((C + 127) // 128) * 128      # lane-dense output width

    n_pad = pl.cdiv(N, block_n) * block_n
    if n_pad != N:
        pad = ((0, n_pad - N), (0, 0))
        x2 = jnp.pad(x2, pad)
        xj_flat = jnp.pad(xj_flat, pad)
        d2_rep = jnp.pad(d2_rep, pad)

    kernel = functools.partial(edgeconv_kernel, K=K, C=C, chunk=chunk,
                               out_w=out_w)
    out = pl.pallas_call(
        kernel,
        out_shape=jax.ShapeDtypeStruct((n_pad, out_w), x.dtype),
        grid_spec=pltpu.PrefetchScalarGridSpec(
            num_scalar_prefetch=0,
            grid=(n_pad // block_n,),
            in_specs=[
                pl.BlockSpec((block_n, F), lambda i: (i, 0)),
                pl.BlockSpec((block_n, K * F), lambda i: (i, 0)),
                pl.BlockSpec((block_n, KK), lambda i: (i, 0)),
                pl.BlockSpec((F, K * C), lambda i: (0, 0)),
                pl.BlockSpec((K * F, K * C), lambda i: (0, 0)),
                pl.BlockSpec((1, K * C), lambda i: (0, 0)),
                pl.BlockSpec((K * C, 2 * KK), lambda i: (0, 0)),
                pl.BlockSpec((KK, KK), lambda i: (0, 0)),
            ],
            out_specs=pl.BlockSpec((block_n, out_w), lambda i: (i, 0)),
        ),
        compiler_params=pltpu.CompilerParams(
            dimension_semantics=("parallel",),
            vmem_limit_bytes=32 * 1024 * 1024),
    )(x2, xj_flat, d2_rep, w_xi, w_xj, bias, w_r, m_sum)

    return out[:N, :C].reshape(N, C, 1)


def edgeconv_ref(x, index, pos, w1, b1, wk, wq):
    """Pure-JAX reference matching the PyTorch forward."""
    x2, pos2 = x[:, :, 0], pos[:, :, 0]
    xj = x2[index]                                                    # [N, K, F]
    xi = jnp.broadcast_to(x2[:, None, :], xj.shape)
    e = jnp.concatenate([xi, xj - xi], axis=-1)                       # [N, K, 2F]
    feat = jax.nn.relu(jnp.einsum('nkf,fc->nkc', e, w1) + b1[None, None, :])
    Kv = jnp.einsum('nkc,c->nk', feat, wk)
    Qv = jnp.einsum('nkc,c->nk', feat, wq)
    r = Kv[:, :, None] * Qv[:, None, :]
    att = jax.nn.softmax(r, axis=1)
    feat2 = jnp.einsum('nab,nac->nbc', att, feat)
    pj = pos2[index]
    vec = pj - pos2[:, None, :]
    dis = jnp.sqrt(jnp.sum(vec * vec, axis=-1, keepdims=True))
    scale = 2.0 * jax.nn.sigmoid(-dis)
    out = jnp.max(scale * feat2, axis=1)
    return out.reshape(out.shape[0], out.shape[1], 1)


if __name__ == "__main__":
    # 500 points (ragged vs. the 64-row tile -> exercises padding and a
    # multi-step grid), K=8 neighbours, in_channels=4, out_channels=32, 3-D pos.
    N, K, IN_CH, OUT_CH, P = 500, 8, 4, 32, 3

    key = jax.random.PRNGKey(0)
    k_x, k_pos, k_idx, k_w1, k_b1, k_wk, k_wq = jax.random.split(key, 7)

    x = jax.random.normal(k_x, (N, IN_CH, 1), dtype=jnp.float32)
    pos = jax.random.normal(k_pos, (N, P, 1), dtype=jnp.float32)
    index = jax.random.randint(k_idx, (N, K), 0, N, dtype=jnp.int32)

    # Parameter shapes from the module __init__:
    #   self.nn:      Conv1d(2*in, out, 1, bias=True)  -> w1 [2F, C], b1 [C]
    #   self.linear:  Conv1d(out, 1, 1, bias=False)    -> wk [C]
    #   self.linear2: Conv1d(out, 1, 1, bias=False)    -> wq [C]
    w1 = 0.1 * jax.random.normal(k_w1, (2 * IN_CH, OUT_CH), dtype=jnp.float32)
    b1 = 0.01 * jax.random.normal(k_b1, (OUT_CH,), dtype=jnp.float32)
    wk = 0.1 * jax.random.normal(k_wk, (OUT_CH,), dtype=jnp.float32)
    wq = 0.1 * jax.random.normal(k_wq, (OUT_CH,), dtype=jnp.float32)

    out = jax.block_until_ready(edgeconv_forward(x, index, pos, w1, b1, wk, wq))
    assert out.shape == (N, OUT_CH, 1), out.shape

    ref = jax.block_until_ready(edgeconv_ref(x, index, pos, w1, b1, wk, wq))
    max_err = float(jnp.max(jnp.abs(out - ref)))
    assert jnp.allclose(out, ref, atol=2e-3, rtol=2e-3), max_err

    print("KERNEL_OK")
</pallas_src>

<mosaic_0001>
module attributes {stable_mosaic.version = 11 : i64} {
  func.func @edgeconv_kernel(%arg0: i32, %arg1: memref<64x4xf32, #tpu.memory_space<vmem>>, %arg2: memref<64x32xf32, #tpu.memory_space<vmem>>, %arg3: memref<64x64xf32, #tpu.memory_space<vmem>>, %arg4: memref<4x256xf32, #tpu.memory_space<vmem>>, %arg5: memref<32x256xf32, #tpu.memory_space<vmem>>, %arg6: memref<1x256xf32, #tpu.memory_space<vmem>>, %arg7: memref<256x128xf32, #tpu.memory_space<vmem>>, %arg8: memref<64x64xf32, #tpu.memory_space<vmem>>, %arg9: memref<64x128xf32, #tpu.memory_space<vmem>>) attributes {dimension_semantics = [#tpu.dimension_semantics<parallel>], iteration_bounds = array<i64: 8>, scalar_prefetch = 0 : i64, scratch_operands = 0 : i64, tpu.core_type = #tpu.core_type<tc>, window_params = [{transform_indices = @transform_0, window_bounds = array<i64: 64, 4>}, {transform_indices = @transform_1, window_bounds = array<i64: 64, 32>}, {transform_indices = @transform_2, window_bounds = array<i64: 64, 64>}, {pipeline_mode = #tpu.pipeline_mode<synchronous>, transform_indices = @transform_3, window_bounds = array<i64: 4, 256>}, {pipeline_mode = #tpu.pipeline_mode<synchronous>, transform_indices = @transform_4, window_bounds = array<i64: 32, 256>}, {pipeline_mode = #tpu.pipeline_mode<synchronous>, transform_indices = @transform_5, window_bounds = array<i64: 1, 256>}, {pipeline_mode = #tpu.pipeline_mode<synchronous>, transform_indices = @transform_6, window_bounds = array<i64: 256, 128>}, {pipeline_mode = #tpu.pipeline_mode<synchronous>, transform_indices = @transform_7, window_bounds = array<i64: 64, 64>}, {transform_indices = @transform_8, window_bounds = array<i64: 64, 128>}]} {
    %c0_i32 = arith.constant 0 : i32
    %c1_i32 = arith.constant 1 : i32
    %0 = arith.muli %c0_i32, %c1_i32 : i32
    %c0_i32_0 = arith.constant 0 : i32
    %1 = arith.addi %c0_i32_0, %0 : i32
    %c64_i32 = arith.constant 64 : i32
    %2 = arith.muli %1, %c64_i32 : i32
    %3 = tpu.assume_multiple %2, 64 : i32
    %4 = arith.index_cast %3 : i32 to index
    %c0 = arith.constant 0 : index
    %5 = vector.load %arg1[%4, %c0] : memref<64x4xf32, #tpu.memory_space<vmem>>, vector<64x4xf32>
    %6 = arith.index_cast %3 : i32 to index
    %c0_1 = arith.constant 0 : index
    %7 = vector.load %arg2[%6, %c0_1] : memref<64x32xf32, #tpu.memory_space<vmem>>, vector<64x32xf32>
    %8 = arith.index_cast %3 : i32 to index
    %c0_2 = arith.constant 0 : index
    %9 = vector.load %arg3[%8, %c0_2] : memref<64x64xf32, #tpu.memory_space<vmem>>, vector<64x64xf32>
    %c0_3 = arith.constant 0 : index
    %c0_4 = arith.constant 0 : index
    %10 = vector.load %arg4[%c0_3, %c0_4] : memref<4x256xf32, #tpu.memory_space<vmem>>, vector<4x256xf32>
    %cst = arith.constant dense<0.000000e+00> : vector<64x256xf32>
    %11 = tpu.matmul %5, %10, %cst {dimension_numbers = #tpu.dot_dimension_numbers<[1], [0], [0], [1], [0, 0, 1, 1], [], []>} : vector<64x4xf32>, vector<4x256xf32>, vector<64x256xf32> -> vector<64x256xf32>
    %c0_5 = arith.constant 0 : index
    %c0_6 = arith.constant 0 : index
    %12 = vector.load %arg5[%c0_5, %c0_6] : memref<32x256xf32, #tpu.memory_space<vmem>>, vector<32x256xf32>
    %cst_7 = arith.constant dense<0.000000e+00> : vector<64x256xf32>
    %13 = tpu.matmul %7, %12, %cst_7 {dimension_numbers = #tpu.dot_dimension_numbers<[1], [0], [0], [1], [0, 0, 1, 1], [], []>} : vector<64x32xf32>, vector<32x256xf32>, vector<64x256xf32> -> vector<64x256xf32>
    %14 = arith.addf %11, %13 : vector<64x256xf32>
    %c0_8 = arith.constant 0 : index
    %c0_9 = arith.constant 0 : index
    %15 = vector.load %arg6[%c0_8, %c0_9] : memref<1x256xf32, #tpu.memory_space<vmem>>, vector<1x256xf32>
    %16 = vector.broadcast %15 : vector<1x256xf32> to vector<64x256xf32>
    %17 = arith.addf %14, %16 : vector<64x256xf32>
    %cst_10 = arith.constant 0.000000e+00 : f32
    %18 = vector.broadcast %cst_10 : f32 to vector<64x256xf32>
    %19 = arith.maximumf %17, %18 : vector<64x256xf32>
    %c0_11 = arith.constant 0 : index
    %c0_12 = arith.constant 0 : index
    %20 = vector.load %arg7[%c0_11, %c0_12] : memref<256x128xf32, #tpu.memory_space<vmem>>, vector<256x128xf32>
    %cst_13 = arith.constant dense<0.000000e+00> : vector<64x128xf32>
    %21 = tpu.matmul %19, %20, %cst_13 {dimension_numbers = #tpu.dot_dimension_numbers<[1], [0], [0], [1], [0, 0, 1, 1], [], []>} : vector<64x256xf32>, vector<256x128xf32>, vector<64x128xf32> -> vector<64x128xf32>
    %22 = vector.extract_strided_slice %21 {offsets = [0, 0], sizes = [64, 64], strides = [1, 1]} : vector<64x128xf32> to vector<64x64xf32>
    %23 = vector.extract_strided_slice %21 {offsets = [0, 64], sizes = [64, 64], strides = [1, 1]} : vector<64x128xf32> to vector<64x64xf32>
    %cst_14 = arith.constant dense<0xFF800000> : vector<64xf32>
    %24 = vector.multi_reduction <maximumf>, %22, %cst_14 [1] : vector<64x64xf32> to vector<64xf32>
    %25 = vector.shape_cast %24 : vector<64xf32> to vector<64x1xf32>
    %cst_15 = arith.constant dense<0x7F800000> : vector<64xf32>
    %26 = vector.multi_reduction <minimumf>, %22, %cst_15 [1] : vector<64x64xf32> to vector<64xf32>
    %27 = vector.shape_cast %26 : vector<64xf32> to vector<64x1xf32>
    %28 = vector.broadcast %25 : vector<64x1xf32> to vector<64x64xf32>
    %29 = arith.mulf %23, %28 : vector<64x64xf32>
    %30 = vector.broadcast %27 : vector<64x1xf32> to vector<64x64xf32>
    %31 = arith.mulf %23, %30 : vector<64x64xf32>
    %32 = arith.maximumf %29, %31 : vector<64x64xf32>
    %33 = arith.mulf %22, %23 : vector<64x64xf32>
    %34 = arith.subf %33, %32 : vector<64x64xf32>
    %35 = math.exp %34 : vector<64x64xf32>
    %c0_16 = arith.constant 0 : index
    %c0_17 = arith.constant 0 : index
    %36 = vector.load %arg8[%c0_16, %c0_17] : memref<64x64xf32, #tpu.memory_space<vmem>>, vector<64x64xf32>
    %cst_18 = arith.constant dense<0.000000e+00> : vector<64x64xf32>
    %37 = tpu.matmul %35, %36, %cst_18 {dimension_numbers = #tpu.dot_dimension_numbers<[1], [0], [0], [1], [0, 0, 1, 1], [], []>} : vector<64x64xf32>, vector<64x64xf32>, vector<64x64xf32> -> vector<64x64xf32>
    %38 = tpu.reciprocal %37 {approx = true} : vector<64x64xf32> -> vector<64x64xf32>
    %39 = arith.mulf %37, %38 : vector<64x64xf32>
    %cst_19 = arith.constant 2.000000e+00 : f32
    %40 = vector.broadcast %cst_19 : f32 to vector<64x64xf32>
    %41 = arith.subf %40, %39 : vector<64x64xf32>
    %42 = arith.mulf %38, %41 : vector<64x64xf32>
    %43 = math.sqrt %9 : vector<64x64xf32>
    %cst_20 = arith.constant 0.000000e+00 : f32
    %44 = vector.broadcast %cst_20 : f32 to vector<64x64xf32>
    %45 = arith.subf %44, %43 : vector<64x64xf32>
    %46 = arith.negf %45 : vector<64x64xf32>
    %47 = math.exp %46 : vector<64x64xf32>
    %cst_21 = arith.constant 1.000000e+00 : f32
    %48 = vector.broadcast %cst_21 : f32 to vector<64x64xf32>
    %49 = arith.addf %48, %47 : vector<64x64xf32>
    %50 = arith.divf %48, %49 : vector<64x64xf32>
    %cst_22 = arith.constant 2.000000e+00 : f32
    %51 = vector.broadcast %cst_22 : f32 to vector<64x64xf32>
    %52 = arith.mulf %51, %50 : vector<64x64xf32>
    %53 = arith.mulf %35, %42 : vector<64x64xf32>
    %54 = arith.mulf %53, %52 : vector<64x64xf32>
    %55 = vector.extract_strided_slice %19 {offsets = [0, 0], sizes = [64, 32], strides = [1, 1]} : vector<64x256xf32> to vector<64x32xf32>
    %56 = vector.extract_strided_slice %19 {offsets = [0, 32], sizes = [64, 32], strides = [1, 1]} : vector<64x256xf32> to vector<64x32xf32>
    %57 = vector.extract_strided_slice %19 {offsets = [0, 64], sizes = [64, 32], strides = [1, 1]} : vector<64x256xf32> to vector<64x32xf32>
    %58 = vector.extract_strided_slice %19 {offsets = [0, 96], sizes = [64, 32], strides = [1, 1]} : vector<64x256xf32> to vector<64x32xf32>
    %59 = vector.extract_strided_slice %19 {offsets = [0, 128], sizes = [64, 32], strides = [1, 1]} : vector<64x256xf32> to vector<64x32xf32>
    %60 = vector.extract_strided_slice %19 {offsets = [0, 160], sizes = [64, 32], strides = [1, 1]} : vector<64x256xf32> to vector<64x32xf32>
    %61 = vector.extract_strided_slice %19 {offsets = [0, 192], sizes = [64, 32], strides = [1, 1]} : vector<64x256xf32> to vector<64x32xf32>
    %62 = vector.extract_strided_slice %19 {offsets = [0, 224], sizes = [64, 32], strides = [1, 1]} : vector<64x256xf32> to vector<64x32xf32>
    %63 = vector.extract_strided_slice %54 {offsets = [0, 0], sizes = [64, 1], strides = [1, 1]} : vector<64x64xf32> to vector<64x1xf32>
    %64 = vector.broadcast %63 : vector<64x1xf32> to vector<64x32xf32>
    %65 = arith.mulf %64, %55 : vector<64x32xf32>
    %66 = vector.extract_strided_slice %54 {offsets = [0, 1], sizes = [64, 1], strides = [1, 1]} : vector<64x64xf32> to vector<64x1xf32>
    %67 = vector.broadcast %66 : vector<64x1xf32> to vector<64x32xf32>
    %68 = arith.mulf %67, %56 : vector<64x32xf32>
    %69 = arith.addf %65, %68 : vector<64x32xf32>
    %70 = vector.extract_strided_slice %54 {offsets = [0, 2], sizes = [64, 1], strides = [1, 1]} : vector<64x64xf32> to vector<64x1xf32>
    %71 = vector.broadcast %70 : vector<64x1xf32> to vector<64x32xf32>
    %72 = arith.mulf %71, %57 : vector<64x32xf32>
    %73 = arith.addf %69, %72 : vector<64x32xf32>
    %74 = vector.extract_strided_slice %54 {offsets = [0, 3], sizes = [64, 1], strides = [1, 1]} : vector<64x64xf32> to vector<64x1xf32>
    %75 = vector.broadcast %74 : vector<64x1xf32> to vector<64x32xf32>
    %76 = arith.mulf %75, %58 : vector<64x32xf32>
    %77 = arith.addf %73, %76 : vector<64x32xf32>
    %78 = vector.extract_strided_slice %54 {offsets = [0, 4], sizes = [64, 1], strides = [1, 1]} : vector<64x64xf32> to vector<64x1xf32>
    %79 = vector.broadcast %78 : vector<64x1xf32> to vector<64x32xf32>
    %80 = arith.mulf %79, %59 : vector<64x32xf32>
    %81 = arith.addf %77, %80 : vector<64x32xf32>
    %82 = vector.extract_strided_slice %54 {offsets = [0, 5], sizes = [64, 1], strides = [1, 1]} : vector<64x64xf32> to vector<64x1xf32>
    %83 = vector.broadcast %82 : vector<64x1xf32> to vector<64x32xf32>
    %84 = arith.mulf %83, %60 : vector<64x32xf32>
    %85 = arith.addf %81, %84 : vector<64x32xf32>
    %86 = vector.extract_strided_slice %54 {offsets = [0, 6], sizes = [64, 1], strides = [1, 1]} : vector<64x64xf32> to vector<64x1xf32>
    %87 = vector.broadcast %86 : vector<64x1xf32> to vector<64x32xf32>
    %88 = arith.mulf %87, %61 : vector<64x32xf32>
    %89 = arith.addf %85, %88 : vector<64x32xf32>
    %90 = vector.extract_strided_slice %54 {offsets = [0, 7], sizes = [64, 1], strides = [1, 1]} : vector<64x64xf32> to vector<64x1xf32>
    %91 = vector.broadcast %90 : vector<64x1xf32> to vector<64x32xf32>
    %92 = arith.mulf %91, %62 : vector<64x32xf32>
    %93 = arith.addf %89, %92 : vector<64x32xf32>
    %94 = vector.extract_strided_slice %54 {offsets = [0, 8], sizes = [64, 1], strides = [1, 1]} : vector<64x64xf32> to vector<64x1xf32>
    %95 = vector.broadcast %94 : vector<64x1xf32> to vector<64x32xf32>
    %96 = arith.mulf %95, %55 : vector<64x32xf32>
    %97 = vector.extract_strided_slice %54 {offsets = [0, 9], sizes = [64, 1], strides = [1, 1]} : vector<64x64xf32> to vector<64x1xf32>
    %98 = vector.broadcast %97 : vector<64x1xf32> to vector<64x32xf32>
    %99 = arith.mulf %98, %56 : vector<64x32xf32>
    %100 = arith.addf %96, %99 : vector<64x32xf32>
    %101 = vector.extract_strided_slice %54 {offsets = [0, 10], sizes = [64, 1], strides = [1, 1]} : vector<64x64xf32> to vector<64x1xf32>
    %102 = vector.broadcast %101 : vector<64x1xf32> to vector<64x32xf32>
    %103 = arith.mulf %102, %57 : vector<64x32xf32>
    %104 = arith.addf %100, %103 : vector<64x32xf32>
    %105 = vector.extract_strided_slice %54 {offsets = [0, 11], sizes = [64, 1], strides = [1, 1]} : vector<64x64xf32> to vector<64x1xf32>
    %106 = vector.broadcast %105 : vector<64x1xf32> to vector<64x32xf32>
    %107 = arith.mulf %106, %58 : vector<64x32xf32>
    %108 = arith.addf %104, %107 : vector<64x32xf32>
    %109 = vector.extract_strided_slice %54 {offsets = [0, 12], sizes = [64, 1], strides = [1, 1]} : vector<64x64xf32> to vector<64x1xf32>
    %110 = vector.broadcast %109 : vector<64x1xf32> to vector<64x32xf32>
    %111 = arith.mulf %110, %59 : vector<64x32xf32>
    %112 = arith.addf %108, %111 : vector<64x32xf32>
    %113 = vector.extract_strided_slice %54 {offsets = [0, 13], sizes = [64, 1], strides = [1, 1]} : vector<64x64xf32> to vector<64x1xf32>
    %114 = vector.broadcast %113 : vector<64x1xf32> to vector<64x32xf32>
    %115 = arith.mulf %114, %60 : vector<64x32xf32>
    %116 = arith.addf %112, %115 : vector<64x32xf32>
    %117 = vector.extract_strided_slice %54 {offsets = [0, 14], sizes = [64, 1], strides = [1, 1]} : vector<64x64xf32> to vector<64x1xf32>
    %118 = vector.broadcast %117 : vector<64x1xf32> to vector<64x32xf32>
    %119 = arith.mulf %118, %61 : vector<64x32xf32>
    %120 = arith.addf %116, %119 : vector<64x32xf32>
    %121 = vector.extract_strided_slice %54 {offsets = [0, 15], sizes = [64, 1], strides = [1, 1]} : vector<64x64xf32> to vector<64x1xf32>
    %122 = vector.broadcast %121 : vector<64x1xf32> to vector<64x32xf32>
    %123 = arith.mulf %122, %62 : vector<64x32xf32>
    %124 = arith.addf %120, %123 : vector<64x32xf32>
    %125 = arith.maximumf %93, %124 : vector<64x32xf32>
    %126 = vector.extract_strided_slice %54 {offsets = [0, 16], sizes = [64, 1], strides = [1, 1]} : vector<64x64xf32> to vector<64x1xf32>
    %127 = vector.broadcast %126 : vector<64x1xf32> to vector<64x32xf32>
    %128 = arith.mulf %127, %55 : vector<64x32xf32>
    %129 = vector.extract_strided_slice %54 {offsets = [0, 17], sizes = [64, 1], strides = [1, 1]} : vector<64x64xf32> to vector<64x1xf32>
    %130 = vector.broadcast %129 : vector<64x1xf32> to vector<64x32xf32>
    %131 = arith.mulf %130, %56 : vector<64x32xf32>
    %132 = arith.addf %128, %131 : vector<64x32xf32>
    %133 = vector.extract_strided_slice %54 {offsets = [0, 18], sizes = [64, 1], strides = [1, 1]} : vector<64x64xf32> to vector<64x1xf32>
    %134 = vector.broadcast %133 : vector<64x1xf32> to vector<64x32xf32>
    %135 = arith.mulf %134, %57 : vector<64x32xf32>
    %136 = arith.addf %132, %135 : vector<64x32xf32>
    %137 = vector.extract_strided_slice %54 {offsets = [0, 19], sizes = [64, 1], strides = [1, 1]} : vector<64x64xf32> to vector<64x1xf32>
    %138 = vector.broadcast %137 : vector<64x1xf32> to vector<64x32xf32>
    %139 = arith.mulf %138, %58 : vector<64x32xf32>
    %140 = arith.addf %136, %139 : vector<64x32xf32>
    %141 = vector.extract_strided_slice %54 {offsets = [0, 20], sizes = [64, 1], strides = [1, 1]} : vector<64x64xf32> to vector<64x1xf32>
    %142 = vector.broadcast %141 : vector<64x1xf32> to vector<64x32xf32>
    %143 = arith.mulf %142, %59 : vector<64x32xf32>
    %144 = arith.addf %140, %143 : vector<64x32xf32>
    %145 = vector.extract_strided_slice %54 {offsets = [0, 21], sizes = [64, 1], strides = [1, 1]} : vector<64x64xf32> to vector<64x1xf32>
    %146 = vector.broadcast %145 : vector<64x1xf32> to vector<64x32xf32>
    %147 = arith.mulf %146, %60 : vector<64x32xf32>
    %148 = arith.addf %144, %147 : vector<64x32xf32>
    %149 = vector.extract_strided_slice %54 {offsets = [0, 22], sizes = [64, 1], strides = [1, 1]} : vector<64x64xf32> to vector<64x1xf32>
    %150 = vector.broadcast %149 : vector<64x1xf32> to vector<64x32xf32>
    %151 = arith.mulf %150, %61 : vector<64x32xf32>
    %152 = arith.addf %148, %151 : vector<64x32xf32>
    %153 = vector.extract_strided_slice %54 {offsets = [0, 23], sizes = [64, 1], strides = [1, 1]} : vector<64x64xf32> to vector<64x1xf32>
    %154 = vector.broadcast %153 : vector<64x1xf32> to vector<64x32xf32>
    %155 = arith.mulf %154, %62 : vector<64x32xf32>
    %156 = arith.addf %152, %155 : vector<64x32xf32>
    %157 = arith.maximumf %125, %156 : vector<64x32xf32>
    %158 = vector.extract_strided_slice %54 {offsets = [0, 24], sizes = [64, 1], strides = [1, 1]} : vector<64x64xf32> to vector<64x1xf32>
    %159 = vector.broadcast %158 : vector<64x1xf32> to vector<64x32xf32>
    %160 = arith.mulf %159, %55 : vector<64x32xf32>
    %161 = vector.extract_strided_slice %54 {offsets = [0, 25], sizes = [64, 1], strides = [1, 1]} : vector<64x64xf32> to vector<64x1xf32>
    %162 = vector.broadcast %161 : vector<64x1xf32> to vector<64x32xf32>
    %163 = arith.mulf %162, %56 : vector<64x32xf32>
    %164 = arith.addf %160, %163 : vector<64x32xf32>
    %165 = vector.extract_strided_slice %54 {offsets = [0, 26], sizes = [64, 1], strides = [1, 1]} : vector<64x64xf32> to vector<64x1xf32>
    %166 = vector.broadcast %165 : vector<64x1xf32> to vector<64x32xf32>
    %167 = arith.mulf %166, %57 : vector<64x32xf32>
    %168 = arith.addf %164, %167 : vector<64x32xf32>
    %169 = vector.extract_strided_slice %54 {offsets = [0, 27], sizes = [64, 1], strides = [1, 1]} : vector<64x64xf32> to vector<64x1xf32>
    %170 = vector.broadcast %169 : vector<64x1xf32> to vector<64x32xf32>
    %171 = arith.mulf %170, %58 : vector<64x32xf32>
    %172 = arith.addf %168, %171 : vector<64x32xf32>
    %173 = vector.extract_strided_slice %54 {offsets = [0, 28], sizes = [64, 1], strides = [1, 1]} : vector<64x64xf32> to vector<64x1xf32>
    %174 = vector.broadcast %173 : vector<64x1xf32> to vector<64x32xf32>
    %175 = arith.mulf %174, %59 : vector<64x32xf32>
    %176 = arith.addf %172, %175 : vector<64x32xf32>
    %177 = vector.extract_strided_slice %54 {offsets = [0, 29], sizes = [64, 1], strides = [1, 1]} : vector<64x64xf32> to vector<64x1xf32>
    %178 = vector.broadcast %177 : vector<64x1xf32> to vector<64x32xf32>
    %179 = arith.mulf %178, %60 : vector<64x32xf32>
    %180 = arith.addf %176, %179 : vector<64x32xf32>
    %181 = vector.extract_strided_slice %54 {offsets = [0, 30], sizes = [64, 1], strides = [1, 1]} : vector<64x64xf32> to vector<64x1xf32>
    %182 = vector.broadcast %181 : vector<64x1xf32> to vector<64x32xf32>
    %183 = arith.mulf %182, %61 : vector<64x32xf32>
    %184 = arith.addf %180, %183 : vector<64x32xf32>
    %185 = vector.extract_strided_slice %54 {offsets = [0, 31], sizes = [64, 1], strides = [1, 1]} : vector<64x64xf32> to vector<64x1xf32>
    %186 = vector.broadcast %185 : vector<64x1xf32> to vector<64x32xf32>
    %187 = arith.mulf %186, %62 : vector<64x32xf32>
    %188 = arith.addf %184, %187 : vector<64x32xf32>
    %189 = arith.maximumf %157, %188 : vector<64x32xf32>
    %190 = vector.extract_strided_slice %54 {offsets = [0, 32], sizes = [64, 1], strides = [1, 1]} : vector<64x64xf32> to vector<64x1xf32>
    %191 = vector.broadcast %190 : vector<64x1xf32> to vector<64x32xf32>
    %192 = arith.mulf %191, %55 : vector<64x32xf32>
    %193 = vector.extract_strided_slice %54 {offsets = [0, 33], sizes = [64, 1], strides = [1, 1]} : vector<64x64xf32> to vector<64x1xf32>
    %194 = vector.broadcast %193 : vector<64x1xf32> to vector<64x32xf32>
    %195 = arith.mulf %194, %56 : vector<64x32xf32>
    %196 = arith.addf %192, %195 : vector<64x32xf32>
    %197 = vector.extract_strided_slice %54 {offsets = [0, 34], sizes = [64, 1], strides = [1, 1]} : vector<64x64xf32> to vector<64x1xf32>
    %198 = vector.broadcast %197 : vector<64x1xf32> to vector<64x32xf32>
    %199 = arith.mulf %198, %57 : vector<64x32xf32>
    %200 = arith.addf %196, %199 : vector<64x32xf32>
    %201 = vector.extract_strided_slice %54 {offsets = [0, 35], sizes = [64, 1], strides = [1, 1]} : vector<64x64xf32> to vector<64x1xf32>
    %202 = vector.broadcast %201 : vector<64x1xf32> to vector<64x32xf32>
    %203 = arith.mulf %202, %58 : vector<64x32xf32>
    %204 = arith.addf %200, %203 : vector<64x32xf32>
    %205 = vector.extract_strided_slice %54 {offsets = [0, 36], sizes = [64, 1], strides = [1, 1]} : vector<64x64xf32> to vector<64x1xf32>
    %206 = vector.broadcast %205 : vector<64x1xf32> to vector<64x32xf32>
    %207 = arith.mulf %206, %59 : vector<64x32xf32>
    %208 = arith.addf %204, %207 : vector<64x32xf32>
    %209 = vector.extract_strided_slice %54 {offsets = [0, 37], sizes = [64, 1], strides = [1, 1]} : vector<64x64xf32> to vector<64x1xf32>
    %210 = vector.broadcast %209 : vector<64x1xf32> to vector<64x32xf32>
    %211 = arith.mulf %210, %60 : vector<64x32xf32>
    %212 = arith.addf %208, %211 : vector<64x32xf32>
    %213 = vector.extract_strided_slice %54 {offsets = [0, 38], sizes = [64, 1], strides = [1, 1]} : vector<64x64xf32> to vector<64x1xf32>
    %214 = vector.broadcast %213 : vector<64x1xf32> to vector<64x32xf32>
    %215 = arith.mulf %214, %61 : vector<64x32xf32>
    %216 = arith.addf %212, %215 : vector<64x32xf32>
    %217 = vector.extract_strided_slice %54 {offsets = [0, 39], sizes = [64, 1], strides = [1, 1]} : vector<64x64xf32> to vector<64x1xf32>
    %218 = vector.broadcast %217 : vector<64x1xf32> to vector<64x32xf32>
    %219 = arith.mulf %218, %62 : vector<64x32xf32>
    %220 = arith.addf %216, %219 : vector<64x32xf32>
    %221 = arith.maximumf %189, %220 : vector<64x32xf32>
    %222 = vector.extract_strided_slice %54 {offsets = [0, 40], sizes = [64, 1], strides = [1, 1]} : vector<64x64xf32> to vector<64x1xf32>
    %223 = vector.broadcast %222 : vector<64x1xf32> to vector<64x32xf32>
    %224 = arith.mulf %223, %55 : vector<64x32xf32>
    %225 = vector.extract_strided_slice %54 {offsets = [0, 41], sizes = [64, 1], strides = [1, 1]} : vector<64x64xf32> to vector<64x1xf32>
    %226 = vector.broadcast %225 : vector<64x1xf32> to vector<64x32xf32>
    %227 = arith.mulf %226, %56 : vector<64x32xf32>
    %228 = arith.addf %224, %227 : vector<64x32xf32>
    %229 = vector.extract_strided_slice %54 {offsets = [0, 42], sizes = [64, 1], strides = [1, 1]} : vector<64x64xf32> to vector<64x1xf32>
    %230 = vector.broadcast %229 : vector<64x1xf32> to vector<64x32xf32>
    %231 = arith.mulf %230, %57 : vector<64x32xf32>
    %232 = arith.addf %228, %231 : vector<64x32xf32>
    %233 = vector.extract_strided_slice %54 {offsets = [0, 43], sizes = [64, 1], strides = [1, 1]} : vector<64x64xf32> to vector<64x1xf32>
    %234 = vector.broadcast %233 : vector<64x1xf32> to vector<64x32xf32>
    %235 = arith.mulf %234, %58 : vector<64x32xf32>
    %236 = arith.addf %232, %235 : vector<64x32xf32>
    %237 = vector.extract_strided_slice %54 {offsets = [0, 44], sizes = [64, 1], strides = [1, 1]} : vector<64x64xf32> to vector<64x1xf32>
    %238 = vector.broadcast %237 : vector<64x1xf32> to vector<64x32xf32>
    %239 = arith.mulf %238, %59 : vector<64x32xf32>
    %240 = arith.addf %236, %239 : vector<64x32xf32>
    %241 = vector.extract_strided_slice %54 {offsets = [0, 45], sizes = [64, 1], strides = [1, 1]} : vector<64x64xf32> to vector<64x1xf32>
    %242 = vector.broadcast %241 : vector<64x1xf32> to vector<64x32xf32>
    %243 = arith.mulf %242, %60 : vector<64x32xf32>
    %244 = arith.addf %240, %243 : vector<64x32xf32>
    %245 = vector.extract_strided_slice %54 {offsets = [0, 46], sizes = [64, 1], strides = [1, 1]} : vector<64x64xf32> to vector<64x1xf32>
    %246 = vector.broadcast %245 : vector<64x1xf32> to vector<64x32xf32>
    %247 = arith.mulf %246, %61 : vector<64x32xf32>
    %248 = arith.addf %244, %247 : vector<64x32xf32>
    %249 = vector.extract_strided_slice %54 {offsets = [0, 47], sizes = [64, 1], strides = [1, 1]} : vector<64x64xf32> to vector<64x1xf32>
    %250 = vector.broadcast %249 : vector<64x1xf32> to vector<64x32xf32>
    %251 = arith.mulf %250, %62 : vector<64x32xf32>
    %252 = arith.addf %248, %251 : vector<64x32xf32>
    %253 = arith.maximumf %221, %252 : vector<64x32xf32>
    %254 = vector.extract_strided_slice %54 {offsets = [0, 48], sizes = [64, 1], strides = [1, 1]} : vector<64x64xf32> to vector<64x1xf32>
    %255 = vector.broadcast %254 : vector<64x1xf32> to vector<64x32xf32>
    %256 = arith.mulf %255, %55 : vector<64x32xf32>
    %257 = vector.extract_strided_slice %54 {offsets = [0, 49], sizes = [64, 1], strides = [1, 1]} : vector<64x64xf32> to vector<64x1xf32>
    %258 = vector.broadcast %257 : vector<64x1xf32> to vector<64x32xf32>
    %259 = arith.mulf %258, %56 : vector<64x32xf32>
    %260 = arith.addf %256, %259 : vector<64x32xf32>
    %261 = vector.extract_strided_slice %54 {offsets = [0, 50], sizes = [64, 1], strides = [1, 1]} : vector<64x64xf32> to vector<64x1xf32>
    %262 = vector.broadcast %261 : vector<64x1xf32> to vector<64x32xf32>
    %263 = arith.mulf %262, %57 : vector<64x32xf32>
    %264 = arith.addf %260, %263 : vector<64x32xf32>
    %265 = vector.extract_strided_slice %54 {offsets = [0, 51], sizes = [64, 1], strides = [1, 1]} : vector<64x64xf32> to vector<64x1xf32>
    %266 = vector.broadcast %265 : vector<64x1xf32> to vector<64x32xf32>
    %267 = arith.mulf %266, %58 : vector<64x32xf32>
    %268 = arith.addf %264, %267 : vector<64x32xf32>
    %269 = vector.extract_strided_slice %54 {offsets = [0, 52], sizes = [64, 1], strides = [1, 1]} : vector<64x64xf32> to vector<64x1xf32>
    %270 = vector.broadcast %269 : vector<64x1xf32> to vector<64x32xf32>
    %271 = arith.mulf %270, %59 : vector<64x32xf32>
    %272 = arith.addf %268, %271 : vector<64x32xf32>
    %273 = vector.extract_strided_slice %54 {offsets = [0, 53], sizes = [64, 1], strides = [1, 1]} : vector<64x64xf32> to vector<64x1xf32>
    %274 = vector.broadcast %273 : vector<64x1xf32> to vector<64x32xf32>
    %275 = arith.mulf %274, %60 : vector<64x32xf32>
    %276 = arith.addf %272, %275 : vector<64x32xf32>
    %277 = vector.extract_strided_slice %54 {offsets = [0, 54], sizes = [64, 1], strides = [1, 1]} : vector<64x64xf32> to vector<64x1xf32>
    %278 = vector.broadcast %277 : vector<64x1xf32> to vector<64x32xf32>
    %279 = arith.mulf %278, %61 : vector<64x32xf32>
    %280 = arith.addf %276, %279 : vector<64x32xf32>
    %281 = vector.extract_strided_slice %54 {offsets = [0, 55], sizes = [64, 1], strides = [1, 1]} : vector<64x64xf32> to vector<64x1xf32>
    %282 = vector.broadcast %281 : vector<64x1xf32> to vector<64x32xf32>
    %283 = arith.mulf %282, %62 : vector<64x32xf32>
    %284 = arith.addf %280, %283 : vector<64x32xf32>
    %285 = arith.maximumf %253, %284 : vector<64x32xf32>
    %286 = vector.extract_strided_slice %54 {offsets = [0, 56], sizes = [64, 1], strides = [1, 1]} : vector<64x64xf32> to vector<64x1xf32>
    %287 = vector.broadcast %286 : vector<64x1xf32> to vector<64x32xf32>
    %288 = arith.mulf %287, %55 : vector<64x32xf32>
    %289 = vector.extract_strided_slice %54 {offsets = [0, 57], sizes = [64, 1], strides = [1, 1]} : vector<64x64xf32> to vector<64x1xf32>
    %290 = vector.broadcast %289 : vector<64x1xf32> to vector<64x32xf32>
    %291 = arith.mulf %290, %56 : vector<64x32xf32>
    %292 = arith.addf %288, %291 : vector<64x32xf32>
    %293 = vector.extract_strided_slice %54 {offsets = [0, 58], sizes = [64, 1], strides = [1, 1]} : vector<64x64xf32> to vector<64x1xf32>
    %294 = vector.broadcast %293 : vector<64x1xf32> to vector<64x32xf32>
    %295 = arith.mulf %294, %57 : vector<64x32xf32>
    %296 = arith.addf %292, %295 : vector<64x32xf32>
    %297 = vector.extract_strided_slice %54 {offsets = [0, 59], sizes = [64, 1], strides = [1, 1]} : vector<64x64xf32> to vector<64x1xf32>
    %298 = vector.broadcast %297 : vector<64x1xf32> to vector<64x32xf32>
    %299 = arith.mulf %298, %58 : vector<64x32xf32>
    %300 = arith.addf %296, %299 : vector<64x32xf32>
    %301 = vector.extract_strided_slice %54 {offsets = [0, 60], sizes = [64, 1], strides = [1, 1]} : vector<64x64xf32> to vector<64x1xf32>
    %302 = vector.broadcast %301 : vector<64x1xf32> to vector<64x32xf32>
    %303 = arith.mulf %302, %59 : vector<64x32xf32>
    %304 = arith.addf %300, %303 : vector<64x32xf32>
    %305 = vector.extract_strided_slice %54 {offsets = [0, 61], sizes = [64, 1], strides = [1, 1]} : vector<64x64xf32> to vector<64x1xf32>
    %306 = vector.broadcast %305 : vector<64x1xf32> to vector<64x32xf32>
    %307 = arith.mulf %306, %60 : vector<64x32xf32>
    %308 = arith.addf %304, %307 : vector<64x32xf32>
    %309 = vector.extract_strided_slice %54 {offsets = [0, 62], sizes = [64, 1], strides = [1, 1]} : vector<64x64xf32> to vector<64x1xf32>
    %310 = vector.broadcast %309 : vector<64x1xf32> to vector<64x32xf32>
    %311 = arith.mulf %310, %61 : vector<64x32xf32>
    %312 = arith.addf %308, %311 : vector<64x32xf32>
    %313 = vector.extract_strided_slice %54 {offsets = [0, 63], sizes = [64, 1], strides = [1, 1]} : vector<64x64xf32> to vector<64x1xf32>
    %314 = vector.broadcast %313 : vector<64x1xf32> to vector<64x32xf32>
    %315 = arith.mulf %314, %62 : vector<64x32xf32>
    %316 = arith.addf %312, %315 : vector<64x32xf32>
    %317 = arith.maximumf %285, %316 : vector<64x32xf32>
    %cst_23 = arith.constant 0.000000e+00 : f32
    %318 = vector.broadcast %cst_23 : f32 to vector<64x96xf32>
    %319 = tpu.concatenate %317, %318 in 1 : vector<64x32xf32>, vector<64x96xf32> -> vector<64x128xf32>
    %320 = arith.index_cast %3 : i32 to index
    %c0_24 = arith.constant 0 : index
    %321 = vector.load %arg9[%320, %c0_24] : memref<64x128xf32, #tpu.memory_space<vmem>>, vector<64x128xf32>
    tpu.vector_store %arg9[%320, %c0_24], %319 {strides = array<i32>} : memref<64x128xf32, #tpu.memory_space<vmem>>, vector<64x128xf32>,
    %c1_i32_25 = arith.constant 1 : i32
    return
  }
  func.func @transform_0(%arg0: i32) -> (i32, i32) {
    %c0_i32 = arith.constant 0 : i32
    %c0_i32_0 = arith.constant 0 : i32
    return %arg0, %c0_i32 : i32, i32
  }
  func.func @transform_1(%arg0: i32) -> (i32, i32) {
    %c0_i32 = arith.constant 0 : i32
    %c0_i32_0 = arith.constant 0 : i32
    return %arg0, %c0_i32 : i32, i32
  }
  func.func @transform_2(%arg0: i32) -> (i32, i32) {
    %c0_i32 = arith.constant 0 : i32
    %c0_i32_0 = arith.constant 0 : i32
    return %arg0, %c0_i32 : i32, i32
  }
  func.func @transform_3(%arg0: i32) -> (i32, i32) {
    %c0_i32 = arith.constant 0 : i32
    %c0_i32_0 = arith.constant 0 : i32
    %c0_i32_1 = arith.constant 0 : i32
    return %c0_i32, %c0_i32_0 : i32, i32
  }
  func.func @transform_4(%arg0: i32) -> (i32, i32) {
    %c0_i32 = arith.constant 0 : i32
    %c0_i32_0 = arith.constant 0 : i32
    %c0_i32_1 = arith.constant 0 : i32
    return %c0_i32, %c0_i32_0 : i32, i32
  }
  func.func @transform_5(%arg0: i32) -> (i32, i32) {
    %c0_i32 = arith.constant 0 : i32
    %c0_i32_0 = arith.constant 0 : i32
    %c0_i32_1 = arith.constant 0 : i32
    return %c0_i32, %c0_i32_0 : i32, i32
  }
  func.func @transform_6(%arg0: i32) -> (i32, i32) {
    %c0_i32 = arith.constant 0 : i32
    %c0_i32_0 = arith.constant 0 : i32
    %c0_i32_1 = arith.constant 0 : i32
    return %c0_i32, %c0_i32_0 : i32, i32
  }
  func.func @transform_7(%arg0: i32) -> (i32, i32) {
    %c0_i32 = arith.constant 0 : i32
    %c0_i32_0 = arith.constant 0 : i32
    %c0_i32_1 = arith.constant 0 : i32
    return %c0_i32, %c0_i32_0 : i32, i32
  }
  func.func @transform_8(%arg0: i32) -> (i32, i32) {
    %c0_i32 = arith.constant 0 : i32
    %c0_i32_0 = arith.constant 0 : i32
    return %arg0, %c0_i32 : i32, i32
  }
}

</mosaic_0001>

<bundles_post_ra>
// kernel: tpu_custom_call.1
= control target key start
LH: loop header
LB: loop body
LE: loop exit
PB: predicated region body
PF: predicated region fallthrough
CT: control target
= control target key end

     0   :  { %13 = vsyncpa [#allocation3], 0  ;;  %s10983_s0 = inlined_call_operand.vmem [shape: f32[512,4], index: 0, kind: input, shape index: {}]   ;;  %s10984_s1 = inlined_call_operand.vmem [shape: f32[512,32], index: 1, kind: input, shape index: {}]   ;;  %s10985_s2 = inlined_call_operand.vmem [shape: f32[512,64], index: 2, kind: input, shape index: {}]   ;;  %s10986_s3 = inlined_call_operand.vmem [shape: f32[4,256], index: 3, kind: input, shape index: {}]   ;;  %s10987_s4 = inlined_call_operand.vmem [shape: f32[32,256], index: 4, kind: input, shape index: {}]   ;;  %s10988_s5 = inlined_call_operand.vmem [shape: f32[1,256], index: 5, kind: input, shape index: {}]   ;;  %s10989_s6 = inlined_call_operand.vmem [shape: f32[256,128], index: 6, kind: input, shape index: {}]   ;;  %s10990_s7 = inlined_call_operand.vmem [shape: f32[64,64], index: 7, kind: input, shape index: {}]   ;;  %s10991_s8 = inlined_call_operand.hbm [shape: f32[512,128], index: 8, kind: output, shape index: {}]  }
   0x1   :  { %15 = vsyncpa [#allocation3 + $0x1], 0  ;;  %s6790_s27 = smov 0   ;;  %s6792_s28 = smov 0  }
   0x2   :  { %s6794_s29 = smov 0   ;;  %s6796_s30 = smov 0  }
   0x3 LB: > { %s6811_s9 = sadd.s32 4294967295, %s6674_s30   ;;  %s6039_s10 = sadd.s32 4294967294, %s6674_s30   ;;  %s6674_s30 = sphi %s6796_s30, %s12076_s30   ;;  %s6670_s29 = sphi %s6794_s29, %s12075_s29   ;;  %s6666_s28 = sphi %s6792_s28, %s12074_s28   ;;  %s6662_s27 = sphi %s6790_s27, %s12073_s27  }
   0x4   : > { %s6815_s11 = sadd.s32 1, %s6674_s30   ;;  %s211_s12 = sadd.s32 1, %s6670_s29 }
   0x5   : > { %s208_s13 = ssub.s32 %s6674_s30, %s6815_s11  ;;  %p221_p0 = scmp.ne.s32.totalorder %s6670_s29, %s6666_s28 }
   0x6   : > { %p209_p1 = scmp.eq.s32.totalorder %s208_s13, 0  ;;  %p222_p2 = scmp.eq.s32.totalorder %s6811_s9, 7 }
   0x7   : > { %p227_p3 = scmp.ne.s32.totalorder %s6666_s28, %s6662_s27  ;;  %p228_p4 = scmp.eq.s32.totalorder %s6039_s10, 7 }
   0x8   : > { %s6826_s14 = scalar_select %p209_p1, %s6670_s29, %s211_s12  }
   0x9   : > { %p6828_p5 = por %p222_p2, %p221_p0  ;;  %p6832_p6 = por %p228_p4, %p227_p3 }
   0xa   : > { %p6042_p7 = scmp.ge.s32.totalorder %s6674_s30, 1  ;;  %p288_p8 = scmp.lt.s32.totalorder %s6674_s30, 9 }
   0xc   : > { %p289_p9 = pnand %p6042_p7, %p288_p8 }
   0xe   : > { %292 = sbr.rel (%p289_p9) target bundleno = 6659 (0x1a03), region = 52 }
  0x13   : > { %v382_v0 = vld [vmem:[%s10987_s4 + $0x30] sm:$0xff]  ;;  %v380_v1 = vld [vmem:[%s10987_s4 + $0x20] sm:$0xff]  ;;  %s6044_s21 = sshll.u32 %s6811_s9, 3  ;;  %vm384_vm0 = vcmask 261120   ;;  %vm520_vm1 = vcmask 1043456   ;;  %vm495_vm2 = vcmask 31744  }
  0x14   : > { %421 = vmatpush.msra.mxu0 %v382_v0  ;;  %6106 = vmatpush.msra.mxu1 %v382_v0  ;;  %p333_p10 = scmp.lt.s32.totalorder %s6044_s21, 63  ;;  %v375_v2 = vld [vmem:[%s10986_s3] sm:$0xff]  ;;  %v378_v3 = vld [vmem:[%s10987_s4 + $0x10] sm:$0xff]  ;;  %v383_v12 = vld [vmem:[%s10987_s4 + $0x38] sm:$0xff]  ;;  %vm759_vm3 = vcmask 523264   ;;  %s6676_s24 = smov 64  }
  0x15   : > { %492 = vst [vmem:[#allocation1] ss:$2 sm:$0xff] %v375_v2  ;;  %v376_v4 = vld [vmem:[%s10987_s4] sm:$0xff]  ;;  %v381_v15 = vld [vmem:[%s10987_s4 + $0x28] sm:$0xff]  ;;  %v379_v16 = vld [vmem:[%s10987_s4 + $0x18] sm:$0xff]  ;;  %s6105_s25 = sshll.u32 %s6811_s9, 6 }
  0x16   : > { %422 = vmatpush.msra.mxu0 %v380_v1  ;;  %6107 = vmatpush.msra.mxu1 %v380_v1  ;;  %s12078_s21 = smov (!%p333_p10, %s6044_s21), 63  ;;  %v377_v18 = vld [vmem:[%s10987_s4 + $0x8] sm:$0xff]  ;;  %v660_v27 = vld [vmem:[%s10989_s6 + $0x78] sm:$0xff]  ;;  %v659_v28 = vld [vmem:[%s10989_s6 + $0x70] sm:$0xff]  ;;  %s5949_s13 = scalar_lea.hbm %s10991_s8, %s6105_s25 }
  0x17   : > { %s6854_s12 = sshll.u32 %s12078_s21, 3  ;;  %v676_v29 = vld [vmem:[%s10989_s6 + $0xf8] sm:$0xff]  ;;  %v658_v30 = vld [vmem:[%s10989_s6 + $0x68] sm:$0xff]  ;;  %v657_v31 = vld [vmem:[%s10989_s6 + $0x60] sm:$0xff]  ;;  %s5952_s17 = sshll.u32 %s5949_s13, 4  ;;  %s5953_s17 = int_to_ptr.hbm [resolvable:$true] %s5952_s17 }
  0x18   : > { %423 = vmatpush.msra.mxu0 %v378_v3  ;;  %6108 = vmatpush.msra.mxu1 %v378_v3  ;;  %s6860_s18 = scalar_lea.vmem %s10984_s1, %s6854_s12  ;;  %s6868_s21 = scalar_lea.vmem %s10983_s0, %s6854_s12  ;;  %v656_v32 = vld [vmem:[%s10989_s6 + $0x58] sm:$0xff]  ;;  %v655_v33 = vld [vmem:[%s10989_s6 + $0x50] sm:$0xff]  ;;  %v654_v35 = vld [vmem:[%s10989_s6 + $0x48] sm:$0xff] }
  0x19   : > { %v359_v5 = vld [vmem:[%s6860_s18] sm:$0xff]  ;;  %v361_v6 = vld [vmem:[%s6860_s18 + $0x10] sm:$0xff]  ;;  %v360_v9 = vld [vmem:[%s6860_s18 + $0x8] sm:$0xff]  ;;  %s7251_s20 = scalar_lea.vmem %s10985_s2, %s6854_s12  ;;  %s6698_s12 = smov 32  }
  0x1a   : > { %424 = vmatpush.msra.mxu0 %v376_v4  ;;  %6109 = vmatpush.msra.mxu1 %v376_v4  ;;  %v355_v8 = vld [vmem:[%s6868_s21 + $0x20] sm:$0xff]  ;;  %v362_v10 = vld [vmem:[%s6860_s18 + $0x18] sm:$0xff]  ;;  %v356_v11 = vld [vmem:[%s6868_s21 + $0x28] sm:$0xff]  ;;  %s6626_s19 = sshra.s32 %s5953_s17, 4  ;;  %s6627_s19 = int_to_ptr.hbm [resolvable:$true] %s6626_s19 }
  0x1b   : > { %6050 = vmatmul.msk.f32.vlgmr.msra.gmra.mxu0 %vm384_vm0, %v359_v5  ;;  %6052 = vmatmul.msk.f32.vlgmr.msra.gmra.mxu1 %vm384_vm0, %v361_v6  ;;  %v351_v14 = vld [vmem:[%s6868_s21] sm:$0xff]  ;;  %v357_v19 = vld [vmem:[%s6868_s21 + $0x30] sm:$0xff]  ;;  %v352_v20 = vld [vmem:[%s6868_s21 + $0x8] sm:$0xff]  ;;  %p6633_p0 = scmp.lt.s32.totalorder %s6627_s19, %s10991_s8 }
  0x1c   : > { %v493_v7 = vld.sshfl [vmem:[#allocation1] sm:$0xff pattern:$0x75316420]  ;;  %v494_v13 = vld.sshfl [vmem:[#allocation1 + $0x8] sm:$0xff pattern:$0x75316420]  ;;  %462 = vmatpush.msrb.mxu1 %v383_v12 }
  0x1d   : > { %6110 = vmatpush.msk.msra.mxu2 %vm520_vm1, %v493_v7  ;;  %6066 = vmatpush.msk.msrb.mxu0 %vm520_vm1, %v493_v7  ;;  %v363_v17 = vld [vmem:[%s6860_s18 + $0x20] sm:$0xff]  ;;  %v364_v21 = vld [vmem:[%s6860_s18 + $0x28] sm:$0xff]  ;;  %v358_v22 = vld [vmem:[%s6868_s21 + $0x38] sm:$0xff] }
  0x1e   : > { %6071 = vmatmul.msk.f32.vlgmr.msra.gmra.mxu2 %vm495_vm2, %v355_v8  ;;  %6075 = vmatpush.msk.msra.mxu3 %vm520_vm1, %v494_v13  ;;  %v353_v23 = vld [vmem:[%s6868_s21 + $0x10] sm:$0xff]  ;;  %v354_v25 = vld [vmem:[%s6868_s21 + $0x18] sm:$0xff]  ;;  %v674_v36 = vld [vmem:[%s10989_s6 + $0xe8] sm:$0xff]  ;;  %s6699_s21 = smov 96  }
  0x1f   : > { %6076 = vmatmul.msk.f32.vlgmr.msra.gmra.mxu3 %vm495_vm2, %v351_v14  ;;  %463 = vmatpush.msrb.mxu1 %v381_v15  ;;  %v365_v24 = vld [vmem:[%s6860_s18 + $0x30] sm:$0xff]  ;;  %v366_v26 = vld [vmem:[%s6860_s18 + $0x38] sm:$0xff]  ;;  %v653_v37 = vld [vmem:[%s10989_s6 + $0x40] sm:$0xff] }
  0x20   : > { %677 = vmatpush.msrb.mxu2 %v660_v27  ;;  %6111 = vmatpush.msrb.mxu3 %v676_v29  ;;  %v675_v34 = vld [vmem:[%s10989_s6 + $0xf0] sm:$0xff]  ;;  %v652_v38 = vld [vmem:[%s10989_s6 + $0x38] sm:$0xff]  ;;  %v673_v40 = vld [vmem:[%s10989_s6 + $0xe0] sm:$0xff] }
  0x21   : > { %464 = vmatpush.msrb.mxu1 %v379_v16  ;;  %v651_v39 = vld [vmem:[%s10989_s6 + $0x30] sm:$0xff]  ;;  %v650_v41 = vld [vmem:[%s10989_s6 + $0x28] sm:$0xff]  ;;  %v672_v42 = vld [vmem:[%s10989_s6 + $0xd8] sm:$0xff] }
  0x22   : > { %678 = vmatpush.msrb.mxu2 %v659_v28  ;;  %6112 = vmatpush.msrb.mxu3 %v675_v34  ;;  %v649_v43 = vld [vmem:[%s10989_s6 + $0x20] sm:$0xff]  ;;  %v648_v44 = vld [vmem:[%s10989_s6 + $0x18] sm:$0xff]  ;;  %v647_v45 = vld [vmem:[%s10989_s6 + $0x10] sm:$0xff] }
  0x23   : > { %6051 = vmatmul.msk.f32.gmra.mxu0 %vm384_vm0, %v360_v9  ;;  %6053 = vmatmul.msk.f32.gmra.mxu1 %vm384_vm0, %v362_v10  ;;  %v646_v46 = vld [vmem:[%s10989_s6 + $0x8] sm:$0xff]  ;;  %v671_v47 = vld [vmem:[%s10989_s6 + $0xd0] sm:$0xff]  ;;  %v645_v48 = vld [vmem:[%s10989_s6] sm:$0xff] }
  0x24   : > { %465 = vmatpush.msrb.mxu1 %v377_v18  ;;  %679 = vmatpush.msrb.mxu2 %v658_v30  ;;  %v670_v49 = vld [vmem:[%s10989_s6 + $0xc8] sm:$0xff]  ;;  %v669_v51 = vld [vmem:[%s10989_s6 + $0xc0] sm:$0xff]  ;;  %v668_v52 = vld [vmem:[%s10989_s6 + $0xb8] sm:$0xff] }
  0x25   : > { %6113 = vmatpush.msrb.mxu3 %v674_v36  ;;  %v667_v55 = vld [vmem:[%s10989_s6 + $0xb0] sm:$0xff]  ;;  %v666_v56 = vld [vmem:[%s10989_s6 + $0xa8] sm:$0xff]  ;;  %v607_v58 = vld [vmem:[%s10988_s5] sm:$0x3] }
  0x26   : > { %6072 = vmatmul.msk.f32.gmra.mxu2 %vm495_vm2, %v356_v11  ;;  %v7015_v59 = vperm.slane %v607_v58, 0  ;;  %v665_v61 = vld [vmem:[%s10989_s6 + $0xa0] sm:$0xff]  ;;  %v664_v62 = vld [vmem:[%s10989_s6 + $0x98] sm:$0xff]  ;;  %v663_v4 = vld [vmem:[%s10989_s6 + $0x90] sm:$0xff] }
  0x27   : > { %6077 = vmatmul.msk.f32.gmra.mxu3 %vm495_vm2, %v352_v20  ;;  %680 = vmatpush.msrb.mxu2 %v657_v31 }
  0x28   : > { %6114 = vmatpush.msrb.mxu3 %v673_v40 }
  0x29   : > { %681 = vmatpush.msrb.mxu2 %v656_v32 }
  0x2a   : > { %6115 = vmatpush.msrb.mxu3 %v672_v42 }
  0x2b   : > { %6067 = vmatmul.msk.f32.vlgmr.msrb.gmra.mxu0 %vm495_vm2, %v351_v14  ;;  %6054 = vmatmul.msk.f32.gmra.mxu1 %vm384_vm0, %v363_v17 }
  0x2c   : > { %682 = vmatpush.msrb.mxu2 %v655_v33  ;;  %6116 = vmatpush.msrb.mxu3 %v671_v47 }
  0x2e   : > { %6073 = vmatmul.msk.f32.gmra.mxu2 %vm495_vm2, %v357_v19  ;;  %6117 = vmatpush.msrb.mxu3 %v670_v49 }
  0x2f   : > { %6078 = vmatmul.msk.f32.gmra.mxu3 %vm495_vm2, %v353_v23  ;;  %683 = vmatpush.msrb.mxu2 %v654_v35 }
  0x30   : > { %6118 = vmatpush.msrb.mxu3 %v669_v51 }
  0x31   : > { %684 = vmatpush.msrb.mxu2 %v653_v37 }
  0x32   : > { %6119 = vmatpush.msrb.mxu3 %v668_v52 }
  0x33   : > { %6068 = vmatmul.msk.f32.gmra.mxu0 %vm495_vm2, %v352_v20  ;;  %6055 = vmatmul.msk.f32.gmra.mxu1 %vm384_vm0, %v364_v21 }
  0x34   : > { %685 = vmatpush.msrb.mxu2 %v652_v38  ;;  %6120 = vmatpush.msrb.mxu3 %v667_v55 }
  0x36   : > { %6074 = vmatmul.msk.f32.gmra.mxu2 %vm495_vm2, %v358_v22  ;;  %6121 = vmatpush.msrb.mxu3 %v666_v56 }
  0x37   : > { %6079 = vmatmul.msk.f32.gmra.mxu3 %vm495_vm2, %v354_v25  ;;  %686 = vmatpush.msrb.mxu2 %v651_v39 }
  0x38   : > { %6122 = vmatpush.msrb.mxu3 %v665_v61 }
  0x39   : > { %687 = vmatpush.msrb.mxu2 %v650_v41 }
  0x3a   : > { %6123 = vmatpush.msrb.mxu3 %v664_v62 }
  0x3b   : > { %6069 = vmatmul.msk.f32.gmra.mxu0 %vm495_vm2, %v353_v23  ;;  %6056 = vmatmul.msk.f32.gmra.mxu1 %vm384_vm0, %v365_v24 }
  0x3c   : > { %688 = vmatpush.msrb.mxu2 %v649_v43  ;;  %6124 = vmatpush.msrb.mxu3 %v663_v4 }
  0x3e   : > { %689 = vmatpush.msrb.mxu2 %v648_v44 }
  0x3f   : > { %6080 = vmatmul.msk.f32.gmra.mxu3 %vm495_vm2, %v355_v8 }
  0x40   : > { %690 = vmatpush.msrb.mxu2 %v647_v45 }
  0x42   : > { %691 = vmatpush.msrb.mxu2 %v646_v46 }
  0x43   : > { %6070 = vmatmul.msk.f32.gmra.mxu0 %vm495_vm2, %v354_v25  ;;  %6057 = vmatmul.msk.f32.gmra.mxu1 %vm384_vm0, %v366_v26 }
  0x44   : > { %692 = vmatpush.msrb.mxu2 %v645_v48 }
  0x46   : > { %718 = vmatpush.msra.mxu2 %v676_v29 }
  0x47   : > { %6081 = vmatmul.msk.f32.gmra.mxu3 %vm495_vm2, %v356_v11  ;;  %v661_v11 = vld [vmem:[%s10989_s6 + $0x80] sm:$0xff] }
  0x48   : > { %719 = vmatpush.msra.mxu2 %v675_v34  ;;  %v610_v34 = vperm.slane %v607_v58, 1 }
  0x4a   : > { %720 = vmatpush.msra.mxu2 %v674_v36 }
  0x4b   : > { %6058 = vmatmul.msk.f32.vlgmr.msrb.gmra.mxu1 %vm384_vm0, %v359_v5  ;;  %v662_v5 = vld [vmem:[%s10989_s6 + $0x88] sm:$0xff] }
  0x4c   : > { %721 = vmatpush.msra.mxu2 %v673_v40  ;;  %6125 = vmatpush.msrb.mxu3 %v662_v5 }
  0x4e   : > { %722 = vmatpush.msra.mxu2 %v672_v42  ;;  %6126 = vmatpush.msrb.mxu3 %v661_v11 }
  0x4f   : > { %6082 = vmatmul.msk.f32.gmra.mxu3 %vm495_vm2, %v357_v19 }
  0x50   : > { %723 = vmatpush.msra.mxu2 %v671_v47 }
  0x52   : > { %724 = vmatpush.msra.mxu2 %v670_v49 }
  0x53   : > { %6059 = vmatmul.msk.f32.gmra.mxu1 %vm384_vm0, %v360_v9 }
  0x54   : > { %725 = vmatpush.msra.mxu2 %v669_v51 }
  0x56   : > { %726 = vmatpush.msra.mxu2 %v668_v52 }
  0x57   : > { %6083 = vmatmul.msk.f32.gmra.mxu3 %vm495_vm2, %v358_v22 }
  0x58   : > { %727 = vmatpush.msra.mxu2 %v667_v55 }
  0x5a   : > { %728 = vmatpush.msra.mxu2 %v666_v56 }
  0x5b   : > { %6060 = vmatmul.msk.f32.gmra.mxu1 %vm384_vm0, %v361_v6 }
  0x5c   : > { %729 = vmatpush.msra.mxu2 %v665_v61 }
  0x5e   : > { %730 = vmatpush.msra.mxu2 %v664_v62 }
  0x60   : > { %731 = vmatpush.msra.mxu2 %v663_v4 }
  0x62   : > { %732 = vmatpush.msra.mxu2 %v662_v5 }
  0x63   : > { %6061 = vmatmul.msk.f32.gmra.mxu1 %vm384_vm0, %v362_v10 }
  0x64   : > { %733 = vmatpush.msra.mxu2 %v661_v11 }
  0x6b   : > { %6062 = vmatmul.msk.f32.gmra.mxu1 %vm384_vm0, %v363_v17 }
  0x73   : > { %6063 = vmatmul.msk.f32.gmra.mxu1 %vm384_vm0, %v364_v21 }
  0x7b   : > { %6064 = vmatmul.msk.f32.gmra.mxu1 %vm384_vm0, %v365_v24 }
  0x83   : > { %6065 = vmatmul.msk.f32.gmra.mxu1 %vm384_vm0, %v366_v26 }
  0x98   : > { %v426_v50 = vpop.f32.mrf.mxu0  ;;  %v432_v53 = vpop.f32.mrf.mxu1 }
  0xa0   : > { %v429_v54 = vpop.f32.mrf.mxu0  ;;  %v435_v57 = vpop.f32.mrf.mxu1 }
  0xa1   : > { %v554_v16 = vpop.f32.mrf.mxu2 }
  0xa2   : > { %v583_v15 = vpop.f32.mrf.mxu3 }
  0xa8   : > { %v542_v60 = vpop.f32.mrf.mxu0  ;;  %v438_v0 = vpop.f32.mrf.mxu1 }
  0xa9   : > { %v543_v63 = vadd.f32 %v542_v60, %v426_v50  ;;  %v555_v22 = vadd.f32 %v554_v16, %v438_v0  ;;  %v557_v25 = vpop.f32.mrf.mxu2 }
  0xaa   : > { %v586_v24 = vpop.f32.mrf.mxu3 }
  0xab   : > { %v613_v1 = vadd.f32 %v7015_v59, %v543_v63  ;;  %v621_v26 = vadd.f32 %v7015_v59, %v555_v22 }
  0xad   : > { %v7024_v2 = vmax.f32 %v613_v1, 0.0  ;;  %v7049_v28 = vmax.f32 %v621_v26, 0.0 }
  0xaf   : > { %11080 = vst [vmem:[#allocation5_spill] sm:$0xff] %v7024_v2  ;;  %693 = vmatmul.f32.vlgmr.msrb.gmra.mxu2 %v7024_v2 }
  0xb0   : > { %v545_v3 = vpop.f32.mrf.mxu0  ;;  %v441_v7 = vpop.f32.mrf.mxu1  ;;  %11083 = vst [vmem:[#allocation8_spill] sm:$0xff] %v7049_v28 }
  0xb1   : > { %v546_v6 = vadd.f32 %v545_v3, %v429_v54  ;;  %v558_v29 = vadd.f32 %v557_v25, %v441_v7  ;;  %v560_v31 = vpop.f32.mrf.mxu2 }
  0xb2   : > { %v589_v30 = vpop.f32.mrf.mxu3 }
  0xb3   : > { %v615_v8 = vadd.f32 %v7015_v59, %v546_v6  ;;  %v623_v32 = vadd.f32 %v7015_v59, %v558_v29 }
  0xb5   : > { %v7034_v9 = vmax.f32 %v615_v8, 0.0  ;;  %v7053_v36 = vmax.f32 %v623_v32, 0.0 }
  0xb7   : > { %11081 = vst [vmem:[#allocation6_spill] sm:$0xff] %v7034_v9  ;;  %696 = vmatmul.f32.gmra.mxu2 %v7034_v9 }
  0xb8   : > { %v548_v10 = vpop.f32.mrf.mxu0  ;;  %v444_v13 = vpop.f32.mrf.mxu1  ;;  %11084 = vst [vmem:[#allocation9_spill] sm:$0xff] %v7053_v36 }
  0xb9   : > { %v549_v12 = vadd.f32 %v548_v10, %v432_v53  ;;  %v561_v37 = vadd.f32 %v560_v31, %v444_v13  ;;  %v563_v42 = vpop.f32.mrf.mxu2 }
  0xba   : > { %v592_v41 = vpop.f32.mrf.mxu3 }
  0xbb   : > { %v617_v14 = vadd.f32 %v7015_v59, %v549_v12  ;;  %v625_v40 = vadd.f32 %v7015_v59, %v561_v37 }
  0xbd   : > { %v7041_v17 = vmax.f32 %v617_v14, 0.0  ;;  %v7060_v45 = vmax.f32 %v625_v40, 0.0 }
  0xbf   : > { %699 = vmatmul.f32.gmra.mxu2 %v7041_v17  ;;  %11085 = vst [vmem:[#allocation10_spill] sm:$0xff] %v7060_v45 }
  0xc0   : > { %v551_v18 = vpop.f32.mrf.mxu0  ;;  %v447_v20 = vpop.f32.mrf.mxu1 }
  0xc1   : > { %v552_v19 = vadd.f32 %v551_v18, %v435_v57  ;;  %v564_v46 = vadd.f32 %v563_v42, %v447_v20 }
  0xc2   : > { %v595_v51 = vpop.f32.mrf.mxu3 }
  0xc3   : > { %v619_v21 = vadd.f32 %v7015_v59, %v552_v19  ;;  %v627_v49 = vadd.f32 %v7015_v59, %v564_v46 }
  0xc5   : > { %v7045_v23 = vmax.f32 %v619_v21, 0.0  ;;  %v7067_v53 = vmax.f32 %v627_v49, 0.0 }
  0xc7   : > { %11082 = vst [vmem:[#allocation7_spill] sm:$0xff] %v7045_v23  ;;  %702 = vmatmul.f32.gmra.mxu2 %v7045_v23 }
  0xc8   : > { %v467_v27 = vpop.f32.mrf.mxu1  ;;  %11086 = vst [vmem:[#allocation11_spill] sm:$0xff] %v7067_v53 }
  0xc9   : > { %v584_v54 = vadd.f32 %v583_v15, %v467_v27 }
  0xca   : > { %v598_v59 = vpop.f32.mrf.mxu3 }
  0xcb   : > { %v614_v57 = vadd.f32 %v610_v34, %v584_v54 }
  0xcd   : > { %v7073_v61 = vmax.f32 %v614_v57, 0.0 }
  0xcf   : > { %705 = vmatmul.f32.gmra.mxu2 %v7049_v28  ;;  %11088 = vst [vmem:[#allocation13_spill] sm:$0xff] %v7073_v61 }
  0xd0   : > { %v470_v33 = vpop.f32.mrf.mxu1 }
  0xd1   : > { %v587_v35 = vadd.f32 %v586_v24, %v470_v33 }
  0xd2   : > { %v601_v4 = vpop.f32.mrf.mxu3 }
  0xd3   : > { %v616_v38 = vadd.f32 %v610_v34, %v587_v35 }
  0xd5   : > { %v7056_v39 = vmax.f32 %v616_v38, 0.0 }
  0xd7   : > { %708 = vmatmul.f32.gmra.mxu2 %v7053_v36  ;;  %737 = vmatmul.f32.vlgmr.msrb.gmra.mxu3 %v7056_v39 }
  0xd8   : > { %v473_v43 = vpop.f32.mrf.mxu1 }
  0xd9   : > { %v590_v44 = vadd.f32 %v589_v30, %v473_v43 }
  0xda   : > { %v604_v11 = vpop.f32.mrf.mxu3 }
  0xdb   : > { %v618_v47 = vadd.f32 %v610_v34, %v590_v44 }
  0xdd   : > { %v7063_v48 = vmax.f32 %v618_v47, 0.0 }
  0xdf   : > { %711 = vmatmul.f32.gmra.mxu2 %v7060_v45  ;;  %740 = vmatmul.f32.gmra.mxu3 %v7063_v48 }
  0xe0   : > { %v476_v50 = vpop.f32.mrf.mxu1 }
  0xe1   : > { %v593_v52 = vadd.f32 %v592_v41, %v476_v50 }
  0xe3   : > { %v620_v55 = vadd.f32 %v610_v34, %v593_v52 }
  0xe5   : > { %v7070_v56 = vmax.f32 %v620_v55, 0.0 }
  0xe7   : > { %714 = vmatmul.f32.gmra.mxu2 %v7067_v53  ;;  %11087 = vst [vmem:[#allocation12_spill] sm:$0xff] %v7070_v56  ;;  %743 = vmatmul.f32.gmra.mxu3 %v7070_v56 }
  0xe8   : > { %v479_v58 = vpop.f32.mrf.mxu1 }
  0xe9   : > { %v596_v60 = vadd.f32 %v595_v51, %v479_v58 }
  0xeb   : > { %v622_v62 = vadd.f32 %v610_v34, %v596_v60 }
  0xed   : > { %v7076_v63 = vmax.f32 %v622_v62, 0.0 }
  0xef   : > { %734 = vmatmul.f32.vlgmr.msra.gmra.mxu2 %v7073_v61  ;;  %11089 = vst [vmem:[#allocation14_spill] sm:$0xff] %v7076_v63  ;;  %746 = vmatmul.f32.gmra.mxu3 %v7076_v63 }
  0xf0   : > { %v482_v0 = vpop.f32.mrf.mxu1 }
  0xf1   : > { %v599_v1 = vadd.f32 %v598_v59, %v482_v0 }
  0xf3   : > { %v624_v3 = vadd.f32 %v610_v34, %v599_v1 }
  0xf5   : > { %v7079_v5 = vmax.f32 %v624_v3, 0.0 }
  0xf7   : > { %11090 = vst [vmem:[#allocation15_spill] sm:$0xff] %v7079_v5  ;;  %749 = vmatmul.f32.gmra.mxu3 %v7079_v5 }
  0xf8   : > { %v485_v6 = vpop.f32.mrf.mxu1 }
  0xf9   : > { %v602_v7 = vadd.f32 %v601_v4, %v485_v6 }
  0xfb   : > { %v626_v8 = vadd.f32 %v610_v34, %v602_v7 }
  0xfd   : > { %v7082_v10 = vmax.f32 %v626_v8, 0.0 }
  0xff   : > { %11091 = vst [vmem:[#allocation16_spill] sm:$0xff] %v7082_v10  ;;  %752 = vmatmul.f32.gmra.mxu3 %v7082_v10 }
 0x100   : > { %v488_v12 = vpop.f32.mrf.mxu1 }
 0x101   : > { %v605_v13 = vadd.f32 %v604_v11, %v488_v12 }
 0x103   : > { %v628_v14 = vadd.f32 %v610_v34, %v605_v13 }
 0x105   : > { %v7085_v15 = vmax.f32 %v628_v14, 0.0 }
 0x107   : > { %11092 = vst [vmem:[#allocation17_spill] sm:$0xff] %v7085_v15  ;;  %755 = vmatmul.f32.gmra.mxu3 %v7085_v15 }
 0x132   : > { %v694_v16 = vpop.f32.mrf.mxu2 }
 0x13a   : > { %v697_v18 = vpop.f32.mrf.mxu2 }
 0x142   : > { %v700_v19 = vpop.f32.mrf.mxu2 }
 0x14a   : > { %v703_v20 = vpop.f32.mrf.mxu2 }
 0x152   : > { %v706_v25 = vpop.f32.mrf.mxu2 }
 0x15a   : > { %v738_v21 = vpop.f32.mrf.mxu3  ;;  %v709_v33 = vpop.f32.mrf.mxu2 }
 0x15b   : > { %v7088_v22 = vadd.f32 %v738_v21, %v697_v18 }
 0x15d   : > { %842 = vrot.lane.b32.xlu2 %v7088_v22, %s6676_s24  ;;  %v763_v24 = vsel %vm759_vm3, %v7088_v22, -inf  ;;  %v787_v29 = vsel %vm759_vm3, %v7088_v22, inf }
 0x15e   : > { %764 = vmax.xlane.f32.xlu0 %v763_v24 }
 0x162   : > { %v741_v26 = vpop.f32.mrf.mxu3  ;;  %v712_v37 = vpop.f32.mrf.mxu2 }
 0x163   : > { %v7094_v27 = vadd.f32 %v741_v26, %v700_v19 }
 0x165   : > { %v766_v30 = vsel %vm759_vm3, %v7094_v27, -inf  ;;  %v790_v34 = vsel %vm759_vm3, %v7094_v27, inf }
 0x166   : > { %788 = vmin.xlane.f32.xlu0 %v787_v29  ;;  %767 = vmax.xlane.f32.xlu1 %v766_v30 }
 0x16a   : > { %v744_v31 = vpop.f32.mrf.mxu3  ;;  %v715_v38 = vpop.f32.mrf.mxu2 }
 0x16b   : > { %v7100_v32 = vadd.f32 %v744_v31, %v703_v20 }
 0x16d   : > { %846 = vrot.lane.b32.xlu2 %v7100_v32, %s6676_s24  ;;  %v769_v35 = vsel %vm759_vm3, %v7100_v32, -inf  ;;  %v793_v44 = vsel %vm759_vm3, %v7100_v32, inf }
 0x16e   : > { %791 = vmin.xlane.f32.xlu1 %v790_v34 }
 0x172   : > { %v735_v40 = vpop.f32.mrf.mxu2  ;;  %v747_v42 = vpop.f32.mrf.mxu3 }
 0x173   : > { %v7110_v41 = vadd.f32 %v735_v40, %v694_v16  ;;  %v7114_v43 = vadd.f32 %v747_v42, %v706_v25 }
 0x175   : > { %v772_v46 = vsel %vm759_vm3, %v7114_v43, -inf  ;;  %v760_v47 = vsel %vm759_vm3, %v7110_v41, -inf  ;;  %v784_v49 = vsel %vm759_vm3, %v7110_v41, inf  ;;  %v796_v52 = vsel %vm759_vm3, %v7114_v43, inf }
 0x176   : > { %770 = vmax.xlane.f32.xlu1 %v769_v35 }
 0x17a   : > { %844 = vrot.lane.b32.xlu0 %v7094_v27, %s6676_s24  ;;  %v750_v50 = vpop.f32.mrf.mxu3 }
 0x17b   : > { %v7126_v51 = vadd.f32 %v750_v50, %v709_v33 }
 0x17d   : > { %v775_v54 = vsel %vm759_vm3, %v7126_v51, -inf  ;;  %v799_v55 = vsel %vm759_vm3, %v7126_v51, inf }
 0x182   : > { %v753_v57 = vpop.f32.mrf.mxu3 }
 0x183   : > { %v7136_v58 = vadd.f32 %v753_v57, %v712_v37 }
 0x185   : > { %v778_v62 = vsel %vm759_vm3, %v7136_v58, -inf  ;;  %v802_v0 = vsel %vm759_vm3, %v7136_v58, inf }
 0x18a   : > { %v756_v60 = vpop.f32.mrf.mxu3 }
 0x18b   : > { %v7140_v59 = vadd.f32 %v756_v60, %v715_v38 }
 0x18d   : > { %v805_v1 = vsel %vm759_vm3, %v7140_v59, inf  ;;  %v781_v14 = vsel %vm759_vm3, %v7140_v59, -inf }
 0x18f   : > { %840 = vrot.lane.b32.xlu1 %v7110_v41, %s6676_s24 }
 0x196   : > { %794 = vmin.xlane.f32.xlu2 %v793_v44 }
 0x197   : > { %848 = vrot.lane.b32.xlu1 %v7114_v43, %s6676_s24 }
 0x19e   : > { %773 = vmax.xlane.f32.xlu2 %v772_v46 }
 0x1a4   : > { %761 = vmax.xlane.f32.xlu0 %v760_v47 }
 0x1a6   : > { %785 = vmin.xlane.f32.xlu2 %v784_v49 }
 0x1ac   : > { %797 = vmin.xlane.f32.xlu0 %v796_v52 }
 0x1ae   : > { %776 = vmax.xlane.f32.xlu2 %v775_v54 }
 0x1b7   : > { %v7150_v6 = vpop.permute.xlu2 %842 }
 0x1c0   : > { %850 = vrot.lane.b32.xlu0 %v7126_v51, %s6676_s24 }
 0x1c1   : > { %800 = vmin.xlane.f32.xlu1 %v799_v55 }
 0x1c6   : > { %852 = vrot.lane.b32.xlu2 %v7136_v58, %s6676_s24 }
 0x1c7   : > { %v7152_v11 = vpop.permute.xlu2 %846 }
 0x1d1   : > { %v765_v4 = vpop.xlane.xlu0 %764 }
 0x1d2   : > { %v809_v13 = vmul.f32 %v765_v4, %v7088_v22 }
 0x1d9   : > { %v768_v3 = vpop.xlane.xlu1 %767  ;;  %v789_v8 = vpop.xlane.xlu0 %788 }
 0x1da   : > { %854 = vrot.lane.b32.xlu1 %v7140_v59, %s6676_s24  ;;  %v817_v12 = vmul.f32 %v789_v8, %v7088_v22  ;;  %v810_v31 = vmul.f32 %v768_v3, %v7094_v27  ;;  %v934_v8 = vld [vmem:[%s10990_s7 + $0x30] sm:$0xff] }
 0x1dc   : > { %v825_v16 = vmax.f32 %v809_v13, %v817_v12  ;;  %v933_v13 = vld [vmem:[%s10990_s7 + $0x28] sm:$0xff] }
 0x1e1   : > { %v792_v7 = vpop.xlane.xlu1 %791 }
 0x1e2   : > { %v818_v29 = vmul.f32 %v792_v7, %v7094_v27 }
 0x1e4   : > { %v826_v37 = vmax.f32 %v810_v31, %v818_v29 }
 0x1e9   : > { %v771_v18 = vpop.xlane.xlu1 %770 }
 0x1ea   : > { %779 = vmax.xlane.f32.xlu0 %v778_v62  ;;  %v811_v20 = vmul.f32 %v771_v18, %v7100_v32 }
 0x1ec   : > { %v7162_v25 = vpop.permute.xlu0 %844 }
 0x1ef   : > { %803 = vmin.xlane.f32.xlu2 %v802_v0  ;;  %v935_v0 = vld [vmem:[%s10990_s7 + $0x38] sm:$0xff] }
 0x1f0   : > { %968 = vmatpush.msra.mxu0 %v935_v0 }
 0x1f2   : > { %806 = vmin.xlane.f32.xlu0 %v805_v1  ;;  %969 = vmatpush.msra.mxu0 %v934_v8 }
 0x1f4   : > { %970 = vmatpush.msra.mxu0 %v933_v13 }
 0x201   : > { %v841_v46 = vpop.permute.xlu1 %840 }
 0x204   : > { %782 = vmax.xlane.f32.xlu1 %v781_v14  ;;  %v932_v14 = vld [vmem:[%s10990_s7 + $0x20] sm:$0xff] }
 0x205   : > { %971 = vmatpush.msra.mxu0 %v932_v14 }
 0x207   : > { %882 = vrot.lane.b32.xlu2 %v825_v16, %s6676_s24  ;;  %v931_v16 = vld [vmem:[%s10990_s7 + $0x18] sm:$0xff] }
 0x208   : > { %972 = vmatpush.msra.mxu0 %v931_v16 }
 0x209   : > { %v795_v19 = vpop.xlane.xlu2 %794  ;;  %v7173_v49 = vpop.permute.xlu1 %848 }
 0x20a   : > { %v819_v21 = vmul.f32 %v795_v19, %v7100_v32  ;;  %v930_v19 = vld [vmem:[%s10990_s7 + $0x10] sm:$0xff] }
 0x20b   : > { %973 = vmatpush.msra.mxu0 %v930_v19 }
 0x20c   : > { %v827_v24 = vmax.f32 %v811_v20, %v819_v21  ;;  %v929_v21 = vld [vmem:[%s10990_s7 + $0x8] sm:$0xff] }
 0x20d   : > { %974 = vmatpush.msra.mxu0 %v929_v21 }
 0x20e   : > { %886 = vrot.lane.b32.xlu0 %v827_v24, %s6676_s24  ;;  %v928_v24 = vld [vmem:[%s10990_s7] sm:$0xff] }
 0x20f   : > { %975 = vmatpush.msra.mxu0 %v928_v24 }
 0x211   : > { %v774_v26 = vpop.xlane.xlu2 %773 }
 0x212   : > { %v812_v42 = vmul.f32 %v774_v26, %v7114_v43 }
 0x217   : > { %v762_v30 = vpop.xlane.xlu0 %761 }
 0x218   : > { %v808_v34 = vmul.f32 %v762_v30, %v7110_v41 }
 0x219   : > { %v786_v33 = vpop.xlane.xlu2 %785 }
 0x21a   : > { %v816_v35 = vmul.f32 %v786_v33, %v7110_v41 }
 0x21c   : > { %v824_v38 = vmax.f32 %v808_v34, %v816_v35  ;;  %v864_v34 = vmul.f32 %v841_v46, %v7110_v41 }
 0x21d   : > { %884 = vrot.lane.b32.xlu1 %v826_v37, %s6676_s24 }
 0x21e   : > { %880 = vrot.lane.b32.xlu0 %v824_v38, %s6676_s24 }
 0x21f   : > { %v798_v40 = vpop.xlane.xlu0 %797 }
 0x220   : > { %v820_v44 = vmul.f32 %v798_v40, %v7114_v43  ;;  %v865_v40 = vmul.f32 %v7150_v6, %v7088_v22  ;;  %v867_v22 = vmul.f32 %v7152_v11, %v7100_v32 }
 0x221   : > { %v777_v50 = vpop.xlane.xlu2 %776 }
 0x222   : > { %v828_v47 = vmax.f32 %v812_v42, %v820_v44  ;;  %v813_v54 = vmul.f32 %v777_v50, %v7126_v51 }
 0x224   : > { %888 = vrot.lane.b32.xlu2 %v828_v47, %s6676_s24 }
 0x229   : > { %v7180_v62 = vpop.permute.xlu2 %852 }
 0x22a   : > { %v870_v14 = vmul.f32 %v7180_v62, %v7136_v58 }
 0x232   : > { %v7178_v60 = vpop.permute.xlu0 %850 }
 0x234   : > { %v801_v52 = vpop.xlane.xlu1 %800 }
 0x235   : > { %v821_v55 = vmul.f32 %v801_v52, %v7126_v51 }
 0x237   : > { %v829_v57 = vmax.f32 %v813_v54, %v821_v55  ;;  %v866_v54 = vmul.f32 %v7162_v25, %v7094_v27  ;;  %v868_v27 = vmul.f32 %v7173_v49, %v7114_v43 }
 0x239   : > { %890 = vrot.lane.b32.xlu1 %v829_v57, %s6676_s24 }
 0x24c   : > { %v7200_v18 = vpop.permute.xlu1 %854 }
 0x24d   : > { %v871_v24 = vmul.f32 %v7200_v18, %v7140_v59 }
 0x25d   : > { %v780_v1 = vpop.xlane.xlu0 %779 }
 0x25e   : > { %v814_v4 = vmul.f32 %v780_v1, %v7136_v58 }
 0x262   : > { %v804_v3 = vpop.xlane.xlu2 %803 }
 0x263   : > { %v822_v7 = vmul.f32 %v804_v3, %v7136_v58  ;;  %v371_v58 = vld [vmem:[%s7251_s20 + $0x20] sm:$0xff] }
 0x264   : > { %vm1088_vm6 = vcmp.eq.f32.partialorder %v371_v58, inf  ;;  %vm1090_vm7 = vcmp.eq.f32.partialorder %v371_v58, 0.0 }
 0x265   : > { %v830_v12 = vmax.f32 %v814_v4, %v822_v7  ;;  %v807_v20 = vpop.xlane.xlu0 %806  ;;  %v869_v4 = vmul.f32 %v7178_v60, %v7126_v51  ;;  %v367_v51 = vld [vmem:[%s7251_s20] sm:$0xff] }
 0x266   : > { %v823_v29 = vmul.f32 %v807_v20, %v7140_v59  ;;  %vm1040_vm4 = vcmp.eq.f32.partialorder %v367_v51, inf  ;;  %vm1042_vm5 = vcmp.eq.f32.partialorder %v367_v51, 0.0 }
 0x267   : > { %892 = vrot.lane.b32.xlu0 %v830_v12, %s6676_s24 }
 0x26a   : > { %v883_v38 = vpop.permute.xlu2 %882 }
 0x26b   : > { %v905_v44 = vsub.f32 %v865_v40, %v883_v38 }
 0x26d   : > { %v914_v47 = vmul.f32 1.442695, %v905_v44  ;;  %v368_v44 = vld [vmem:[%s7251_s20 + $0x8] sm:$0xff] }
 0x26e   : > { %vm1052_vm8 = vcmp.eq.f32.partialorder %v368_v44, inf  ;;  %vm1054_vm11 = vcmp.eq.f32.partialorder %v368_v44, 0.0 }
 0x277   : > { %v783_v26 = vpop.xlane.xlu1 %782 }
 0x278   : > { %v815_v30 = vmul.f32 %v783_v26, %v7140_v59 }
 0x27a   : > { %v831_v31 = vmax.f32 %v815_v30, %v823_v29 }
 0x27c   : > { %894 = vrot.lane.b32.xlu2 %v831_v31, %s6676_s24 }
 0x27e   : > { %v889_v0 = vpop.permute.xlu2 %888 }
 0x27f   : > { %v908_v25 = vsub.f32 %v868_v27, %v889_v0 }
 0x280   : > { %v887_v33 = vpop.permute.xlu0 %886 }
 0x281   : > { %v907_v6 = vsub.f32 %v867_v22, %v887_v33  ;;  %v920_v3 = vmul.f32 1.442695, %v908_v25 }
 0x283   : > { %v918_v57 = vmul.f32 1.442695, %v907_v6 }
 0x28f   : > { %v885_v50 = vpop.permute.xlu1 %884 }
 0x290   : > { %v881_v35 = vpop.permute.xlu0 %880  ;;  %v906_v41 = vsub.f32 %v866_v54, %v885_v50 }
 0x291   : > { %v904_v37 = vsub.f32 %v864_v34, %v881_v35  ;;  %v1043_v35 = vand.u32 2147483648, %v367_v51 }
 0x292   : > { %v916_v46 = vmul.f32 1.442695, %v906_v41 }
 0x293   : > { %v912_v42 = vmul.f32 1.442695, %v904_v37 }
 0x295   : > { %6532 = vpow2.f32 %v912_v42 }
 0x296   : > { %6534 = vpow2.f32 %v914_v47 }
 0x297   : > { %6536 = vpow2.f32 %v916_v46 }
 0x298   : > { %6538 = vpow2.f32 %v918_v57 }
 0x299   : > { %6540 = vpow2.f32 %v920_v3 }
 0x29b   : > { %v7217_v52 = vpop.eup %6532 }
 0x29c   : > { %6084 = vmatmul.msk.f32.vlgmr.msra.gmra.mxu0 %vm759_vm3, %v7217_v52  ;;  %v7223_v55 = vpop.eup %6534 }
 0x29d   : > { %v7229_v1 = vpop.eup %6536 }
 0x29e   : > { %v7235_v11 = vpop.eup %6538 }
 0x29f   : > { %v7241_v43 = vpop.eup %6540 }
 0x2a4   : > { %6085 = vmatmul.msk.f32.gmra.mxu0 %vm759_vm3, %v7223_v55 }
 0x2ab   : > { %v891_v32 = vpop.permute.xlu1 %890 }
 0x2ac   : > { %6086 = vmatmul.msk.f32.gmra.mxu0 %vm759_vm3, %v7229_v1  ;;  %v909_v7 = vsub.f32 %v869_v4, %v891_v32  ;;  %v1091_v32 = vand.u32 2147483648, %v371_v58  ;;  %v11016_v4 = vmov 3  }
 0x2ad   : > { %6238 = vset.pattern.permute.xlu0 %v11016_v4 }
 0x2ae   : > { %v922_v8 = vmul.f32 1.442695, %v909_v7  ;;  %v11014_v7 = vmov 2  }
 0x2af   : > { %6237 = vset.pattern.permute.xlu2 %v11014_v7 }
 0x2b0   : > { %6542 = vpow2.f32 %v922_v8 }
 0x2b1   : > { %6544 = vrsqrt.f32 %v367_v51 }
 0x2b4   : > { %6087 = vmatmul.msk.f32.gmra.mxu0 %vm759_vm3, %v7235_v11 }
 0x2b6   : > { %v7245_v49 = vpop.eup %6542 }
 0x2b7   : > { %v6545_v60 = vpop.eup %6544 }
 0x2b8   : > { %v1034_v12 = vmul.f32 %v6545_v60, %v367_v51 }
 0x2ba   : > { %v1035_v13 = vmul.f32 %v6545_v60, %v1034_v12 }
 0x2bc   : > { %6088 = vmatmul.msk.f32.gmra.mxu0 %vm759_vm3, %v7241_v43  ;;  %v1036_v20 = vmul.f32 0.5, %v1035_v13 }
 0x2be   : > { %v1037_v30 = vsub.f32 1.5, %v1036_v20 }
 0x2c0   : > { %v1038_v33 = vmul.f32 %v6545_v60, %v1037_v30 }
 0x2c2   : > { %v1039_v62 = vmul.f32 %v1038_v33, %v367_v51 }
 0x2c4   : > { %6089 = vmatmul.msk.f32.gmra.mxu0 %vm759_vm3, %v7245_v49  ;;  %v1041_v37 = vsel %vm1040_vm4, %v367_v51, %v1039_v62  ;;  %v11000_v51 = vmov 0  }
 0x2c5   : > { %v1044_v18 = vsel %vm1042_vm5, %v1043_v35, %v1041_v37  ;;  %6235 = vset.pattern.permute.xlu1 %v11000_v51 }
 0x2c6   : > { %v1129_v40 = vsub.f32 0.0, %v1044_v18 }
 0x2c8   : > { %v6092_v47 = vmul.f32 -1.442695, %v1129_v40 }
 0x2d6   : > { %v895_v21 = vpop.permute.xlu2 %894 }
 0x2d7   : > { %v911_v29 = vsub.f32 %v871_v24, %v895_v21 }
 0x2d9   : > { %v893_v16 = vpop.permute.xlu0 %892  ;;  %v926_v31 = vmul.f32 1.442695, %v911_v29  ;;  %v1055_v29 = vand.u32 2147483648, %v368_v44 }
 0x2da   : > { %v910_v19 = vsub.f32 %v870_v14, %v893_v16 }
 0x2dc   : > { %v924_v26 = vmul.f32 1.442695, %v910_v19 }
 0x2de   : > { %6546 = vpow2.f32 %v924_v26 }
 0x2df   : > { %6548 = vpow2.f32 %v926_v31 }
 0x2e0   : > { %6550 = vrsqrt.f32 %v371_v58 }
 0x2e1   : > { %6552 = vrsqrt.f32 %v368_v44 }
 0x2e2   : > { %6554 = vpow2.f32 %v6092_v47 }
 0x2e4   : > { %v7260_v34 = vpop.eup %6546 }
 0x2e5   : > { %6090 = vmatmul.msk.f32.gmra.mxu0 %vm759_vm3, %v7260_v34  ;;  %v7265_v59 = vpop.eup %6548 }
 0x2e6   : > { %v6551_v38 = vpop.eup %6550 }
 0x2e7   : > { %v1082_v42 = vmul.f32 %v6551_v38, %v371_v58  ;;  %v6553_v41 = vpop.eup %6552 }
 0x2e8   : > { %v6555_v46 = vpop.eup %6554  ;;  %v1046_v6 = vmul.f32 %v6553_v41, %v368_v44 }
 0x2e9   : > { %v1083_v50 = vmul.f32 %v6551_v38, %v1082_v42  ;;  %v1161_v57 = vadd.f32 1.0, %v6555_v46 }
 0x2ea   : > { %v1047_v27 = vmul.f32 %v6553_v41, %v1046_v6 }
 0x2eb   : > { %v1084_v54 = vmul.f32 0.5, %v1083_v50  ;;  %6556 = vrcp.f32 %v1161_v57  ;;  %vm1174_vm9 = vweird.f32 %v1161_v57  ;;  %v1180_v33 = vand.u32 2147483648, %v1161_v57 }
 0x2ec   : > { %v1048_v3 = vmul.f32 0.5, %v1047_v27  ;;  %v1178_v62 = vand.u32 2147483647, %v1161_v57 }
 0x2ed   : > { %6091 = vmatmul.msk.f32.gmra.mxu0 %vm759_vm3, %v7265_v59  ;;  %v1085_v22 = vsub.f32 1.5, %v1084_v54  ;;  %v1181_v37 = vor.u32 1.1754944e-38, %v1180_v33 }
 0x2ee   : > { %v1049_v12 = vsub.f32 1.5, %v1048_v3  ;;  %vm1179_vm13 = vcmp.eq.f32.partialorder %v1178_v62, 8.507059e+37 }
 0x2ef   : > { %v1086_v0 = vmul.f32 %v6551_v38, %v1085_v22 }
 0x2f0   : > { %v1050_v19 = vmul.f32 %v6553_v41, %v1049_v12 }
 0x2f1   : > { %v1087_v25 = vmul.f32 %v1086_v0, %v371_v58  ;;  %v6557_v60 = vpop.eup %6556 }
 0x2f2   : > { %v1170_v14 = vmul.f32 %v6557_v60, %v1161_v57  ;;  %v1051_v24 = vmul.f32 %v1050_v19, %v368_v44  ;;  %vm1175_vm10 = vweird.f32 %v6557_v60  ;;  %v7276_v57 = vld [vmem:[%s7251_s20 + $0x10] sm:$0xff]  ;;  %v11010_v19 = vmov 6  }
 0x2f3   : > { %v1089_v8 = vsel %vm1088_vm6, %v371_v58, %v1087_v25  ;;  %vm1176_vm12 = vmor %vm1174_vm9, %vm1175_vm10  ;;  %vm1064_vm3 = vcmp.eq.f32.partialorder %v7276_v57, inf  ;;  %vm1066_vm6 = vcmp.eq.f32.partialorder %v7276_v57, 0.0 }
 0x2f4   : > { %v1092_v13 = vsel %vm1090_vm7, %v1091_v32, %v1089_v8  ;;  %v1171_v20 = vsub.f32 1.0, %v1170_v14  ;;  %v1053_v31 = vsel %vm1052_vm8, %v368_v44, %v1051_v24 }
 0x2f5   : > { %v1133_v16 = vsub.f32 0.0, %v1092_v13  ;;  %v1056_v35 = vsel %vm1054_vm11, %v1055_v29, %v1053_v31 }
 0x2f6   : > { %v1172_v26 = vmul.f32 %v6557_v60, %v1171_v20  ;;  %v1130_v42 = vsub.f32 0.0, %v1056_v35  ;;  %v10994_v20 = vmov 1   ;;  %v11026_v35 = vmov 11  }
 0x2f7   : > { %v6096_v21 = vmul.f32 -1.442695, %v1133_v16  ;;  %v11008_v16 = vmov 7  }
 0x2f8   : > { %v1173_v58 = vadd.f32 %v6557_v60, %v1172_v26  ;;  %v6093_v44 = vmul.f32 -1.442695, %v1130_v42 }
 0x2f9   : > { %6558 = vpow2.f32 %v6096_v21 }
 0x2fa   : > { %v1177_v38 = vsel %vm1176_vm12, %v6557_v60, %v1173_v58 }
 0x2fb   : > { %v1182_v41 = vsel %vm1179_vm13, %v1181_v37, %v1177_v38  ;;  %v11022_v37 = vmov 10  }
 0x2fc   : > { %v1289_v22 = vmul.f32 2.0, %v1182_v41 }
 0x2ff   : > { %v6559_v18 = vpop.eup %6558 }
 0x300   : > { %v1165_v54 = vadd.f32 1.0, %v6559_v18  ;;  %v10992_v18 = vmov 4  }
 0x302   : > { %vm1234_vm14 = vweird.f32 %v1165_v54  ;;  %v1240_v29 = vand.u32 2147483648, %v1165_v54  ;;  %v1238_v58 = vand.u32 2147483647, %v1165_v54 }
 0x304   : > { %vm1239_vm2 = vcmp.eq.f32.partialorder %v1238_v58, 8.507059e+37 }
 0x319   : > { %v977_v30 = vpop.f32.mrf.mxu0 }
 0x31a   : > { %6560 = vrcp.f32 %v977_v30 }
 0x31b   : > { %6562 = vrcp.f32 %v1165_v54 }
 0x31c   : > { %6564 = vpow2.f32 %v6093_v44 }
 0x31d   : > { %6566 = vrsqrt.f32 %v7276_v57 }
 0x320   : > { %v6561_v40 = vpop.eup %6560 }
 0x321   : > { %v1009_v47 = vmul.f32 %v6561_v40, %v977_v30  ;;  %v7273_v50 = vpop.f32.mrf.mxu0  ;;  %v6563_v3 = vpop.eup %6562 }
 0x322   : > { %v6565_v32 = vpop.eup %6564  ;;  %v1230_v8 = vmul.f32 %v6563_v3, %v1165_v54  ;;  %vm1235_vm15 = vweird.f32 %v6563_v3 }
 0x323   : > { %v1017_v46 = vsub.f32 2.0, %v1009_v47  ;;  %v6567_v60 = vpop.eup %6566  ;;  %v7287_v12 = vadd.f32 1.0, %v6565_v32  ;;  %vm7301_vm1 = vmor %vm1234_vm14, %vm1235_vm15 }
 0x324   : > { %v1058_v13 = vmul.f32 %v6567_v60, %v7276_v57  ;;  %v1231_v14 = vsub.f32 1.0, %v1230_v8 }
 0x325   : > { %v1025_v6 = vmul.f32 %v6561_v40, %v1017_v46  ;;  %6568 = vrcp.f32 %v7287_v12  ;;  %v1241_v40 = vor.u32 1.1754944e-38, %v1240_v29  ;;  %vm1189_vm4 = vweird.f32 %v7287_v12 }
 0x326   : > { %v1059_v21 = vmul.f32 %v6567_v60, %v1058_v13  ;;  %v1232_v24 = vmul.f32 %v6563_v3, %v1231_v14  ;;  %v11032_v14 = vmov 15   ;;  %v1195_v29 = vand.u32 2147483648, %v7287_v12 }
 0x327   : > { %v1297_v0 = vmul.f32 %v7217_v52, %v1025_v6  ;;  %v1193_v58 = vand.u32 2147483647, %v7287_v12 }
 0x328   : > { %v1060_v31 = vmul.f32 0.5, %v1059_v21  ;;  %v1233_v33 = vadd.f32 %v6563_v3, %v1232_v24 }
 0x329   : > { %v7279_v27 = vmul.f32 %v1297_v0, %v1289_v22  ;;  %v7281_v25 = vpop.f32.mrf.mxu0  ;;  %vm1194_vm8 = vcmp.eq.f32.partialorder %v1193_v58, 8.507059e+37 }
 0x32a   : > { %v1061_v42 = vsub.f32 1.5, %v1060_v31  ;;  %v1237_v47 = vsel %vm7301_vm1, %v6563_v3, %v1233_v33  ;;  %v11030_v3 = vmov 14   ;;  %v1067_v31 = vand.u32 2147483648, %v7276_v57 }
 0x32b   : > { %11093 = vst [vmem:[#allocation18_spill] sm:$0xff] %v7279_v27  ;;  %1522 = vperm.xlu0 %6238, %v7279_v27   ;;  %1442 = vperm.xlu2 %6237, %v7279_v27   ;;  %v7299_v30 = vpop.eup %6568  ;;  %v1242_v44 = vsel %vm1239_vm2, %v1241_v40, %v1237_v47  ;;  %v11002_v47 = vmov 19  }
 0x32c   : > { %1315 = vperm.xlu1 %6235, %v7279_v27   ;;  %v1185_v38 = vmul.f32 %v7299_v30, %v7287_v12  ;;  %v1062_v22 = vmul.f32 %v6567_v60, %v1061_v42  ;;  %v1293_v32 = vmul.f32 2.0, %v1242_v44  ;;  %vm1190_vm5 = vweird.f32 %v7299_v30 }
 0x32d   : > { %vm1191_vm7 = vmor %vm1189_vm4, %vm1190_vm5 }
 0x32e   : > { %v1186_v46 = vsub.f32 1.0, %v1185_v38  ;;  %v1063_v21 = vmul.f32 %v1062_v22, %v7276_v57  ;;  %v1196_v38 = vor.u32 1.1754944e-38, %v1195_v29  ;;  %v11024_v29 = vmov 16  }
 0x330   : > { %v1187_v13 = vmul.f32 %v7299_v30, %v1186_v46  ;;  %v1065_v62 = vsel %vm1064_vm3, %v7276_v57, %v1063_v21  ;;  %v10996_v46 = vmov 8   ;;  %v11012_v21 = vmov 13  }
 0x331   : > { %v7289_v52 = vpop.f32.mrf.mxu0  ;;  %v1068_v40 = vsel %vm1066_vm6, %v1067_v31, %v1065_v62 }
 0x332   : > { %v1188_v33 = vadd.f32 %v7299_v30, %v1187_v13  ;;  %v1131_v12 = vsub.f32 0.0, %v1068_v40 }
 0x333   : > { %6242 = vset.pattern.permute.xlu0 %v11008_v16  ;;  %6241 = vset.pattern.permute.xlu2 %v11010_v19 }
 0x334   : > { %6236 = vset.pattern.permute.xlu1 %v10994_v20  ;;  %1810 = vperm.xlu0 %6242, %v7279_v27   ;;  %v1192_v42 = vsel %vm1191_vm7, %v7299_v30, %v1188_v33  ;;  %v6094_v22 = vmul.f32 -1.442695, %v1131_v12  ;;  %v11028_v12 = vmov 17  }
 0x335   : > { %1730 = vperm.xlu2 %6241, %v7279_v27   ;;  %1362 = vperm.xlu1 %6236, %v7279_v27   ;;  %v1197_v44 = vsel %vm1194_vm8, %v1196_v38, %v1192_v42 }
 0x336   : > { %v1290_v57 = vmul.f32 2.0, %v1197_v44 }
 0x339   : > { %v989_v26 = vpop.f32.mrf.mxu0 }
 0x33a   : > { %6570 = vrcp.f32 %v989_v26 }
 0x33b   : > { %6572 = vrcp.f32 %v7273_v50 }
 0x33c   : > { %6246 = vset.pattern.permute.xlu0 %v11026_v35  ;;  %6574 = vpow2.f32 %v6094_v22 }
 0x33d   : > { %6245 = vset.pattern.permute.xlu2 %v11022_v37  ;;  %6239 = vset.pattern.permute.xlu1 %v10992_v18 }
 0x33e   : > { %2090 = vperm.xlu0 %6246, %v7279_v27   ;;  %2010 = vperm.xlu2 %6245, %v7279_v27  }
 0x33f   : > { %1602 = vperm.xlu1 %6239, %v7279_v27  }
 0x340   : > { %v6571_v54 = vpop.eup %6570 }
 0x341   : > { %v1013_v41 = vmul.f32 %v6571_v54, %v989_v26  ;;  %v6573_v0 = vpop.eup %6572  ;;  %v10998_v26 = vmov 5  }
 0x342   : > { %v1010_v60 = vmul.f32 %v6573_v0, %v7273_v50 }
 0x343   : > { %v1021_v6 = vsub.f32 2.0, %v1013_v41  ;;  %v11020_v41 = vmov 18  }
 0x344   : > { %v1018_v50 = vsub.f32 2.0, %v1010_v60 }
 0x345   : > { %v1029_v8 = vmul.f32 %v6571_v54, %v1021_v6 }
 0x346   : > { %6250 = vset.pattern.permute.xlu0 %v11032_v14  ;;  %6249 = vset.pattern.permute.xlu2 %v11030_v3  ;;  %v1026_v54 = vmul.f32 %v6573_v0, %v1018_v50  ;;  %v11006_v0 = vmov 9  }
 0x347   : > { %v1301_v24 = vmul.f32 %v7241_v43, %v1029_v8  ;;  %6240 = vset.pattern.permute.xlu1 %v10998_v26  ;;  %2378 = vperm.xlu0 %6250, %v7279_v27  }
 0x348   : > { %2298 = vperm.xlu2 %6249, %v7279_v27   ;;  %1650 = vperm.xlu1 %6240, %v7279_v27   ;;  %v1298_v30 = vmul.f32 %v7223_v55, %v1026_v54  ;;  %v11004_v55 = vmov 12  }
 0x349   : > { %v7330_v43 = vmul.f32 %v1301_v24, %v1293_v32  ;;  %v6575_v32 = vpop.eup %6574 }
 0x34a   : > { %v7345_v6 = vmul.f32 %v1298_v30, %v1290_v57  ;;  %v1163_v8 = vadd.f32 1.0, %v6575_v32  ;;  %v11018_v32 = vmov 20  }
 0x34b   : > { %11096 = vst [vmem:[#allocation19_spill] sm:$0xff] %v7330_v43 }
 0x34c   : > { %11097 = vst [vmem:[#allocation20_spill] sm:$0xff] %v7345_v6  ;;  %6576 = vrcp.f32 %v1163_v8  ;;  %vm1204_vm9 = vweird.f32 %v1163_v8  ;;  %v1210_v62 = vand.u32 2147483648, %v1163_v8  ;;  %v1208_v38 = vand.u32 2147483647, %v1163_v8 }
 0x34d   : > { %6578 = vrcp.f32 %v7281_v25 }
 0x34e   : > { %v1211_v42 = vor.u32 1.1754944e-38, %v1210_v62  ;;  %vm1209_vm12 = vcmp.eq.f32.partialorder %v1208_v38, 8.507059e+37 }
 0x34f   : > { %6254 = vset.pattern.permute.xlu0 %v11002_v47 }
 0x350   : > { %6253 = vset.pattern.permute.xlu2 %v11020_v41  ;;  %6243 = vset.pattern.permute.xlu1 %v10996_v46 }
 0x351   : > { %2666 = vperm.xlu0 %6254, %v7279_v27   ;;  %2586 = vperm.xlu2 %6253, %v7279_v27  }
 0x352   : > { %1890 = vperm.xlu1 %6243, %v7279_v27   ;;  %v6577_v13 = vpop.eup %6576 }
 0x353   : > { %v1200_v24 = vmul.f32 %v6577_v13, %v1163_v8  ;;  %v6579_v31 = vpop.eup %6578  ;;  %vm1205_vm10 = vweird.f32 %v6577_v13 }
 0x354   : > { %v1011_v58 = vmul.f32 %v6579_v31, %v7281_v25  ;;  %vm1206_vm11 = vmor %vm1204_vm9, %vm1205_vm10 }
 0x355   : > { %v1201_v60 = vsub.f32 1.0, %v1200_v24 }
 0x356   : > { %v1019_v40 = vsub.f32 2.0, %v1011_v58 }
 0x357   : > { %v1202_v33 = vmul.f32 %v6577_v13, %v1201_v60 }
 0x358   : > { %v1027_v44 = vmul.f32 %v6579_v31, %v1019_v40 }
 0x359   : > { %6256 = vset.pattern.permute.xlu0 %v11000_v51  ;;  %6259 = vset.pattern.permute.xlu2 %v11016_v4  ;;  %v1203_v50 = vadd.f32 %v6577_v13, %v1202_v33 }
 0x35a   : > { %6244 = vset.pattern.permute.xlu1 %v11006_v0  ;;  %1526 = vperm.xlu2 %6259, %v7345_v6   ;;  %v1299_v30 = vmul.f32 %v7229_v1, %v1027_v44  ;;  %v7394_v1 = vld [vmem:[%s7251_s20 + $0x28] sm:$0xff] }
 0x35b   : > { %1930 = vperm.xlu1 %6244, %v7279_v27   ;;  %1320 = vperm.xlu0 %6256, %v7345_v6   ;;  %v1207_v54 = vsel %vm1206_vm11, %v6577_v13, %v1203_v50  ;;  %v7391_v13 = vld [vmem:[%s7251_s20 + $0x18] sm:$0xff]  ;;  %vm1100_vm14 = vcmp.eq.f32.partialorder %v7394_v1, inf  ;;  %vm1102_vm1 = vcmp.eq.f32.partialorder %v7394_v1, 0.0 }
 0x35c   : > { %v1212_v25 = vsel %vm1209_vm12, %v1211_v42, %v1207_v54  ;;  %6580 = vrsqrt.f32 %v7391_v13  ;;  %vm1076_vm13 = vcmp.eq.f32.partialorder %v7391_v13, inf  ;;  %vm1078_vm15 = vcmp.eq.f32.partialorder %v7391_v13, 0.0 }
 0x35d   : > { %v1291_v57 = vmul.f32 2.0, %v1212_v25  ;;  %6582 = vrsqrt.f32 %v7394_v1 }
 0x35f   : > { %v7383_v8 = vmul.f32 %v1299_v30, %v1291_v57 }
 0x361   : > { %11099 = vst [vmem:[#allocation22_spill] sm:$0xff] %v7383_v8 }
 0x362   : > { %6263 = vset.pattern.permute.xlu2 %v11008_v16  ;;  %v6581_v60 = vpop.eup %6580 }
 0x363   : > { %6247 = vset.pattern.permute.xlu1 %v11004_v55  ;;  %6257 = vset.pattern.permute.xlu0 %v10994_v20  ;;  %v6583_v31 = vpop.eup %6582  ;;  %v1070_v58 = vmul.f32 %v6581_v60, %v7391_v13 }
 0x364   : > { %2170 = vperm.xlu1 %6247, %v7279_v27   ;;  %1814 = vperm.xlu2 %6263, %v7345_v6   ;;  %v1094_v62 = vmul.f32 %v6583_v31, %v7394_v1 }
 0x365   : > { %1366 = vperm.xlu0 %6257, %v7345_v6   ;;  %v1071_v38 = vmul.f32 %v6581_v60, %v1070_v58 }
 0x366   : > { %v1095_v42 = vmul.f32 %v6583_v31, %v1094_v62 }
 0x367   : > { %v1072_v54 = vmul.f32 0.5, %v1071_v38 }
 0x368   : > { %v1096_v25 = vmul.f32 0.5, %v1095_v42 }
 0x369   : > { %v1073_v57 = vsub.f32 1.5, %v1072_v54 }
 0x36a   : > { %v1097_v58 = vsub.f32 1.5, %v1096_v25 }
 0x36b   : > { %v1074_v38 = vmul.f32 %v6581_v60, %v1073_v57 }
 0x36c   : > { %6248 = vset.pattern.permute.xlu1 %v11012_v21  ;;  %6267 = vset.pattern.permute.xlu2 %v11026_v35  ;;  %v1098_v42 = vmul.f32 %v6583_v31, %v1097_v58  ;;  %v1079_v31 = vand.u32 2147483648, %v7391_v13  ;;  %v1103_v58 = vand.u32 2147483648, %v7394_v1 }
 0x36d   : > { %6260 = vset.pattern.permute.xlu0 %v10992_v18  ;;  %2218 = vperm.xlu1 %6248, %v7279_v27  }
 0x36e   : > { %2094 = vperm.xlu2 %6267, %v7345_v6   ;;  %1606 = vperm.xlu0 %6260, %v7345_v6   ;;  %v1099_v54 = vmul.f32 %v1098_v42, %v7394_v1 }
 0x375   : > { %6251 = vset.pattern.permute.xlu1 %v11024_v29 }
 0x376   : > { %6271 = vset.pattern.permute.xlu2 %v11032_v14  ;;  %6261 = vset.pattern.permute.xlu0 %v10998_v26 }
 0x377   : > { %2466 = vperm.xlu1 %6251, %v7279_v27   ;;  %2382 = vperm.xlu2 %6271, %v7345_v6  }
 0x378   : > { %1654 = vperm.xlu0 %6261, %v7345_v6  }
 0x37f   : > { %6252 = vset.pattern.permute.xlu1 %v11028_v12  ;;  %6275 = vset.pattern.permute.xlu2 %v11002_v47 }
 0x380   : > { %6264 = vset.pattern.permute.xlu0 %v10996_v46  ;;  %2506 = vperm.xlu1 %6252, %v7279_v27  }
 0x381   : > { %2670 = vperm.xlu2 %6275, %v7345_v6   ;;  %1894 = vperm.xlu0 %6264, %v7345_v6  }
 0x385   : > { %v7380_v22 = vpop.permute.xlu2 %1442 }
 0x386   : > { %11098 = vst [vmem:[#allocation21_spill] sm:$0xff] %v7380_v22 }
 0x388   : > { %6255 = vset.pattern.permute.xlu1 %v11018_v32 }
 0x389   : > { %6277 = vset.pattern.permute.xlu2 %v11000_v51  ;;  %6265 = vset.pattern.permute.xlu0 %v11006_v0 }
 0x38a   : > { %2746 = vperm.xlu1 %6255, %v7279_v27   ;;  %1934 = vperm.xlu0 %6265, %v7345_v6   ;;  %v11119_v27 = vmov 17  }
 0x38b   : > { %1325 = vperm.xlu2 %6277, %v7383_v8  }
 0x38f   : > { %v7396_v24 = vpop.permute.xlu2 %1730 }
 0x390   : > { %11100 = vst [vmem:[#allocation23_spill] sm:$0xff] %v7396_v24 }
 0x392   : > { %6258 = vset.pattern.permute.xlu1 %v11014_v7  ;;  %6268 = vset.pattern.permute.xlu0 %v11004_v55 }
 0x393   : > { %6278 = vset.pattern.permute.xlu2 %v10994_v20  ;;  %1446 = vperm.xlu1 %6258, %v7345_v6   ;;  %v1075_v20 = vmul.f32 %v1074_v38, %v7391_v13  ;;  %v1101_v38 = vsel %vm1100_vm14, %v7394_v1, %v1099_v54 }
 0x394   : > { %2174 = vperm.xlu0 %6268, %v7345_v6   ;;  %1370 = vperm.xlu2 %6278, %v7383_v8  }
 0x395   : > { %v1077_v57 = vsel %vm1076_vm13, %v7391_v13, %v1075_v20 }
 0x398   : > { %v7406_v33 = vpop.permute.xlu2 %2010 }
 0x399   : > { %11101 = vst [vmem:[#allocation24_spill] sm:$0xff] %v7406_v33 }
 0x39b   : > { %6262 = vset.pattern.permute.xlu1 %v11010_v19 }
 0x39c   : > { %6269 = vset.pattern.permute.xlu0 %v11012_v21  ;;  %6281 = vset.pattern.permute.xlu2 %v10992_v18 }
 0x39d   : > { %1734 = vperm.xlu1 %6262, %v7345_v6   ;;  %2222 = vperm.xlu0 %6269, %v7345_v6   ;;  %v7415_v50 = vpop.permute.xlu0 %1522 }
 0x39e   : > { %1610 = vperm.xlu2 %6281, %v7383_v8   ;;  %v7418_v40 = vpop.permute.xlu1 %1315 }
 0x39f   : > { %11102 = vst [vmem:[#allocation25_spill] sm:$0xff] %v7418_v40 }
 0x3a2   : > { %v7420_v44 = vpop.permute.xlu2 %2298 }
 0x3a3   : > { %11103 = vst [vmem:[#allocation26_spill] sm:$0xff] %v7420_v44 }
 0x3a5   : > { %6266 = vset.pattern.permute.xlu1 %v11022_v37  ;;  %6272 = vset.pattern.permute.xlu0 %v11024_v29 }
 0x3a6   : > { %6282 = vset.pattern.permute.xlu2 %v10998_v26  ;;  %2014 = vperm.xlu1 %6266, %v7345_v6   ;;  %v7426_v30 = vpop.permute.xlu0 %1810  ;;  %v1104_v26 = vsel %vm1102_vm1, %v1103_v58, %v1101_v38 }
 0x3a7   : > { %2470 = vperm.xlu0 %6272, %v7345_v6   ;;  %1658 = vperm.xlu2 %6282, %v7383_v8   ;;  %v7430_v62 = vpop.permute.xlu1 %1362  ;;  %v1134_v47 = vsub.f32 0.0, %v1104_v26 }
 0x3a8   : > { %11104 = vst [vmem:[#allocation27_spill] sm:$0xff] %v7430_v62 }
 0x3a9   : > { %v6097_v54 = vmul.f32 -1.442695, %v1134_v47 }
 0x3ab   : > { %v7432_v18 = vpop.permute.xlu2 %2586 }
 0x3ac   : > { %11105 = vst [vmem:[#allocation28_spill] sm:$0xff] %v7432_v18  ;;  %v11155_v18 = vmov 8  }
 0x3ae   : > { %6270 = vset.pattern.permute.xlu1 %v11030_v3 }
 0x3af   : > { %6273 = vset.pattern.permute.xlu0 %v11028_v12  ;;  %6285 = vset.pattern.permute.xlu2 %v10996_v46  ;;  %v1080_v46 = vsel %vm1078_vm15, %v1079_v31, %v1077_v57  ;;  %v7469_v31 = vld [vmem:[%s7251_s20 + $0x30] sm:$0xff] }
 0x3b0   : > { %2302 = vperm.xlu1 %6270, %v7345_v6   ;;  %2510 = vperm.xlu0 %6273, %v7345_v6   ;;  %v7443_v60 = vpop.permute.xlu0 %2090  ;;  %v1132_v51 = vsub.f32 0.0, %v1080_v46  ;;  %vm1112_vm2 = vcmp.eq.f32.partialorder %v7469_v31, inf  ;;  %vm1114_vm7 = vcmp.eq.f32.partialorder %v7469_v31, 0.0 }
 0x3b1   : > { %1898 = vperm.xlu2 %6285, %v7383_v8   ;;  %v7447_v25 = vpop.permute.xlu1 %1602 }
 0x3b2   : > { %11106 = vst [vmem:[#allocation29_spill] sm:$0xff] %v7447_v25  ;;  %v6095_v1 = vmul.f32 -1.442695, %v1132_v51  ;;  %v11118_v25 = vmov 14  }
 0x3b4   : > { %v7454_v42 = vpop.permute.xlu2 %1526  ;;  %6584 = vpow2.f32 %v6095_v1 }
 0x3b5   : > { %11107 = vst [vmem:[#allocation30_spill] sm:$0xff] %v7454_v42  ;;  %6586 = vpow2.f32 %v6097_v54 }
 0x3b6   : > { %6588 = vrsqrt.f32 %v7469_v31 }
 0x3b8   : > { %6274 = vset.pattern.permute.xlu1 %v11020_v41  ;;  %6276 = vset.pattern.permute.xlu0 %v11018_v32 }
 0x3b9   : > { %6286 = vset.pattern.permute.xlu2 %v11006_v0  ;;  %2590 = vperm.xlu1 %6274, %v7345_v6   ;;  %v7460_v20 = vpop.permute.xlu0 %2378 }
 0x3ba   : > { %2750 = vperm.xlu0 %6276, %v7345_v6   ;;  %1938 = vperm.xlu2 %6286, %v7383_v8   ;;  %v7464_v13 = vpop.permute.xlu1 %1650  ;;  %v6585_v47 = vpop.eup %6584 }
 0x3bb   : > { %11108 = vst [vmem:[#allocation31_spill] sm:$0xff] %v7464_v13  ;;  %v6587_v57 = vpop.eup %6586  ;;  %v7484_v1 = vadd.f32 1.0, %v6585_v47 }
 0x3bc   : > { %v6589_v58 = vpop.eup %6588  ;;  %v7486_v54 = vadd.f32 1.0, %v6587_v57 }
 0x3bd   : > { %6590 = vrcp.f32 %v7484_v1  ;;  %vm1219_vm3 = vweird.f32 %v7484_v1  ;;  %v1223_v6 = vand.u32 2147483647, %v7484_v1 }
 0x3be   : > { %v7466_v46 = vpop.permute.xlu2 %1814  ;;  %6592 = vrcp.f32 %v7486_v54  ;;  %vm1249_vm5 = vweird.f32 %v7486_v54 }
 0x3bf   : > { %11109 = vst [vmem:[#allocation32_spill] sm:$0xff] %v7466_v46  ;;  %6594 = vrcp.f32 %v7289_v52  ;;  %vm1224_vm10 = vcmp.eq.f32.partialorder %v1223_v6, 8.507059e+37 }
 0x3c1   : > { %6280 = vset.pattern.permute.xlu1 %v11016_v4  ;;  %v992_v4 = vpop.f32.mrf.mxu0 }
 0x3c2   : > { %6279 = vset.pattern.permute.xlu0 %v11014_v7  ;;  %6289 = vset.pattern.permute.xlu2 %v11004_v55  ;;  %v1106_v55 = vmul.f32 %v6589_v58, %v7469_v31  ;;  %6596 = vrcp.f32 %v992_v4 }
 0x3c3   : > { %1530 = vperm.xlu1 %6280, %v7383_v8   ;;  %1450 = vperm.xlu0 %6279, %v7383_v8   ;;  %v7477_v51 = vpop.permute.xlu0 %2666 }
 0x3c4   : > { %2178 = vperm.xlu2 %6289, %v7383_v8   ;;  %v7480_v26 = vpop.permute.xlu1 %1890  ;;  %v1107_v0 = vmul.f32 %v6589_v58, %v1106_v55 }
 0x3c5   : > { %11110 = vst [vmem:[#allocation33_spill] sm:$0xff] %v7480_v26 }
 0x3c8   : > { %v7482_v38 = vpop.permute.xlu2 %2094 }
 0x3c9   : > { %11111 = vst [vmem:[#allocation34_spill] sm:$0xff] %v7482_v38 }
 0x3cb   : > { %6284 = vset.pattern.permute.xlu1 %v11008_v16  ;;  %6283 = vset.pattern.permute.xlu0 %v11010_v19  ;;  %v7503_v19 = vpop.eup %6590 }
 0x3cc   : > { %6290 = vset.pattern.permute.xlu2 %v11012_v21  ;;  %1818 = vperm.xlu1 %6284, %v7383_v8   ;;  %v1108_v21 = vmul.f32 0.5, %v1107_v0  ;;  %v7505_v7 = vpop.eup %6592  ;;  %v1215_v32 = vmul.f32 %v7503_v19, %v7484_v1  ;;  %vm1220_vm4 = vweird.f32 %v7503_v19 }
 0x3cd   : > { %1738 = vperm.xlu0 %6283, %v7383_v8   ;;  %2226 = vperm.xlu2 %6290, %v7383_v8   ;;  %v7496_v47 = vpop.permute.xlu1 %1930  ;;  %v7498_v57 = vpop.permute.xlu0 %1320  ;;  %v1245_v0 = vmul.f32 %v7505_v7, %v7486_v54  ;;  %vm1250_vm6 = vweird.f32 %v7505_v7  ;;  %vm7554_vm8 = vmor %vm1219_vm3, %vm1220_vm4 }
 0x3ce   : > { %11112 = vst [vmem:[#allocation35_spill] sm:$0xff] %v7496_v47  ;;  %v1109_v41 = vsub.f32 1.5, %v1108_v21  ;;  %v6595_v14 = vpop.eup %6594  ;;  %v11117_v21 = vmov 15   ;;  %vm7560_vm9 = vmor %vm1249_vm5, %vm1250_vm6 }
 0x3cf   : > { %11113 = vst [vmem:[#allocation36_spill] sm:$0xff] %v7498_v57  ;;  %v1246_v12 = vsub.f32 1.0, %v1245_v0  ;;  %v6597_v57 = vpop.eup %6596 }
 0x3d1   : > { %v7501_v16 = vpop.permute.xlu2 %2382  ;;  %v1247_v26 = vmul.f32 %v7505_v7, %v1246_v12  ;;  %v1225_v12 = vand.u32 2147483648, %v7484_v1 }
 0x3d2   : > { %11114 = vst [vmem:[#allocation37_spill] sm:$0xff] %v7501_v16 }
 0x3d4   : > { %6288 = vset.pattern.permute.xlu1 %v11026_v35  ;;  %v1110_v35 = vmul.f32 %v6589_v58, %v1109_v41  ;;  %v1115_v58 = vand.u32 2147483648, %v7469_v31 }
 0x3d5   : > { %6287 = vset.pattern.permute.xlu0 %v11022_v37  ;;  %6293 = vset.pattern.permute.xlu2 %v11024_v29  ;;  %v1216_v29 = vsub.f32 1.0, %v1215_v32  ;;  %v1014_v32 = vmul.f32 %v6597_v57, %v992_v4  ;;  %v1248_v4 = vadd.f32 %v7505_v7, %v1247_v26 }
 0x3d6   : > { %2098 = vperm.xlu1 %6288, %v7383_v8   ;;  %2018 = vperm.xlu0 %6287, %v7383_v8   ;;  %v7514_v55 = vpop.permute.xlu1 %2170  ;;  %v1111_v40 = vmul.f32 %v1110_v35, %v7469_v31 }
 0x3d7   : > { %11115 = vst [vmem:[#allocation38_spill] sm:$0xff] %v7514_v55  ;;  %2474 = vperm.xlu2 %6293, %v7383_v8   ;;  %v7520_v37 = vpop.permute.xlu0 %1366  ;;  %v1217_v55 = vmul.f32 %v7503_v19, %v1216_v29  ;;  %v1012_v29 = vmul.f32 %v6595_v14, %v7289_v52  ;;  %v1255_v52 = vand.u32 2147483648, %v7486_v54  ;;  %v1022_v10 = vsub.f32 2.0, %v1014_v32 }
 0x3d8   : > { %v1113_v15 = vsel %vm1112_vm2, %v7469_v31, %v1111_v40  ;;  %v1226_v40 = vor.u32 1.1754944e-38, %v1225_v12  ;;  %v1252_v26 = vsel %vm7560_vm9, %v7505_v7, %v1248_v4  ;;  %v11129_v12 = vmov 20  }
 0x3d9   : > { %v1218_v0 = vadd.f32 %v7503_v19, %v1217_v55  ;;  %v1253_v55 = vand.u32 2147483647, %v7486_v54  ;;  %v1116_v16 = vsel %vm1114_vm7, %v1115_v58, %v1113_v15  ;;  %v1256_v45 = vor.u32 1.1754944e-38, %v1255_v52 }
 0x3da   : > { %v11127_v54 = vmov 19   ;;  %v1135_v32 = vsub.f32 0.0, %v1116_v16  ;;  %v1030_v58 = vmul.f32 %v6597_v57, %v1022_v10  ;;  %v11133_v52 = vmov 0  }
 0x3db   : > { %v7522_v3 = vpop.permute.xlu2 %2670  ;;  %v1222_v1 = vsel %vm7554_vm8, %v7503_v19, %v1218_v0  ;;  %vm1254_vm11 = vcmp.eq.f32.partialorder %v1253_v55, 8.507059e+37  ;;  %v11135_v4 = vmov 2  }
 0x3dc   : > { %11116 = vst [vmem:[#allocation39_spill] sm:$0xff] %v7522_v3  ;;  %v1020_v3 = vsub.f32 2.0, %v1012_v29  ;;  %v11128_v29 = vmov 18   ;;  %v1227_v15 = vsel %vm1224_vm10, %v1226_v40, %v1222_v1  ;;  %v1257_v6 = vsel %vm1254_vm11, %v1256_v45, %v1252_v26 }
 0x3dd   : > { %v1292_v7 = vmul.f32 2.0, %v1227_v15  ;;  %v1302_v16 = vmul.f32 %v7245_v49, %v1030_v58  ;;  %v11134_v45 = vmov 3   ;;  %v11139_v1 = vmov 1  }
 0x3de   : > { %6292 = vset.pattern.permute.xlu1 %v11117_v21  ;;  %6291 = vset.pattern.permute.xlu0 %v11118_v25  ;;  %v1028_v38 = vmul.f32 %v6595_v14, %v1020_v3  ;;  %v6098_v3 = vmul.f32 -1.442695, %v1135_v32  ;;  %v11140_v26 = vmov 7  }
 0x3df   : > { %6294 = vset.pattern.permute.xlu2 %v11119_v27  ;;  %2386 = vperm.xlu1 %6292, %v7383_v8   ;;  %v7531_v41 = vpop.permute.xlu1 %2218 }
 0x3e0   : > { %11120 = vst [vmem:[#allocation40_spill] sm:$0xff] %v7531_v41  ;;  %2306 = vperm.xlu0 %6291, %v7383_v8   ;;  %2514 = vperm.xlu2 %6294, %v7383_v8   ;;  %v7539_v35 = vpop.permute.xlu0 %1606  ;;  %v1300_v14 = vmul.f32 %v7235_v11, %v1028_v38  ;;  %6598 = vpow2.f32 %v6098_v3  ;;  %v995_v3 = vpop.f32.mrf.mxu0  ;;  %v11154_v41 = vmov 10  }
 0x3e1   : > { %11121 = vst [vmem:[#allocation41_spill] sm:$0xff] %v7539_v35  ;;  %v1294_v35 = vmul.f32 2.0, %v1257_v6 }
 0x3e2   : > { %v7586_v10 = vmul.f32 %v1300_v14, %v1292_v7  ;;  %v11143_v7 = vmov 6   ;;  %v11144_v14 = vmov 4  }
 0x3e3   : > { %v7588_v57 = vmul.f32 %v1302_v16, %v1294_v35  ;;  %v11145_v35 = vmov 11  }
 0x3e4   : > { %11132 = vst [vmem:[#allocation45_spill] sm:$0xff] %v7586_v10 }
 0x3e5   : > { %v7564_v31 = vpop.permute.xlu2 %1325 }
 0x3e6   : > { %11126 = vst [vmem:[#allocation42_spill] sm:$0xff] %v7564_v31  ;;  %v6599_v38 = vpop.eup %6598 }
 0x3e7   : > { %6296 = vset.pattern.permute.xlu1 %v11127_v54  ;;  %v1167_v40 = vadd.f32 1.0, %v6599_v38 }
 0x3e8   : > { %6295 = vset.pattern.permute.xlu0 %v11128_v29  ;;  %6297 = vset.pattern.permute.xlu2 %v11129_v12 }
 0x3e9   : > { %2674 = vperm.xlu1 %6296, %v7383_v8   ;;  %2594 = vperm.xlu0 %6295, %v7383_v8   ;;  %v7577_v19 = vpop.permute.xlu1 %2466  ;;  %6600 = vrcp.f32 %v1167_v40  ;;  %vm1264_vm12 = vweird.f32 %v1167_v40 }
 0x3ea   : > { %11130 = vst [vmem:[#allocation43_spill] sm:$0xff] %v7577_v19  ;;  %2754 = vperm.xlu2 %6297, %v7383_v8   ;;  %v7580_v53 = vpop.permute.xlu0 %1654  ;;  %6602 = vrcp.f32 %v995_v3 }
 0x3ee   : > { %v7584_v0 = vpop.permute.xlu2 %1370 }
 0x3ef   : > { %11131 = vst [vmem:[#allocation44_spill] sm:$0xff] %v7584_v0  ;;  %v6601_v6 = vpop.eup %6600 }
 0x3f0   : > { %v6603_v31 = vpop.eup %6602  ;;  %vm1265_vm13 = vweird.f32 %v6601_v6 }
 0x3f1   : > { %6298 = vset.pattern.permute.xlu1 %v11133_v52  ;;  %6343 = vset.pattern.permute.xlu0 %v11134_v45  ;;  %vm7636_vm14 = vmor %vm1264_vm12, %vm1265_vm13 }
 0x3f2   : > { %6300 = vset.pattern.permute.xlu2 %v11135_v4  ;;  %1330 = vperm.xlu1 %6298, %v7586_v10   ;;  %v7594_v11 = vpop.permute.xlu1 %2506 }
 0x3f3   : > { %11136 = vst [vmem:[#allocation46_spill] sm:$0xff] %v7594_v11  ;;  %1454 = vperm.xlu2 %6300, %v7586_v10   ;;  %1542 = vperm.xlu0 %6343, %v7588_v57   ;;  %v7598_v49 = vpop.permute.xlu0 %1894 }
 0x3f4   : > { %11137 = vst [vmem:[#allocation47_spill] sm:$0xff] %v7598_v49  ;;  %v11149_v49 = vmov 5  }
 0x3f8   : > { %v7600_v55 = vpop.permute.xlu2 %1610 }
 0x3f9   : > { %11138 = vst [vmem:[#allocation48_spill] sm:$0xff] %v7600_v55 }
 0x3fa   : > { %6299 = vset.pattern.permute.xlu1 %v11139_v1 }
 0x3fb   : > { %6301 = vset.pattern.permute.xlu2 %v11134_v45  ;;  %6347 = vset.pattern.permute.xlu0 %v11140_v26 }
 0x3fc   : > { %1534 = vperm.xlu2 %6301, %v7586_v10   ;;  %1374 = vperm.xlu1 %6299, %v7586_v10   ;;  %v7607_v32 = vpop.permute.xlu1 %2746  ;;  %v7609_v15 = vpop.permute.xlu0 %1934 }
 0x3fd   : > { %11141 = vst [vmem:[#allocation49_spill] sm:$0xff] %v7607_v32  ;;  %1830 = vperm.xlu0 %6347, %v7588_v57   ;;  %v1260_v32 = vmul.f32 %v6601_v6, %v1167_v40 }
 0x3ff   : > { %v1261_v55 = vsub.f32 1.0, %v1260_v32  ;;  %v1015_v32 = vmul.f32 %v6603_v31, %v995_v3 }
 0x401   : > { %v7612_v58 = vpop.permute.xlu2 %1658  ;;  %v1262_v8 = vmul.f32 %v6601_v6, %v1261_v55  ;;  %v1023_v11 = vsub.f32 2.0, %v1015_v32  ;;  %v11159_v32 = vmov 9  }
 0x402   : > { %11142 = vst [vmem:[#allocation50_spill] sm:$0xff] %v7612_v58 }
 0x403   : > { %v1263_v0 = vadd.f32 %v6601_v6, %v1262_v8 }
 0x404   : > { %6304 = vset.pattern.permute.xlu2 %v11143_v7  ;;  %6302 = vset.pattern.permute.xlu1 %v11144_v14 }
 0x405   : > { %6351 = vset.pattern.permute.xlu0 %v11145_v35  ;;  %1742 = vperm.xlu2 %6304, %v7586_v10   ;;  %v7618_v16 = vpop.permute.xlu1 %1446 }
 0x406   : > { %11146 = vst [vmem:[#allocation51_spill] sm:$0xff] %v7618_v16  ;;  %1614 = vperm.xlu1 %6302, %v7586_v10   ;;  %2110 = vperm.xlu0 %6351, %v7588_v57   ;;  %v7622_v38 = vpop.permute.xlu0 %2174  ;;  %v1268_v16 = vand.u32 2147483647, %v1167_v40 }
 0x407   : > { %11147 = vst [vmem:[#allocation52_spill] sm:$0xff] %v7622_v38 }
 0x408   : > { %vm1269_vm15 = vcmp.eq.f32.partialorder %v1268_v16, 8.507059e+37 }
 0x40b   : > { %v7624_v19 = vpop.permute.xlu2 %1898 }
 0x40c   : > { %11148 = vst [vmem:[#allocation53_spill] sm:$0xff] %v7624_v19  ;;  %v1270_v19 = vand.u32 2147483648, %v1167_v40  ;;  %v1031_v40 = vmul.f32 %v6603_v31, %v1023_v11 }
 0x40d   : > { %6305 = vset.pattern.permute.xlu2 %v11140_v26 }
 0x40e   : > { %6303 = vset.pattern.permute.xlu1 %v11149_v49  ;;  %6355 = vset.pattern.permute.xlu0 %v11117_v21  ;;  %v1271_v42 = vor.u32 1.1754944e-38, %v1270_v19 }
 0x40f   : > { %1822 = vperm.xlu2 %6305, %v7586_v10   ;;  %1662 = vperm.xlu1 %6303, %v7586_v10   ;;  %v7631_v58 = vpop.permute.xlu1 %1734  ;;  %v7633_v38 = vpop.permute.xlu0 %2222 }
 0x410   : > { %11150 = vst [vmem:[#allocation54_spill] sm:$0xff] %v7631_v58  ;;  %2398 = vperm.xlu0 %6355, %v7588_v57   ;;  %v1267_v58 = vsel %vm7636_vm14, %v6601_v6, %v1263_v0  ;;  %v1303_v6 = vmul.f32 %v7260_v34, %v1031_v40  ;;  %v374_v34 = vld [vmem:[%s7251_s20 + $0x38] sm:$0xff]  ;;  %s6628_s20 = scalar_lea.hbm %s6627_s19, 64 }
 0x411   : > { %v1272_v46 = vsel %vm1269_vm15, %v1271_v42, %v1267_v58  ;;  %6604 = vrsqrt.f32 %v374_v34  ;;  %v11162_v58 = vmov 12   ;;  %vm1124_vm1 = vcmp.eq.f32.partialorder %v374_v34, inf  ;;  %p6629_p11 = scmp.ne.s32.totalorder %s6627_s19, %s6628_s20 }
 0x412   : > { %v1295_v0 = vmul.f32 2.0, %v1272_v46  ;;  %vm1126_vm2 = vcmp.eq.f32.partialorder %v374_v34, 0.0 }
 0x413   : > { %p6630_p12 = pnand %p6629_p11, %p6828_p5 }
 0x414   : > { %v7640_v55 = vpop.permute.xlu2 %1938  ;;  %v7658_v16 = vmul.f32 %v1303_v6, %v1295_v0 }
 0x415   : > { %11153 = vst [vmem:[#allocation55_spill] sm:$0xff] %v7640_v55  ;;  %p6631_p13 = pneg %p6630_p12 }
 0x417   : > { %6308 = vset.pattern.permute.xlu2 %v11154_v41  ;;  %6306 = vset.pattern.permute.xlu1 %v11155_v18  ;;  %v6605_v0 = vpop.eup %6604 }
 0x418   : > { %6359 = vset.pattern.permute.xlu0 %v11127_v54  ;;  %2022 = vperm.xlu2 %6308, %v7586_v10   ;;  %v7648_v8 = vpop.permute.xlu1 %2014 }
 0x419   : > { %11156 = vst [vmem:[#allocation56_spill] sm:$0xff] %v7648_v8  ;;  %1902 = vperm.xlu1 %6306, %v7586_v10   ;;  %2686 = vperm.xlu0 %6359, %v7588_v57   ;;  %v7652_v19 = vpop.permute.xlu0 %2470 }
 0x41a   : > { %11157 = vst [vmem:[#allocation57_spill] sm:$0xff] %v7652_v19  ;;  %v11166_v19 = vmov 13  }
 0x41e   : > { %v7655_v3 = vpop.permute.xlu2 %2178 }
 0x41f   : > { %11158 = vst [vmem:[#allocation58_spill] sm:$0xff] %v7655_v3  ;;  %v1118_v3 = vmul.f32 %v6605_v0, %v374_v34 }
 0x420   : > { %6309 = vset.pattern.permute.xlu2 %v11145_v35 }
 0x421   : > { %6307 = vset.pattern.permute.xlu1 %v11159_v32  ;;  %6361 = vset.pattern.permute.xlu0 %v11133_v52 }
 0x422   : > { %2102 = vperm.xlu2 %6309, %v7586_v10   ;;  %1942 = vperm.xlu1 %6307, %v7586_v10   ;;  %v7664_v31 = vpop.permute.xlu1 %2302  ;;  %v7666_v42 = vpop.permute.xlu0 %2510 }
 0x423   : > { %11160 = vst [vmem:[#allocation59_spill] sm:$0xff] %v7664_v31  ;;  %1345 = vperm.xlu0 %6361, %v7658_v16   ;;  %v11169_v31 = vmov 16  }
 0x427   : > { %v7670_v11 = vpop.permute.xlu2 %2226 }
 0x428   : > { %11161 = vst [vmem:[#allocation60_spill] sm:$0xff] %v7670_v11 }
 0x42a   : > { %6312 = vset.pattern.permute.xlu2 %v11118_v25  ;;  %6310 = vset.pattern.permute.xlu1 %v11162_v58 }
 0x42b   : > { %6362 = vset.pattern.permute.xlu0 %v11139_v1  ;;  %2310 = vperm.xlu2 %6312, %v7586_v10   ;;  %v7676_v40 = vpop.permute.xlu1 %2590 }
 0x42c   : > { %11163 = vst [vmem:[#allocation61_spill] sm:$0xff] %v7676_v40  ;;  %2182 = vperm.xlu1 %6310, %v7586_v10   ;;  %1386 = vperm.xlu0 %6362, %v7658_v16   ;;  %v7680_v46 = vpop.permute.xlu0 %2750 }
 0x42d   : > { %11164 = vst [vmem:[#allocation62_spill] sm:$0xff] %v7680_v46  ;;  %v1119_v46 = vmul.f32 %v6605_v0, %v1118_v3 }
 0x431   : > { %v7682_v6 = vpop.permute.xlu2 %2474 }
 0x432   : > { %11165 = vst [vmem:[#allocation63_spill] sm:$0xff] %v7682_v6  ;;  %v1120_v6 = vmul.f32 0.5, %v1119_v46 }
 0x433   : > { %6313 = vset.pattern.permute.xlu2 %v11117_v21 }
 0x434   : > { %6311 = vset.pattern.permute.xlu1 %v11166_v19  ;;  %6365 = vset.pattern.permute.xlu0 %v11144_v14  ;;  %v1121_v5 = vsub.f32 1.5, %v1120_v6 }
 0x435   : > { %2390 = vperm.xlu2 %6313, %v7586_v10   ;;  %2230 = vperm.xlu1 %6311, %v7586_v10   ;;  %v7689_v11 = vpop.permute.xlu1 %1530  ;;  %v7691_v55 = vpop.permute.xlu0 %1450 }
 0x436   : > { %11167 = vst [vmem:[#allocation64_spill] sm:$0xff] %v7689_v11  ;;  %1626 = vperm.xlu0 %6365, %v7658_v16   ;;  %v1122_v3 = vmul.f32 %v6605_v0, %v1121_v5  ;;  %v1127_v5 = vand.u32 2147483648, %v374_v34 }
 0x438   : > { %v1123_v46 = vmul.f32 %v1122_v3, %v374_v34 }
 0x43a   : > { %v7694_v40 = vpop.permute.xlu2 %2514  ;;  %v1125_v0 = vsel %vm1124_vm1, %v374_v34, %v1123_v46 }
 0x43b   : > { %11168 = vst [vmem:[#allocation65_spill] sm:$0xff] %v7694_v40  ;;  %v1128_v3 = vsel %vm1126_vm2, %v1127_v5, %v1125_v0 }
 0x43c   : > { %v1136_v47 = vsub.f32 0.0, %v1128_v3 }
 0x43d   : > { %6316 = vset.pattern.permute.xlu2 %v11128_v29  ;;  %6314 = vset.pattern.permute.xlu1 %v11169_v31 }
 0x43e   : > { %6366 = vset.pattern.permute.xlu0 %v11149_v49  ;;  %2598 = vperm.xlu2 %6316, %v7586_v10   ;;  %v7700_v8 = vpop.permute.xlu1 %1818  ;;  %v6099_v34 = vmul.f32 -1.442695, %v1136_v47 }
 0x43f   : > { %11170 = vst [vmem:[#allocation66_spill] sm:$0xff] %v7700_v8  ;;  %2478 = vperm.xlu1 %6314, %v7586_v10   ;;  %1674 = vperm.xlu0 %6366, %v7658_v16   ;;  %v7704_v11 = vpop.permute.xlu0 %1738 }
 0x440   : > { %6606 = vpow2.f32 %v6099_v34 }
 0x444   : > { %v7706_v40 = vpop.permute.xlu2 %2754 }
 0x445   : > { %11171 = vst [vmem:[#allocation67_spill] sm:$0xff] %v7706_v40 }
 0x446   : > { %6317 = vset.pattern.permute.xlu2 %v11127_v54  ;;  %v6607_v47 = vpop.eup %6606 }
 0x447   : > { %6315 = vset.pattern.permute.xlu1 %v11119_v27  ;;  %6369 = vset.pattern.permute.xlu0 %v11155_v18  ;;  %v1168_v34 = vadd.f32 1.0, %v6607_v47 }
 0x448   : > { %2678 = vperm.xlu2 %6317, %v7586_v10   ;;  %2518 = vperm.xlu1 %6315, %v7586_v10   ;;  %v7713_v6 = vpop.permute.xlu1 %2098  ;;  %v7715_v8 = vpop.permute.xlu0 %2018 }
 0x449   : > { %11172 = vst [vmem:[#allocation68_spill] sm:$0xff] %v7713_v6  ;;  %1914 = vperm.xlu0 %6369, %v7658_v16   ;;  %6608 = vrcp.f32 %v1168_v34  ;;  %vm1279_vm3 = vweird.f32 %v1168_v34  ;;  %v1283_v22 = vand.u32 2147483647, %v1168_v34 }
 0x44b   : > { %vm1284_vm6 = vcmp.eq.f32.partialorder %v1283_v22, 8.507059e+37 }
 0x44d   : > { %v7718_v40 = vpop.permute.xlu2 %1454 }
 0x44e   : > { %11173 = vst [vmem:[#allocation69_spill] sm:$0xff] %v7718_v40 }
 0x44f   : > { %v6609_v47 = vpop.eup %6608 }
 0x450   : > { %6319 = vset.pattern.permute.xlu2 %v11133_v52  ;;  %6318 = vset.pattern.permute.xlu1 %v11129_v12  ;;  %v1275_v44 = vmul.f32 %v6609_v47, %v1168_v34  ;;  %vm1280_vm4 = vweird.f32 %v6609_v47 }
 0x451   : > { %6370 = vset.pattern.permute.xlu0 %v11159_v32  ;;  %2758 = vperm.xlu1 %6318, %v7586_v10   ;;  %v7724_v6 = vpop.permute.xlu1 %2386  ;;  %vm1281_vm5 = vmor %vm1279_vm3, %vm1280_vm4 }
 0x452   : > { %11174 = vst [vmem:[#allocation70_spill] sm:$0xff] %v7724_v6  ;;  %1335 = vperm.xlu2 %6319, %v7330_v43   ;;  %1954 = vperm.xlu0 %6370, %v7658_v16   ;;  %v7728_v46 = vpop.permute.xlu0 %2306  ;;  %v1276_v13 = vsub.f32 1.0, %v1275_v44 }
 0x454   : > { %v1277_v62 = vmul.f32 %v6609_v47, %v1276_v13 }
 0x456   : > { %v7730_v40 = vpop.permute.xlu2 %1534  ;;  %v1278_v24 = vadd.f32 %v6609_v47, %v1277_v62 }
 0x459   : > { %6321 = vset.pattern.permute.xlu1 %v11135_v4 }
 0x45a   : > { %6320 = vset.pattern.permute.xlu2 %v11139_v1  ;;  %6373 = vset.pattern.permute.xlu0 %v11162_v58 }
 0x45b   : > { %1458 = vperm.xlu1 %6321, %v7330_v43   ;;  %1378 = vperm.xlu2 %6320, %v7330_v43   ;;  %v7737_v5 = vpop.permute.xlu1 %2674  ;;  %v7739_v0 = vpop.permute.xlu0 %2594 }
 0x45c   : > { %11175 = vst [vmem:[#allocation71_spill] sm:$0xff] %v7737_v5  ;;  %2194 = vperm.xlu0 %6373, %v7658_v16  }
 0x45f   : > { %v7742_v3 = vpop.permute.xlu2 %1742 }
 0x460   : > { %11176 = vst [vmem:[#allocation72_spill] sm:$0xff] %v7742_v3  ;;  %v998_v3 = vpop.f32.mrf.mxu0 }
 0x461   : > { %6610 = vrcp.f32 %v998_v3 }
 0x463   : > { %6322 = vset.pattern.permute.xlu1 %v11134_v45  ;;  %6323 = vset.pattern.permute.xlu2 %v11144_v14 }
 0x464   : > { %6374 = vset.pattern.permute.xlu0 %v11166_v19  ;;  %1538 = vperm.xlu1 %6322, %v7330_v43   ;;  %v7748_v10 = vpop.permute.xlu1 %1330 }
 0x465   : > { %11177 = vst [vmem:[#allocation73_spill] sm:$0xff] %v7748_v10  ;;  %1618 = vperm.xlu2 %6323, %v7330_v43   ;;  %2242 = vperm.xlu0 %6374, %v7658_v16   ;;  %v7752_v5 = vpop.permute.xlu0 %1542 }
 0x466   : > { %11178 = vst [vmem:[#allocation74_spill] sm:$0xff] %v7752_v5 }
 0x467   : > { %v6611_v33 = vpop.eup %6610 }
 0x468   : > { %v1016_v44 = vmul.f32 %v6611_v33, %v998_v3 }
 0x469   : > { %v7754_v6 = vpop.permute.xlu2 %1822 }
 0x46a   : > { %11179 = vst [vmem:[#allocation75_spill] sm:$0xff] %v7754_v6  ;;  %v1024_v63 = vsub.f32 2.0, %v1016_v44  ;;  %v1282_v6 = vsel %vm1281_vm5, %v6609_v47, %v1278_v24 }
 0x46c   : > { %6325 = vset.pattern.permute.xlu1 %v11143_v7 }
 0x46d   : > { %6324 = vset.pattern.permute.xlu2 %v11149_v49  ;;  %6377 = vset.pattern.permute.xlu0 %v11169_v31 }
 0x46e   : > { %1746 = vperm.xlu1 %6325, %v7330_v43   ;;  %1666 = vperm.xlu2 %6324, %v7330_v43   ;;  %v7761_v10 = vpop.permute.xlu1 %1374 }
 0x46f   : > { %11180 = vst [vmem:[#allocation76_spill] sm:$0xff] %v7761_v10  ;;  %2490 = vperm.xlu0 %6377, %v7658_v16   ;;  %v7764_v5 = vpop.permute.xlu0 %1830 }
 0x470   : > { %11181 = vst [vmem:[#allocation77_spill] sm:$0xff] %v7764_v5 }
 0x472   : > { %v7766_v36 = vpop.permute.xlu2 %2022 }
 0x473   : > { %11182 = vst [vmem:[#allocation78_spill] sm:$0xff] %v7766_v36  ;;  %v1285_v36 = vand.u32 2147483648, %v1168_v34 }
 0x475   : > { %v1286_v28 = vor.u32 1.1754944e-38, %v1285_v36 }
 0x476   : > { %6326 = vset.pattern.permute.xlu1 %v11140_v26  ;;  %6327 = vset.pattern.permute.xlu2 %v11155_v18 }
 0x477   : > { %6378 = vset.pattern.permute.xlu0 %v11119_v27  ;;  %1826 = vperm.xlu1 %6326, %v7330_v43   ;;  %v1287_v3 = vsel %vm1284_vm6, %v1286_v28, %v1282_v6 }
 0x478   : > { %1906 = vperm.xlu2 %6327, %v7330_v43   ;;  %2530 = vperm.xlu0 %6378, %v7658_v16   ;;  %v7774_v10 = vpop.permute.xlu1 %1614  ;;  %v7776_v5 = vpop.permute.xlu0 %2110  ;;  %v1296_v36 = vmul.f32 2.0, %v1287_v3 }
 0x479   : > { %11183 = vst [vmem:[#allocation79_spill] sm:$0xff] %v7774_v10  ;;  %v1032_v10 = vmul.f32 %v6611_v33, %v1024_v63 }
 0x47a   : > { %11184 = vst [vmem:[#allocation80_spill] sm:$0xff] %v7776_v5 }
 0x47b   : > { %v1304_v22 = vmul.f32 %v7265_v59, %v1032_v10 }
 0x47c   : > { %v7778_v13 = vpop.permute.xlu2 %2102 }
 0x47d   : > { %v7793_v47 = vmul.f32 %v1304_v22, %v1296_v36 }
 0x47f   : > { %6329 = vset.pattern.permute.xlu1 %v11154_v41 }
 0x480   : > { %6328 = vset.pattern.permute.xlu2 %v11159_v32  ;;  %6381 = vset.pattern.permute.xlu0 %v11129_v12 }
 0x481   : > { %2026 = vperm.xlu1 %6329, %v7330_v43   ;;  %1946 = vperm.xlu2 %6328, %v7330_v43   ;;  %v7785_v62 = vpop.permute.xlu1 %1662 }
 0x482   : > { %2770 = vperm.xlu0 %6381, %v7658_v16   ;;  %v7788_v34 = vpop.permute.xlu0 %2398 }
 0x483   : > { %11185 = vst [vmem:[#allocation81_spill] sm:$0xff] %v7788_v34 }
 0x485   : > { %v7791_v24 = vpop.permute.xlu2 %2310 }
 0x489   : > { %6330 = vset.pattern.permute.xlu1 %v11145_v35  ;;  %6331 = vset.pattern.permute.xlu2 %v11162_v58 }
 0x48a   : > { %6384 = vset.pattern.permute.xlu0 %v11135_v4  ;;  %2106 = vperm.xlu1 %6330, %v7330_v43  }
 0x48b   : > { %2186 = vperm.xlu2 %6331, %v7330_v43   ;;  %1470 = vperm.xlu0 %6384, %v7793_v47   ;;  %v7801_v28 = vpop.permute.xlu1 %1902  ;;  %v7803_v63 = vpop.permute.xlu0 %2686 }
 0x48c   : > { %11186 = vst [vmem:[#allocation82_spill] sm:$0xff] %v7801_v28 }
 0x48d   : > { %11187 = vst [vmem:[#allocation83_spill] sm:$0xff] %v7803_v63 }
 0x48f   : > { %v7805_v59 = vpop.permute.xlu2 %2390 }
 0x492   : > { %6333 = vset.pattern.permute.xlu1 %v11118_v25 }
 0x493   : > { %6332 = vset.pattern.permute.xlu2 %v11166_v19  ;;  %6388 = vset.pattern.permute.xlu0 %v11143_v7 }
 0x494   : > { %2314 = vperm.xlu1 %6333, %v7330_v43   ;;  %2234 = vperm.xlu2 %6332, %v7330_v43   ;;  %v7812_v33 = vpop.permute.xlu1 %1942 }
 0x495   : > { %1758 = vperm.xlu0 %6388, %v7793_v47   ;;  %v7815_v10 = vpop.permute.xlu0 %1345 }
 0x496   : > { %11188 = vst [vmem:[#allocation84_spill] sm:$0xff] %v7815_v10 }
 0x498   : > { %v7817_v6 = vpop.permute.xlu2 %2598 }
 0x49c   : > { %6334 = vset.pattern.permute.xlu1 %v11117_v21  ;;  %6335 = vset.pattern.permute.xlu2 %v11169_v31 }
 0x49d   : > { %6392 = vset.pattern.permute.xlu0 %v11154_v41  ;;  %2394 = vperm.xlu1 %6334, %v7330_v43  }
 0x49e   : > { %2482 = vperm.xlu2 %6335, %v7330_v43   ;;  %2038 = vperm.xlu0 %6392, %v7793_v47   ;;  %v7825_v44 = vpop.permute.xlu1 %2182  ;;  %v7827_v3 = vpop.permute.xlu0 %1386 }
 0x49f   : > { %11189 = vst [vmem:[#allocation85_spill] sm:$0xff] %v7825_v44 }
 0x4a0   : > { %11190 = vst [vmem:[#allocation86_spill] sm:$0xff] %v7827_v3 }
 0x4a2   : > { %v7829_v36 = vpop.permute.xlu2 %2678 }
 0x4a5   : > { %6337 = vset.pattern.permute.xlu1 %v11128_v29 }
 0x4a6   : > { %6336 = vset.pattern.permute.xlu2 %v11119_v27  ;;  %6396 = vset.pattern.permute.xlu0 %v11118_v25 }
 0x4a7   : > { %2602 = vperm.xlu1 %6337, %v7330_v43   ;;  %2522 = vperm.xlu2 %6336, %v7330_v43   ;;  %v7836_v22 = vpop.permute.xlu1 %2230 }
 0x4a8   : > { %2326 = vperm.xlu0 %6396, %v7793_v47   ;;  %v7839_v10 = vpop.permute.xlu0 %1626 }
 0x4a9   : > { %11191 = vst [vmem:[#allocation87_spill] sm:$0xff] %v7839_v10 }
 0x4ac   : > { %v7841_v44 = vpop.permute.xlu2 %1335 }
 0x4ad   : > { %11192 = vst [vmem:[#allocation88_spill] sm:$0xff] %v7841_v44  ;;  %v1553_v44 = vmul.f32 %v7415_v50, %v7024_v2 }
 0x4af   : > { %6338 = vset.pattern.permute.xlu1 %v11127_v54  ;;  %6339 = vset.pattern.permute.xlu2 %v11129_v12 }
 0x4b0   : > { %6400 = vset.pattern.permute.xlu0 %v11128_v29  ;;  %2682 = vperm.xlu1 %6338, %v7330_v43  }
 0x4b1   : > { %2762 = vperm.xlu2 %6339, %v7330_v43   ;;  %2614 = vperm.xlu0 %6400, %v7793_v47   ;;  %v7849_v28 = vpop.permute.xlu1 %2478  ;;  %v7851_v3 = vpop.permute.xlu0 %1674  ;;  %v1841_v43 = vmul.f32 %v7426_v30, %v7073_v61 }
 0x4b2   : > { %11193 = vst [vmem:[#allocation89_spill] sm:$0xff] %v7849_v28 }
 0x4b3   : > { %11194 = vst [vmem:[#allocation90_spill] sm:$0xff] %v7851_v3 }
 0x4b5   : > { %v7853_v63 = vpop.permute.xlu2 %1378 }
 0x4b8   : > { %6340 = vset.pattern.permute.xlu1 %v11133_v52 }
 0x4b9   : > { %6342 = vset.pattern.permute.xlu2 %v11135_v4  ;;  %1569 = vrot.lane.b32.xlu0 %v1553_v44, %s6698_s12 }
 0x4ba   : > { %1462 = vperm.xlu2 %6342, %v7588_v57   ;;  %1340 = vperm.xlu1 %6340, %v7588_v57   ;;  %v7862_v10 = vpop.permute.xlu1 %2518 }
 0x4bb   : > { %v7864_v28 = vpop.permute.xlu0 %1914 }
 0x4bc   : > { %11195 = vst [vmem:[#allocation91_spill] sm:$0xff] %v7864_v28  ;;  %v2121_v28 = vmul.f32 %v7443_v60, %v7024_v2 }
 0x4bf   : > { %v7868_v3 = vpop.permute.xlu2 %1618 }
 0x4c0   : > { %11196 = vst [vmem:[#allocation92_spill] sm:$0xff] %v7868_v3  ;;  %v2409_v3 = vmul.f32 %v7460_v20, %v7073_v61 }
 0x4c1   : > { %1857 = vrot.lane.b32.xlu0 %v1841_v43, %s6698_s12 }
 0x4c2   : > { %6346 = vset.pattern.permute.xlu2 %v11143_v7  ;;  %6341 = vset.pattern.permute.xlu1 %v11139_v1 }
 0x4c3   : > { %1750 = vperm.xlu2 %6346, %v7588_v57   ;;  %1382 = vperm.xlu1 %6341, %v7588_v57   ;;  %v7875_v50 = vpop.permute.xlu1 %2758 }
 0x4c4   : > { %11197 = vst [vmem:[#allocation93_spill] sm:$0xff] %v7875_v50  ;;  %v7877_v44 = vpop.permute.xlu0 %1954 }
 0x4c5   : > { %11198 = vst [vmem:[#allocation94_spill] sm:$0xff] %v7877_v44 }
 0x4c8   : > { %v7881_v30 = vpop.permute.xlu2 %1666 }
 0x4c9   : > { %2137 = vrot.lane.b32.xlu0 %v2121_v28, %s6698_s12 }
 0x4cb   : > { %6350 = vset.pattern.permute.xlu2 %v11154_v41  ;;  %6344 = vset.pattern.permute.xlu1 %v11144_v14 }
 0x4cc   : > { %2030 = vperm.xlu2 %6350, %v7588_v57   ;;  %1622 = vperm.xlu1 %6344, %v7588_v57  }
 0x4cd   : > { %v7888_v43 = vpop.permute.xlu1 %1458 }
 0x4ce   : > { %v7890_v50 = vpop.permute.xlu0 %2194 }
 0x4cf   : > { %11199 = vst [vmem:[#allocation95_spill] sm:$0xff] %v7890_v50  ;;  %v2697_v50 = vmul.f32 %v7477_v51, %v7024_v2 }
 0x4d1   : > { %2425 = vrot.lane.b32.xlu0 %v2409_v3, %s6698_s12  ;;  %v1394_v3 = vmul.f32 %v7520_v37, %v7034_v9 }
 0x4d2   : > { %v7895_v60 = vpop.permute.xlu2 %1906 }
 0x4d3   : > { %11200 = vst [vmem:[#allocation96_spill] sm:$0xff] %v7895_v60 }
 0x4d4   : > { %6354 = vset.pattern.permute.xlu2 %v11118_v25  ;;  %6345 = vset.pattern.permute.xlu1 %v11149_v49 }
 0x4d5   : > { %2318 = vperm.xlu2 %6354, %v7588_v57   ;;  %1670 = vperm.xlu1 %6345, %v7588_v57  }
 0x4d6   : > { %v7901_v28 = vpop.permute.xlu1 %1538 }
 0x4d7   : > { %v7905_v44 = vpop.permute.xlu0 %2242 }
 0x4d8   : > { %11201 = vst [vmem:[#allocation97_spill] sm:$0xff] %v7905_v44  ;;  %v1682_v44 = vmul.f32 %v7580_v53, %v7056_v39 }
 0x4d9   : > { %2713 = vrot.lane.b32.xlu0 %v2697_v50, %s6698_s12 }
 0x4db   : > { %v7908_v20 = vpop.permute.xlu2 %1946 }
 0x4dd   : > { %6358 = vset.pattern.permute.xlu2 %v11128_v29  ;;  %6348 = vset.pattern.permute.xlu1 %v11155_v18 }
 0x4de   : > { %2606 = vperm.xlu2 %6358, %v7588_v57   ;;  %1910 = vperm.xlu1 %6348, %v7588_v57  }
 0x4e0   : > { %v7916_v60 = vpop.permute.xlu1 %1746 }
 0x4e1   : > { %1411 = vrot.lane.b32.xlu0 %v1394_v3, %s6699_s21  ;;  %v7919_v51 = vpop.permute.xlu0 %2490 }
 0x4e2   : > { %11202 = vst [vmem:[#allocation98_spill] sm:$0xff] %v7919_v51 }
 0x4e5   : > { %v7921_v50 = vpop.permute.xlu2 %2186 }
 0x4e6   : > { %11203 = vst [vmem:[#allocation99_spill] sm:$0xff] %v7921_v50  ;;  %6364 = vset.pattern.permute.xlu2 %v11134_v45  ;;  %6349 = vset.pattern.permute.xlu1 %v11159_v32  ;;  %v1962_v50 = vmul.f32 %v7609_v15, %v7034_v9 }
 0x4e7   : > { %1950 = vperm.xlu1 %6349, %v7588_v57   ;;  %1546 = vperm.xlu2 %6364, %v7658_v16  }
 0x4e9   : > { %1699 = vrot.lane.b32.xlu0 %v1682_v44, %s6699_s21  ;;  %v7930_v37 = vpop.permute.xlu1 %1826 }
 0x4ea   : > { %v7932_v3 = vpop.permute.xlu0 %2530 }
 0x4eb   : > { %11204 = vst [vmem:[#allocation100_spill] sm:$0xff] %v7932_v3  ;;  %v2250_v3 = vmul.f32 %v7633_v38, %v7056_v39 }
 0x4ee   : > { %v7934_v51 = vpop.permute.xlu2 %2234 }
 0x4ef   : > { %6352 = vset.pattern.permute.xlu1 %v11162_v58  ;;  %6368 = vset.pattern.permute.xlu2 %v11140_v26 }
 0x4f0   : > { %2190 = vperm.xlu1 %6352, %v7588_v57   ;;  %1834 = vperm.xlu2 %6368, %v7658_v16  }
 0x4f1   : > { %1979 = vrot.lane.b32.xlu0 %v1962_v50, %s6699_s21 }
 0x4f3   : > { %v7943_v53 = vpop.permute.xlu1 %2026 }
 0x4f4   : > { %v7945_v44 = vpop.permute.xlu0 %2770 }
 0x4f5   : > { %11205 = vst [vmem:[#allocation101_spill] sm:$0xff] %v7945_v44  ;;  %v2538_v44 = vmul.f32 %v7666_v42, %v7034_v9 }
 0x4f8   : > { %6353 = vset.pattern.permute.xlu1 %v11166_v19  ;;  %6372 = vset.pattern.permute.xlu2 %v11145_v35  ;;  %v7951_v15 = vpop.permute.xlu2 %2482 }
 0x4f9   : > { %11206 = vst [vmem:[#allocation102_spill] sm:$0xff] %v7951_v15  ;;  %2238 = vperm.xlu1 %6353, %v7588_v57   ;;  %2114 = vperm.xlu2 %6372, %v7658_v16  }
 0x4fa   : > { %2267 = vrot.lane.b32.xlu0 %v2250_v3, %s6699_s21 }
 0x4fc   : > { %v7956_v50 = vpop.permute.xlu1 %2106 }
 0x4fd   : > { %v7958_v34 = vpop.permute.xlu0 %1470 }
 0x4fe   : > { %11207 = vst [vmem:[#allocation103_spill] sm:$0xff] %v7958_v34  ;;  %v1475_v34 = vmul.f32 %v7691_v55, %v7041_v17 }
 0x501   : > { %6356 = vset.pattern.permute.xlu1 %v11169_v31  ;;  %6376 = vset.pattern.permute.xlu2 %v11117_v21  ;;  %v7964_v38 = vpop.permute.xlu2 %2522 }
 0x502   : > { %2555 = vrot.lane.b32.xlu0 %v2538_v44, %s6699_s21  ;;  %2486 = vperm.xlu1 %6356, %v7588_v57  }
 0x503   : > { %2402 = vperm.xlu2 %6376, %v7658_v16  }
 0x506   : > { %v7969_v3 = vpop.permute.xlu1 %2314 }
 0x507   : > { %v7971_v15 = vpop.permute.xlu0 %1758 }
 0x508   : > { %11208 = vst [vmem:[#allocation104_spill] sm:$0xff] %v7971_v15  ;;  %v1763_v15 = vmul.f32 %v7704_v11, %v7063_v48 }
 0x50a   : > { %1493 = vrot.lane.b32.xlu0 %v1475_v34, %s6676_s24  ;;  %6357 = vset.pattern.permute.xlu1 %v11119_v27  ;;  %v2043_v34 = vmul.f32 %v7715_v8, %v7041_v17 }
 0x50b   : > { %6380 = vset.pattern.permute.xlu2 %v11127_v54  ;;  %v7978_v42 = vpop.permute.xlu2 %2762  ;;  %2526 = vperm.xlu1 %6357, %v7588_v57  }
 0x50c   : > { %11209 = vst [vmem:[#allocation105_spill] sm:$0xff] %v7978_v42  ;;  %2690 = vperm.xlu2 %6380, %v7658_v16  }
 0x50f   : > { %v7982_v44 = vpop.permute.xlu1 %2394 }
 0x510   : > { %v7986_v5 = vpop.permute.xlu0 %2038 }
 0x512   : > { %1781 = vrot.lane.b32.xlu0 %v1763_v15, %s6676_s24  ;;  %v2331_v15 = vmul.f32 %v7728_v46, %v7063_v48 }
 0x513   : > { %6360 = vset.pattern.permute.xlu1 %v11129_v12 }
 0x514   : > { %6382 = vset.pattern.permute.xlu2 %v11133_v52  ;;  %v7991_v55 = vpop.permute.xlu2 %1462  ;;  %2766 = vperm.xlu1 %6360, %v7588_v57  }
 0x515   : > { %1350 = vperm.xlu2 %6382, %v7793_v47  }
 0x519   : > { %v7997_v42 = vpop.permute.xlu1 %2602 }
 0x51a   : > { %2061 = vrot.lane.b32.xlu0 %v2043_v34, %s6676_s24  ;;  %v8000_v11 = vpop.permute.xlu0 %2326 }
 0x51c   : > { %6363 = vset.pattern.permute.xlu1 %v11135_v4 }
 0x51d   : > { %6383 = vset.pattern.permute.xlu2 %v11139_v1  ;;  %v8004_v52 = vpop.permute.xlu2 %1750  ;;  %1466 = vperm.xlu1 %6363, %v7658_v16   ;;  %v2619_v1 = vmul.f32 %v7739_v0, %v7041_v17 }
 0x51e   : > { %1390 = vperm.xlu2 %6383, %v7793_v47  }
 0x522   : > { %2349 = vrot.lane.b32.xlu0 %v2331_v15, %s6676_s24  ;;  %v8011_v8 = vpop.permute.xlu1 %2682 }
 0x523   : > { %v8013_v34 = vpop.permute.xlu0 %2614 }
 0x525   : > { %6367 = vset.pattern.permute.xlu1 %v11143_v7 }
 0x526   : > { %6386 = vset.pattern.permute.xlu2 %v11144_v14  ;;  %v8017_v4 = vpop.permute.xlu2 %2030  ;;  %1754 = vperm.xlu1 %6367, %v7658_v16   ;;  %v1556_v14 = vmul.f32 %v7730_v40, %v7045_v23 }
 0x527   : > { %1630 = vperm.xlu2 %6386, %v7793_v47  }
 0x52a   : > { %2637 = vrot.lane.b32.xlu0 %v2619_v1, %s6676_s24 }
 0x52b   : > { %v8024_v46 = vpop.permute.xlu0 %1569 }
 0x52c   : > { %11210 = vst [vmem:[#allocation106_spill] sm:$0xff] %v8024_v46  ;;  %v8026_v15 = vpop.permute.xlu1 %1340 }
 0x52d   : > { %11211 = vst [vmem:[#allocation107_spill] sm:$0xff] %v8026_v15 }
 0x52e   : > { %6371 = vset.pattern.permute.xlu1 %v11154_v41  ;;  %v11213_v41 = vld [vmem:[#allocation75_spill] sm:$0xff] }
 0x52f   : > { %6387 = vset.pattern.permute.xlu2 %v11149_v49  ;;  %v8030_v7 = vpop.permute.xlu2 %2318  ;;  %2034 = vperm.xlu1 %6371, %v7658_v16   ;;  %v1844_v49 = vmul.f32 %v11213_v41, %v7070_v56 }
 0x530   : > { %1678 = vperm.xlu2 %6387, %v7793_v47  }
 0x532   : > { %1575 = vrot.lane.b32.xlu0 %v1556_v14, %s6698_s12 }
 0x533   : > { %v8037_v0 = vpop.permute.xlu0 %1857 }
 0x534   : > { %11212 = vst [vmem:[#allocation108_spill] sm:$0xff] %v8037_v0  ;;  %v2412_v0 = vmul.f32 %v7805_v59, %v7070_v56  ;;  %v11220_v59 = vld [vmem:[#allocation8_spill] sm:$0xff] }
 0x535   : > { %v8039_v1 = vpop.permute.xlu1 %1382 }
 0x537   : > { %6375 = vset.pattern.permute.xlu1 %v11118_v25  ;;  %v2124_v25 = vmul.f32 %v7778_v13, %v7045_v23  ;;  %v2700_v13 = vmul.f32 %v7829_v36, %v7045_v23 }
 0x538   : > { %6390 = vset.pattern.permute.xlu2 %v11155_v18  ;;  %v8045_v15 = vpop.permute.xlu2 %2606  ;;  %2322 = vperm.xlu1 %6375, %v7658_v16  }
 0x539   : > { %1918 = vperm.xlu2 %6390, %v7793_v47  }
 0x53a   : > { %1863 = vrot.lane.b32.xlu0 %v1844_v49, %s6698_s12 }
 0x53b   : > { %v8050_v40 = vpop.permute.xlu0 %2137 }
 0x53c   : > { %11214 = vst [vmem:[#allocation75_spill] sm:$0xff] %v8050_v40 }
 0x53e   : > { %v8052_v14 = vpop.permute.xlu1 %1622 }
 0x53f   : > { %11215 = vst [vmem:[#allocation109_spill] sm:$0xff] %v8052_v14 }
 0x540   : > { %6379 = vset.pattern.permute.xlu1 %v11128_v29 }
 0x541   : > { %6391 = vset.pattern.permute.xlu2 %v11159_v32  ;;  %v8058_v18 = vpop.permute.xlu2 %1546  ;;  %2610 = vperm.xlu1 %6379, %v7658_v16  }
 0x542   : > { %1958 = vperm.xlu2 %6391, %v7793_v47   ;;  %2143 = vrot.lane.b32.xlu0 %v2124_v25, %s6698_s12 }
 0x543   : > { %v8063_v41 = vpop.permute.xlu0 %2425 }
 0x544   : > { %11216 = vst [vmem:[#allocation110_spill] sm:$0xff] %v8063_v41 }
 0x547   : > { %v8065_v49 = vpop.permute.xlu1 %1670 }
 0x549   : > { %6385 = vset.pattern.permute.xlu1 %v11134_v45 }
 0x54a   : > { %6394 = vset.pattern.permute.xlu2 %v11162_v58  ;;  %2431 = vrot.lane.b32.xlu0 %v2412_v0, %s6698_s12  ;;  %v8072_v29 = vpop.permute.xlu2 %1834  ;;  %v1397_v0 = vmul.f32 %v7853_v63, %v11220_v59 }
 0x54b   : > { %1550 = vperm.xlu1 %6385, %v7793_v47   ;;  %2198 = vperm.xlu2 %6394, %v7793_v47   ;;  %v8076_v32 = vpop.permute.xlu0 %2713 }
 0x54c   : > { %11217 = vst [vmem:[#allocation111_spill] sm:$0xff] %v8076_v32 }
 0x550   : > { %v8080_v25 = vpop.permute.xlu1 %1910 }
 0x551   : > { %11218 = vst [vmem:[#allocation112_spill] sm:$0xff] %v8080_v25 }
 0x552   : > { %2719 = vrot.lane.b32.xlu0 %v2700_v13, %s6698_s12 }
 0x553   : > { %6389 = vset.pattern.permute.xlu1 %v11140_v26  ;;  %6395 = vset.pattern.permute.xlu2 %v11166_v19  ;;  %v8085_v45 = vpop.permute.xlu2 %2114  ;;  %v8087_v58 = vpop.permute.xlu0 %1411  ;;  %v11222_v19 = vld [vmem:[#allocation14_spill] sm:$0xff] }
 0x554   : > { %11219 = vst [vmem:[#allocation113_spill] sm:$0xff] %v8087_v58  ;;  %1838 = vperm.xlu1 %6389, %v7793_v47   ;;  %2246 = vperm.xlu2 %6395, %v7793_v47   ;;  %v1685_v32 = vmul.f32 %v7881_v30, %v11222_v19 }
 0x559   : > { %v8093_v36 = vpop.permute.xlu1 %1950 }
 0x55a   : > { %1417 = vrot.lane.b32.xlu0 %v1397_v0, %s6699_s21 }
 0x55b   : > { %v8096_v13 = vpop.permute.xlu0 %1699 }
 0x55c   : > { %11221 = vst [vmem:[#allocation8_spill] sm:$0xff] %v8096_v13  ;;  %6393 = vset.pattern.permute.xlu1 %v11145_v35  ;;  %6398 = vset.pattern.permute.xlu2 %v11169_v31  ;;  %v1965_v31 = vmul.f32 %v7908_v20, %v11220_v59  ;;  %v11228_v20 = vld [vmem:[#allocation23_spill] sm:$0xff] }
 0x55d   : > { %v8100_v26 = vpop.permute.xlu2 %2402  ;;  %2118 = vperm.xlu1 %6393, %v7793_v47   ;;  %2494 = vperm.xlu2 %6398, %v7793_v47  }
 0x562   : > { %1705 = vrot.lane.b32.xlu0 %v1685_v32, %s6699_s21  ;;  %v8107_v63 = vpop.permute.xlu1 %2190  ;;  %v11225_v32 = vld [vmem:[#allocation21_spill] sm:$0xff] }
 0x563   : > { %11223 = vst [vmem:[#allocation14_spill] sm:$0xff] %v8107_v63  ;;  %v8109_v0 = vpop.permute.xlu0 %1979  ;;  %v1473_v41 = vmul.f32 %v11225_v32, %v7024_v2 }
 0x564   : > { %11224 = vst [vmem:[#allocation114_spill] sm:$0xff] %v8109_v0 }
 0x565   : > { %6397 = vset.pattern.permute.xlu1 %v11117_v21  ;;  %6399 = vset.pattern.permute.xlu2 %v11119_v27  ;;  %v2253_v21 = vmul.f32 %v7934_v51, %v11222_v19 }
 0x566   : > { %v8113_v35 = vpop.permute.xlu2 %2690  ;;  %2406 = vperm.xlu1 %6397, %v7793_v47   ;;  %2534 = vperm.xlu2 %6399, %v7793_v47  }
 0x56a   : > { %1985 = vrot.lane.b32.xlu0 %v1965_v31, %s6699_s21  ;;  %v1761_v31 = vmul.f32 %v11228_v20, %v7073_v61 }
 0x56b   : > { %v8120_v30 = vpop.permute.xlu1 %2238 }
 0x56c   : > { %v8124_v13 = vpop.permute.xlu0 %2267 }
 0x56d   : > { %11226 = vst [vmem:[#allocation21_spill] sm:$0xff] %v8124_v13 }
 0x56e   : > { %6401 = vset.pattern.permute.xlu1 %v11127_v54  ;;  %1489 = vrot.lane.b32.xlu2 %v1473_v41, %s6676_s24  ;;  %v11231_v54 = vld [vmem:[#allocation27_spill] sm:$0xff] }
 0x56f   : > { %2694 = vperm.xlu1 %6401, %v7793_v47   ;;  %v8129_v27 = vpop.permute.xlu2 %1350  ;;  %6402 = vset.pattern.permute.xlu2 %v11129_v12  ;;  %v1393_v41 = vmul.f32 %v11231_v54, %v7024_v2  ;;  %v2541_v12 = vmul.f32 %v7964_v38, %v11220_v59 }
 0x570   : > { %11227 = vst [vmem:[#allocation115_spill] sm:$0xff] %v8129_v27 }
 0x572   : > { %2273 = vrot.lane.b32.xlu0 %v2253_v21, %s6699_s21  ;;  %v11232_v21 = vld [vmem:[#allocation24_spill] sm:$0xff] }
 0x573   : > { %v2041_v20 = vmul.f32 %v11232_v21, %v7024_v2 }
 0x574   : > { %v8137_v32 = vpop.permute.xlu0 %2555  ;;  %v8139_v63 = vpop.permute.xlu1 %2486 }
 0x575   : > { %11229 = vst [vmem:[#allocation23_spill] sm:$0xff] %v8137_v32 }
 0x576   : > { %11230 = vst [vmem:[#allocation116_spill] sm:$0xff] %v8139_v63  ;;  %1777 = vrot.lane.b32.xlu2 %v1761_v31, %s6676_s24  ;;  %v11234_v63 = vld [vmem:[#allocation31_spill] sm:$0xff]  ;;  %v11235_v31 = vld [vmem:[#allocation9_spill] sm:$0xff] }
 0x577   : > { %1409 = vrot.lane.b32.xlu1 %v1393_v41, %s6699_s21  ;;  %v1681_v27 = vmul.f32 %v11234_v63, %v7073_v61  ;;  %v1478_v38 = vmul.f32 %v7991_v55, %v11235_v31  ;;  %v11239_v63 = vld [vmem:[#allocation35_spill] sm:$0xff] }
 0x578   : > { %v8147_v51 = vpop.permute.xlu2 %1390  ;;  %v1961_v25 = vmul.f32 %v11239_v63, %v7024_v2  ;;  %v11244_v63 = vld [vmem:[#allocation40_spill] sm:$0xff] }
 0x57a   : > { %2561 = vrot.lane.b32.xlu0 %v2541_v12, %s6699_s21  ;;  %v11237_v12 = vld [vmem:[#allocation26_spill] sm:$0xff] }
 0x57b   : > { %v2329_v21 = vmul.f32 %v11237_v12, %v7073_v61 }
 0x57c   : > { %v8152_v32 = vpop.permute.xlu0 %1493 }
 0x57d   : > { %11233 = vst [vmem:[#allocation27_spill] sm:$0xff] %v8152_v32  ;;  %v8156_v54 = vpop.permute.xlu1 %2526  ;;  %v2249_v32 = vmul.f32 %v11244_v63, %v7073_v61  ;;  %v11248_v63 = vld [vmem:[#allocation46_spill] sm:$0xff] }
 0x57e   : > { %2057 = vrot.lane.b32.xlu2 %v2041_v20, %s6676_s24 }
 0x57f   : > { %1697 = vrot.lane.b32.xlu1 %v1681_v27, %s6699_s21  ;;  %v11241_v27 = vld [vmem:[#allocation15_spill] sm:$0xff] }
 0x580   : > { %v1766_v55 = vmul.f32 %v8004_v52, %v11241_v27  ;;  %v2046_v52 = vmul.f32 %v8017_v4, %v11235_v31 }
 0x581   : > { %v8162_v41 = vpop.permute.xlu2 %1630 }
 0x582   : > { %11236 = vst [vmem:[#allocation24_spill] sm:$0xff] %v8162_v41  ;;  %1499 = vrot.lane.b32.xlu0 %v1478_v38, %s6676_s24  ;;  %v11242_v38 = vld [vmem:[#allocation28_spill] sm:$0xff] }
 0x583   : > { %v2617_v12 = vmul.f32 %v11242_v38, %v7024_v2 }
 0x584   : > { %v8167_v13 = vpop.permute.xlu0 %1781 }
 0x585   : > { %11238 = vst [vmem:[#allocation31_spill] sm:$0xff] %v8167_v13 }
 0x586   : > { %2345 = vrot.lane.b32.xlu2 %v2329_v21, %s6676_s24  ;;  %v8172_v20 = vpop.permute.xlu1 %2766 }
 0x587   : > { %11240 = vst [vmem:[#allocation26_spill] sm:$0xff] %v8172_v20  ;;  %1977 = vrot.lane.b32.xlu1 %v1961_v25, %s6699_s21 }
 0x58a   : > { %v8177_v41 = vpop.permute.xlu2 %1678  ;;  %1787 = vrot.lane.b32.xlu0 %v1766_v55, %s6676_s24  ;;  %v11246_v55 = vld [vmem:[#allocation30_spill] sm:$0xff] }
 0x58b   : > { %v1554_v38 = vmul.f32 %v11246_v55, %v7034_v9 }
 0x58c   : > { %v8182_v13 = vpop.permute.xlu0 %2061 }
 0x58d   : > { %11243 = vst [vmem:[#allocation35_spill] sm:$0xff] %v8182_v13  ;;  %v2537_v13 = vmul.f32 %v11248_v63, %v7024_v2  ;;  %v11251_v63 = vld [vmem:[#allocation51_spill] sm:$0xff] }
 0x58e   : > { %2633 = vrot.lane.b32.xlu2 %v2617_v12, %s6676_s24  ;;  %v11249_v12 = vld [vmem:[#allocation32_spill] sm:$0xff] }
 0x58f   : > { %2265 = vrot.lane.b32.xlu1 %v2249_v32, %s6699_s21  ;;  %v8188_v25 = vpop.permute.xlu1 %1466  ;;  %v2334_v32 = vmul.f32 %v8030_v7, %v11241_v27  ;;  %v2622_v7 = vmul.f32 %v8045_v15, %v11235_v31 }
 0x592   : > { %2067 = vrot.lane.b32.xlu0 %v2046_v52, %s6676_s24  ;;  %v1842_v52 = vmul.f32 %v11249_v12, %v7056_v39 }
 0x593   : > { %v8193_v21 = vpop.permute.xlu2 %1918 }
 0x594   : > { %11245 = vst [vmem:[#allocation28_spill] sm:$0xff] %v8193_v21  ;;  %v8197_v20 = vpop.permute.xlu0 %2349  ;;  %v1474_v21 = vmul.f32 %v11251_v63, %v7034_v9 }
 0x595   : > { %11247 = vst [vmem:[#allocation40_spill] sm:$0xff] %v8197_v20 }
 0x596   : > { %1571 = vrot.lane.b32.xlu2 %v1554_v38, %s6698_s12  ;;  %v11252_v38 = vld [vmem:[#allocation34_spill] sm:$0xff] }
 0x597   : > { %2553 = vrot.lane.b32.xlu1 %v2537_v13, %s6699_s21 }
 0x598   : > { %v8205_v4 = vpop.permute.xlu1 %1754 }
 0x59a   : > { %2355 = vrot.lane.b32.xlu0 %v2334_v32, %s6676_s24  ;;  %v2122_v32 = vmul.f32 %v11252_v38, %v7034_v9 }
 0x59c   : > { %v8210_v55 = vpop.permute.xlu2 %1958  ;;  %v8212_v20 = vpop.permute.xlu0 %2637 }
 0x59d   : > { %11250 = vst [vmem:[#allocation30_spill] sm:$0xff] %v8212_v20  ;;  %v11254_v20 = vld [vmem:[#allocation54_spill] sm:$0xff] }
 0x59e   : > { %1859 = vrot.lane.b32.xlu2 %v1842_v52, %s6698_s12  ;;  %v1762_v14 = vmul.f32 %v11254_v20, %v7056_v39  ;;  %v11259_v20 = vld [vmem:[#allocation56_spill] sm:$0xff] }
 0x59f   : > { %1491 = vrot.lane.b32.xlu1 %v1474_v21, %s6676_s24  ;;  %v11256_v21 = vld [vmem:[#allocation10_spill] sm:$0xff]  ;;  %v2042_v46 = vmul.f32 %v11259_v20, %v7034_v9  ;;  %v11263_v20 = vld [vmem:[#allocation59_spill] sm:$0xff] }
 0x5a0   : > { %v1559_v15 = vmul.f32 %v8058_v18, %v11256_v21  ;;  %v2330_v40 = vmul.f32 %v11263_v20, %v7056_v39 }
 0x5a1   : > { %v8220_v13 = vpop.permute.xlu1 %2034 }
 0x5a2   : > { %2643 = vrot.lane.b32.xlu0 %v2622_v7, %s6676_s24  ;;  %v11257_v7 = vld [vmem:[#allocation37_spill] sm:$0xff] }
 0x5a3   : > { %v2410_v38 = vmul.f32 %v11257_v7, %v7056_v39  ;;  %v11261_v7 = vld [vmem:[#allocation39_spill] sm:$0xff] }
 0x5a4   : > { %v8225_v12 = vpop.permute.xlu0 %1575 }
 0x5a5   : > { %11253 = vst [vmem:[#allocation46_spill] sm:$0xff] %v8225_v12  ;;  %v8229_v63 = vpop.permute.xlu2 %2198 }
 0x5a6   : > { %11255 = vst [vmem:[#allocation32_spill] sm:$0xff] %v8229_v63  ;;  %2139 = vrot.lane.b32.xlu2 %v2122_v32, %s6698_s12  ;;  %v2698_v63 = vmul.f32 %v11261_v7, %v7034_v9 }
 0x5a7   : > { %1779 = vrot.lane.b32.xlu1 %v1762_v14, %s6676_s24  ;;  %v11260_v14 = vld [vmem:[#allocation16_spill] sm:$0xff] }
 0x5a8   : > { %v1847_v18 = vmul.f32 %v8072_v29, %v11260_v14  ;;  %v2127_v29 = vmul.f32 %v8085_v45, %v11256_v21 }
 0x5aa   : > { %1581 = vrot.lane.b32.xlu0 %v1559_v15, %s6698_s12  ;;  %v8236_v52 = vpop.permute.xlu1 %2322 }
 0x5ac   : > { %v8240_v12 = vpop.permute.xlu0 %1863 }
 0x5ad   : > { %11258 = vst [vmem:[#allocation51_spill] sm:$0xff] %v8240_v12 }
 0x5ae   : > { %2427 = vrot.lane.b32.xlu2 %v2410_v38, %s6698_s12  ;;  %v8245_v32 = vpop.permute.xlu2 %2246  ;;  %v11265_v38 = vld [vmem:[#allocation44_spill] sm:$0xff] }
 0x5af   : > { %2059 = vrot.lane.b32.xlu1 %v2042_v46, %s6676_s24 }
 0x5b2   : > { %1869 = vrot.lane.b32.xlu0 %v1847_v18, %s6698_s12  ;;  %v1395_v18 = vmul.f32 %v11265_v38, %v7041_v17 }
 0x5b3   : > { %v8251_v15 = vpop.permute.xlu1 %2610 }
 0x5b4   : > { %v8255_v12 = vpop.permute.xlu0 %2143 }
 0x5b5   : > { %11262 = vst [vmem:[#allocation34_spill] sm:$0xff] %v8255_v12  ;;  %v11267_v12 = vld [vmem:[#allocation61_spill] sm:$0xff] }
 0x5b6   : > { %2715 = vrot.lane.b32.xlu2 %v2698_v63, %s6698_s12  ;;  %v2618_v58 = vmul.f32 %v11267_v12, %v7034_v9  ;;  %v11268_v63 = vld [vmem:[#allocation50_spill] sm:$0xff] }
 0x5b7   : > { %2347 = vrot.lane.b32.xlu1 %v2330_v40, %s6676_s24  ;;  %v8261_v46 = vpop.permute.xlu2 %2494  ;;  %v2415_v40 = vmul.f32 %v8100_v26, %v11260_v14 }
 0x5b8   : > { %11264 = vst [vmem:[#allocation54_spill] sm:$0xff] %v8261_v46 }
 0x5ba   : > { %2149 = vrot.lane.b32.xlu0 %v2127_v29, %s6698_s12  ;;  %v1683_v29 = vmul.f32 %v11268_v63, %v7063_v48 }
 0x5bc   : > { %v8268_v7 = vpop.permute.xlu0 %2431 }
 0x5bd   : > { %11266 = vst [vmem:[#allocation37_spill] sm:$0xff] %v8268_v7  ;;  %v8272_v20 = vpop.permute.xlu1 %1550  ;;  %v11270_v7 = vld [vmem:[#allocation64_spill] sm:$0xff] }
 0x5be   : > { %1413 = vrot.lane.b32.xlu2 %v1395_v18, %s6699_s21  ;;  %v1555_v12 = vmul.f32 %v11270_v7, %v7041_v17  ;;  %v11272_v18 = vld [vmem:[#allocation55_spill] sm:$0xff]  ;;  %v11274_v7 = vld [vmem:[#allocation66_spill] sm:$0xff] }
 0x5bf   : > { %2635 = vrot.lane.b32.xlu1 %v2618_v58, %s6676_s24  ;;  %v2703_v58 = vmul.f32 %v8113_v35, %v11256_v21 }
 0x5c0   : > { %v2535_v45 = vpop.permute.xlu2 %2534 }
 0x5c2   : > { %2437 = vrot.lane.b32.xlu0 %v2415_v40, %s6698_s12  ;;  %v1963_v40 = vmul.f32 %v11272_v18, %v7041_v17 }
 0x5c4   : > { %v8281_v38 = vpop.permute.xlu0 %2719 }
 0x5c5   : > { %11269 = vst [vmem:[#allocation56_spill] sm:$0xff] %v8281_v38  ;;  %v1843_v38 = vmul.f32 %v11274_v7, %v7063_v48  ;;  %v11279_v7 = vld [vmem:[#allocation68_spill] sm:$0xff] }
 0x5c6   : > { %v8285_v46 = vpop.permute.xlu1 %1838  ;;  %1701 = vrot.lane.b32.xlu2 %v1683_v29, %s6699_s21  ;;  %v2123_v0 = vmul.f32 %v11279_v7, %v7041_v17 }
 0x5c7   : > { %1573 = vrot.lane.b32.xlu1 %v1555_v12, %s6698_s12  ;;  %v11275_v12 = vld [vmem:[#allocation11_spill] sm:$0xff] }
 0x5c8   : > { %v8291_v26 = vpop.permute.xlu2 %1489  ;;  %v1400_v35 = vmul.f32 %v8147_v51, %v11275_v12 }
 0x5c9   : > { %11271 = vst [vmem:[#allocation39_spill] sm:$0xff] %v8291_v26 }
 0x5ca   : > { %2725 = vrot.lane.b32.xlu0 %v2703_v58, %s6698_s12  ;;  %v11277_v58 = vld [vmem:[#allocation60_spill] sm:$0xff] }
 0x5cb   : > { %v2251_v18 = vmul.f32 %v11277_v58, %v7063_v48  ;;  %v11282_v58 = vld [vmem:[#allocation65_spill] sm:$0xff] }
 0x5cc   : > { %v8296_v63 = vpop.permute.xlu0 %1417  ;;  %v2539_v7 = vmul.f32 %v11282_v58, %v7041_v17 }
 0x5cd   : > { %11273 = vst [vmem:[#allocation59_spill] sm:$0xff] %v8296_v63 }
 0x5ce   : > { %1981 = vrot.lane.b32.xlu2 %v1963_v40, %s6699_s21 }
 0x5cf   : > { %1861 = vrot.lane.b32.xlu1 %v1843_v38, %s6698_s12  ;;  %v8302_v29 = vpop.permute.xlu1 %2118  ;;  %v11280_v38 = vld [vmem:[#allocation17_spill] sm:$0xff] }
 0x5d0   : > { %v8306_v26 = vpop.permute.xlu2 %1777  ;;  %v1688_v40 = vmul.f32 %v8177_v41, %v11280_v38  ;;  %v1968_v41 = vmul.f32 %v8210_v55, %v11275_v12  ;;  %v2256_v55 = vmul.f32 %v8245_v32, %v11280_v38 }
 0x5d1   : > { %11276 = vst [vmem:[#allocation44_spill] sm:$0xff] %v8306_v26 }
 0x5d2   : > { %1423 = vrot.lane.b32.xlu0 %v1400_v35, %s6699_s21  ;;  %v11060_v35 = vmov 21  }
 0x5d3   : > { %6404 = vset.pattern.permute.xlu0 %v11060_v35  ;;  %6403 = vset.pattern.permute.xlu1 %v11060_v35 }
 0x5d4   : > { %v8311_v63 = vpop.permute.xlu0 %1705 }
 0x5d5   : > { %11278 = vst [vmem:[#allocation61_spill] sm:$0xff] %v8311_v63 }
 0x5d6   : > { %2269 = vrot.lane.b32.xlu2 %v2251_v18, %s6699_s21 }
 0x5d7   : > { %2141 = vrot.lane.b32.xlu1 %v2123_v0, %s6698_s12  ;;  %v11284_v0 = vld [vmem:[#allocation70_spill] sm:$0xff] }
 0x5d8   : > { %v8319_v51 = vpop.permute.xlu1 %2406  ;;  %v8321_v26 = vpop.permute.xlu2 %2057  ;;  %v2411_v63 = vmul.f32 %v11284_v0, %v7063_v48  ;;  %v11288_v0 = vld [vmem:[#allocation71_spill] sm:$0xff] }
 0x5d9   : > { %11281 = vst [vmem:[#allocation50_spill] sm:$0xff] %v8321_v26  ;;  %v2699_v2 = vmul.f32 %v11288_v0, %v7041_v17  ;;  %v11293_v0 = vld [vmem:[#allocation76_spill] sm:$0xff] }
 0x5da   : > { %1711 = vrot.lane.b32.xlu0 %v1688_v40, %s6699_s21  ;;  %v11286_v40 = vld [vmem:[#allocation69_spill] sm:$0xff] }
 0x5db   : > { %v1476_v58 = vmul.f32 %v11286_v40, %v7045_v23 }
 0x5dc   : > { %v8328_v18 = vpop.permute.xlu0 %1985 }
 0x5dd   : > { %11283 = vst [vmem:[#allocation64_spill] sm:$0xff] %v8328_v18 }
 0x5de   : > { %2557 = vrot.lane.b32.xlu2 %v2539_v7, %s6699_s21 }
 0x5df   : > { %2429 = vrot.lane.b32.xlu1 %v2411_v63, %s6698_s12 }
 0x5e0   : > { %v8336_v26 = vpop.permute.xlu2 %2345 }
 0x5e1   : > { %11285 = vst [vmem:[#allocation55_spill] sm:$0xff] %v8336_v26  ;;  %v8338_v35 = vpop.permute.xlu1 %2694  ;;  %v1396_v26 = vmul.f32 %v11293_v0, %v7045_v23  ;;  %v1684_v0 = vmul.f32 %v7785_v62, %v7070_v56 }
 0x5e2   : > { %1991 = vrot.lane.b32.xlu0 %v1968_v41, %s6699_s21  ;;  %v11291_v41 = vld [vmem:[#allocation72_spill] sm:$0xff] }
 0x5e3   : > { %v1764_v40 = vmul.f32 %v11291_v41, %v7070_v56 }
 0x5e4   : > { %v8343_v18 = vpop.permute.xlu0 %2273 }
 0x5e5   : > { %11287 = vst [vmem:[#allocation66_spill] sm:$0xff] %v8343_v18 }
 0x5e6   : > { %1495 = vrot.lane.b32.xlu2 %v1476_v58, %s6676_s24 }
 0x5e7   : > { %2717 = vrot.lane.b32.xlu1 %v2699_v2, %s6698_s12  ;;  %v2544_v2 = vmul.f32 %v2535_v45, %v11275_v12 }
 0x5e8   : > { %v8351_v63 = vpop.permute.xlu2 %2633 }
 0x5e9   : > { %11289 = vst [vmem:[#allocation11_spill] sm:$0xff] %v8351_v63  ;;  %v8353_v7 = vpop.permute.xlu1 %1409 }
 0x5ea   : > { %11290 = vst [vmem:[#allocation60_spill] sm:$0xff] %v8353_v7  ;;  %2279 = vrot.lane.b32.xlu0 %v2256_v55, %s6699_s21  ;;  %v11296_v55 = vld [vmem:[#allocation78_spill] sm:$0xff] }
 0x5eb   : > { %v2044_v41 = vmul.f32 %v11296_v55, %v7045_v23  ;;  %v1964_v55 = vmul.f32 %v7812_v33, %v7045_v23 }
 0x5ec   : > { %v8358_v18 = vpop.permute.xlu0 %2561 }
 0x5ed   : > { %11292 = vst [vmem:[#allocation68_spill] sm:$0xff] %v8358_v18 }
 0x5ee   : > { %1783 = vrot.lane.b32.xlu2 %v1764_v40, %s6676_s24  ;;  %v11300_v40 = vld [vmem:[#allocation20_spill] sm:$0xff] }
 0x5ef   : > { %1415 = vrot.lane.b32.xlu1 %v1396_v26, %s6699_s21 }
 0x5f0   : > { %v8365_v32 = vpop.permute.xlu2 %1571 }
 0x5f1   : > { %11294 = vst [vmem:[#allocation17_spill] sm:$0xff] %v8365_v32  ;;  %v8367_v58 = vpop.permute.xlu1 %1697 }
 0x5f2   : > { %11295 = vst [vmem:[#allocation65_spill] sm:$0xff] %v8367_v58  ;;  %2567 = vrot.lane.b32.xlu0 %v2544_v2, %s6699_s21  ;;  %v2332_v2 = vmul.f32 %v7791_v24, %v7070_v56  ;;  %v2252_v24 = vmul.f32 %v7836_v22, %v7070_v56 }
 0x5f4   : > { %v8372_v63 = vpop.permute.xlu0 %1499 }
 0x5f5   : > { %11297 = vst [vmem:[#allocation70_spill] sm:$0xff] %v8372_v63 }
 0x5f6   : > { %2063 = vrot.lane.b32.xlu2 %v2044_v41, %s6676_s24 }
 0x5f7   : > { %1703 = vrot.lane.b32.xlu1 %v1684_v0, %s6699_s21  ;;  %v2620_v0 = vmul.f32 %v7817_v6, %v7045_v23  ;;  %v2540_v6 = vmul.f32 %v7862_v10, %v7045_v23 }
 0x5f8   : > { %v8378_v26 = vpop.permute.xlu2 %1859 }
 0x5f9   : > { %11298 = vst [vmem:[#allocation69_spill] sm:$0xff] %v8378_v26  ;;  %v8380_v45 = vpop.permute.xlu1 %1977 }
 0x5fa   : > { %11299 = vst [vmem:[#allocation71_spill] sm:$0xff] %v8380_v45  ;;  %2798 = vperm.xlu0 %6404, %v11300_v40  }
 0x5fc   : > { %v8385_v18 = vpop.permute.xlu0 %1787 }
 0x5fd   : > { %11301 = vst [vmem:[#allocation72_spill] sm:$0xff] %v8385_v18 }
 0x5fe   : > { %2351 = vrot.lane.b32.xlu2 %v2332_v2, %s6676_s24 }
 0x5ff   : > { %1983 = vrot.lane.b32.xlu1 %v1964_v55, %s6699_s21  ;;  %v1557_v55 = vmul.f32 %v7901_v28, %v11220_v59  ;;  %v1477_v28 = vmul.f32 %v7888_v43, %v11220_v59 }
 0x600   : > { %v8391_v62 = vpop.permute.xlu2 %2139 }
 0x601   : > { %11302 = vst [vmem:[#allocation76_spill] sm:$0xff] %v8391_v62  ;;  %v8393_v41 = vpop.permute.xlu1 %2265 }
 0x602   : > { %11303 = vst [vmem:[#allocation78_spill] sm:$0xff] %v8393_v41  ;;  %2818 = vperm.xlu0 %6404, %v7658_v16  }
 0x604   : > { %v8398_v63 = vpop.permute.xlu0 %2067 }
 0x605   : > { %11304 = vst [vmem:[#allocation20_spill] sm:$0xff] %v8398_v63 }
 0x606   : > { %2639 = vrot.lane.b32.xlu2 %v2620_v0, %s6676_s24 }
 0x607   : > { %2271 = vrot.lane.b32.xlu1 %v2252_v24, %s6699_s21  ;;  %v1845_v24 = vmul.f32 %v7930_v37, %v11222_v19  ;;  %v1765_v37 = vmul.f32 %v7916_v60, %v11222_v19 }
 0x608   : > { %v8404_v33 = vpop.permute.xlu2 %2427 }
 0x609   : > { %11305 = vst [vmem:[#allocation117_spill] sm:$0xff] %v8404_v33  ;;  %v8406_v2 = vpop.permute.xlu1 %2553 }
 0x60a   : > { %11306 = vst [vmem:[#allocation118_spill] sm:$0xff] %v8406_v2 }
 0x60c   : > { %v8410_v18 = vpop.permute.xlu0 %2355 }
 0x60d   : > { %11307 = vst [vmem:[#allocation119_spill] sm:$0xff] %v8410_v18 }
 0x60e   : > { %1577 = vrot.lane.b32.xlu2 %v1557_v55, %s6698_s12 }
 0x60f   : > { %2559 = vrot.lane.b32.xlu1 %v2540_v6, %s6699_s21  ;;  %v2125_v6 = vmul.f32 %v7956_v50, %v11220_v59  ;;  %v2045_v50 = vmul.f32 %v7943_v53, %v11220_v59 }
 0x610   : > { %v8416_v22 = vpop.permute.xlu2 %2715 }
 0x611   : > { %11308 = vst [vmem:[#allocation120_spill] sm:$0xff] %v8416_v22  ;;  %v8418_v0 = vpop.permute.xlu1 %1491 }
 0x612   : > { %11309 = vst [vmem:[#allocation121_spill] sm:$0xff] %v8418_v0 }
 0x614   : > { %v8422_v63 = vpop.permute.xlu0 %2643 }
 0x615   : > { %11310 = vst [vmem:[#allocation122_spill] sm:$0xff] %v8422_v63 }
 0x616   : > { %1865 = vrot.lane.b32.xlu2 %v1845_v24, %s6698_s12 }
 0x617   : > { %1497 = vrot.lane.b32.xlu1 %v1477_v28, %s6676_s24  ;;  %v2413_v28 = vmul.f32 %v7982_v44, %v11222_v19  ;;  %v2333_v44 = vmul.f32 %v7969_v3, %v11222_v19 }
 0x618   : > { %v8428_v10 = vpop.permute.xlu2 %1413 }
 0x619   : > { %11311 = vst [vmem:[#allocation123_spill] sm:$0xff] %v8428_v10  ;;  %v8430_v55 = vpop.permute.xlu1 %1779 }
 0x61a   : > { %11312 = vst [vmem:[#allocation124_spill] sm:$0xff] %v8430_v55 }
 0x61c   : > { %v8434_v18 = vpop.permute.xlu0 %1581 }
 0x61d   : > { %11313 = vst [vmem:[#allocation125_spill] sm:$0xff] %v8434_v18 }
 0x61e   : > { %2145 = vrot.lane.b32.xlu2 %v2125_v6, %s6698_s12 }
 0x61f   : > { %1785 = vrot.lane.b32.xlu1 %v1765_v37, %s6676_s24  ;;  %v2701_v37 = vmul.f32 %v8011_v8, %v11220_v59  ;;  %v2621_v8 = vmul.f32 %v7997_v42, %v11220_v59 }
 0x620   : > { %v8440_v43 = vpop.permute.xlu2 %1701 }
 0x621   : > { %11314 = vst [vmem:[#allocation126_spill] sm:$0xff] %v8440_v43  ;;  %v8442_v24 = vpop.permute.xlu1 %2059 }
 0x622   : > { %11315 = vst [vmem:[#allocation127_spill] sm:$0xff] %v8442_v24 }
 0x624   : > { %v8446_v63 = vpop.permute.xlu0 %1869 }
 0x625   : > { %11316 = vst [vmem:[#allocation128_spill] sm:$0xff] %v8446_v63 }
 0x626   : > { %2433 = vrot.lane.b32.xlu2 %v2413_v28, %s6698_s12 }
 0x627   : > { %2065 = vrot.lane.b32.xlu1 %v2045_v50, %s6676_s24  ;;  %v1398_v50 = vmul.f32 %v8039_v1, %v11235_v31  ;;  %v11326_v1 = vld [vmem:[#allocation74_spill] sm:$0xff] }
 0x628   : > { %v8452_v60 = vpop.permute.xlu2 %1981  ;;  %v1558_v22 = vmul.f32 %v11326_v1, %v11235_v31 }
 0x629   : > { %11317 = vst [vmem:[#allocation129_spill] sm:$0xff] %v8452_v60  ;;  %v8454_v6 = vpop.permute.xlu1 %2347 }
 0x62a   : > { %11318 = vst [vmem:[#allocation130_spill] sm:$0xff] %v8454_v6 }
 0x62c   : > { %v8458_v18 = vpop.permute.xlu0 %2149 }
 0x62d   : > { %11319 = vst [vmem:[#allocation131_spill] sm:$0xff] %v8458_v18 }
 0x62e   : > { %2721 = vrot.lane.b32.xlu2 %v2701_v37, %s6698_s12 }
 0x62f   : > { %2353 = vrot.lane.b32.xlu1 %v2333_v44, %s6676_s24  ;;  %v1686_v44 = vmul.f32 %v8065_v49, %v11241_v27  ;;  %v11330_v49 = vld [vmem:[#allocation77_spill] sm:$0xff] }
 0x630   : > { %v8464_v53 = vpop.permute.xlu2 %2269  ;;  %v1846_v26 = vmul.f32 %v11330_v49, %v11241_v27 }
 0x631   : > { %11320 = vst [vmem:[#allocation132_spill] sm:$0xff] %v8464_v53  ;;  %v8466_v28 = vpop.permute.xlu1 %2635 }
 0x632   : > { %11321 = vst [vmem:[#allocation133_spill] sm:$0xff] %v8466_v28 }
 0x634   : > { %v8470_v63 = vpop.permute.xlu0 %2437 }
 0x635   : > { %11322 = vst [vmem:[#allocation134_spill] sm:$0xff] %v8470_v63 }
 0x636   : > { %1419 = vrot.lane.b32.xlu2 %v1398_v50, %s6699_s21 }
 0x637   : > { %2641 = vrot.lane.b32.xlu1 %v2621_v8, %s6676_s24  ;;  %v1966_v8 = vmul.f32 %v8093_v36, %v11235_v31  ;;  %v11334_v36 = vld [vmem:[#allocation80_spill] sm:$0xff] }
 0x638   : > { %v8476_v3 = vpop.permute.xlu2 %2557 }
 0x639   : > { %11323 = vst [vmem:[#allocation135_spill] sm:$0xff] %v8476_v3  ;;  %v8478_v37 = vpop.permute.xlu1 %1573 }
 0x63a   : > { %11324 = vst [vmem:[#allocation136_spill] sm:$0xff] %v8478_v37 }
 0x63c   : > { %v8482_v18 = vpop.permute.xlu0 %2725 }
 0x63d   : > { %11325 = vst [vmem:[#allocation137_spill] sm:$0xff] %v8482_v18 }
 0x63e   : > { %1707 = vrot.lane.b32.xlu2 %v1686_v44, %s6699_s21 }
 0x63f   : > { %1579 = vrot.lane.b32.xlu1 %v1558_v22, %s6698_s12  ;;  %v2254_v22 = vmul.f32 %v8120_v30, %v11241_v27  ;;  %v11338_v30 = vld [vmem:[#allocation81_spill] sm:$0xff] }
 0x640   : > { %v8488_v42 = vpop.permute.xlu2 %1495 }
 0x641   : > { %11327 = vst [vmem:[#allocation74_spill] sm:$0xff] %v8488_v42  ;;  %v8490_v50 = vpop.permute.xlu1 %1861 }
 0x642   : > { %11328 = vst [vmem:[#allocation138_spill] sm:$0xff] %v8490_v50  ;;  %v2126_v50 = vmul.f32 %v11334_v36, %v11235_v31 }
 0x644   : > { %v8494_v63 = vpop.permute.xlu0 %1423 }
 0x645   : > { %11329 = vst [vmem:[#allocation139_spill] sm:$0xff] %v8494_v63  ;;  %v2414_v63 = vmul.f32 %v11338_v30, %v11241_v27 }
 0x646   : > { %1987 = vrot.lane.b32.xlu2 %v1966_v8, %s6699_s21 }
 0x647   : > { %1867 = vrot.lane.b32.xlu1 %v1846_v26, %s6698_s12  ;;  %v2542_v26 = vmul.f32 %v8156_v54, %v11235_v31  ;;  %v11342_v54 = vld [vmem:[#allocation83_spill] sm:$0xff] }
 0x648   : > { %v8500_v1 = vpop.permute.xlu2 %1783 }
 0x649   : > { %11331 = vst [vmem:[#allocation77_spill] sm:$0xff] %v8500_v1  ;;  %v8502_v44 = vpop.permute.xlu1 %2141 }
 0x64a   : > { %11332 = vst [vmem:[#allocation140_spill] sm:$0xff] %v8502_v44 }
 0x64c   : > { %v8506_v18 = vpop.permute.xlu0 %1711 }
 0x64d   : > { %11333 = vst [vmem:[#allocation141_spill] sm:$0xff] %v8506_v18 }
 0x64e   : > { %2275 = vrot.lane.b32.xlu2 %v2254_v22, %s6699_s21 }
 0x64f   : > { %2147 = vrot.lane.b32.xlu1 %v2126_v50, %s6698_s12  ;;  %v1479_v50 = vmul.f32 %v8188_v25, %v11256_v21  ;;  %v11346_v25 = vld [vmem:[#allocation86_spill] sm:$0xff] }
 0x650   : > { %v8512_v49 = vpop.permute.xlu2 %2063 }
 0x651   : > { %11335 = vst [vmem:[#allocation80_spill] sm:$0xff] %v8512_v49  ;;  %v8514_v8 = vpop.permute.xlu1 %2429 }
 0x652   : > { %11336 = vst [vmem:[#allocation142_spill] sm:$0xff] %v8514_v8  ;;  %v2702_v8 = vmul.f32 %v11342_v54, %v11235_v31 }
 0x654   : > { %v8518_v1 = vpop.permute.xlu0 %1991 }
 0x655   : > { %11337 = vst [vmem:[#allocation143_spill] sm:$0xff] %v8518_v1 }
 0x656   : > { %2563 = vrot.lane.b32.xlu2 %v2542_v26, %s6699_s21 }
 0x657   : > { %2435 = vrot.lane.b32.xlu1 %v2414_v63, %s6698_s12  ;;  %v1767_v63 = vmul.f32 %v8205_v4, %v11260_v14 }
 0x658   : > { %v8524_v36 = vpop.permute.xlu2 %2351 }
 0x659   : > { %11339 = vst [vmem:[#allocation81_spill] sm:$0xff] %v8524_v36  ;;  %v8526_v22 = vpop.permute.xlu1 %2717 }
 0x65a   : > { %11340 = vst [vmem:[#allocation144_spill] sm:$0xff] %v8526_v22  ;;  %v1399_v22 = vmul.f32 %v11346_v25, %v11256_v21  ;;  %v2335_v25 = vmul.f32 %v8236_v52, %v11260_v14 }
 0x65c   : > { %v8530_v18 = vpop.permute.xlu0 %2279 }
 0x65d   : > { %11341 = vst [vmem:[#allocation145_spill] sm:$0xff] %v8530_v18 }
 0x65e   : > { %1501 = vrot.lane.b32.xlu2 %v1479_v50, %s6676_s24 }
 0x65f   : > { %2723 = vrot.lane.b32.xlu1 %v2702_v8, %s6698_s12  ;;  %v2047_v8 = vmul.f32 %v8220_v13, %v11256_v21  ;;  %v11352_v13 = vld [vmem:[#allocation94_spill] sm:$0xff] }
 0x660   : > { %v8536_v30 = vpop.permute.xlu2 %2639 }
 0x661   : > { %11343 = vst [vmem:[#allocation83_spill] sm:$0xff] %v8536_v30  ;;  %v8538_v26 = vpop.permute.xlu1 %1415  ;;  %v11349_v30 = vld [vmem:[#allocation90_spill] sm:$0xff] }
 0x662   : > { %11344 = vst [vmem:[#allocation146_spill] sm:$0xff] %v8538_v26  ;;  %v1687_v4 = vmul.f32 %v11349_v30, %v11260_v14 }
 0x664   : > { %v8542_v36 = vpop.permute.xlu0 %2567 }
 0x665   : > { %11345 = vst [vmem:[#allocation147_spill] sm:$0xff] %v8542_v36 }
 0x666   : > { %1789 = vrot.lane.b32.xlu2 %v1767_v63, %s6676_s24 }
 0x667   : > { %1421 = vrot.lane.b32.xlu1 %v1399_v22, %s6699_s21 }
 0x668   : > { %v8548_v54 = vpop.permute.xlu2 %1577 }
 0x669   : > { %11347 = vst [vmem:[#allocation86_spill] sm:$0xff] %v8548_v54  ;;  %v8550_v50 = vpop.permute.xlu1 %1703 }
 0x66a   : > { %11348 = vst [vmem:[#allocation148_spill] sm:$0xff] %v8550_v50  ;;  %v1967_v50 = vmul.f32 %v11352_v13, %v11256_v21 }
 0x66c   : > { %v2799_v18 = vpop.permute.xlu0 %2798 }
 0x66d   : > { %v2826_v36 = vmul.f32 %v2799_v18, %v7056_v39 }
 0x66e   : > { %2069 = vrot.lane.b32.xlu2 %v2047_v8, %s6676_s24  ;;  %v11355_v8 = vld [vmem:[#allocation97_spill] sm:$0xff] }
 0x66f   : > { %1709 = vrot.lane.b32.xlu1 %v1687_v4, %s6699_s21  ;;  %2843 = vrot.lane.b32.xlu0 %v2826_v36, %s6699_s21  ;;  %v2623_v36 = vmul.f32 %v8251_v15, %v11256_v21  ;;  %v2255_v4 = vmul.f32 %v11355_v8, %v11260_v14 }
 0x670   : > { %v8560_v22 = vpop.permute.xlu2 %1865 }
 0x671   : > { %11350 = vst [vmem:[#allocation90_spill] sm:$0xff] %v8560_v22  ;;  %v8562_v63 = vpop.permute.xlu1 %1983 }
 0x672   : > { %11351 = vst [vmem:[#allocation149_spill] sm:$0xff] %v8562_v63 }
 0x676   : > { %2357 = vrot.lane.b32.xlu2 %v2335_v25, %s6676_s24  ;;  %v11358_v25 = vld [vmem:[#allocation100_spill] sm:$0xff] }
 0x677   : > { %1989 = vrot.lane.b32.xlu1 %v1967_v50, %s6699_s21  ;;  %v1560_v50 = vmul.f32 %v8272_v20, %v11275_v12  ;;  %v2543_v22 = vmul.f32 %v11358_v25, %v11256_v21 }
 0x678   : > { %v8570_v18 = vpop.permute.xlu2 %2145 }
 0x679   : > { %11353 = vst [vmem:[#allocation94_spill] sm:$0xff] %v8570_v18  ;;  %v8572_v30 = vpop.permute.xlu1 %2271 }
 0x67a   : > { %11354 = vst [vmem:[#allocation150_spill] sm:$0xff] %v8572_v30 }
 0x67e   : > { %2645 = vrot.lane.b32.xlu2 %v2623_v36, %s6676_s24  ;;  %v1848_v36 = vmul.f32 %v8285_v46, %v11280_v38 }
 0x67f   : > { %2277 = vrot.lane.b32.xlu1 %v2255_v4, %s6699_s21  ;;  %v11361_v4 = vld [vmem:[#allocation103_spill] sm:$0xff] }
 0x680   : > { %v8580_v52 = vpop.permute.xlu2 %2433 }
 0x681   : > { %11356 = vst [vmem:[#allocation97_spill] sm:$0xff] %v8580_v52  ;;  %v8582_v13 = vpop.permute.xlu1 %2559  ;;  %v1480_v52 = vmul.f32 %v11361_v4, %v11275_v12 }
 0x682   : > { %11357 = vst [vmem:[#allocation151_spill] sm:$0xff] %v8582_v13 }
 0x686   : > { %1583 = vrot.lane.b32.xlu2 %v1560_v50, %s6698_s12  ;;  %v11364_v50 = vld [vmem:[#allocation104_spill] sm:$0xff] }
 0x687   : > { %2565 = vrot.lane.b32.xlu1 %v2543_v22, %s6699_s21  ;;  %v2128_v22 = vmul.f32 %v8302_v29, %v11275_v12 }
 0x688   : > { %v8590_v15 = vpop.permute.xlu2 %2721 }
 0x689   : > { %11359 = vst [vmem:[#allocation100_spill] sm:$0xff] %v8590_v15  ;;  %v8592_v8 = vpop.permute.xlu1 %1497  ;;  %v1768_v15 = vmul.f32 %v11364_v50, %v11280_v38 }
 0x68a   : > { %11360 = vst [vmem:[#allocation152_spill] sm:$0xff] %v8592_v8 }
 0x68e   : > { %1871 = vrot.lane.b32.xlu2 %v1848_v36, %s6698_s12  ;;  %v2048_v36 = vmul.f32 %v7986_v5, %v11275_v12 }
 0x68f   : > { %1503 = vrot.lane.b32.xlu1 %v1480_v52, %s6676_s24  ;;  %v2416_v52 = vmul.f32 %v8319_v51, %v11280_v38 }
 0x690   : > { %v8600_v20 = vpop.permute.xlu2 %1419 }
 0x691   : > { %11362 = vst [vmem:[#allocation103_spill] sm:$0xff] %v8600_v20  ;;  %v8602_v25 = vpop.permute.xlu1 %1785  ;;  %v11378_v20 = vld [vmem:[#allocation19_spill] sm:$0xff] }
 0x692   : > { %11363 = vst [vmem:[#allocation153_spill] sm:$0xff] %v8602_v25 }
 0x696   : > { %2151 = vrot.lane.b32.xlu2 %v2128_v22, %s6698_s12  ;;  %v2336_v22 = vmul.f32 %v8000_v11, %v11280_v38  ;;  %v11373_v11 = vmov 21  }
 0x697   : > { %1791 = vrot.lane.b32.xlu1 %v1768_v15, %s6676_s24  ;;  %v2704_v15 = vmul.f32 %v8338_v35, %v11275_v12 }
 0x698   : > { %v8610_v46 = vpop.permute.xlu2 %1707 }
 0x699   : > { %11365 = vst [vmem:[#allocation104_spill] sm:$0xff] %v8610_v46  ;;  %v8612_v4 = vpop.permute.xlu1 %2065 }
 0x69a   : > { %11366 = vst [vmem:[#allocation154_spill] sm:$0xff] %v8612_v4 }
 0x69e   : > { %2439 = vrot.lane.b32.xlu2 %v2416_v52, %s6698_s12  ;;  %v2624_v52 = vmul.f32 %v8013_v34, %v11275_v12  ;;  %v11379_v34 = vld [vmem:[#allocation45_spill] sm:$0xff] }
 0x69f   : > { %2071 = vrot.lane.b32.xlu1 %v2048_v36, %s6676_s24 }
 0x6a0   : > { %v8620_v29 = vpop.permute.xlu2 %1987 }
 0x6a1   : > { %11367 = vst [vmem:[#allocation155_spill] sm:$0xff] %v8620_v29  ;;  %v8622_v50 = vpop.permute.xlu1 %2353 }
 0x6a2   : > { %11368 = vst [vmem:[#allocation156_spill] sm:$0xff] %v8622_v50 }
 0x6a6   : > { %2727 = vrot.lane.b32.xlu2 %v2704_v15, %s6698_s12  ;;  %v11374_v15 = vld [vmem:[#allocation22_spill] sm:$0xff] }
 0x6a7   : > { %2359 = vrot.lane.b32.xlu1 %v2336_v22, %s6676_s24  ;;  %v11375_v22 = vld [vmem:[#allocation18_spill] sm:$0xff] }
 0x6a8   : > { %v8630_v51 = vpop.permute.xlu2 %2275 }
 0x6a9   : > { %11369 = vst [vmem:[#allocation157_spill] sm:$0xff] %v8630_v51  ;;  %v8632_v5 = vpop.permute.xlu1 %2641 }
 0x6aa   : > { %11370 = vst [vmem:[#allocation158_spill] sm:$0xff] %v8632_v5 }
 0x6ae   : > { %2774 = vperm.xlu2 %6402, %v7793_v47  }
 0x6af   : > { %2647 = vrot.lane.b32.xlu1 %v2624_v52, %s6676_s24 }
 0x6b0   : > { %v8638_v36 = vpop.permute.xlu2 %2563 }
 0x6b1   : > { %11371 = vst [vmem:[#allocation159_spill] sm:$0xff] %v8638_v36  ;;  %v8640_v35 = vpop.permute.xlu1 %1579 }
 0x6b2   : > { %11372 = vst [vmem:[#allocation160_spill] sm:$0xff] %v8640_v35 }
 0x6b6   : > { %6405 = vset.pattern.permute.xlu2 %v11373_v11 }
 0x6b7   : > { %2802 = vperm.xlu2 %6405, %v11374_v15   ;;  %2794 = vperm.xlu1 %6403, %v11375_v22  }
 0x6b8   : > { %v8645_v46 = vpop.permute.xlu2 %1501 }
 0x6b9   : > { %11376 = vst [vmem:[#allocation22_spill] sm:$0xff] %v8645_v46  ;;  %v8647_v51 = vpop.permute.xlu1 %1867 }
 0x6ba   : > { %11377 = vst [vmem:[#allocation18_spill] sm:$0xff] %v8647_v51 }
 0x6bf   : > { %2810 = vperm.xlu2 %6405, %v11378_v20   ;;  %2806 = vperm.xlu1 %6403, %v11379_v34  }
 0x6c0   : > { %v8651_v30 = vpop.permute.xlu2 %1789 }
 0x6c1   : > { %11380 = vst [vmem:[#allocation19_spill] sm:$0xff] %v8651_v30  ;;  %v8653_v52 = vpop.permute.xlu1 %2147 }
 0x6c2   : > { %11381 = vst [vmem:[#allocation45_spill] sm:$0xff] %v8653_v52 }
 0x6c7   : > { %2822 = vperm.xlu2 %6405, %v7793_v47   ;;  %2814 = vperm.xlu1 %6403, %v7588_v57  }
 0x6c8   : > { %v8657_v11 = vpop.permute.xlu2 %2069 }
 0x6c9   : > { %11382 = vst [vmem:[#allocation161_spill] sm:$0xff] %v8657_v11  ;;  %v8659_v35 = vpop.permute.xlu1 %2435 }
 0x6ca   : > { %11383 = vst [vmem:[#allocation162_spill] sm:$0xff] %v8659_v35 }
 0x6d0   : > { %v8661_v36 = vpop.permute.xlu2 %2357 }
 0x6d1   : > { %11384 = vst [vmem:[#allocation163_spill] sm:$0xff] %v8661_v36  ;;  %v8663_v46 = vpop.permute.xlu1 %2723 }
 0x6d2   : > { %11385 = vst [vmem:[#allocation164_spill] sm:$0xff] %v8663_v46 }
 0x6d8   : > { %v8665_v51 = vpop.permute.xlu2 %2645 }
 0x6d9   : > { %11386 = vst [vmem:[#allocation165_spill] sm:$0xff] %v8665_v51  ;;  %v8667_v25 = vpop.permute.xlu1 %1421 }
 0x6da   : > { %11387 = vst [vmem:[#allocation166_spill] sm:$0xff] %v8667_v25 }
 0x6e0   : > { %v8669_v5 = vpop.permute.xlu2 %1583 }
 0x6e1   : > { %11388 = vst [vmem:[#allocation167_spill] sm:$0xff] %v8669_v5  ;;  %v8671_v30 = vpop.permute.xlu1 %1709 }
 0x6e2   : > { %11389 = vst [vmem:[#allocation168_spill] sm:$0xff] %v8671_v30  ;;  %v6701_v30 = vmov 22  }
 0x6e3   : > { %6408 = vset.pattern.permute.xlu0 %v6701_v30  ;;  %6406 = vset.pattern.permute.xlu2 %v6701_v30 }
 0x6e4   : > { %6407 = vset.pattern.permute.xlu1 %v6701_v30 }
 0x6e8   : > { %v8673_v52 = vpop.permute.xlu2 %1871 }
 0x6e9   : > { %11390 = vst [vmem:[#allocation169_spill] sm:$0xff] %v8673_v52  ;;  %v8675_v50 = vpop.permute.xlu1 %1989 }
 0x6ea   : > { %11391 = vst [vmem:[#allocation170_spill] sm:$0xff] %v8675_v50 }
 0x6f0   : > { %v8677_v29 = vpop.permute.xlu2 %2151 }
 0x6f1   : > { %11392 = vst [vmem:[#allocation171_spill] sm:$0xff] %v8677_v29  ;;  %v8679_v11 = vpop.permute.xlu1 %2277 }
 0x6f2   : > { %11393 = vst [vmem:[#allocation172_spill] sm:$0xff] %v8679_v11 }
 0x6f8   : > { %v8681_v35 = vpop.permute.xlu2 %2439 }
 0x6f9   : > { %11394 = vst [vmem:[#allocation173_spill] sm:$0xff] %v8681_v35  ;;  %v8683_v36 = vpop.permute.xlu1 %2565 }
 0x6fa   : > { %11395 = vst [vmem:[#allocation174_spill] sm:$0xff] %v8683_v36 }
 0x700   : > { %v8685_v46 = vpop.permute.xlu2 %2727 }
 0x701   : > { %11396 = vst [vmem:[#allocation175_spill] sm:$0xff] %v8685_v46  ;;  %v8687_v51 = vpop.permute.xlu1 %1503 }
 0x702   : > { %11397 = vst [vmem:[#allocation176_spill] sm:$0xff] %v8687_v51 }
 0x708   : > { %v8689_v25 = vpop.permute.xlu2 %2774 }
 0x709   : > { %11398 = vst [vmem:[#allocation177_spill] sm:$0xff] %v8689_v25  ;;  %v8691_v5 = vpop.permute.xlu1 %1791 }
 0x70a   : > { %11399 = vst [vmem:[#allocation178_spill] sm:$0xff] %v8691_v5 }
 0x711   : > { %v2803_v52 = vpop.permute.xlu2 %2802  ;;  %v8693_v50 = vpop.permute.xlu1 %2071 }
 0x712   : > { %11400 = vst [vmem:[#allocation179_spill] sm:$0xff] %v8693_v50  ;;  %v2827_v11 = vmul.f32 %v2803_v52, %v7063_v48 }
 0x714   : > { %2845 = vrot.lane.b32.xlu2 %v2827_v11, %s6699_s21 }
 0x719   : > { %v2811_v35 = vpop.permute.xlu2 %2810  ;;  %v8697_v36 = vpop.permute.xlu1 %2359 }
 0x71a   : > { %11401 = vst [vmem:[#allocation180_spill] sm:$0xff] %v8697_v36  ;;  %v2829_v46 = vmul.f32 %v2811_v35, %v11222_v19 }
 0x71c   : > { %2849 = vrot.lane.b32.xlu0 %v2829_v46, %s6699_s21  ;;  %v2819_v46 = vpop.permute.xlu0 %2818 }
 0x721   : > { %v2823_v25 = vpop.permute.xlu2 %2822  ;;  %v8701_v5 = vpop.permute.xlu1 %2647 }
 0x722   : > { %11402 = vst [vmem:[#allocation181_spill] sm:$0xff] %v8701_v5  ;;  %v2832_v29 = vmul.f32 %v2823_v25, %v11280_v38  ;;  %v2831_v25 = vmul.f32 %v2819_v46, %v11260_v14 }
 0x724   : > { %2855 = vrot.lane.b32.xlu0 %v2832_v29, %s6699_s21 }
 0x729   : > { %v2795_v30 = vpop.permute.xlu1 %2794 }
 0x72a   : > { %v2825_v51 = vmul.f32 %v2795_v30, %v7073_v61 }
 0x72c   : > { %2841 = vrot.lane.b32.xlu1 %v2825_v51, %s6699_s21  ;;  %2882 = vperm.xlu0 %6408, %v11374_v15   ;;  %v8721_v51 = vpop.permute.xlu0 %2843 }
 0x72d   : > { %11403 = vst [vmem:[#allocation182_spill] sm:$0xff] %v8721_v51 }
 0x731   : > { %v2807_v52 = vpop.permute.xlu1 %2806 }
 0x732   : > { %v2828_v11 = vmul.f32 %v2807_v52, %v7070_v56 }
 0x734   : > { %2847 = vrot.lane.b32.xlu1 %v2828_v11, %s6699_s21  ;;  %2902 = vperm.xlu0 %6408, %v7793_v47  }
 0x739   : > { %v2815_v35 = vpop.permute.xlu1 %2814 }
 0x73a   : > { %v2830_v29 = vmul.f32 %v2815_v35, %v11241_v27  ;;  %v6702_v35 = vmov 23  }
 0x73c   : > { %2851 = vrot.lane.b32.xlu2 %v2830_v29, %s6699_s21  ;;  %2853 = vrot.lane.b32.xlu1 %v2831_v25, %s6699_s21 }
 0x73d   : > { %6409 = vset.pattern.permute.xlu0 %v6702_v35 }
 0x744   : > { %2874 = vperm.xlu2 %6406, %v11375_v22   ;;  %2878 = vperm.xlu1 %6407, %v11300_v40  }
 0x74c   : > { %2886 = vperm.xlu2 %6406, %v11379_v34   ;;  %2890 = vperm.xlu1 %6407, %v11378_v20  }
 0x754   : > { %2894 = vperm.xlu2 %6406, %v7588_v57   ;;  %2898 = vperm.xlu1 %6407, %v7658_v16  }
 0x75c   : > { %6410 = vset.pattern.permute.xlu2 %v6702_v35  ;;  %6411 = vset.pattern.permute.xlu1 %v6702_v35 }
 0x76e   : > { %v8723_v30 = vpop.permute.xlu2 %2845 }
 0x76f   : > { %11404 = vst [vmem:[#allocation183_spill] sm:$0xff] %v8723_v30 }
 0x78e   : > { %v8725_v52 = vpop.permute.xlu0 %2849 }
 0x78f   : > { %11405 = vst [vmem:[#allocation184_spill] sm:$0xff] %v8725_v52 }
 0x796   : > { %v8727_v11 = vpop.permute.xlu2 %2851  ;;  %v8729_v46 = vpop.permute.xlu0 %2855 }
 0x797   : > { %11406 = vst [vmem:[#allocation185_spill] sm:$0xff] %v8727_v11 }
 0x798   : > { %11407 = vst [vmem:[#allocation186_spill] sm:$0xff] %v8729_v46 }
 0x79e   : > { %v2875_v25 = vpop.permute.xlu2 %2874  ;;  %v8731_v29 = vpop.permute.xlu1 %2841 }
 0x79f   : > { %11408 = vst [vmem:[#allocation187_spill] sm:$0xff] %v8731_v29  ;;  %v2905_v36 = vmul.f32 %v2875_v25, %v7073_v61  ;;  %v2883_v5 = vpop.permute.xlu0 %2882 }
 0x7a0   : > { %v2907_v51 = vmul.f32 %v2883_v5, %v7063_v48 }
 0x7a1   : > { %2921 = vrot.lane.b32.xlu2 %v2905_v36, %s6676_s24 }
 0x7a2   : > { %2925 = vrot.lane.b32.xlu0 %v2907_v51, %s6676_s24 }
 0x7a6   : > { %v2887_v52 = vpop.permute.xlu2 %2886  ;;  %v8737_v11 = vpop.permute.xlu1 %2847 }
 0x7a7   : > { %11409 = vst [vmem:[#allocation188_spill] sm:$0xff] %v8737_v11  ;;  %v2908_v46 = vmul.f32 %v2887_v52, %v7070_v56  ;;  %v2903_v52 = vpop.permute.xlu0 %2902 }
 0x7a9   : > { %2927 = vrot.lane.b32.xlu2 %v2908_v46, %s6676_s24 }
 0x7ae   : > { %v2895_v35 = vpop.permute.xlu2 %2894  ;;  %v8741_v30 = vpop.permute.xlu1 %2853 }
 0x7af   : > { %11410 = vst [vmem:[#allocation189_spill] sm:$0xff] %v8741_v30  ;;  %v2910_v29 = vmul.f32 %v2895_v35, %v11241_v27  ;;  %v2912_v35 = vmul.f32 %v2903_v52, %v11280_v38 }
 0x7b1   : > { %2931 = vrot.lane.b32.xlu0 %v2910_v29, %s6676_s24 }
 0x7b6   : > { %v2879_v25 = vpop.permute.xlu1 %2878 }
 0x7b7   : > { %v2906_v5 = vmul.f32 %v2879_v25, %v7056_v39 }
 0x7b9   : > { %2923 = vrot.lane.b32.xlu1 %v2906_v5, %s6676_s24  ;;  %2954 = vperm.xlu0 %6409, %v11375_v22  }
 0x7be   : > { %v2891_v36 = vpop.permute.xlu1 %2890 }
 0x7bf   : > { %v2909_v51 = vmul.f32 %v2891_v36, %v11222_v19 }
 0x7c1   : > { %2929 = vrot.lane.b32.xlu1 %v2909_v51, %s6676_s24  ;;  %2974 = vperm.xlu0 %6409, %v7588_v57  }
 0x7c6   : > { %v2899_v46 = vpop.permute.xlu1 %2898 }
 0x7c7   : > { %v2911_v29 = vmul.f32 %v2899_v46, %v11260_v14  ;;  %v6703_v46 = vmov 24  }
 0x7c9   : > { %2933 = vrot.lane.b32.xlu2 %v2911_v29, %s6676_s24  ;;  %2935 = vrot.lane.b32.xlu1 %v2912_v35, %s6676_s24 }
 0x7ca   : > { %6413 = vset.pattern.permute.xlu0 %v6703_v46 }
 0x7d1   : > { %2958 = vperm.xlu2 %6410, %v11300_v40   ;;  %2962 = vperm.xlu1 %6411, %v11374_v15  }
 0x7d9   : > { %2966 = vperm.xlu2 %6410, %v11379_v34   ;;  %2970 = vperm.xlu1 %6411, %v11378_v20  }
 0x7e1   : > { %2978 = vperm.xlu2 %6410, %v7658_v16   ;;  %2982 = vperm.xlu1 %6411, %v7793_v47  }
 0x7e9   : > { %6412 = vset.pattern.permute.xlu1 %v6703_v46  ;;  %6414 = vset.pattern.permute.xlu2 %v6703_v46 }
 0x7fb   : > { %v8761_v25 = vpop.permute.xlu2 %2921 }
 0x7fc   : > { %11411 = vst [vmem:[#allocation190_spill] sm:$0xff] %v8761_v25 }
 0x803   : > { %v8763_v5 = vpop.permute.xlu2 %2927 }
 0x804   : > { %11412 = vst [vmem:[#allocation191_spill] sm:$0xff] %v8763_v5 }
 0x814   : > { %v8765_v36 = vpop.permute.xlu0 %2925 }
 0x815   : > { %11413 = vst [vmem:[#allocation192_spill] sm:$0xff] %v8765_v36 }
 0x823   : > { %v8767_v51 = vpop.permute.xlu2 %2933  ;;  %v8769_v52 = vpop.permute.xlu0 %2931 }
 0x824   : > { %11414 = vst [vmem:[#allocation193_spill] sm:$0xff] %v8767_v51 }
 0x825   : > { %11415 = vst [vmem:[#allocation194_spill] sm:$0xff] %v8769_v52 }
 0x82b   : > { %v2959_v35 = vpop.permute.xlu2 %2958  ;;  %v8771_v29 = vpop.permute.xlu1 %2923 }
 0x82c   : > { %11416 = vst [vmem:[#allocation195_spill] sm:$0xff] %v8771_v29  ;;  %v2986_v30 = vmul.f32 %v2959_v35, %v7056_v39  ;;  %v2955_v11 = vpop.permute.xlu0 %2954 }
 0x82d   : > { %v2985_v25 = vmul.f32 %v2955_v11, %v7073_v61 }
 0x82e   : > { %3003 = vrot.lane.b32.xlu2 %v2986_v30, %s6698_s12 }
 0x82f   : > { %3001 = vrot.lane.b32.xlu0 %v2985_v25, %s6698_s12 }
 0x833   : > { %v2967_v5 = vpop.permute.xlu2 %2966  ;;  %v8777_v51 = vpop.permute.xlu1 %2929 }
 0x834   : > { %11417 = vst [vmem:[#allocation196_spill] sm:$0xff] %v8777_v51  ;;  %v2988_v52 = vmul.f32 %v2967_v5, %v7070_v56  ;;  %v2975_v30 = vpop.permute.xlu0 %2974 }
 0x835   : > { %v2990_v5 = vmul.f32 %v2975_v30, %v11241_v27 }
 0x837   : > { %3007 = vrot.lane.b32.xlu0 %v2988_v52, %s6698_s12 }
 0x83b   : > { %v2979_v46 = vpop.permute.xlu2 %2978  ;;  %v8781_v36 = vpop.permute.xlu1 %2935 }
 0x83c   : > { %11418 = vst [vmem:[#allocation197_spill] sm:$0xff] %v8781_v36  ;;  %v2991_v29 = vmul.f32 %v2979_v46, %v11260_v14 }
 0x83f   : > { %3013 = vrot.lane.b32.xlu0 %v2991_v29, %s6698_s12 }
 0x843   : > { %v2963_v35 = vpop.permute.xlu1 %2962 }
 0x844   : > { %v2987_v11 = vmul.f32 %v2963_v35, %v7063_v48  ;;  %v6704_v35 = vmov 25  }
 0x846   : > { %3005 = vrot.lane.b32.xlu1 %v2987_v11, %s6698_s12 }
 0x847   : > { %3046 = vperm.xlu0 %6413, %v11300_v40  }
 0x84b   : > { %v2971_v25 = vpop.permute.xlu1 %2970 }
 0x84c   : > { %v2989_v52 = vmul.f32 %v2971_v25, %v11222_v19 }
 0x84e   : > { %3009 = vrot.lane.b32.xlu2 %v2989_v52, %s6698_s12  ;;  %3011 = vrot.lane.b32.xlu1 %v2990_v5, %s6698_s12 }
 0x84f   : > { %3066 = vperm.xlu0 %6413, %v7658_v16  }
 0x853   : > { %v2983_v29 = vpop.permute.xlu1 %2982 }
 0x854   : > { %v2992_v46 = vmul.f32 %v2983_v29, %v11280_v38 }
 0x856   : > { %3015 = vrot.lane.b32.xlu2 %v2992_v46, %s6698_s12  ;;  %3042 = vperm.xlu1 %6412, %v11375_v22  }
 0x857   : > { %6416 = vset.pattern.permute.xlu0 %v6704_v35 }
 0x858   : > { %3086 = vperm.xlu0 %6416, %v11300_v40  }
 0x85e   : > { %3050 = vperm.xlu2 %6414, %v11374_v15   ;;  %3054 = vperm.xlu1 %6412, %v11379_v34  }
 0x860   : > { %3106 = vperm.xlu0 %6416, %v7658_v16  }
 0x866   : > { %3058 = vperm.xlu2 %6414, %v11378_v20   ;;  %3062 = vperm.xlu1 %6412, %v7588_v57  }
 0x86e   : > { %3070 = vperm.xlu2 %6414, %v7793_v47   ;;  %6415 = vset.pattern.permute.xlu1 %v6704_v35 }
 0x86f   : > { %3082 = vperm.xlu1 %6415, %v11375_v22  }
 0x876   : > { %6417 = vset.pattern.permute.xlu2 %v6704_v35 }
 0x877   : > { %3090 = vperm.xlu2 %6417, %v11374_v15   ;;  %3094 = vperm.xlu1 %6415, %v11379_v34  }
 0x87f   : > { %3098 = vperm.xlu2 %6417, %v11378_v20   ;;  %3102 = vperm.xlu1 %6415, %v7588_v57  }
 0x887   : > { %3110 = vperm.xlu2 %6417, %v7793_v47  }
 0x888   : > { %v8809_v11 = vpop.permute.xlu2 %3003 }
 0x889   : > { %11419 = vst [vmem:[#allocation198_spill] sm:$0xff] %v8809_v11 }
 0x8a1   : > { %v8811_v30 = vpop.permute.xlu0 %3001 }
 0x8a2   : > { %11420 = vst [vmem:[#allocation199_spill] sm:$0xff] %v8811_v30 }
 0x8a8   : > { %v8813_v25 = vpop.permute.xlu2 %3009 }
 0x8a9   : > { %11421 = vst [vmem:[#allocation200_spill] sm:$0xff] %v8813_v25  ;;  %v8815_v5 = vpop.permute.xlu0 %3007 }
 0x8aa   : > { %11422 = vst [vmem:[#allocation201_spill] sm:$0xff] %v8815_v5 }
 0x8b0   : > { %v8817_v52 = vpop.permute.xlu2 %3015 }
 0x8b1   : > { %11423 = vst [vmem:[#allocation202_spill] sm:$0xff] %v8817_v52  ;;  %v8819_v29 = vpop.permute.xlu0 %3013 }
 0x8b2   : > { %11424 = vst [vmem:[#allocation203_spill] sm:$0xff] %v8819_v29  ;;  %v6705_v29 = vmov 26  }
 0x8b3   : > { %6420 = vset.pattern.permute.xlu0 %v6705_v29  ;;  %6418 = vset.pattern.permute.xlu2 %v6705_v29 }
 0x8b4   : > { %6419 = vset.pattern.permute.xlu1 %v6705_v29 }
 0x8b8   : > { %v8821_v46 = vpop.permute.xlu2 %3050  ;;  %v8823_v35 = vpop.permute.xlu1 %3005 }
 0x8b9   : > { %11425 = vst [vmem:[#allocation204_spill] sm:$0xff] %v8821_v46  ;;  %v8825_v36 = vpop.permute.xlu0 %3046  ;;  %v11435_v46 = vld [vmem:[#allocation5_spill] sm:$0xff] }
 0x8ba   : > { %11426 = vst [vmem:[#allocation205_spill] sm:$0xff] %v8823_v35 }
 0x8bb   : > { %11427 = vst [vmem:[#allocation206_spill] sm:$0xff] %v8825_v36 }
 0x8c0   : > { %v8827_v51 = vpop.permute.xlu2 %3058  ;;  %v8829_v50 = vpop.permute.xlu1 %3011 }
 0x8c1   : > { %11428 = vst [vmem:[#allocation207_spill] sm:$0xff] %v8827_v51  ;;  %v8831_v11 = vpop.permute.xlu0 %3066 }
 0x8c2   : > { %11429 = vst [vmem:[#allocation208_spill] sm:$0xff] %v8829_v50 }
 0x8c3   : > { %11430 = vst [vmem:[#allocation209_spill] sm:$0xff] %v8831_v11 }
 0x8c8   : > { %v8833_v30 = vpop.permute.xlu2 %3070  ;;  %v8835_v25 = vpop.permute.xlu1 %3042 }
 0x8c9   : > { %11431 = vst [vmem:[#allocation210_spill] sm:$0xff] %v8833_v30 }
 0x8ca   : > { %11432 = vst [vmem:[#allocation211_spill] sm:$0xff] %v8835_v25  ;;  %v3087_v5 = vpop.permute.xlu0 %3086 }
 0x8cb   : > { %v3114_v52 = vmul.f32 %v3087_v5, %v7034_v9 }
 0x8cd   : > { %3131 = vrot.lane.b32.xlu0 %v3114_v52, %s6699_s21 }
 0x8d0   : > { %v8839_v36 = vpop.permute.xlu1 %3054 }
 0x8d1   : > { %11433 = vst [vmem:[#allocation212_spill] sm:$0xff] %v8839_v36  ;;  %v3091_v51 = vpop.permute.xlu2 %3090 }
 0x8d2   : > { %v3115_v50 = vmul.f32 %v3091_v51, %v7041_v17 }
 0x8d4   : > { %3133 = vrot.lane.b32.xlu2 %v3115_v50, %s6699_s21 }
 0x8d8   : > { %v8843_v11 = vpop.permute.xlu1 %3062 }
 0x8d9   : > { %11434 = vst [vmem:[#allocation213_spill] sm:$0xff] %v8843_v11  ;;  %v3099_v30 = vpop.permute.xlu2 %3098 }
 0x8da   : > { %v3117_v25 = vmul.f32 %v3099_v30, %v11220_v59  ;;  %v3107_v30 = vpop.permute.xlu0 %3106 }
 0x8db   : > { %v3119_v36 = vmul.f32 %v3107_v30, %v11256_v21 }
 0x8dc   : > { %3137 = vrot.lane.b32.xlu0 %v3117_v25, %s6699_s21 }
 0x8e1   : > { %v3111_v5 = vpop.permute.xlu2 %3110  ;;  %v3083_v35 = vpop.permute.xlu1 %3082 }
 0x8e2   : > { %v3120_v29 = vmul.f32 %v3111_v5, %v11275_v12  ;;  %v3113_v52 = vmul.f32 %v3083_v35, %v11435_v46 }
 0x8e4   : > { %3129 = vrot.lane.b32.xlu1 %v3113_v52, %s6699_s21  ;;  %3143 = vrot.lane.b32.xlu0 %v3120_v29, %s6699_s21 }
 0x8e9   : > { %v3095_v51 = vpop.permute.xlu1 %3094 }
 0x8ea   : > { %v3116_v50 = vmul.f32 %v3095_v51, %v7045_v23 }
 0x8ec   : > { %3135 = vrot.lane.b32.xlu1 %v3116_v50, %s6699_s21  ;;  %3170 = vperm.xlu0 %6420, %v11374_v15  }
 0x8f1   : > { %v3103_v11 = vpop.permute.xlu1 %3102 }
 0x8f2   : > { %v3118_v25 = vmul.f32 %v3103_v11, %v11235_v31 }
 0x8f4   : > { %3139 = vrot.lane.b32.xlu2 %v3118_v25, %s6699_s21  ;;  %3190 = vperm.xlu0 %6420, %v7793_v47  }
 0x8f5   : > { %3141 = vrot.lane.b32.xlu1 %v3119_v36, %s6699_s21  ;;  %v6706_v36 = vmov 27  }
 0x8fc   : > { %3162 = vperm.xlu2 %6418, %v11375_v22   ;;  %6421 = vset.pattern.permute.xlu0 %v6706_v36 }
 0x8fd   : > { %3166 = vperm.xlu1 %6419, %v11300_v40  }
 0x904   : > { %3174 = vperm.xlu2 %6418, %v11379_v34  }
 0x905   : > { %3178 = vperm.xlu1 %6419, %v11378_v20  }
 0x90c   : > { %3182 = vperm.xlu2 %6418, %v7588_v57  }
 0x90d   : > { %3186 = vperm.xlu1 %6419, %v7658_v16  }
 0x914   : > { %6422 = vset.pattern.permute.xlu2 %v6706_v36 }
 0x915   : > { %6423 = vset.pattern.permute.xlu1 %v6706_v36 }
 0x92e   : > { %v8865_v11 = vpop.permute.xlu2 %3133 }
 0x92f   : > { %11436 = vst [vmem:[#allocation214_spill] sm:$0xff] %v8865_v11 }
 0x93f   : > { %v8867_v35 = vpop.permute.xlu0 %3131 }
 0x940   : > { %11437 = vst [vmem:[#allocation215_spill] sm:$0xff] %v8867_v35 }
 0x94e   : > { %v8869_v5 = vpop.permute.xlu2 %3139  ;;  %v8871_v29 = vpop.permute.xlu0 %3137 }
 0x94f   : > { %11438 = vst [vmem:[#allocation216_spill] sm:$0xff] %v8869_v5 }
 0x950   : > { %11439 = vst [vmem:[#allocation217_spill] sm:$0xff] %v8871_v29 }
 0x956   : > { %v3163_v52 = vpop.permute.xlu2 %3162  ;;  %v8873_v51 = vpop.permute.xlu1 %3129 }
 0x957   : > { %11440 = vst [vmem:[#allocation218_spill] sm:$0xff] %v8873_v51  ;;  %v3193_v50 = vmul.f32 %v3163_v52, %v11435_v46  ;;  %v8876_v30 = vpop.permute.xlu0 %3143 }
 0x958   : > { %11441 = vst [vmem:[#allocation219_spill] sm:$0xff] %v8876_v30 }
 0x959   : > { %3209 = vrot.lane.b32.xlu2 %v3193_v50, %s6676_s24 }
 0x95e   : > { %v3175_v25 = vpop.permute.xlu2 %3174  ;;  %v8879_v11 = vpop.permute.xlu1 %3135 }
 0x95f   : > { %11442 = vst [vmem:[#allocation220_spill] sm:$0xff] %v8879_v11  ;;  %v3196_v5 = vmul.f32 %v3175_v25, %v7045_v23  ;;  %v3171_v35 = vpop.permute.xlu0 %3170 }
 0x960   : > { %v3195_v29 = vmul.f32 %v3171_v35, %v7041_v17 }
 0x961   : > { %3215 = vrot.lane.b32.xlu2 %v3196_v5, %s6676_s24 }
 0x962   : > { %3213 = vrot.lane.b32.xlu0 %v3195_v29, %s6676_s24 }
 0x966   : > { %v3183_v36 = vpop.permute.xlu2 %3182 }
 0x967   : > { %v3198_v51 = vmul.f32 %v3183_v36, %v11235_v31  ;;  %v8886_v52 = vpop.permute.xlu1 %3141  ;;  %v3191_v5 = vpop.permute.xlu0 %3190 }
 0x968   : > { %11443 = vst [vmem:[#allocation221_spill] sm:$0xff] %v8886_v52  ;;  %v3200_v36 = vmul.f32 %v3191_v5, %v11275_v12 }
 0x96a   : > { %3219 = vrot.lane.b32.xlu0 %v3198_v51, %s6676_s24 }
 0x96f   : > { %v3167_v50 = vpop.permute.xlu1 %3166 }
 0x970   : > { %v3194_v30 = vmul.f32 %v3167_v50, %v7034_v9 }
 0x972   : > { %3211 = vrot.lane.b32.xlu1 %v3194_v30, %s6676_s24  ;;  %3242 = vperm.xlu0 %6421, %v11375_v22  }
 0x977   : > { %v3179_v25 = vpop.permute.xlu1 %3178 }
 0x978   : > { %v3197_v35 = vmul.f32 %v3179_v25, %v11220_v59 }
 0x97a   : > { %3217 = vrot.lane.b32.xlu1 %v3197_v35, %s6676_s24  ;;  %3262 = vperm.xlu0 %6421, %v7588_v57  }
 0x97f   : > { %v3187_v29 = vpop.permute.xlu1 %3186 }
 0x980   : > { %v3199_v51 = vmul.f32 %v3187_v29, %v11256_v21  ;;  %v6707_v29 = vmov 28  }
 0x982   : > { %3221 = vrot.lane.b32.xlu2 %v3199_v51, %s6676_s24  ;;  %3223 = vrot.lane.b32.xlu1 %v3200_v36, %s6676_s24 }
 0x983   : > { %6425 = vset.pattern.permute.xlu0 %v6707_v29 }
 0x98a   : > { %3246 = vperm.xlu2 %6422, %v11300_v40   ;;  %3250 = vperm.xlu1 %6423, %v11374_v15  }
 0x992   : > { %3254 = vperm.xlu2 %6422, %v11379_v34   ;;  %3258 = vperm.xlu1 %6423, %v11378_v20  }
 0x99a   : > { %3266 = vperm.xlu2 %6422, %v7658_v16   ;;  %3270 = vperm.xlu1 %6423, %v7793_v47  }
 0x9a2   : > { %6424 = vset.pattern.permute.xlu1 %v6707_v29  ;;  %6426 = vset.pattern.permute.xlu2 %v6707_v29 }
 0x9b3   : > { %v8905_v30 = vpop.permute.xlu2 %3209 }
 0x9b4   : > { %11444 = vst [vmem:[#allocation222_spill] sm:$0xff] %v8905_v30 }
 0x9bb   : > { %v8907_v50 = vpop.permute.xlu2 %3215 }
 0x9bc   : > { %11445 = vst [vmem:[#allocation223_spill] sm:$0xff] %v8907_v50 }
 0x9d4   : > { %v8909_v25 = vpop.permute.xlu0 %3213 }
 0x9d5   : > { %11446 = vst [vmem:[#allocation224_spill] sm:$0xff] %v8909_v25 }
 0x9dc   : > { %v8911_v35 = vpop.permute.xlu2 %3221  ;;  %v8913_v5 = vpop.permute.xlu0 %3219 }
 0x9dd   : > { %11447 = vst [vmem:[#allocation225_spill] sm:$0xff] %v8911_v35 }
 0x9de   : > { %11448 = vst [vmem:[#allocation226_spill] sm:$0xff] %v8913_v5 }
 0x9e4   : > { %v3247_v36 = vpop.permute.xlu2 %3246  ;;  %v8915_v51 = vpop.permute.xlu1 %3211 }
 0x9e5   : > { %11449 = vst [vmem:[#allocation227_spill] sm:$0xff] %v8915_v51  ;;  %v3274_v52 = vmul.f32 %v3247_v36, %v7034_v9  ;;  %v3243_v11 = vpop.permute.xlu0 %3242 }
 0x9e6   : > { %v3273_v30 = vmul.f32 %v3243_v11, %v11435_v46 }
 0x9e7   : > { %3291 = vrot.lane.b32.xlu2 %v3274_v52, %s6698_s12 }
 0x9e8   : > { %3289 = vrot.lane.b32.xlu0 %v3273_v30, %s6698_s12 }
 0x9ec   : > { %v3255_v50 = vpop.permute.xlu2 %3254  ;;  %v8921_v35 = vpop.permute.xlu1 %3217 }
 0x9ed   : > { %11450 = vst [vmem:[#allocation228_spill] sm:$0xff] %v8921_v35  ;;  %v3276_v5 = vmul.f32 %v3255_v50, %v7045_v23  ;;  %v3263_v52 = vpop.permute.xlu0 %3262 }
 0x9ee   : > { %v3278_v50 = vmul.f32 %v3263_v52, %v11235_v31 }
 0x9f0   : > { %3295 = vrot.lane.b32.xlu0 %v3276_v5, %s6698_s12 }
 0x9f4   : > { %v3267_v29 = vpop.permute.xlu2 %3266  ;;  %v8925_v25 = vpop.permute.xlu1 %3223 }
 0x9f5   : > { %11451 = vst [vmem:[#allocation229_spill] sm:$0xff] %v8925_v25  ;;  %v3279_v51 = vmul.f32 %v3267_v29, %v11256_v21 }
 0x9f8   : > { %3301 = vrot.lane.b32.xlu0 %v3279_v51, %s6698_s12 }
 0x9fc   : > { %v3251_v36 = vpop.permute.xlu1 %3250 }
 0x9fd   : > { %v3275_v11 = vmul.f32 %v3251_v36, %v7041_v17  ;;  %v6708_v36 = vmov 29  }
 0x9ff   : > { %3293 = vrot.lane.b32.xlu1 %v3275_v11, %s6698_s12 }
 0xa00   : > { %3326 = vperm.xlu0 %6425, %v11300_v40  }
 0xa04   : > { %v3259_v30 = vpop.permute.xlu1 %3258 }
 0xa05   : > { %v3277_v5 = vmul.f32 %v3259_v30, %v11220_v59 }
 0xa07   : > { %3297 = vrot.lane.b32.xlu2 %v3277_v5, %s6698_s12  ;;  %3299 = vrot.lane.b32.xlu1 %v3278_v50, %s6698_s12 }
 0xa08   : > { %3346 = vperm.xlu0 %6425, %v7658_v16  }
 0xa0c   : > { %v3271_v51 = vpop.permute.xlu1 %3270 }
 0xa0d   : > { %v3280_v29 = vmul.f32 %v3271_v51, %v11275_v12 }
 0xa0f   : > { %3303 = vrot.lane.b32.xlu2 %v3280_v29, %s6698_s12  ;;  %3322 = vperm.xlu1 %6424, %v11375_v22  }
 0xa10   : > { %6428 = vset.pattern.permute.xlu0 %v6708_v36 }
 0xa11   : > { %3374 = vperm.xlu0 %6428, %v11300_v40  }
 0xa17   : > { %3330 = vperm.xlu2 %6426, %v11374_v15   ;;  %3334 = vperm.xlu1 %6424, %v11379_v34  }
 0xa19   : > { %3394 = vperm.xlu0 %6428, %v7658_v16  }
 0xa1f   : > { %3338 = vperm.xlu2 %6426, %v11378_v20   ;;  %3342 = vperm.xlu1 %6424, %v7588_v57  }
 0xa27   : > { %3350 = vperm.xlu2 %6426, %v7793_v47   ;;  %6427 = vset.pattern.permute.xlu1 %v6708_v36 }
 0xa28   : > { %3370 = vperm.xlu1 %6427, %v11375_v22  }
 0xa2f   : > { %6429 = vset.pattern.permute.xlu2 %v6708_v36 }
 0xa30   : > { %3378 = vperm.xlu2 %6429, %v11374_v15   ;;  %3382 = vperm.xlu1 %6427, %v11379_v34  }
 0xa38   : > { %3386 = vperm.xlu2 %6429, %v11378_v20   ;;  %3390 = vperm.xlu1 %6427, %v7588_v57  }
 0xa40   : > { %3398 = vperm.xlu2 %6429, %v7793_v47  }
 0xa41   : > { %v8953_v11 = vpop.permute.xlu2 %3291 }
 0xa42   : > { %11452 = vst [vmem:[#allocation230_spill] sm:$0xff] %v8953_v11 }
 0xa5a   : > { %v8955_v52 = vpop.permute.xlu0 %3289 }
 0xa5b   : > { %11453 = vst [vmem:[#allocation231_spill] sm:$0xff] %v8955_v52 }
 0xa61   : > { %v8957_v30 = vpop.permute.xlu2 %3297 }
 0xa62   : > { %11454 = vst [vmem:[#allocation232_spill] sm:$0xff] %v8957_v30  ;;  %v8959_v50 = vpop.permute.xlu0 %3295 }
 0xa63   : > { %11455 = vst [vmem:[#allocation233_spill] sm:$0xff] %v8959_v50 }
 0xa69   : > { %v8961_v5 = vpop.permute.xlu2 %3303 }
 0xa6a   : > { %11456 = vst [vmem:[#allocation234_spill] sm:$0xff] %v8961_v5  ;;  %v8963_v51 = vpop.permute.xlu0 %3301 }
 0xa6b   : > { %11457 = vst [vmem:[#allocation235_spill] sm:$0xff] %v8963_v51  ;;  %v6709_v51 = vmov 30  }
 0xa6c   : > { %6432 = vset.pattern.permute.xlu0 %v6709_v51  ;;  %6430 = vset.pattern.permute.xlu2 %v6709_v51 }
 0xa6d   : > { %6431 = vset.pattern.permute.xlu1 %v6709_v51 }
 0xa71   : > { %v8965_v29 = vpop.permute.xlu2 %3330  ;;  %v8967_v36 = vpop.permute.xlu1 %3293 }
 0xa72   : > { %11458 = vst [vmem:[#allocation236_spill] sm:$0xff] %v8965_v29  ;;  %v8969_v25 = vpop.permute.xlu0 %3326 }
 0xa73   : > { %11459 = vst [vmem:[#allocation237_spill] sm:$0xff] %v8967_v36 }
 0xa74   : > { %11460 = vst [vmem:[#allocation238_spill] sm:$0xff] %v8969_v25 }
 0xa79   : > { %v8971_v35 = vpop.permute.xlu2 %3338  ;;  %v8973_v13 = vpop.permute.xlu1 %3299 }
 0xa7a   : > { %11461 = vst [vmem:[#allocation239_spill] sm:$0xff] %v8971_v35  ;;  %v8975_v11 = vpop.permute.xlu0 %3346 }
 0xa7b   : > { %11462 = vst [vmem:[#allocation240_spill] sm:$0xff] %v8973_v13 }
 0xa7c   : > { %11463 = vst [vmem:[#allocation241_spill] sm:$0xff] %v8975_v11 }
 0xa81   : > { %v8977_v52 = vpop.permute.xlu2 %3350  ;;  %v8979_v30 = vpop.permute.xlu1 %3322 }
 0xa82   : > { %11464 = vst [vmem:[#allocation242_spill] sm:$0xff] %v8977_v52 }
 0xa83   : > { %11465 = vst [vmem:[#allocation243_spill] sm:$0xff] %v8979_v30  ;;  %v3375_v50 = vpop.permute.xlu0 %3374 }
 0xa84   : > { %v3402_v5 = vmul.f32 %v3375_v50, %v7056_v39 }
 0xa86   : > { %3419 = vrot.lane.b32.xlu0 %v3402_v5, %s6699_s21 }
 0xa89   : > { %v8983_v25 = vpop.permute.xlu1 %3334 }
 0xa8a   : > { %11466 = vst [vmem:[#allocation244_spill] sm:$0xff] %v8983_v25  ;;  %v3379_v35 = vpop.permute.xlu2 %3378 }
 0xa8b   : > { %v3403_v13 = vmul.f32 %v3379_v35, %v7063_v48 }
 0xa8d   : > { %3421 = vrot.lane.b32.xlu2 %v3403_v13, %s6699_s21 }
 0xa91   : > { %v8987_v11 = vpop.permute.xlu1 %3342 }
 0xa92   : > { %11467 = vst [vmem:[#allocation245_spill] sm:$0xff] %v8987_v11  ;;  %v3387_v52 = vpop.permute.xlu2 %3386 }
 0xa93   : > { %v3405_v30 = vmul.f32 %v3387_v52, %v11222_v19  ;;  %v3395_v52 = vpop.permute.xlu0 %3394 }
 0xa94   : > { %v3407_v25 = vmul.f32 %v3395_v52, %v11260_v14 }
 0xa95   : > { %3425 = vrot.lane.b32.xlu0 %v3405_v30, %s6699_s21 }
 0xa9a   : > { %v3399_v50 = vpop.permute.xlu2 %3398  ;;  %v3371_v36 = vpop.permute.xlu1 %3370 }
 0xa9b   : > { %v3408_v51 = vmul.f32 %v3399_v50, %v11280_v38  ;;  %v3401_v5 = vmul.f32 %v3371_v36, %v7073_v61 }
 0xa9d   : > { %3417 = vrot.lane.b32.xlu1 %v3401_v5, %s6699_s21  ;;  %3431 = vrot.lane.b32.xlu0 %v3408_v51, %s6699_s21 }
 0xaa2   : > { %v3383_v35 = vpop.permute.xlu1 %3382 }
 0xaa3   : > { %v3404_v13 = vmul.f32 %v3383_v35, %v7070_v56 }
 0xaa5   : > { %3423 = vrot.lane.b32.xlu1 %v3404_v13, %s6699_s21  ;;  %3458 = vperm.xlu0 %6432, %v11374_v15  }
 0xaaa   : > { %v3391_v11 = vpop.permute.xlu1 %3390 }
 0xaab   : > { %v3406_v30 = vmul.f32 %v3391_v11, %v11241_v27 }
 0xaad   : > { %3427 = vrot.lane.b32.xlu2 %v3406_v30, %s6699_s21  ;;  %3478 = vperm.xlu0 %6432, %v7793_v47  }
 0xaae   : > { %3429 = vrot.lane.b32.xlu1 %v3407_v25, %s6699_s21  ;;  %v6710_v25 = vmov 31  }
 0xab5   : > { %3450 = vperm.xlu2 %6430, %v11375_v22   ;;  %6433 = vset.pattern.permute.xlu0 %v6710_v25 }
 0xab6   : > { %3454 = vperm.xlu1 %6431, %v11300_v40  }
 0xabd   : > { %3462 = vperm.xlu2 %6430, %v11379_v34  }
 0xabe   : > { %3466 = vperm.xlu1 %6431, %v11378_v20  }
 0xac5   : > { %3470 = vperm.xlu2 %6430, %v7588_v57  }
 0xac6   : > { %3474 = vperm.xlu1 %6431, %v7658_v16  }
 0xacd   : > { %6434 = vset.pattern.permute.xlu2 %v6710_v25 }
 0xace   : > { %6435 = vset.pattern.permute.xlu1 %v6710_v25 }
 0xae7   : > { %v9009_v11 = vpop.permute.xlu2 %3421 }
 0xae8   : > { %11468 = vst [vmem:[#allocation246_spill] sm:$0xff] %v9009_v11 }
 0xaf8   : > { %v9011_v36 = vpop.permute.xlu0 %3419 }
 0xaf9   : > { %11469 = vst [vmem:[#allocation247_spill] sm:$0xff] %v9011_v36 }
 0xb07   : > { %v9013_v50 = vpop.permute.xlu2 %3427  ;;  %v9015_v51 = vpop.permute.xlu0 %3425 }
 0xb08   : > { %11470 = vst [vmem:[#allocation248_spill] sm:$0xff] %v9013_v50 }
 0xb09   : > { %11471 = vst [vmem:[#allocation249_spill] sm:$0xff] %v9015_v51 }
 0xb0f   : > { %v3451_v5 = vpop.permute.xlu2 %3450  ;;  %v9017_v35 = vpop.permute.xlu1 %3417 }
 0xb10   : > { %11472 = vst [vmem:[#allocation250_spill] sm:$0xff] %v9017_v35  ;;  %v3481_v13 = vmul.f32 %v3451_v5, %v7073_v61  ;;  %v9020_v52 = vpop.permute.xlu0 %3431 }
 0xb11   : > { %11473 = vst [vmem:[#allocation251_spill] sm:$0xff] %v9020_v52 }
 0xb12   : > { %3497 = vrot.lane.b32.xlu2 %v3481_v13, %s6676_s24 }
 0xb17   : > { %v3463_v30 = vpop.permute.xlu2 %3462  ;;  %v9023_v11 = vpop.permute.xlu1 %3423 }
 0xb18   : > { %11474 = vst [vmem:[#allocation252_spill] sm:$0xff] %v9023_v11  ;;  %v3484_v50 = vmul.f32 %v3463_v30, %v7070_v56  ;;  %v3459_v36 = vpop.permute.xlu0 %3458 }
 0xb19   : > { %v3483_v51 = vmul.f32 %v3459_v36, %v7063_v48 }
 0xb1a   : > { %3503 = vrot.lane.b32.xlu2 %v3484_v50, %s6676_s24 }
 0xb1b   : > { %3501 = vrot.lane.b32.xlu0 %v3483_v51, %s6676_s24 }
 0xb1f   : > { %v3471_v25 = vpop.permute.xlu2 %3470 }
 0xb20   : > { %v3486_v35 = vmul.f32 %v3471_v25, %v11241_v27  ;;  %v9030_v5 = vpop.permute.xlu1 %3429  ;;  %v3479_v50 = vpop.permute.xlu0 %3478 }
 0xb21   : > { %11475 = vst [vmem:[#allocation253_spill] sm:$0xff] %v9030_v5  ;;  %v3488_v25 = vmul.f32 %v3479_v50, %v11280_v38 }
 0xb23   : > { %3507 = vrot.lane.b32.xlu0 %v3486_v35, %s6676_s24 }
 0xb28   : > { %v3455_v13 = vpop.permute.xlu1 %3454 }
 0xb29   : > { %v3482_v52 = vmul.f32 %v3455_v13, %v7056_v39 }
 0xb2b   : > { %3499 = vrot.lane.b32.xlu1 %v3482_v52, %s6676_s24  ;;  %3530 = vperm.xlu0 %6433, %v11375_v22  }
 0xb30   : > { %v3467_v30 = vpop.permute.xlu1 %3466 }
 0xb31   : > { %v3485_v36 = vmul.f32 %v3467_v30, %v11222_v19 }
 0xb33   : > { %3505 = vrot.lane.b32.xlu1 %v3485_v36, %s6676_s24  ;;  %3550 = vperm.xlu0 %6433, %v7588_v57  }
 0xb38   : > { %v3475_v51 = vpop.permute.xlu1 %3474 }
 0xb39   : > { %v3487_v35 = vmul.f32 %v3475_v51, %v11260_v14  ;;  %v6711_v51 = vmov 32  }
 0xb3b   : > { %3509 = vrot.lane.b32.xlu2 %v3487_v35, %s6676_s24  ;;  %3511 = vrot.lane.b32.xlu1 %v3488_v25, %s6676_s24 }
 0xb3c   : > { %6437 = vset.pattern.permute.xlu0 %v6711_v51 }
 0xb43   : > { %3534 = vperm.xlu2 %6434, %v11300_v40   ;;  %3538 = vperm.xlu1 %6435, %v11374_v15  }
 0xb4b   : > { %3542 = vperm.xlu2 %6434, %v11379_v34   ;;  %3546 = vperm.xlu1 %6435, %v11378_v20  }
 0xb53   : > { %3554 = vperm.xlu2 %6434, %v7658_v16   ;;  %3558 = vperm.xlu1 %6435, %v7793_v47  }
 0xb5b   : > { %6436 = vset.pattern.permute.xlu1 %v6711_v51  ;;  %6438 = vset.pattern.permute.xlu2 %v6711_v51 }
 0xb6c   : > { %v9049_v52 = vpop.permute.xlu2 %3497 }
 0xb6d   : > { %11476 = vst [vmem:[#allocation254_spill] sm:$0xff] %v9049_v52 }
 0xb74   : > { %v9051_v13 = vpop.permute.xlu2 %3503 }
 0xb75   : > { %11477 = vst [vmem:[#allocation255_spill] sm:$0xff] %v9051_v13 }
 0xb8d   : > { %v9053_v30 = vpop.permute.xlu0 %3501 }
 0xb8e   : > { %11478 = vst [vmem:[#allocation256_spill] sm:$0xff] %v9053_v30 }
 0xb95   : > { %v9055_v36 = vpop.permute.xlu2 %3509  ;;  %v9057_v50 = vpop.permute.xlu0 %3507 }
 0xb96   : > { %11479 = vst [vmem:[#allocation257_spill] sm:$0xff] %v9055_v36 }
 0xb97   : > { %11480 = vst [vmem:[#allocation258_spill] sm:$0xff] %v9057_v50 }
 0xb9d   : > { %v3535_v25 = vpop.permute.xlu2 %3534  ;;  %v9059_v35 = vpop.permute.xlu1 %3499 }
 0xb9e   : > { %11481 = vst [vmem:[#allocation259_spill] sm:$0xff] %v9059_v35  ;;  %v3562_v5 = vmul.f32 %v3535_v25, %v7056_v39  ;;  %v3531_v11 = vpop.permute.xlu0 %3530 }
 0xb9f   : > { %v3561_v52 = vmul.f32 %v3531_v11, %v7073_v61 }
 0xba0   : > { %3579 = vrot.lane.b32.xlu2 %v3562_v5, %s6698_s12 }
 0xba1   : > { %3577 = vrot.lane.b32.xlu0 %v3561_v52, %s6698_s12 }
 0xba5   : > { %v3543_v13 = vpop.permute.xlu2 %3542  ;;  %v9065_v36 = vpop.permute.xlu1 %3505 }
 0xba6   : > { %11482 = vst [vmem:[#allocation260_spill] sm:$0xff] %v9065_v36  ;;  %v3564_v50 = vmul.f32 %v3543_v13, %v7070_v56  ;;  %v3551_v5 = vpop.permute.xlu0 %3550 }
 0xba7   : > { %v3566_v13 = vmul.f32 %v3551_v5, %v11241_v27 }
 0xba9   : > { %3583 = vrot.lane.b32.xlu0 %v3564_v50, %s6698_s12 }
 0xbad   : > { %v3555_v51 = vpop.permute.xlu2 %3554  ;;  %v9069_v30 = vpop.permute.xlu1 %3511 }
 0xbae   : > { %11483 = vst [vmem:[#allocation261_spill] sm:$0xff] %v9069_v30  ;;  %v3567_v35 = vmul.f32 %v3555_v51, %v11260_v14 }
 0xbb1   : > { %3589 = vrot.lane.b32.xlu0 %v3567_v35, %s6698_s12 }
 0xbb5   : > { %v3539_v25 = vpop.permute.xlu1 %3538 }
 0xbb6   : > { %v3563_v11 = vmul.f32 %v3539_v25, %v7063_v48  ;;  %v6712_v25 = vmov 33  }
 0xbb8   : > { %3581 = vrot.lane.b32.xlu1 %v3563_v11, %s6698_s12 }
 0xbb9   : > { %3622 = vperm.xlu0 %6437, %v11300_v40  }
 0xbbd   : > { %v3547_v52 = vpop.permute.xlu1 %3546 }
 0xbbe   : > { %v3565_v50 = vmul.f32 %v3547_v52, %v11222_v19 }
 0xbc0   : > { %3585 = vrot.lane.b32.xlu2 %v3565_v50, %s6698_s12  ;;  %3587 = vrot.lane.b32.xlu1 %v3566_v13, %s6698_s12 }
 0xbc1   : > { %3642 = vperm.xlu0 %6437, %v7658_v16  }
 0xbc5   : > { %v3559_v35 = vpop.permute.xlu1 %3558 }
 0xbc6   : > { %v3568_v51 = vmul.f32 %v3559_v35, %v11280_v38 }
 0xbc8   : > { %3591 = vrot.lane.b32.xlu2 %v3568_v51, %s6698_s12  ;;  %3618 = vperm.xlu1 %6436, %v11375_v22  }
 0xbc9   : > { %6440 = vset.pattern.permute.xlu0 %v6712_v25 }
 0xbca   : > { %3662 = vperm.xlu0 %6440, %v11300_v40  }
 0xbd0   : > { %3626 = vperm.xlu2 %6438, %v11374_v15   ;;  %3630 = vperm.xlu1 %6436, %v11379_v34  }
 0xbd2   : > { %3682 = vperm.xlu0 %6440, %v7658_v16  }
 0xbd8   : > { %3634 = vperm.xlu2 %6438, %v11378_v20   ;;  %3638 = vperm.xlu1 %6436, %v7588_v57  }
 0xbe0   : > { %3646 = vperm.xlu2 %6438, %v7793_v47   ;;  %6439 = vset.pattern.permute.xlu1 %v6712_v25 }
 0xbe1   : > { %3658 = vperm.xlu1 %6439, %v11375_v22  }
 0xbe8   : > { %6441 = vset.pattern.permute.xlu2 %v6712_v25 }
 0xbe9   : > { %3666 = vperm.xlu2 %6441, %v11374_v15   ;;  %3670 = vperm.xlu1 %6439, %v11379_v34  }
 0xbf1   : > { %3674 = vperm.xlu2 %6441, %v11378_v20   ;;  %3678 = vperm.xlu1 %6439, %v7588_v57  }
 0xbf9   : > { %3686 = vperm.xlu2 %6441, %v7793_v47  }
 0xbfa   : > { %v9097_v11 = vpop.permute.xlu2 %3579 }
 0xbfb   : > { %11484 = vst [vmem:[#allocation262_spill] sm:$0xff] %v9097_v11 }
 0xc13   : > { %v9099_v5 = vpop.permute.xlu0 %3577 }
 0xc14   : > { %11485 = vst [vmem:[#allocation263_spill] sm:$0xff] %v9099_v5 }
 0xc1a   : > { %v9101_v52 = vpop.permute.xlu2 %3585 }
 0xc1b   : > { %11486 = vst [vmem:[#allocation264_spill] sm:$0xff] %v9101_v52  ;;  %v9103_v13 = vpop.permute.xlu0 %3583 }
 0xc1c   : > { %11487 = vst [vmem:[#allocation265_spill] sm:$0xff] %v9103_v13 }
 0xc22   : > { %v9105_v50 = vpop.permute.xlu2 %3591 }
 0xc23   : > { %11488 = vst [vmem:[#allocation266_spill] sm:$0xff] %v9105_v50  ;;  %v9107_v35 = vpop.permute.xlu0 %3589 }
 0xc24   : > { %11489 = vst [vmem:[#allocation267_spill] sm:$0xff] %v9107_v35  ;;  %v6713_v35 = vmov 34  }
 0xc25   : > { %6444 = vset.pattern.permute.xlu0 %v6713_v35  ;;  %6442 = vset.pattern.permute.xlu2 %v6713_v35 }
 0xc26   : > { %6443 = vset.pattern.permute.xlu1 %v6713_v35 }
 0xc2a   : > { %v9109_v51 = vpop.permute.xlu2 %3626  ;;  %v9111_v25 = vpop.permute.xlu1 %3581 }
 0xc2b   : > { %11490 = vst [vmem:[#allocation268_spill] sm:$0xff] %v9109_v51  ;;  %v9113_v30 = vpop.permute.xlu0 %3622 }
 0xc2c   : > { %11491 = vst [vmem:[#allocation269_spill] sm:$0xff] %v9111_v25 }
 0xc2d   : > { %11492 = vst [vmem:[#allocation270_spill] sm:$0xff] %v9113_v30 }
 0xc32   : > { %v9115_v36 = vpop.permute.xlu2 %3634  ;;  %v9117_v29 = vpop.permute.xlu1 %3587 }
 0xc33   : > { %11493 = vst [vmem:[#allocation271_spill] sm:$0xff] %v9115_v36  ;;  %v9119_v11 = vpop.permute.xlu0 %3642 }
 0xc34   : > { %11494 = vst [vmem:[#allocation272_spill] sm:$0xff] %v9117_v29 }
 0xc35   : > { %11495 = vst [vmem:[#allocation273_spill] sm:$0xff] %v9119_v11 }
 0xc3a   : > { %v9121_v5 = vpop.permute.xlu2 %3646  ;;  %v9123_v52 = vpop.permute.xlu1 %3618 }
 0xc3b   : > { %11496 = vst [vmem:[#allocation274_spill] sm:$0xff] %v9121_v5 }
 0xc3c   : > { %11497 = vst [vmem:[#allocation275_spill] sm:$0xff] %v9123_v52  ;;  %v3663_v13 = vpop.permute.xlu0 %3662 }
 0xc3d   : > { %v3690_v50 = vmul.f32 %v3663_v13, %v7034_v9 }
 0xc3f   : > { %3707 = vrot.lane.b32.xlu0 %v3690_v50, %s6699_s21 }
 0xc42   : > { %v9127_v25 = vpop.permute.xlu1 %3630 }
 0xc43   : > { %11498 = vst [vmem:[#allocation276_spill] sm:$0xff] %v9127_v25  ;;  %v3667_v36 = vpop.permute.xlu2 %3666 }
 0xc44   : > { %v3691_v29 = vmul.f32 %v3667_v36, %v7041_v17 }
 0xc46   : > { %3709 = vrot.lane.b32.xlu2 %v3691_v29, %s6699_s21 }
 0xc4a   : > { %v9131_v11 = vpop.permute.xlu1 %3638 }
 0xc4b   : > { %11499 = vst [vmem:[#allocation277_spill] sm:$0xff] %v9131_v11  ;;  %v3675_v5 = vpop.permute.xlu2 %3674 }
 0xc4c   : > { %v3693_v52 = vmul.f32 %v3675_v5, %v11220_v59  ;;  %v3683_v5 = vpop.permute.xlu0 %3682 }
 0xc4d   : > { %v3695_v25 = vmul.f32 %v3683_v5, %v11256_v21 }
 0xc4e   : > { %3713 = vrot.lane.b32.xlu0 %v3693_v52, %s6699_s21 }
 0xc53   : > { %v3687_v13 = vpop.permute.xlu2 %3686  ;;  %v3659_v30 = vpop.permute.xlu1 %3658 }
 0xc54   : > { %v3696_v35 = vmul.f32 %v3687_v13, %v11275_v12  ;;  %v3689_v50 = vmul.f32 %v3659_v30, %v11435_v46 }
 0xc56   : > { %3705 = vrot.lane.b32.xlu1 %v3689_v50, %s6699_s21  ;;  %3719 = vrot.lane.b32.xlu0 %v3696_v35, %s6699_s21 }
 0xc5b   : > { %v3671_v36 = vpop.permute.xlu1 %3670 }
 0xc5c   : > { %v3692_v29 = vmul.f32 %v3671_v36, %v7045_v23 }
 0xc5e   : > { %3711 = vrot.lane.b32.xlu1 %v3692_v29, %s6699_s21  ;;  %3746 = vperm.xlu0 %6444, %v11374_v15  }
 0xc63   : > { %v3679_v11 = vpop.permute.xlu1 %3678 }
 0xc64   : > { %v3694_v52 = vmul.f32 %v3679_v11, %v11235_v31 }
 0xc66   : > { %3715 = vrot.lane.b32.xlu2 %v3694_v52, %s6699_s21  ;;  %3766 = vperm.xlu0 %6444, %v7793_v47  }
 0xc67   : > { %3717 = vrot.lane.b32.xlu1 %v3695_v25, %s6699_s21  ;;  %v6714_v25 = vmov 35  }
 0xc6e   : > { %3738 = vperm.xlu2 %6442, %v11375_v22   ;;  %6445 = vset.pattern.permute.xlu0 %v6714_v25 }
 0xc6f   : > { %3742 = vperm.xlu1 %6443, %v11300_v40  }
 0xc76   : > { %3750 = vperm.xlu2 %6442, %v11379_v34  }
 0xc77   : > { %3754 = vperm.xlu1 %6443, %v11378_v20  }
 0xc7e   : > { %3758 = vperm.xlu2 %6442, %v7588_v57  }
 0xc7f   : > { %3762 = vperm.xlu1 %6443, %v7658_v16  }
 0xc86   : > { %6446 = vset.pattern.permute.xlu2 %v6714_v25 }
 0xc87   : > { %6447 = vset.pattern.permute.xlu1 %v6714_v25 }
 0xca0   : > { %v9153_v30 = vpop.permute.xlu2 %3709 }
 0xca1   : > { %11500 = vst [vmem:[#allocation278_spill] sm:$0xff] %v9153_v30 }
 0xcb1   : > { %v9155_v11 = vpop.permute.xlu0 %3707 }
 0xcb2   : > { %11501 = vst [vmem:[#allocation279_spill] sm:$0xff] %v9155_v11 }
 0xcc0   : > { %v9157_v13 = vpop.permute.xlu2 %3715  ;;  %v9159_v35 = vpop.permute.xlu0 %3713 }
 0xcc1   : > { %11502 = vst [vmem:[#allocation280_spill] sm:$0xff] %v9157_v13 }
 0xcc2   : > { %11503 = vst [vmem:[#allocation281_spill] sm:$0xff] %v9159_v35 }
 0xcc8   : > { %v3739_v50 = vpop.permute.xlu2 %3738  ;;  %v9161_v36 = vpop.permute.xlu1 %3705 }
 0xcc9   : > { %11504 = vst [vmem:[#allocation282_spill] sm:$0xff] %v9161_v36  ;;  %v3769_v29 = vmul.f32 %v3739_v50, %v11435_v46  ;;  %v9164_v5 = vpop.permute.xlu0 %3719 }
 0xcca   : > { %11505 = vst [vmem:[#allocation283_spill] sm:$0xff] %v9164_v5 }
 0xccb   : > { %3785 = vrot.lane.b32.xlu2 %v3769_v29, %s6676_s24 }
 0xcd0   : > { %v3751_v52 = vpop.permute.xlu2 %3750  ;;  %v9167_v30 = vpop.permute.xlu1 %3711 }
 0xcd1   : > { %11506 = vst [vmem:[#allocation284_spill] sm:$0xff] %v9167_v30  ;;  %v3772_v13 = vmul.f32 %v3751_v52, %v7045_v23  ;;  %v3747_v11 = vpop.permute.xlu0 %3746 }
 0xcd2   : > { %v3771_v35 = vmul.f32 %v3747_v11, %v7041_v17 }
 0xcd3   : > { %3791 = vrot.lane.b32.xlu2 %v3772_v13, %s6676_s24 }
 0xcd4   : > { %3789 = vrot.lane.b32.xlu0 %v3771_v35, %s6676_s24 }
 0xcd8   : > { %v3759_v25 = vpop.permute.xlu2 %3758 }
 0xcd9   : > { %v3774_v36 = vmul.f32 %v3759_v25, %v11235_v31  ;;  %v9174_v50 = vpop.permute.xlu1 %3717  ;;  %v3767_v13 = vpop.permute.xlu0 %3766 }
 0xcda   : > { %11507 = vst [vmem:[#allocation285_spill] sm:$0xff] %v9174_v50  ;;  %v3776_v25 = vmul.f32 %v3767_v13, %v11275_v12 }
 0xcdc   : > { %3795 = vrot.lane.b32.xlu0 %v3774_v36, %s6676_s24 }
 0xce1   : > { %v3743_v29 = vpop.permute.xlu1 %3742 }
 0xce2   : > { %v3770_v5 = vmul.f32 %v3743_v29, %v7034_v9 }
 0xce4   : > { %3787 = vrot.lane.b32.xlu1 %v3770_v5, %s6676_s24  ;;  %3818 = vperm.xlu0 %6445, %v11375_v22  }
 0xce9   : > { %v3755_v52 = vpop.permute.xlu1 %3754 }
 0xcea   : > { %v3773_v11 = vmul.f32 %v3755_v52, %v11220_v59 }
 0xcec   : > { %3793 = vrot.lane.b32.xlu1 %v3773_v11, %s6676_s24  ;;  %3838 = vperm.xlu0 %6445, %v7588_v57  }
 0xcf1   : > { %v3763_v35 = vpop.permute.xlu1 %3762 }
 0xcf2   : > { %v3775_v36 = vmul.f32 %v3763_v35, %v11256_v21  ;;  %v6715_v35 = vmov 36  }
 0xcf4   : > { %3797 = vrot.lane.b32.xlu2 %v3775_v36, %s6676_s24  ;;  %3799 = vrot.lane.b32.xlu1 %v3776_v25, %s6676_s24 }
 0xcf5   : > { %6449 = vset.pattern.permute.xlu0 %v6715_v35 }
 0xcfc   : > { %3822 = vperm.xlu2 %6446, %v11300_v40   ;;  %3826 = vperm.xlu1 %6447, %v11374_v15  }
 0xd04   : > { %3830 = vperm.xlu2 %6446, %v11379_v34   ;;  %3834 = vperm.xlu1 %6447, %v11378_v20  }
 0xd0c   : > { %3842 = vperm.xlu2 %6446, %v7658_v16   ;;  %3846 = vperm.xlu1 %6447, %v7793_v47  }
 0xd14   : > { %6448 = vset.pattern.permute.xlu1 %v6715_v35  ;;  %6450 = vset.pattern.permute.xlu2 %v6715_v35 }
 0xd25   : > { %v9193_v5 = vpop.permute.xlu2 %3785 }
 0xd26   : > { %11508 = vst [vmem:[#allocation286_spill] sm:$0xff] %v9193_v5 }
 0xd2d   : > { %v9195_v29 = vpop.permute.xlu2 %3791 }
 0xd2e   : > { %11509 = vst [vmem:[#allocation287_spill] sm:$0xff] %v9195_v29 }
 0xd46   : > { %v9197_v52 = vpop.permute.xlu0 %3789 }
 0xd47   : > { %11510 = vst [vmem:[#allocation288_spill] sm:$0xff] %v9197_v52 }
 0xd4e   : > { %v9199_v11 = vpop.permute.xlu2 %3797  ;;  %v9201_v13 = vpop.permute.xlu0 %3795 }
 0xd4f   : > { %11511 = vst [vmem:[#allocation289_spill] sm:$0xff] %v9199_v11 }
 0xd50   : > { %11512 = vst [vmem:[#allocation290_spill] sm:$0xff] %v9201_v13 }
 0xd56   : > { %v3823_v25 = vpop.permute.xlu2 %3822  ;;  %v9203_v36 = vpop.permute.xlu1 %3787 }
 0xd57   : > { %11513 = vst [vmem:[#allocation291_spill] sm:$0xff] %v9203_v36  ;;  %v3850_v50 = vmul.f32 %v3823_v25, %v7034_v9  ;;  %v3819_v30 = vpop.permute.xlu0 %3818 }
 0xd58   : > { %v3849_v5 = vmul.f32 %v3819_v30, %v11435_v46 }
 0xd59   : > { %3867 = vrot.lane.b32.xlu2 %v3850_v50, %s6698_s12 }
 0xd5a   : > { %3865 = vrot.lane.b32.xlu0 %v3849_v5, %s6698_s12 }
 0xd5e   : > { %v3831_v29 = vpop.permute.xlu2 %3830  ;;  %v9209_v11 = vpop.permute.xlu1 %3793 }
 0xd5f   : > { %11514 = vst [vmem:[#allocation292_spill] sm:$0xff] %v9209_v11  ;;  %v3852_v13 = vmul.f32 %v3831_v29, %v7045_v23  ;;  %v3839_v50 = vpop.permute.xlu0 %3838 }
 0xd60   : > { %v3854_v29 = vmul.f32 %v3839_v50, %v11235_v31 }
 0xd62   : > { %3871 = vrot.lane.b32.xlu0 %v3852_v13, %s6698_s12 }
 0xd66   : > { %v3843_v35 = vpop.permute.xlu2 %3842  ;;  %v9213_v52 = vpop.permute.xlu1 %3799 }
 0xd67   : > { %11515 = vst [vmem:[#allocation293_spill] sm:$0xff] %v9213_v52  ;;  %v3855_v36 = vmul.f32 %v3843_v35, %v11256_v21 }
 0xd6a   : > { %3877 = vrot.lane.b32.xlu0 %v3855_v36, %s6698_s12 }
 0xd6e   : > { %v3827_v25 = vpop.permute.xlu1 %3826 }
 0xd6f   : > { %v3851_v30 = vmul.f32 %v3827_v25, %v7041_v17  ;;  %v6716_v25 = vmov 37  }
 0xd71   : > { %3869 = vrot.lane.b32.xlu1 %v3851_v30, %s6698_s12 }
 0xd72   : > { %3902 = vperm.xlu0 %6449, %v11300_v40  }
 0xd76   : > { %v3835_v5 = vpop.permute.xlu1 %3834 }
 0xd77   : > { %v3853_v13 = vmul.f32 %v3835_v5, %v11220_v59 }
 0xd79   : > { %3873 = vrot.lane.b32.xlu2 %v3853_v13, %s6698_s12  ;;  %3875 = vrot.lane.b32.xlu1 %v3854_v29, %s6698_s12 }
 0xd7a   : > { %3922 = vperm.xlu0 %6449, %v7658_v16  }
 0xd7e   : > { %v3847_v36 = vpop.permute.xlu1 %3846 }
 0xd7f   : > { %v3856_v35 = vmul.f32 %v3847_v36, %v11275_v12 }
 0xd81   : > { %3879 = vrot.lane.b32.xlu2 %v3856_v35, %s6698_s12  ;;  %3898 = vperm.xlu1 %6448, %v11375_v22  }
 0xd82   : > { %6452 = vset.pattern.permute.xlu0 %v6716_v25 }
 0xd83   : > { %3950 = vperm.xlu0 %6452, %v11300_v40  }
 0xd89   : > { %3906 = vperm.xlu2 %6450, %v11374_v15   ;;  %3910 = vperm.xlu1 %6448, %v11379_v34  }
 0xd8b   : > { %3970 = vperm.xlu0 %6452, %v7658_v16  }
 0xd91   : > { %3914 = vperm.xlu2 %6450, %v11378_v20   ;;  %3918 = vperm.xlu1 %6448, %v7588_v57  }
 0xd99   : > { %3926 = vperm.xlu2 %6450, %v7793_v47   ;;  %6451 = vset.pattern.permute.xlu1 %v6716_v25 }
 0xd9a   : > { %3946 = vperm.xlu1 %6451, %v11375_v22  }
 0xda1   : > { %6453 = vset.pattern.permute.xlu2 %v6716_v25 }
 0xda2   : > { %3954 = vperm.xlu2 %6453, %v11374_v15   ;;  %3958 = vperm.xlu1 %6451, %v11379_v34  }
 0xdaa   : > { %3962 = vperm.xlu2 %6453, %v11378_v20   ;;  %3966 = vperm.xlu1 %6451, %v7588_v57  }
 0xdb2   : > { %3974 = vperm.xlu2 %6453, %v7793_v47  }
 0xdb3   : > { %v9241_v30 = vpop.permute.xlu2 %3867 }
 0xdb4   : > { %11516 = vst [vmem:[#allocation294_spill] sm:$0xff] %v9241_v30 }
 0xdcc   : > { %v9243_v50 = vpop.permute.xlu0 %3865 }
 0xdcd   : > { %11517 = vst [vmem:[#allocation295_spill] sm:$0xff] %v9243_v50 }
 0xdd3   : > { %v9245_v5 = vpop.permute.xlu2 %3873 }
 0xdd4   : > { %11518 = vst [vmem:[#allocation296_spill] sm:$0xff] %v9245_v5  ;;  %v9247_v29 = vpop.permute.xlu0 %3871 }
 0xdd5   : > { %11519 = vst [vmem:[#allocation297_spill] sm:$0xff] %v9247_v29 }
 0xddb   : > { %v9249_v13 = vpop.permute.xlu2 %3879 }
 0xddc   : > { %11520 = vst [vmem:[#allocation298_spill] sm:$0xff] %v9249_v13  ;;  %v9251_v36 = vpop.permute.xlu0 %3877 }
 0xddd   : > { %11521 = vst [vmem:[#allocation299_spill] sm:$0xff] %v9251_v36  ;;  %v6717_v36 = vmov 38  }
 0xdde   : > { %6456 = vset.pattern.permute.xlu0 %v6717_v36  ;;  %6454 = vset.pattern.permute.xlu2 %v6717_v36 }
 0xddf   : > { %6455 = vset.pattern.permute.xlu1 %v6717_v36 }
 0xde3   : > { %v9253_v35 = vpop.permute.xlu2 %3906  ;;  %v9255_v25 = vpop.permute.xlu1 %3869 }
 0xde4   : > { %11522 = vst [vmem:[#allocation300_spill] sm:$0xff] %v9253_v35  ;;  %v9257_v52 = vpop.permute.xlu0 %3902 }
 0xde5   : > { %11523 = vst [vmem:[#allocation301_spill] sm:$0xff] %v9255_v25 }
 0xde6   : > { %11524 = vst [vmem:[#allocation302_spill] sm:$0xff] %v9257_v52 }
 0xdeb   : > { %v9259_v11 = vpop.permute.xlu2 %3914  ;;  %v9261_v51 = vpop.permute.xlu1 %3875 }
 0xdec   : > { %11525 = vst [vmem:[#allocation303_spill] sm:$0xff] %v9259_v11  ;;  %v9263_v30 = vpop.permute.xlu0 %3922 }
 0xded   : > { %11526 = vst [vmem:[#allocation304_spill] sm:$0xff] %v9261_v51 }
 0xdee   : > { %11527 = vst [vmem:[#allocation305_spill] sm:$0xff] %v9263_v30 }
 0xdf3   : > { %v9265_v50 = vpop.permute.xlu2 %3926  ;;  %v9267_v5 = vpop.permute.xlu1 %3898 }
 0xdf4   : > { %11528 = vst [vmem:[#allocation306_spill] sm:$0xff] %v9265_v50 }
 0xdf5   : > { %11529 = vst [vmem:[#allocation307_spill] sm:$0xff] %v9267_v5  ;;  %v3951_v29 = vpop.permute.xlu0 %3950 }
 0xdf6   : > { %v3978_v13 = vmul.f32 %v3951_v29, %v7056_v39 }
 0xdf8   : > { %3995 = vrot.lane.b32.xlu0 %v3978_v13, %s6699_s21 }
 0xdfb   : > { %v9271_v52 = vpop.permute.xlu1 %3910 }
 0xdfc   : > { %11530 = vst [vmem:[#allocation308_spill] sm:$0xff] %v9271_v52  ;;  %v3955_v11 = vpop.permute.xlu2 %3954 }
 0xdfd   : > { %v3979_v51 = vmul.f32 %v3955_v11, %v7063_v48 }
 0xdff   : > { %3997 = vrot.lane.b32.xlu2 %v3979_v51, %s6699_s21 }
 0xe03   : > { %v9275_v30 = vpop.permute.xlu1 %3918 }
 0xe04   : > { %11531 = vst [vmem:[#allocation309_spill] sm:$0xff] %v9275_v30  ;;  %v3963_v50 = vpop.permute.xlu2 %3962 }
 0xe05   : > { %v3981_v5 = vmul.f32 %v3963_v50, %v11222_v19  ;;  %v3971_v50 = vpop.permute.xlu0 %3970 }
 0xe06   : > { %v3983_v52 = vmul.f32 %v3971_v50, %v11260_v14 }
 0xe07   : > { %4001 = vrot.lane.b32.xlu0 %v3981_v5, %s6699_s21 }
 0xe0c   : > { %v3975_v29 = vpop.permute.xlu2 %3974  ;;  %v3947_v25 = vpop.permute.xlu1 %3946 }
 0xe0d   : > { %v3984_v36 = vmul.f32 %v3975_v29, %v11280_v38  ;;  %v3977_v13 = vmul.f32 %v3947_v25, %v7073_v61 }
 0xe0f   : > { %3993 = vrot.lane.b32.xlu1 %v3977_v13, %s6699_s21  ;;  %4007 = vrot.lane.b32.xlu0 %v3984_v36, %s6699_s21 }
 0xe14   : > { %v3959_v11 = vpop.permute.xlu1 %3958 }
 0xe15   : > { %v3980_v51 = vmul.f32 %v3959_v11, %v7070_v56 }
 0xe17   : > { %3999 = vrot.lane.b32.xlu1 %v3980_v51, %s6699_s21  ;;  %4034 = vperm.xlu0 %6456, %v11374_v15  }
 0xe1c   : > { %v3967_v30 = vpop.permute.xlu1 %3966 }
 0xe1d   : > { %v3982_v5 = vmul.f32 %v3967_v30, %v11241_v27 }
 0xe1f   : > { %4003 = vrot.lane.b32.xlu2 %v3982_v5, %s6699_s21  ;;  %4054 = vperm.xlu0 %6456, %v7793_v47  }
 0xe20   : > { %4005 = vrot.lane.b32.xlu1 %v3983_v52, %s6699_s21  ;;  %v6718_v52 = vmov 39  }
 0xe27   : > { %4026 = vperm.xlu2 %6454, %v11375_v22   ;;  %6457 = vset.pattern.permute.xlu0 %v6718_v52 }
 0xe28   : > { %4030 = vperm.xlu1 %6455, %v11300_v40  }
 0xe2f   : > { %4038 = vperm.xlu2 %6454, %v11379_v34  }
 0xe30   : > { %4042 = vperm.xlu1 %6455, %v11378_v20  }
 0xe37   : > { %4046 = vperm.xlu2 %6454, %v7588_v57  }
 0xe38   : > { %4050 = vperm.xlu1 %6455, %v7658_v16  }
 0xe3f   : > { %6458 = vset.pattern.permute.xlu2 %v6718_v52 }
 0xe40   : > { %6459 = vset.pattern.permute.xlu1 %v6718_v52 }
 0xe59   : > { %v9297_v30 = vpop.permute.xlu2 %3997 }
 0xe5a   : > { %11532 = vst [vmem:[#allocation310_spill] sm:$0xff] %v9297_v30 }
 0xe6a   : > { %v9299_v25 = vpop.permute.xlu0 %3995 }
 0xe6b   : > { %11533 = vst [vmem:[#allocation311_spill] sm:$0xff] %v9299_v25 }
 0xe79   : > { %v9301_v29 = vpop.permute.xlu2 %4003  ;;  %v9303_v36 = vpop.permute.xlu0 %4001 }
 0xe7a   : > { %11534 = vst [vmem:[#allocation312_spill] sm:$0xff] %v9301_v29 }
 0xe7b   : > { %11535 = vst [vmem:[#allocation313_spill] sm:$0xff] %v9303_v36 }
 0xe81   : > { %v4027_v13 = vpop.permute.xlu2 %4026  ;;  %v9305_v11 = vpop.permute.xlu1 %3993 }
 0xe82   : > { %11536 = vst [vmem:[#allocation314_spill] sm:$0xff] %v9305_v11  ;;  %v4057_v51 = vmul.f32 %v4027_v13, %v7073_v61  ;;  %v9308_v50 = vpop.permute.xlu0 %4007 }
 0xe83   : > { %11537 = vst [vmem:[#allocation315_spill] sm:$0xff] %v9308_v50 }
 0xe84   : > { %4073 = vrot.lane.b32.xlu2 %v4057_v51, %s6676_s24 }
 0xe89   : > { %v4039_v5 = vpop.permute.xlu2 %4038  ;;  %v9311_v30 = vpop.permute.xlu1 %3999 }
 0xe8a   : > { %11538 = vst [vmem:[#allocation316_spill] sm:$0xff] %v9311_v30  ;;  %v4060_v29 = vmul.f32 %v4039_v5, %v7070_v56  ;;  %v4035_v25 = vpop.permute.xlu0 %4034 }
 0xe8b   : > { %v4059_v36 = vmul.f32 %v4035_v25, %v7063_v48 }
 0xe8c   : > { %4079 = vrot.lane.b32.xlu2 %v4060_v29, %s6676_s24 }
 0xe8d   : > { %4077 = vrot.lane.b32.xlu0 %v4059_v36, %s6676_s24 }
 0xe91   : > { %v4047_v52 = vpop.permute.xlu2 %4046 }
 0xe92   : > { %v4062_v11 = vmul.f32 %v4047_v52, %v11241_v27  ;;  %v9318_v13 = vpop.permute.xlu1 %4005  ;;  %v4055_v29 = vpop.permute.xlu0 %4054 }
 0xe93   : > { %11539 = vst [vmem:[#allocation317_spill] sm:$0xff] %v9318_v13  ;;  %v4064_v52 = vmul.f32 %v4055_v29, %v11280_v38 }
 0xe95   : > { %4083 = vrot.lane.b32.xlu0 %v4062_v11, %s6676_s24 }
 0xe9a   : > { %v4031_v51 = vpop.permute.xlu1 %4030 }
 0xe9b   : > { %v4058_v50 = vmul.f32 %v4031_v51, %v7056_v39 }
 0xe9d   : > { %4075 = vrot.lane.b32.xlu1 %v4058_v50, %s6676_s24  ;;  %4106 = vperm.xlu0 %6457, %v11375_v22  }
 0xea2   : > { %v4043_v5 = vpop.permute.xlu1 %4042 }
 0xea3   : > { %v4061_v25 = vmul.f32 %v4043_v5, %v11222_v19 }
 0xea5   : > { %4081 = vrot.lane.b32.xlu1 %v4061_v25, %s6676_s24  ;;  %4126 = vperm.xlu0 %6457, %v7588_v57  }
 0xeaa   : > { %v4051_v36 = vpop.permute.xlu1 %4050 }
 0xeab   : > { %v4063_v11 = vmul.f32 %v4051_v36, %v11260_v14  ;;  %v6719_v36 = vmov 40  }
 0xead   : > { %4085 = vrot.lane.b32.xlu2 %v4063_v11, %s6676_s24  ;;  %4087 = vrot.lane.b32.xlu1 %v4064_v52, %s6676_s24 }
 0xeae   : > { %6461 = vset.pattern.permute.xlu0 %v6719_v36 }
 0xeb5   : > { %4110 = vperm.xlu2 %6458, %v11300_v40   ;;  %4114 = vperm.xlu1 %6459, %v11374_v15  }
 0xebd   : > { %4118 = vperm.xlu2 %6458, %v11379_v34   ;;  %4122 = vperm.xlu1 %6459, %v11378_v20  }
 0xec5   : > { %4130 = vperm.xlu2 %6458, %v7658_v16   ;;  %4134 = vperm.xlu1 %6459, %v7793_v47  }
 0xecd   : > { %6460 = vset.pattern.permute.xlu1 %v6719_v36  ;;  %6462 = vset.pattern.permute.xlu2 %v6719_v36 }
 0xede   : > { %v9337_v50 = vpop.permute.xlu2 %4073 }
 0xedf   : > { %11540 = vst [vmem:[#allocation318_spill] sm:$0xff] %v9337_v50 }
 0xee6   : > { %v9339_v51 = vpop.permute.xlu2 %4079 }
 0xee7   : > { %11541 = vst [vmem:[#allocation319_spill] sm:$0xff] %v9339_v51 }
 0xeff   : > { %v9341_v5 = vpop.permute.xlu0 %4077 }
 0xf00   : > { %11542 = vst [vmem:[#allocation320_spill] sm:$0xff] %v9341_v5 }
 0xf07   : > { %v9343_v25 = vpop.permute.xlu2 %4085  ;;  %v9345_v29 = vpop.permute.xlu0 %4083 }
 0xf08   : > { %11543 = vst [vmem:[#allocation321_spill] sm:$0xff] %v9343_v25 }
 0xf09   : > { %11544 = vst [vmem:[#allocation322_spill] sm:$0xff] %v9345_v29 }
 0xf0f   : > { %v4111_v52 = vpop.permute.xlu2 %4110  ;;  %v9347_v11 = vpop.permute.xlu1 %4075 }
 0xf10   : > { %11545 = vst [vmem:[#allocation323_spill] sm:$0xff] %v9347_v11  ;;  %v4138_v13 = vmul.f32 %v4111_v52, %v7056_v39  ;;  %v4107_v30 = vpop.permute.xlu0 %4106 }
 0xf11   : > { %v4137_v50 = vmul.f32 %v4107_v30, %v7073_v61 }
 0xf12   : > { %4155 = vrot.lane.b32.xlu2 %v4138_v13, %s6698_s12 }
 0xf13   : > { %4153 = vrot.lane.b32.xlu0 %v4137_v50, %s6698_s12 }
 0xf17   : > { %v4119_v51 = vpop.permute.xlu2 %4118  ;;  %v9353_v25 = vpop.permute.xlu1 %4081 }
 0xf18   : > { %11546 = vst [vmem:[#allocation324_spill] sm:$0xff] %v9353_v25  ;;  %v4140_v29 = vmul.f32 %v4119_v51, %v7070_v56  ;;  %v4127_v13 = vpop.permute.xlu0 %4126 }
 0xf19   : > { %v4142_v51 = vmul.f32 %v4127_v13, %v11241_v27 }
 0xf1b   : > { %4159 = vrot.lane.b32.xlu0 %v4140_v29, %s6698_s12 }
 0xf1f   : > { %v4131_v36 = vpop.permute.xlu2 %4130  ;;  %v9357_v5 = vpop.permute.xlu1 %4087 }
 0xf20   : > { %11547 = vst [vmem:[#allocation325_spill] sm:$0xff] %v9357_v5  ;;  %v4143_v11 = vmul.f32 %v4131_v36, %v11260_v14 }
 0xf23   : > { %4165 = vrot.lane.b32.xlu0 %v4143_v11, %s6698_s12 }
 0xf27   : > { %v4115_v52 = vpop.permute.xlu1 %4114 }
 0xf28   : > { %v4139_v30 = vmul.f32 %v4115_v52, %v7063_v48  ;;  %v6720_v52 = vmov 41  }
 0xf2a   : > { %4157 = vrot.lane.b32.xlu1 %v4139_v30, %s6698_s12 }
 0xf2b   : > { %4198 = vperm.xlu0 %6461, %v11300_v40  }
 0xf2f   : > { %v4123_v50 = vpop.permute.xlu1 %4122 }
 0xf30   : > { %v4141_v29 = vmul.f32 %v4123_v50, %v11222_v19 }
 0xf32   : > { %4161 = vrot.lane.b32.xlu2 %v4141_v29, %s6698_s12  ;;  %4163 = vrot.lane.b32.xlu1 %v4142_v51, %s6698_s12 }
 0xf33   : > { %4218 = vperm.xlu0 %6461, %v7658_v16  }
 0xf37   : > { %v4135_v11 = vpop.permute.xlu1 %4134 }
 0xf38   : > { %v4144_v36 = vmul.f32 %v4135_v11, %v11280_v38 }
 0xf3a   : > { %4167 = vrot.lane.b32.xlu2 %v4144_v36, %s6698_s12  ;;  %4194 = vperm.xlu1 %6460, %v11375_v22  }
 0xf3b   : > { %6464 = vset.pattern.permute.xlu0 %v6720_v52 }
 0xf3c   : > { %4238 = vperm.xlu0 %6464, %v11300_v40  }
 0xf42   : > { %4202 = vperm.xlu2 %6462, %v11374_v15   ;;  %4206 = vperm.xlu1 %6460, %v11379_v34  }
 0xf44   : > { %4258 = vperm.xlu0 %6464, %v7658_v16  }
 0xf4a   : > { %4210 = vperm.xlu2 %6462, %v11378_v20   ;;  %4214 = vperm.xlu1 %6460, %v7588_v57  }
 0xf52   : > { %4222 = vperm.xlu2 %6462, %v7793_v47   ;;  %6463 = vset.pattern.permute.xlu1 %v6720_v52 }
 0xf53   : > { %4234 = vperm.xlu1 %6463, %v11375_v22  }
 0xf5a   : > { %6465 = vset.pattern.permute.xlu2 %v6720_v52 }
 0xf5b   : > { %4242 = vperm.xlu2 %6465, %v11374_v15   ;;  %4246 = vperm.xlu1 %6463, %v11379_v34  }
 0xf63   : > { %4250 = vperm.xlu2 %6465, %v11378_v20   ;;  %4254 = vperm.xlu1 %6463, %v7588_v57  }
 0xf6b   : > { %4262 = vperm.xlu2 %6465, %v7793_v47  }
 0xf6c   : > { %v9385_v30 = vpop.permute.xlu2 %4155 }
 0xf6d   : > { %11548 = vst [vmem:[#allocation326_spill] sm:$0xff] %v9385_v30 }
 0xf85   : > { %v9387_v13 = vpop.permute.xlu0 %4153 }
 0xf86   : > { %11549 = vst [vmem:[#allocation327_spill] sm:$0xff] %v9387_v13 }
 0xf8c   : > { %v9389_v50 = vpop.permute.xlu2 %4161 }
 0xf8d   : > { %11550 = vst [vmem:[#allocation328_spill] sm:$0xff] %v9389_v50  ;;  %v9391_v51 = vpop.permute.xlu0 %4159 }
 0xf8e   : > { %11551 = vst [vmem:[#allocation329_spill] sm:$0xff] %v9391_v51 }
 0xf94   : > { %v9393_v29 = vpop.permute.xlu2 %4167 }
 0xf95   : > { %11552 = vst [vmem:[#allocation330_spill] sm:$0xff] %v9393_v29  ;;  %v9395_v11 = vpop.permute.xlu0 %4165 }
 0xf96   : > { %11553 = vst [vmem:[#allocation331_spill] sm:$0xff] %v9395_v11  ;;  %v6721_v11 = vmov 42  }
 0xf97   : > { %6468 = vset.pattern.permute.xlu0 %v6721_v11  ;;  %6466 = vset.pattern.permute.xlu2 %v6721_v11 }
 0xf98   : > { %6467 = vset.pattern.permute.xlu1 %v6721_v11 }
 0xf9c   : > { %v9397_v36 = vpop.permute.xlu2 %4202  ;;  %v9399_v52 = vpop.permute.xlu1 %4157 }
 0xf9d   : > { %11554 = vst [vmem:[#allocation332_spill] sm:$0xff] %v9397_v36  ;;  %v9401_v5 = vpop.permute.xlu0 %4198 }
 0xf9e   : > { %11555 = vst [vmem:[#allocation333_spill] sm:$0xff] %v9399_v52 }
 0xf9f   : > { %11556 = vst [vmem:[#allocation334_spill] sm:$0xff] %v9401_v5 }
 0xfa4   : > { %v9403_v25 = vpop.permute.xlu2 %4210  ;;  %v9405_v35 = vpop.permute.xlu1 %4163 }
 0xfa5   : > { %11557 = vst [vmem:[#allocation335_spill] sm:$0xff] %v9403_v25  ;;  %v9407_v30 = vpop.permute.xlu0 %4218 }
 0xfa6   : > { %11558 = vst [vmem:[#allocation336_spill] sm:$0xff] %v9405_v35 }
 0xfa7   : > { %11559 = vst [vmem:[#allocation337_spill] sm:$0xff] %v9407_v30 }
 0xfac   : > { %v9409_v13 = vpop.permute.xlu2 %4222  ;;  %v9411_v50 = vpop.permute.xlu1 %4194 }
 0xfad   : > { %11560 = vst [vmem:[#allocation338_spill] sm:$0xff] %v9409_v13 }
 0xfae   : > { %11561 = vst [vmem:[#allocation339_spill] sm:$0xff] %v9411_v50  ;;  %v4239_v51 = vpop.permute.xlu0 %4238 }
 0xfaf   : > { %v4266_v29 = vmul.f32 %v4239_v51, %v7034_v9 }
 0xfb1   : > { %4283 = vrot.lane.b32.xlu0 %v4266_v29, %s6699_s21 }
 0xfb4   : > { %v9415_v52 = vpop.permute.xlu1 %4206 }
 0xfb5   : > { %11562 = vst [vmem:[#allocation340_spill] sm:$0xff] %v9415_v52  ;;  %v4243_v25 = vpop.permute.xlu2 %4242 }
 0xfb6   : > { %v4267_v35 = vmul.f32 %v4243_v25, %v7041_v17 }
 0xfb8   : > { %4285 = vrot.lane.b32.xlu2 %v4267_v35, %s6699_s21 }
 0xfbc   : > { %v9419_v30 = vpop.permute.xlu1 %4214 }
 0xfbd   : > { %11563 = vst [vmem:[#allocation341_spill] sm:$0xff] %v9419_v30  ;;  %v4251_v13 = vpop.permute.xlu2 %4250 }
 0xfbe   : > { %v4269_v50 = vmul.f32 %v4251_v13, %v11220_v59  ;;  %v4259_v13 = vpop.permute.xlu0 %4258 }
 0xfbf   : > { %v4271_v52 = vmul.f32 %v4259_v13, %v11256_v21 }
 0xfc0   : > { %4289 = vrot.lane.b32.xlu0 %v4269_v50, %s6699_s21 }
 0xfc5   : > { %v4263_v51 = vpop.permute.xlu2 %4262  ;;  %v4235_v5 = vpop.permute.xlu1 %4234 }
 0xfc6   : > { %v4272_v11 = vmul.f32 %v4263_v51, %v11275_v12  ;;  %v4265_v29 = vmul.f32 %v4235_v5, %v11435_v46 }
 0xfc8   : > { %4281 = vrot.lane.b32.xlu1 %v4265_v29, %s6699_s21  ;;  %4295 = vrot.lane.b32.xlu0 %v4272_v11, %s6699_s21 }
 0xfcd   : > { %v4247_v25 = vpop.permute.xlu1 %4246 }
 0xfce   : > { %v4268_v35 = vmul.f32 %v4247_v25, %v7045_v23 }
 0xfd0   : > { %4287 = vrot.lane.b32.xlu1 %v4268_v35, %s6699_s21  ;;  %4322 = vperm.xlu0 %6468, %v11374_v15  }
 0xfd5   : > { %v4255_v30 = vpop.permute.xlu1 %4254 }
 0xfd6   : > { %v4270_v50 = vmul.f32 %v4255_v30, %v11235_v31 }
 0xfd8   : > { %4291 = vrot.lane.b32.xlu2 %v4270_v50, %s6699_s21  ;;  %4342 = vperm.xlu0 %6468, %v7793_v47  }
 0xfd9   : > { %4293 = vrot.lane.b32.xlu1 %v4271_v52, %s6699_s21  ;;  %v6722_v52 = vmov 43  }
 0xfe0   : > { %4314 = vperm.xlu2 %6466, %v11375_v22   ;;  %6469 = vset.pattern.permute.xlu0 %v6722_v52 }
 0xfe1   : > { %4318 = vperm.xlu1 %6467, %v11300_v40  }
 0xfe8   : > { %4326 = vperm.xlu2 %6466, %v11379_v34  }
 0xfe9   : > { %4330 = vperm.xlu1 %6467, %v11378_v20  }
 0xff0   : > { %4334 = vperm.xlu2 %6466, %v7588_v57  }
 0xff1   : > { %4338 = vperm.xlu1 %6467, %v7658_v16  }
 0xff8   : > { %6470 = vset.pattern.permute.xlu2 %v6722_v52 }
 0xff9   : > { %6471 = vset.pattern.permute.xlu1 %v6722_v52 }
0x1012   : > { %v9441_v5 = vpop.permute.xlu2 %4285 }
0x1013   : > { %11564 = vst [vmem:[#allocation342_spill] sm:$0xff] %v9441_v5 }
0x1023   : > { %v9443_v30 = vpop.permute.xlu0 %4283 }
0x1024   : > { %11565 = vst [vmem:[#allocation343_spill] sm:$0xff] %v9443_v30 }
0x1032   : > { %v9445_v51 = vpop.permute.xlu2 %4291  ;;  %v9447_v11 = vpop.permute.xlu0 %4289 }
0x1033   : > { %11566 = vst [vmem:[#allocation344_spill] sm:$0xff] %v9445_v51 }
0x1034   : > { %11567 = vst [vmem:[#allocation345_spill] sm:$0xff] %v9447_v11 }
0x103a   : > { %v4315_v29 = vpop.permute.xlu2 %4314  ;;  %v9449_v25 = vpop.permute.xlu1 %4281 }
0x103b   : > { %11568 = vst [vmem:[#allocation346_spill] sm:$0xff] %v9449_v25  ;;  %v4345_v35 = vmul.f32 %v4315_v29, %v11435_v46  ;;  %v9452_v13 = vpop.permute.xlu0 %4295 }
0x103c   : > { %11569 = vst [vmem:[#allocation347_spill] sm:$0xff] %v9452_v13 }
0x103d   : > { %4361 = vrot.lane.b32.xlu2 %v4345_v35, %s6676_s24 }
0x1042   : > { %v4327_v50 = vpop.permute.xlu2 %4326  ;;  %v9455_v5 = vpop.permute.xlu1 %4287 }
0x1043   : > { %11570 = vst [vmem:[#allocation348_spill] sm:$0xff] %v9455_v5  ;;  %v4348_v51 = vmul.f32 %v4327_v50, %v7045_v23  ;;  %v4323_v30 = vpop.permute.xlu0 %4322 }
0x1044   : > { %v4347_v11 = vmul.f32 %v4323_v30, %v7041_v17 }
0x1045   : > { %4367 = vrot.lane.b32.xlu2 %v4348_v51, %s6676_s24 }
0x1046   : > { %4365 = vrot.lane.b32.xlu0 %v4347_v11, %s6676_s24 }
0x104a   : > { %v4335_v52 = vpop.permute.xlu2 %4334 }
0x104b   : > { %v4350_v25 = vmul.f32 %v4335_v52, %v11235_v31  ;;  %v9462_v29 = vpop.permute.xlu1 %4293  ;;  %v4343_v51 = vpop.permute.xlu0 %4342 }
0x104c   : > { %11571 = vst [vmem:[#allocation349_spill] sm:$0xff] %v9462_v29  ;;  %v4352_v52 = vmul.f32 %v4343_v51, %v11275_v12 }
0x104e   : > { %4371 = vrot.lane.b32.xlu0 %v4350_v25, %s6676_s24 }
0x1053   : > { %v4319_v35 = vpop.permute.xlu1 %4318 }
0x1054   : > { %v4346_v13 = vmul.f32 %v4319_v35, %v7034_v9 }
0x1056   : > { %4363 = vrot.lane.b32.xlu1 %v4346_v13, %s6676_s24  ;;  %4394 = vperm.xlu0 %6469, %v11375_v22  }
0x105b   : > { %v4331_v50 = vpop.permute.xlu1 %4330 }
0x105c   : > { %v4349_v30 = vmul.f32 %v4331_v50, %v11220_v59 }
0x105e   : > { %4369 = vrot.lane.b32.xlu1 %v4349_v30, %s6676_s24  ;;  %4414 = vperm.xlu0 %6469, %v7588_v57  }
0x1063   : > { %v4339_v11 = vpop.permute.xlu1 %4338 }
0x1064   : > { %v4351_v25 = vmul.f32 %v4339_v11, %v11256_v21  ;;  %v6723_v11 = vmov 44  }
0x1066   : > { %4373 = vrot.lane.b32.xlu2 %v4351_v25, %s6676_s24  ;;  %4375 = vrot.lane.b32.xlu1 %v4352_v52, %s6676_s24 }
0x1067   : > { %6473 = vset.pattern.permute.xlu0 %v6723_v11 }
0x106e   : > { %4398 = vperm.xlu2 %6470, %v11300_v40   ;;  %4402 = vperm.xlu1 %6471, %v11374_v15  }
0x1076   : > { %4406 = vperm.xlu2 %6470, %v11379_v34   ;;  %4410 = vperm.xlu1 %6471, %v11378_v20  }
0x107e   : > { %4418 = vperm.xlu2 %6470, %v7658_v16   ;;  %4422 = vperm.xlu1 %6471, %v7793_v47  }
0x1086   : > { %6472 = vset.pattern.permute.xlu1 %v6723_v11  ;;  %6474 = vset.pattern.permute.xlu2 %v6723_v11 }
0x1097   : > { %v9481_v13 = vpop.permute.xlu2 %4361 }
0x1098   : > { %11572 = vst [vmem:[#allocation350_spill] sm:$0xff] %v9481_v13 }
0x109f   : > { %v9483_v35 = vpop.permute.xlu2 %4367 }
0x10a0   : > { %11573 = vst [vmem:[#allocation351_spill] sm:$0xff] %v9483_v35 }
0x10b8   : > { %v9485_v50 = vpop.permute.xlu0 %4365 }
0x10b9   : > { %11574 = vst [vmem:[#allocation352_spill] sm:$0xff] %v9485_v50 }
0x10c0   : > { %v9487_v30 = vpop.permute.xlu2 %4373  ;;  %v9489_v51 = vpop.permute.xlu0 %4371 }
0x10c1   : > { %11575 = vst [vmem:[#allocation353_spill] sm:$0xff] %v9487_v30 }
0x10c2   : > { %11576 = vst [vmem:[#allocation354_spill] sm:$0xff] %v9489_v51 }
0x10c8   : > { %v4399_v52 = vpop.permute.xlu2 %4398  ;;  %v9491_v25 = vpop.permute.xlu1 %4363 }
0x10c9   : > { %11577 = vst [vmem:[#allocation355_spill] sm:$0xff] %v9491_v25  ;;  %v4426_v29 = vmul.f32 %v4399_v52, %v7034_v9  ;;  %v4395_v5 = vpop.permute.xlu0 %4394 }
0x10ca   : > { %v4425_v13 = vmul.f32 %v4395_v5, %v11435_v46 }
0x10cb   : > { %4443 = vrot.lane.b32.xlu2 %v4426_v29, %s6698_s12 }
0x10cc   : > { %4441 = vrot.lane.b32.xlu0 %v4425_v13, %s6698_s12 }
0x10d0   : > { %v4407_v35 = vpop.permute.xlu2 %4406  ;;  %v9497_v30 = vpop.permute.xlu1 %4369 }
0x10d1   : > { %11578 = vst [vmem:[#allocation356_spill] sm:$0xff] %v9497_v30  ;;  %v4428_v51 = vmul.f32 %v4407_v35, %v7045_v23  ;;  %v4415_v29 = vpop.permute.xlu0 %4414 }
0x10d2   : > { %v4430_v35 = vmul.f32 %v4415_v29, %v11235_v31 }
0x10d4   : > { %4447 = vrot.lane.b32.xlu0 %v4428_v51, %s6698_s12 }
0x10d8   : > { %v4419_v11 = vpop.permute.xlu2 %4418  ;;  %v9501_v50 = vpop.permute.xlu1 %4375 }
0x10d9   : > { %11579 = vst [vmem:[#allocation357_spill] sm:$0xff] %v9501_v50  ;;  %v4431_v25 = vmul.f32 %v4419_v11, %v11256_v21 }
0x10dc   : > { %4453 = vrot.lane.b32.xlu0 %v4431_v25, %s6698_s12 }
0x10e0   : > { %v4403_v52 = vpop.permute.xlu1 %4402 }
0x10e1   : > { %v4427_v5 = vmul.f32 %v4403_v52, %v7041_v17  ;;  %v6724_v52 = vmov 45  }
0x10e3   : > { %4445 = vrot.lane.b32.xlu1 %v4427_v5, %s6698_s12 }
0x10e4   : > { %4478 = vperm.xlu0 %6473, %v11300_v40  }
0x10e8   : > { %v4411_v13 = vpop.permute.xlu1 %4410 }
0x10e9   : > { %v4429_v51 = vmul.f32 %v4411_v13, %v11220_v59 }
0x10eb   : > { %4449 = vrot.lane.b32.xlu2 %v4429_v51, %s6698_s12  ;;  %4451 = vrot.lane.b32.xlu1 %v4430_v35, %s6698_s12 }
0x10ec   : > { %4498 = vperm.xlu0 %6473, %v7658_v16  }
0x10f0   : > { %v4423_v25 = vpop.permute.xlu1 %4422 }
0x10f1   : > { %v4432_v11 = vmul.f32 %v4423_v25, %v11275_v12 }
0x10f3   : > { %4455 = vrot.lane.b32.xlu2 %v4432_v11, %s6698_s12  ;;  %4474 = vperm.xlu1 %6472, %v11375_v22  }
0x10f4   : > { %6476 = vset.pattern.permute.xlu0 %v6724_v52 }
0x10f5   : > { %4526 = vperm.xlu0 %6476, %v11300_v40  }
0x10fb   : > { %4482 = vperm.xlu2 %6474, %v11374_v15   ;;  %4486 = vperm.xlu1 %6472, %v11379_v34  }
0x10fd   : > { %4546 = vperm.xlu0 %6476, %v7658_v16  }
0x1103   : > { %4490 = vperm.xlu2 %6474, %v11378_v20   ;;  %4494 = vperm.xlu1 %6472, %v7588_v57  }
0x110b   : > { %4502 = vperm.xlu2 %6474, %v7793_v47   ;;  %6475 = vset.pattern.permute.xlu1 %v6724_v52 }
0x110c   : > { %4522 = vperm.xlu1 %6475, %v11375_v22  }
0x1113   : > { %6477 = vset.pattern.permute.xlu2 %v6724_v52 }
0x1114   : > { %4530 = vperm.xlu2 %6477, %v11374_v15   ;;  %4534 = vperm.xlu1 %6475, %v11379_v34  }
0x111c   : > { %4538 = vperm.xlu2 %6477, %v11378_v20   ;;  %4542 = vperm.xlu1 %6475, %v7588_v57  }
0x1124   : > { %4550 = vperm.xlu2 %6477, %v7793_v47  }
0x1125   : > { %v9529_v5 = vpop.permute.xlu2 %4443 }
0x1126   : > { %11580 = vst [vmem:[#allocation358_spill] sm:$0xff] %v9529_v5 }
0x113e   : > { %v9531_v29 = vpop.permute.xlu0 %4441 }
0x113f   : > { %11581 = vst [vmem:[#allocation359_spill] sm:$0xff] %v9531_v29 }
0x1145   : > { %v9533_v13 = vpop.permute.xlu2 %4449 }
0x1146   : > { %11582 = vst [vmem:[#allocation360_spill] sm:$0xff] %v9533_v13  ;;  %v9535_v35 = vpop.permute.xlu0 %4447 }
0x1147   : > { %11583 = vst [vmem:[#allocation361_spill] sm:$0xff] %v9535_v35 }
0x114d   : > { %v9537_v51 = vpop.permute.xlu2 %4455 }
0x114e   : > { %11584 = vst [vmem:[#allocation362_spill] sm:$0xff] %v9537_v51  ;;  %v9539_v25 = vpop.permute.xlu0 %4453 }
0x114f   : > { %11585 = vst [vmem:[#allocation363_spill] sm:$0xff] %v9539_v25  ;;  %v6725_v25 = vmov 46  }
0x1150   : > { %6480 = vset.pattern.permute.xlu0 %v6725_v25  ;;  %6478 = vset.pattern.permute.xlu2 %v6725_v25 }
0x1151   : > { %6479 = vset.pattern.permute.xlu1 %v6725_v25 }
0x1155   : > { %v9541_v11 = vpop.permute.xlu2 %4482  ;;  %v9543_v52 = vpop.permute.xlu1 %4445 }
0x1156   : > { %11586 = vst [vmem:[#allocation364_spill] sm:$0xff] %v9541_v11  ;;  %v9545_v50 = vpop.permute.xlu0 %4478 }
0x1157   : > { %11587 = vst [vmem:[#allocation365_spill] sm:$0xff] %v9543_v52 }
0x1158   : > { %11588 = vst [vmem:[#allocation366_spill] sm:$0xff] %v9545_v50 }
0x115d   : > { %v9547_v30 = vpop.permute.xlu2 %4490  ;;  %v9549_v36 = vpop.permute.xlu1 %4451 }
0x115e   : > { %11589 = vst [vmem:[#allocation367_spill] sm:$0xff] %v9547_v30  ;;  %v9551_v5 = vpop.permute.xlu0 %4498 }
0x115f   : > { %11590 = vst [vmem:[#allocation368_spill] sm:$0xff] %v9549_v36 }
0x1160   : > { %11591 = vst [vmem:[#allocation369_spill] sm:$0xff] %v9551_v5 }
0x1165   : > { %v9553_v29 = vpop.permute.xlu2 %4502  ;;  %v9555_v13 = vpop.permute.xlu1 %4474 }
0x1166   : > { %11592 = vst [vmem:[#allocation370_spill] sm:$0xff] %v9553_v29 }
0x1167   : > { %11593 = vst [vmem:[#allocation371_spill] sm:$0xff] %v9555_v13  ;;  %v4527_v35 = vpop.permute.xlu0 %4526 }
0x1168   : > { %v4554_v51 = vmul.f32 %v4527_v35, %v7056_v39 }
0x116a   : > { %4571 = vrot.lane.b32.xlu0 %v4554_v51, %s6699_s21 }
0x116d   : > { %v9559_v50 = vpop.permute.xlu1 %4486 }
0x116e   : > { %11594 = vst [vmem:[#allocation372_spill] sm:$0xff] %v9559_v50  ;;  %v4531_v30 = vpop.permute.xlu2 %4530 }
0x116f   : > { %v4555_v36 = vmul.f32 %v4531_v30, %v7063_v48 }
0x1171   : > { %4573 = vrot.lane.b32.xlu2 %v4555_v36, %s6699_s21 }
0x1175   : > { %v9563_v5 = vpop.permute.xlu1 %4494 }
0x1176   : > { %11595 = vst [vmem:[#allocation373_spill] sm:$0xff] %v9563_v5  ;;  %v4539_v29 = vpop.permute.xlu2 %4538 }
0x1177   : > { %v4557_v13 = vmul.f32 %v4539_v29, %v11222_v19  ;;  %v4547_v29 = vpop.permute.xlu0 %4546 }
0x1178   : > { %v4559_v50 = vmul.f32 %v4547_v29, %v11260_v14 }
0x1179   : > { %4577 = vrot.lane.b32.xlu0 %v4557_v13, %s6699_s21 }
0x117e   : > { %v4551_v35 = vpop.permute.xlu2 %4550  ;;  %v4523_v52 = vpop.permute.xlu1 %4522 }
0x117f   : > { %v4560_v25 = vmul.f32 %v4551_v35, %v11280_v38  ;;  %v4553_v51 = vmul.f32 %v4523_v52, %v7073_v61 }
0x1181   : > { %4569 = vrot.lane.b32.xlu1 %v4553_v51, %s6699_s21  ;;  %4583 = vrot.lane.b32.xlu0 %v4560_v25, %s6699_s21 }
0x1186   : > { %v4535_v30 = vpop.permute.xlu1 %4534 }
0x1187   : > { %v4556_v36 = vmul.f32 %v4535_v30, %v7070_v56 }
0x1189   : > { %4575 = vrot.lane.b32.xlu1 %v4556_v36, %s6699_s21  ;;  %4610 = vperm.xlu0 %6480, %v11374_v15  }
0x118e   : > { %v4543_v5 = vpop.permute.xlu1 %4542 }
0x118f   : > { %v4558_v13 = vmul.f32 %v4543_v5, %v11241_v27 }
0x1191   : > { %4579 = vrot.lane.b32.xlu2 %v4558_v13, %s6699_s21  ;;  %4630 = vperm.xlu0 %6480, %v7793_v47  }
0x1192   : > { %4581 = vrot.lane.b32.xlu1 %v4559_v50, %s6699_s21  ;;  %v6726_v50 = vmov 47  }
0x1199   : > { %4602 = vperm.xlu2 %6478, %v11375_v22   ;;  %6481 = vset.pattern.permute.xlu0 %v6726_v50 }
0x119a   : > { %4606 = vperm.xlu1 %6479, %v11300_v40  }
0x11a1   : > { %4614 = vperm.xlu2 %6478, %v11379_v34  }
0x11a2   : > { %4618 = vperm.xlu1 %6479, %v11378_v20  }
0x11a9   : > { %4622 = vperm.xlu2 %6478, %v7588_v57  }
0x11aa   : > { %4626 = vperm.xlu1 %6479, %v7658_v16  }
0x11b1   : > { %6482 = vset.pattern.permute.xlu2 %v6726_v50 }
0x11b2   : > { %6483 = vset.pattern.permute.xlu1 %v6726_v50 }
0x11cb   : > { %v9585_v5 = vpop.permute.xlu2 %4573 }
0x11cc   : > { %11596 = vst [vmem:[#allocation374_spill] sm:$0xff] %v9585_v5 }
0x11dc   : > { %v9587_v52 = vpop.permute.xlu0 %4571 }
0x11dd   : > { %11597 = vst [vmem:[#allocation375_spill] sm:$0xff] %v9587_v52 }
0x11eb   : > { %v9589_v35 = vpop.permute.xlu2 %4579  ;;  %v9591_v25 = vpop.permute.xlu0 %4577 }
0x11ec   : > { %11598 = vst [vmem:[#allocation376_spill] sm:$0xff] %v9589_v35 }
0x11ed   : > { %11599 = vst [vmem:[#allocation377_spill] sm:$0xff] %v9591_v25 }
0x11f3   : > { %v4603_v51 = vpop.permute.xlu2 %4602  ;;  %v9593_v30 = vpop.permute.xlu1 %4569 }
0x11f4   : > { %11600 = vst [vmem:[#allocation378_spill] sm:$0xff] %v9593_v30  ;;  %v4633_v36 = vmul.f32 %v4603_v51, %v7073_v61  ;;  %v9596_v29 = vpop.permute.xlu0 %4583 }
0x11f5   : > { %11601 = vst [vmem:[#allocation379_spill] sm:$0xff] %v9596_v29 }
0x11f6   : > { %4649 = vrot.lane.b32.xlu2 %v4633_v36, %s6676_s24 }
0x11fb   : > { %v4615_v13 = vpop.permute.xlu2 %4614  ;;  %v9599_v5 = vpop.permute.xlu1 %4575 }
0x11fc   : > { %11602 = vst [vmem:[#allocation380_spill] sm:$0xff] %v9599_v5  ;;  %v4636_v35 = vmul.f32 %v4615_v13, %v7070_v56  ;;  %v4611_v52 = vpop.permute.xlu0 %4610 }
0x11fd   : > { %v4635_v25 = vmul.f32 %v4611_v52, %v7063_v48 }
0x11fe   : > { %4655 = vrot.lane.b32.xlu2 %v4636_v35, %s6676_s24 }
0x11ff   : > { %4653 = vrot.lane.b32.xlu0 %v4635_v25, %s6676_s24 }
0x1203   : > { %v4623_v50 = vpop.permute.xlu2 %4622 }
0x1204   : > { %v4638_v30 = vmul.f32 %v4623_v50, %v11241_v27  ;;  %v9606_v51 = vpop.permute.xlu1 %4581  ;;  %v4631_v35 = vpop.permute.xlu0 %4630 }
0x1205   : > { %11603 = vst [vmem:[#allocation381_spill] sm:$0xff] %v9606_v51  ;;  %v4640_v50 = vmul.f32 %v4631_v35, %v11280_v38 }
0x1207   : > { %4659 = vrot.lane.b32.xlu0 %v4638_v30, %s6676_s24 }
0x120c   : > { %v4607_v36 = vpop.permute.xlu1 %4606 }
0x120d   : > { %v4634_v29 = vmul.f32 %v4607_v36, %v7056_v39 }
0x120f   : > { %4651 = vrot.lane.b32.xlu1 %v4634_v29, %s6676_s24  ;;  %4682 = vperm.xlu0 %6481, %v11375_v22  }
0x1214   : > { %v4619_v13 = vpop.permute.xlu1 %4618 }
0x1215   : > { %v4637_v52 = vmul.f32 %v4619_v13, %v11222_v19 }
0x1217   : > { %4657 = vrot.lane.b32.xlu1 %v4637_v52, %s6676_s24  ;;  %4702 = vperm.xlu0 %6481, %v7588_v57  }
0x121c   : > { %v4627_v25 = vpop.permute.xlu1 %4626 }
0x121d   : > { %v4639_v30 = vmul.f32 %v4627_v25, %v11260_v14  ;;  %v6727_v25 = vmov 48  }
0x121f   : > { %4661 = vrot.lane.b32.xlu2 %v4639_v30, %s6676_s24  ;;  %4663 = vrot.lane.b32.xlu1 %v4640_v50, %s6676_s24 }
0x1220   : > { %6485 = vset.pattern.permute.xlu0 %v6727_v25 }
0x1227   : > { %4686 = vperm.xlu2 %6482, %v11300_v40   ;;  %4690 = vperm.xlu1 %6483, %v11374_v15  }
0x122f   : > { %4694 = vperm.xlu2 %6482, %v11379_v34   ;;  %4698 = vperm.xlu1 %6483, %v11378_v20  }
0x1237   : > { %4706 = vperm.xlu2 %6482, %v7658_v16   ;;  %4710 = vperm.xlu1 %6483, %v7793_v47  }
0x123f   : > { %6484 = vset.pattern.permute.xlu1 %v6727_v25  ;;  %6486 = vset.pattern.permute.xlu2 %v6727_v25 }
0x1250   : > { %v9625_v29 = vpop.permute.xlu2 %4649 }
0x1251   : > { %11604 = vst [vmem:[#allocation382_spill] sm:$0xff] %v9625_v29 }
0x1258   : > { %v9627_v36 = vpop.permute.xlu2 %4655 }
0x1259   : > { %11605 = vst [vmem:[#allocation383_spill] sm:$0xff] %v9627_v36 }
0x1271   : > { %v9629_v13 = vpop.permute.xlu0 %4653 }
0x1272   : > { %11606 = vst [vmem:[#allocation384_spill] sm:$0xff] %v9629_v13 }
0x1279   : > { %v9631_v52 = vpop.permute.xlu2 %4661  ;;  %v9633_v35 = vpop.permute.xlu0 %4659 }
0x127a   : > { %11607 = vst [vmem:[#allocation385_spill] sm:$0xff] %v9631_v52 }
0x127b   : > { %11608 = vst [vmem:[#allocation386_spill] sm:$0xff] %v9633_v35 }
0x1281   : > { %v4687_v50 = vpop.permute.xlu2 %4686  ;;  %v9635_v30 = vpop.permute.xlu1 %4651 }
0x1282   : > { %11609 = vst [vmem:[#allocation387_spill] sm:$0xff] %v9635_v30  ;;  %v4714_v51 = vmul.f32 %v4687_v50, %v7056_v39  ;;  %v4683_v5 = vpop.permute.xlu0 %4682 }
0x1283   : > { %v4713_v29 = vmul.f32 %v4683_v5, %v7073_v61 }
0x1284   : > { %4731 = vrot.lane.b32.xlu2 %v4714_v51, %s6698_s12 }
0x1285   : > { %4729 = vrot.lane.b32.xlu0 %v4713_v29, %s6698_s12 }
0x1289   : > { %v4695_v36 = vpop.permute.xlu2 %4694  ;;  %v9641_v52 = vpop.permute.xlu1 %4657 }
0x128a   : > { %11610 = vst [vmem:[#allocation388_spill] sm:$0xff] %v9641_v52  ;;  %v4716_v35 = vmul.f32 %v4695_v36, %v7070_v56  ;;  %v4703_v51 = vpop.permute.xlu0 %4702 }
0x128b   : > { %v4718_v36 = vmul.f32 %v4703_v51, %v11241_v27 }
0x128d   : > { %4735 = vrot.lane.b32.xlu0 %v4716_v35, %s6698_s12 }
0x1291   : > { %v4707_v25 = vpop.permute.xlu2 %4706  ;;  %v9645_v13 = vpop.permute.xlu1 %4663 }
0x1292   : > { %11611 = vst [vmem:[#allocation389_spill] sm:$0xff] %v9645_v13  ;;  %v4719_v30 = vmul.f32 %v4707_v25, %v11260_v14 }
0x1295   : > { %4741 = vrot.lane.b32.xlu0 %v4719_v30, %s6698_s12 }
0x1299   : > { %v4691_v50 = vpop.permute.xlu1 %4690 }
0x129a   : > { %v4715_v5 = vmul.f32 %v4691_v50, %v7063_v48  ;;  %v6728_v50 = vmov 49  }
0x129c   : > { %4733 = vrot.lane.b32.xlu1 %v4715_v5, %s6698_s12 }
0x129d   : > { %4774 = vperm.xlu0 %6485, %v11300_v40  }
0x12a1   : > { %v4699_v29 = vpop.permute.xlu1 %4698 }
0x12a2   : > { %v4717_v35 = vmul.f32 %v4699_v29, %v11222_v19 }
0x12a4   : > { %4737 = vrot.lane.b32.xlu2 %v4717_v35, %s6698_s12  ;;  %4739 = vrot.lane.b32.xlu1 %v4718_v36, %s6698_s12 }
0x12a5   : > { %4794 = vperm.xlu0 %6485, %v7658_v16  }
0x12a9   : > { %v4711_v30 = vpop.permute.xlu1 %4710 }
0x12aa   : > { %v4720_v25 = vmul.f32 %v4711_v30, %v11280_v38 }
0x12ac   : > { %4743 = vrot.lane.b32.xlu2 %v4720_v25, %s6698_s12  ;;  %4770 = vperm.xlu1 %6484, %v11375_v22  }
0x12ad   : > { %6488 = vset.pattern.permute.xlu0 %v6728_v50 }
0x12ae   : > { %4814 = vperm.xlu0 %6488, %v11300_v40  }
0x12b4   : > { %4778 = vperm.xlu2 %6486, %v11374_v15   ;;  %4782 = vperm.xlu1 %6484, %v11379_v34  }
0x12b6   : > { %4834 = vperm.xlu0 %6488, %v7658_v16  }
0x12bc   : > { %4786 = vperm.xlu2 %6486, %v11378_v20   ;;  %4790 = vperm.xlu1 %6484, %v7588_v57  }
0x12c4   : > { %4798 = vperm.xlu2 %6486, %v7793_v47   ;;  %6487 = vset.pattern.permute.xlu1 %v6728_v50 }
0x12c5   : > { %4810 = vperm.xlu1 %6487, %v11375_v22  }
0x12cc   : > { %6489 = vset.pattern.permute.xlu2 %v6728_v50 }
0x12cd   : > { %4818 = vperm.xlu2 %6489, %v11374_v15   ;;  %4822 = vperm.xlu1 %6487, %v11379_v34  }
0x12d5   : > { %4826 = vperm.xlu2 %6489, %v11378_v20   ;;  %4830 = vperm.xlu1 %6487, %v7588_v57  }
0x12dd   : > { %4838 = vperm.xlu2 %6489, %v7793_v47  }
0x12de   : > { %v9673_v5 = vpop.permute.xlu2 %4731 }
0x12df   : > { %11612 = vst [vmem:[#allocation390_spill] sm:$0xff] %v9673_v5 }
0x12f7   : > { %v9675_v51 = vpop.permute.xlu0 %4729 }
0x12f8   : > { %11613 = vst [vmem:[#allocation391_spill] sm:$0xff] %v9675_v51 }
0x12fe   : > { %v9677_v29 = vpop.permute.xlu2 %4737 }
0x12ff   : > { %11614 = vst [vmem:[#allocation392_spill] sm:$0xff] %v9677_v29  ;;  %v9679_v36 = vpop.permute.xlu0 %4735 }
0x1300   : > { %11615 = vst [vmem:[#allocation393_spill] sm:$0xff] %v9679_v36 }
0x1306   : > { %v9681_v35 = vpop.permute.xlu2 %4743 }
0x1307   : > { %11616 = vst [vmem:[#allocation394_spill] sm:$0xff] %v9681_v35  ;;  %v9683_v30 = vpop.permute.xlu0 %4741 }
0x1308   : > { %11617 = vst [vmem:[#allocation395_spill] sm:$0xff] %v9683_v30  ;;  %v6729_v30 = vmov 50  }
0x1309   : > { %6492 = vset.pattern.permute.xlu0 %v6729_v30  ;;  %6490 = vset.pattern.permute.xlu2 %v6729_v30 }
0x130a   : > { %6491 = vset.pattern.permute.xlu1 %v6729_v30 }
0x130e   : > { %v9685_v25 = vpop.permute.xlu2 %4778  ;;  %v9687_v50 = vpop.permute.xlu1 %4733 }
0x130f   : > { %11618 = vst [vmem:[#allocation396_spill] sm:$0xff] %v9687_v50  ;;  %v9689_v13 = vpop.permute.xlu0 %4774 }
0x1316   : > { %v9691_v52 = vpop.permute.xlu2 %4786  ;;  %v9693_v11 = vpop.permute.xlu1 %4739 }
0x1317   : > { %11619 = vst [vmem:[#allocation397_spill] sm:$0xff] %v9693_v11  ;;  %v9695_v5 = vpop.permute.xlu0 %4794 }
0x1318   : > { %v4807_v32 = vmul.f32 %v9695_v5, %v11256_v21 }
0x131e   : > { %v9697_v51 = vpop.permute.xlu2 %4798  ;;  %v9699_v29 = vpop.permute.xlu1 %4770 }
0x1320   : > { %v4815_v36 = vpop.permute.xlu0 %4814 }
0x1321   : > { %v4842_v35 = vmul.f32 %v4815_v36, %v7034_v9 }
0x1323   : > { %4859 = vrot.lane.b32.xlu0 %v4842_v35, %s6699_s21 }
0x1326   : > { %v9703_v50 = vpop.permute.xlu1 %4782 }
0x1327   : > { %v4819_v3 = vpop.permute.xlu2 %4818 }
0x1328   : > { %v4843_v11 = vmul.f32 %v4819_v3, %v7041_v17 }
0x132a   : > { %4861 = vrot.lane.b32.xlu2 %v4843_v11, %s6699_s21 }
0x132e   : > { %v9707_v1 = vpop.permute.xlu1 %4790 }
0x132f   : > { %11620 = vst [vmem:[#allocation398_spill] sm:$0xff] %v9707_v1  ;;  %v4827_v43 = vpop.permute.xlu2 %4826 }
0x1330   : > { %v4845_v53 = vmul.f32 %v4827_v43, %v11220_v59  ;;  %v4835_v43 = vpop.permute.xlu0 %4834 }
0x1331   : > { %v4847_v55 = vmul.f32 %v4835_v43, %v11256_v21 }
0x1332   : > { %4865 = vrot.lane.b32.xlu0 %v4845_v53, %s6699_s21 }
0x1337   : > { %v4839_v36 = vpop.permute.xlu2 %4838  ;;  %v4811_v28 = vpop.permute.xlu1 %4810 }
0x1338   : > { %v4848_v30 = vmul.f32 %v4839_v36, %v11275_v12  ;;  %v4841_v35 = vmul.f32 %v4811_v28, %v11435_v46 }
0x133a   : > { %4857 = vrot.lane.b32.xlu1 %v4841_v35, %s6699_s21  ;;  %4871 = vrot.lane.b32.xlu0 %v4848_v30, %s6699_s21 }
0x133f   : > { %v4823_v3 = vpop.permute.xlu1 %4822 }
0x1340   : > { %v4844_v11 = vmul.f32 %v4823_v3, %v7045_v23 }
0x1342   : > { %4863 = vrot.lane.b32.xlu1 %v4844_v11, %s6699_s21  ;;  %4898 = vperm.xlu0 %6492, %v11374_v15  }
0x1347   : > { %v4831_v33 = vpop.permute.xlu1 %4830 }
0x1348   : > { %v4846_v53 = vmul.f32 %v4831_v33, %v11235_v31 }
0x134a   : > { %4867 = vrot.lane.b32.xlu2 %v4846_v53, %s6699_s21  ;;  %4918 = vperm.xlu0 %6492, %v7793_v47  }
0x134b   : > { %4869 = vrot.lane.b32.xlu1 %v4847_v55, %s6699_s21  ;;  %v6730_v55 = vmov 51  }
0x1352   : > { %4890 = vperm.xlu2 %6490, %v11375_v22   ;;  %6493 = vset.pattern.permute.xlu0 %v6730_v55 }
0x1353   : > { %4894 = vperm.xlu1 %6491, %v11300_v40  }
0x135a   : > { %4902 = vperm.xlu2 %6490, %v11379_v34  }
0x135b   : > { %4906 = vperm.xlu1 %6491, %v11378_v20  }
0x1362   : > { %4910 = vperm.xlu2 %6490, %v7588_v57  }
0x1363   : > { %4914 = vperm.xlu1 %6491, %v7658_v16  }
0x136a   : > { %6494 = vset.pattern.permute.xlu2 %v6730_v55 }
0x136b   : > { %6495 = vset.pattern.permute.xlu1 %v6730_v55 }
0x1384   : > { %v9729_v33 = vpop.permute.xlu2 %4861 }
0x1395   : > { %v9731_v28 = vpop.permute.xlu0 %4859 }
0x13a4   : > { %v9733_v36 = vpop.permute.xlu2 %4867  ;;  %v9735_v30 = vpop.permute.xlu0 %4865 }
0x13a5   : > { %11621 = vst [vmem:[#allocation399_spill] sm:$0xff] %v9733_v36 }
0x13ac   : > { %v4891_v35 = vpop.permute.xlu2 %4890  ;;  %v9737_v3 = vpop.permute.xlu1 %4857 }
0x13ad   : > { %v4921_v11 = vmul.f32 %v4891_v35, %v11435_v46  ;;  %v9740_v43 = vpop.permute.xlu0 %4871 }
0x13af   : > { %4937 = vrot.lane.b32.xlu2 %v4921_v11, %s6676_s24 }
0x13b4   : > { %v4903_v53 = vpop.permute.xlu2 %4902  ;;  %v9743_v49 = vpop.permute.xlu1 %4863 }
0x13b5   : > { %v4924_v54 = vmul.f32 %v4903_v53, %v7045_v23  ;;  %v4899_v6 = vpop.permute.xlu0 %4898 }
0x13b6   : > { %v4923_v18 = vmul.f32 %v4899_v6, %v7041_v17 }
0x13b7   : > { %4943 = vrot.lane.b32.xlu2 %v4924_v54, %s6676_s24 }
0x13b8   : > { %4941 = vrot.lane.b32.xlu0 %v4923_v18, %s6676_s24 }
0x13bc   : > { %v4911_v55 = vpop.permute.xlu2 %4910 }
0x13bd   : > { %v4926_v63 = vmul.f32 %v4911_v55, %v11235_v31  ;;  %v9750_v35 = vpop.permute.xlu1 %4869  ;;  %v4919_v54 = vpop.permute.xlu0 %4918 }
0x13be   : > { %v4928_v55 = vmul.f32 %v4919_v54, %v11275_v12  ;;  %v4887_v60 = vadd.f32 %v9750_v35, %v4807_v32  ;;  %v6733_v32 = vmov 54  }
0x13c0   : > { %4947 = vrot.lane.b32.xlu0 %v4926_v63, %s6676_s24 }
0x13c5   : > { %v4895_v11 = vpop.permute.xlu1 %4894 }
0x13c6   : > { %v4922_v8 = vmul.f32 %v4895_v11, %v7034_v9 }
0x13c8   : > { %4939 = vrot.lane.b32.xlu1 %v4922_v8, %s6676_s24  ;;  %4970 = vperm.xlu0 %6493, %v11375_v22  }
0x13cd   : > { %v4907_v53 = vpop.permute.xlu1 %4906 }
0x13ce   : > { %v4925_v6 = vmul.f32 %v4907_v53, %v11220_v59 }
0x13d0   : > { %4945 = vrot.lane.b32.xlu1 %v4925_v6, %s6676_s24  ;;  %4990 = vperm.xlu0 %6493, %v7588_v57  }
0x13d5   : > { %v4915_v18 = vpop.permute.xlu1 %4914 }
0x13d6   : > { %v4927_v63 = vmul.f32 %v4915_v18, %v11256_v21  ;;  %v6731_v18 = vmov 52  }
0x13d8   : > { %4949 = vrot.lane.b32.xlu2 %v4927_v63, %s6676_s24  ;;  %4951 = vrot.lane.b32.xlu1 %v4928_v55, %s6676_s24 }
0x13d9   : > { %6497 = vset.pattern.permute.xlu0 %v6731_v18 }
0x13e0   : > { %4974 = vperm.xlu2 %6494, %v11300_v40   ;;  %4978 = vperm.xlu1 %6495, %v11374_v15  }
0x13e8   : > { %4982 = vperm.xlu2 %6494, %v11379_v34   ;;  %4986 = vperm.xlu1 %6495, %v11378_v20  }
0x13f0   : > { %4994 = vperm.xlu2 %6494, %v7658_v16   ;;  %4998 = vperm.xlu1 %6495, %v7793_v47  }
0x13f8   : > { %6496 = vset.pattern.permute.xlu1 %v6731_v18  ;;  %6498 = vset.pattern.permute.xlu2 %v6731_v18 }
0x1409   : > { %v9769_v8 = vpop.permute.xlu2 %4937 }
0x1411   : > { %v9771_v11 = vpop.permute.xlu2 %4943 }
0x142a   : > { %v9773_v53 = vpop.permute.xlu0 %4941 }
0x1432   : > { %v9775_v6 = vpop.permute.xlu2 %4949  ;;  %v9777_v54 = vpop.permute.xlu0 %4947 }
0x1433   : > { %11622 = vst [vmem:[#allocation400_spill] sm:$0xff] %v9777_v54  ;;  %v4967_v62 = vadd.f32 %v9775_v6, %v4887_v60 }
0x143a   : > { %v4975_v55 = vpop.permute.xlu2 %4974  ;;  %v9779_v63 = vpop.permute.xlu1 %4939 }
0x143b   : > { %v5002_v42 = vmul.f32 %v4975_v55, %v7034_v9  ;;  %v4971_v37 = vpop.permute.xlu0 %4970 }
0x143c   : > { %v5001_v44 = vmul.f32 %v4971_v37, %v11435_v46 }
0x143d   : > { %5019 = vrot.lane.b32.xlu2 %v5002_v42, %s6698_s12 }
0x143e   : > { %5017 = vrot.lane.b32.xlu0 %v5001_v44, %s6698_s12 }
0x1442   : > { %v4983_v2 = vpop.permute.xlu2 %4982  ;;  %v9785_v4 = vpop.permute.xlu1 %4945 }
0x1443   : > { %v5004_v58 = vmul.f32 %v4983_v2, %v7045_v23  ;;  %v4991_v42 = vpop.permute.xlu0 %4990 }
0x1444   : > { %v5006_v2 = vmul.f32 %v4991_v42, %v11235_v31 }
0x1446   : > { %5023 = vrot.lane.b32.xlu0 %v5004_v58, %s6698_s12 }
0x144a   : > { %v4995_v18 = vpop.permute.xlu2 %4994  ;;  %v9789_v41 = vpop.permute.xlu1 %4951 }
0x144b   : > { %v5007_v26 = vmul.f32 %v4995_v18, %v11256_v21 }
0x144e   : > { %5029 = vrot.lane.b32.xlu0 %v5007_v26, %s6698_s12 }
0x1452   : > { %v4979_v55 = vpop.permute.xlu1 %4978 }
0x1453   : > { %v5003_v37 = vmul.f32 %v4979_v55, %v7041_v17  ;;  %v6732_v55 = vmov 53  }
0x1455   : > { %5021 = vrot.lane.b32.xlu1 %v5003_v37, %s6698_s12 }
0x1456   : > { %5054 = vperm.xlu0 %6497, %v11300_v40  }
0x145a   : > { %v4987_v44 = vpop.permute.xlu1 %4986 }
0x145b   : > { %v5005_v58 = vmul.f32 %v4987_v44, %v11220_v59 }
0x145d   : > { %5025 = vrot.lane.b32.xlu2 %v5005_v58, %s6698_s12  ;;  %5027 = vrot.lane.b32.xlu1 %v5006_v2, %s6698_s12 }
0x145e   : > { %5074 = vperm.xlu0 %6497, %v7658_v16  }
0x1462   : > { %v4999_v26 = vpop.permute.xlu1 %4998 }
0x1463   : > { %v5008_v18 = vmul.f32 %v4999_v26, %v11275_v12 }
0x1465   : > { %5031 = vrot.lane.b32.xlu2 %v5008_v18, %s6698_s12  ;;  %5050 = vperm.xlu1 %6496, %v11375_v22  }
0x1466   : > { %6500 = vset.pattern.permute.xlu0 %v6732_v55 }
0x1467   : > { %5102 = vperm.xlu0 %6500, %v11300_v40  }
0x146d   : > { %5058 = vperm.xlu2 %6498, %v11374_v15   ;;  %5062 = vperm.xlu1 %6496, %v11379_v34  }
0x146f   : > { %5122 = vperm.xlu0 %6500, %v7658_v16  }
0x1475   : > { %5066 = vperm.xlu2 %6498, %v11378_v20   ;;  %5070 = vperm.xlu1 %6496, %v7588_v57  }
0x1477   : > { %6504 = vset.pattern.permute.xlu0 %v6733_v32 }
0x147d   : > { %5078 = vperm.xlu2 %6498, %v7793_v47   ;;  %6499 = vset.pattern.permute.xlu1 %v6732_v55 }
0x147e   : > { %5098 = vperm.xlu1 %6499, %v11375_v22  }
0x1485   : > { %6501 = vset.pattern.permute.xlu2 %v6732_v55 }
0x1486   : > { %5106 = vperm.xlu2 %6501, %v11374_v15   ;;  %5110 = vperm.xlu1 %6499, %v11379_v34  }
0x148e   : > { %5114 = vperm.xlu2 %6501, %v11378_v20   ;;  %5118 = vperm.xlu1 %6499, %v7588_v57  }
0x1496   : > { %5126 = vperm.xlu2 %6501, %v7793_v47   ;;  %6503 = vset.pattern.permute.xlu1 %v6733_v32 }
0x1497   : > { %v5020_v37 = vpop.permute.xlu2 %5019 }
0x149e   : > { %6502 = vset.pattern.permute.xlu2 %v6733_v32 }
0x14b0   : > { %v9817_v42 = vpop.permute.xlu0 %5017 }
0x14b7   : > { %v9819_v44 = vpop.permute.xlu2 %5025 }
0x14b8   : > { %v9821_v2 = vpop.permute.xlu0 %5023 }
0x14bf   : > { %v9823_v58 = vpop.permute.xlu2 %5031 }
0x14c0   : > { %v5030_v26 = vpop.permute.xlu0 %5029 }
0x14c1   : > { %v5047_v45 = vadd.f32 %v5030_v26, %v4967_v62 }
0x14c7   : > { %v9825_v18 = vpop.permute.xlu2 %5058  ;;  %v9827_v55 = vpop.permute.xlu1 %5021 }
0x14c8   : > { %11623 = vst [vmem:[#allocation401_spill] sm:$0xff] %v9827_v55  ;;  %v5055_v10 = vpop.permute.xlu0 %5054 }
0x14cf   : > { %v9833_v0 = vpop.permute.xlu2 %5066  ;;  %v9835_v24 = vpop.permute.xlu1 %5027 }
0x14d0   : > { %11624 = vst [vmem:[#allocation402_spill] sm:$0xff] %v9835_v24  ;;  %v5075_v7 = vpop.permute.xlu0 %5074 }
0x14d1   : > { %v5087_v54 = vmul.f32 %v5075_v7, %v11260_v14 }
0x14d3   : > { %v9838_v36 = vadd.f32 %v5087_v54, %v5047_v45 }
0x14d7   : > { %v9840_v1 = vpop.permute.xlu2 %5078  ;;  %v9842_v31 = vpop.permute.xlu1 %5050 }
0x14d9   : > { %v5103_v55 = vpop.permute.xlu0 %5102 }
0x14da   : > { %v5130_v5 = vmul.f32 %v5103_v55, %v7056_v39 }
0x14dc   : > { %5147 = vrot.lane.b32.xlu0 %v5130_v5, %s6699_s21 }
0x14df   : > { %v9846_v60 = vpop.permute.xlu1 %5062 }
0x14e0   : > { %v5107_v62 = vpop.permute.xlu2 %5106 }
0x14e1   : > { %v5131_v7 = vmul.f32 %v5107_v62, %v7063_v48 }
0x14e3   : > { %5149 = vrot.lane.b32.xlu2 %v5131_v7, %s6699_s21  ;;  %v5123_v7 = vpop.permute.xlu0 %5122 }
0x14e4   : > { %v5135_v21 = vmul.f32 %v5123_v7, %v11260_v14 }
0x14e7   : > { %v9850_v45 = vpop.permute.xlu1 %5070 }
0x14e8   : > { %11625 = vst [vmem:[#allocation403_spill] sm:$0xff] %v9850_v45  ;;  %v5115_v35 = vpop.permute.xlu2 %5114  ;;  %v6734_v45 = vmov 55  }
0x14e9   : > { %v5133_v6 = vmul.f32 %v5115_v35, %v11222_v19 }
0x14eb   : > { %5153 = vrot.lane.b32.xlu0 %v5133_v6, %s6699_s21 }
0x14f0   : > { %v5127_v54 = vpop.permute.xlu2 %5126  ;;  %v5099_v26 = vpop.permute.xlu1 %5098 }
0x14f1   : > { %v5136_v55 = vmul.f32 %v5127_v54, %v11280_v38  ;;  %v5129_v5 = vmul.f32 %v5099_v26, %v7073_v61  ;;  %v4802_v54 = vmul.f32 %v9689_v13, %v7034_v9 }
0x14f3   : > { %5145 = vrot.lane.b32.xlu1 %v5129_v5, %s6699_s21  ;;  %5159 = vrot.lane.b32.xlu0 %v5136_v55, %s6699_s21  ;;  %v4882_v26 = vadd.f32 %v9731_v28, %v4802_v54 }
0x14f5   : > { %v4962_v55 = vadd.f32 %v9779_v63, %v4882_v26 }
0x14f7   : > { %v5042_v5 = vadd.f32 %v5020_v37, %v4962_v55 }
0x14f8   : > { %v5111_v32 = vpop.permute.xlu1 %5110 }
0x14f9   : > { %v5132_v62 = vmul.f32 %v5111_v32, %v7070_v56 }
0x14fb   : > { %5151 = vrot.lane.b32.xlu1 %v5132_v62, %s6699_s21  ;;  %5186 = vperm.xlu0 %6504, %v11374_v15  }
0x1500   : > { %v5119_v35 = vpop.permute.xlu1 %5118 }
0x1501   : > { %v5134_v6 = vmul.f32 %v5119_v35, %v11241_v27 }
0x1503   : > { %5155 = vrot.lane.b32.xlu2 %v5134_v6, %s6699_s21  ;;  %5206 = vperm.xlu0 %6504, %v7793_v47  }
0x1504   : > { %5157 = vrot.lane.b32.xlu1 %v5135_v21, %s6699_s21  ;;  %v5082_v21 = vmul.f32 %v5055_v10, %v7056_v39 }
0x1506   : > { %v5090_v32 = vadd.f32 %v5082_v21, %v5042_v5 }
0x150b   : > { %5178 = vperm.xlu2 %6502, %v11375_v22   ;;  %6505 = vset.pattern.permute.xlu0 %v6734_v45 }
0x150c   : > { %5182 = vperm.xlu1 %6503, %v11300_v40  }
0x1513   : > { %5190 = vperm.xlu2 %6502, %v11379_v34  }
0x1514   : > { %5194 = vperm.xlu1 %6503, %v11378_v20  }
0x151b   : > { %5198 = vperm.xlu2 %6502, %v7588_v57  }
0x151c   : > { %5202 = vperm.xlu1 %6503, %v7658_v16  }
0x1523   : > { %6506 = vset.pattern.permute.xlu2 %v6734_v45 }
0x1524   : > { %6507 = vset.pattern.permute.xlu1 %v6734_v45 }
0x153d   : > { %v9877_v35 = vpop.permute.xlu2 %5149 }
0x153e   : > { %11626 = vst [vmem:[#allocation404_spill] sm:$0xff] %v9877_v35 }
0x154e   : > { %v5148_v62 = vpop.permute.xlu0 %5147 }
0x154f   : > { %v5170_v7 = vadd.f32 %v5148_v62, %v5090_v32 }
0x155d   : > { %v9879_v6 = vpop.permute.xlu2 %5155  ;;  %v9881_v24 = vpop.permute.xlu0 %5153 }
0x155e   : > { %11627 = vst [vmem:[#allocation405_spill] sm:$0xff] %v9879_v6 }
0x1565   : > { %v5179_v13 = vpop.permute.xlu2 %5178  ;;  %v9883_v28 = vpop.permute.xlu1 %5145 }
0x1566   : > { %v5209_v63 = vmul.f32 %v5179_v13, %v7073_v61  ;;  %v9886_v10 = vpop.permute.xlu0 %5159 }
0x1568   : > { %5225 = vrot.lane.b32.xlu2 %v5209_v63, %s6676_s24 }
0x156d   : > { %v5191_v37 = vpop.permute.xlu2 %5190  ;;  %v9889_v54 = vpop.permute.xlu1 %5151 }
0x156e   : > { %v5212_v26 = vmul.f32 %v5191_v37, %v7070_v56  ;;  %v5187_v55 = vpop.permute.xlu0 %5186 }
0x156f   : > { %v5211_v21 = vmul.f32 %v5187_v55, %v7063_v48 }
0x1570   : > { %5231 = vrot.lane.b32.xlu2 %v5212_v26, %s6676_s24 }
0x1571   : > { %5229 = vrot.lane.b32.xlu0 %v5211_v21, %s6676_s24 }
0x1575   : > { %v5199_v45 = vpop.permute.xlu2 %5198 }
0x1576   : > { %v5214_v5 = vmul.f32 %v5199_v45, %v11241_v27  ;;  %v5158_v32 = vpop.permute.xlu1 %5157  ;;  %v5207_v26 = vpop.permute.xlu0 %5206 }
0x1577   : > { %v5216_v21 = vmul.f32 %v5207_v26, %v11280_v38 }
0x1579   : > { %5235 = vrot.lane.b32.xlu0 %v5214_v5, %s6676_s24 }
0x157e   : > { %v5183_v62 = vpop.permute.xlu1 %5182 }
0x157f   : > { %v5210_v13 = vmul.f32 %v5183_v62, %v7056_v39 }
0x1581   : > { %5227 = vrot.lane.b32.xlu1 %v5210_v13, %s6676_s24  ;;  %5258 = vperm.xlu0 %6505, %v11375_v22  }
0x1586   : > { %v5195_v63 = vpop.permute.xlu1 %5194 }
0x1587   : > { %v5213_v37 = vmul.f32 %v5195_v63, %v11222_v19  ;;  %v5175_v63 = vadd.f32 %v5158_v32, %v9838_v36  ;;  %v5085_v36 = vmul.f32 %v9833_v0, %v11222_v19 }
0x1589   : > { %5233 = vrot.lane.b32.xlu1 %v5213_v37, %s6676_s24  ;;  %5278 = vperm.xlu0 %6505, %v7588_v57  }
0x158e   : > { %v5203_v55 = vpop.permute.xlu1 %5202 }
0x158f   : > { %v5215_v45 = vmul.f32 %v5203_v55, %v11260_v14 }
0x1591   : > { %5237 = vrot.lane.b32.xlu2 %v5215_v45, %s6676_s24  ;;  %5239 = vrot.lane.b32.xlu1 %v5216_v21, %s6676_s24  ;;  %v6735_v21 = vmov 56   ;;  %v4805_v45 = vmul.f32 %v9691_v52, %v11220_v59  ;;  %v4808_v52 = vmul.f32 %v9697_v51, %v11275_v12 }
0x1592   : > { %6509 = vset.pattern.permute.xlu0 %v6735_v21 }
0x1593   : > { %v4885_v9 = vadd.f32 %v9735_v30, %v4805_v45 }
0x1599   : > { %5262 = vperm.xlu2 %6506, %v11300_v40   ;;  %5266 = vperm.xlu1 %6507, %v11374_v15  }
0x15a1   : > { %5270 = vperm.xlu2 %6506, %v11379_v34   ;;  %5274 = vperm.xlu1 %6507, %v11378_v20  }
0x15a9   : > { %5282 = vperm.xlu2 %6506, %v7658_v16   ;;  %5286 = vperm.xlu1 %6507, %v7793_v47  }
0x15b1   : > { %6508 = vset.pattern.permute.xlu1 %v6735_v21  ;;  %6510 = vset.pattern.permute.xlu2 %v6735_v21 }
0x15c2   : > { %v9913_v5 = vpop.permute.xlu2 %5225 }
0x15ca   : > { %v9915_v62 = vpop.permute.xlu2 %5231 }
0x15e3   : > { %v9917_v13 = vpop.permute.xlu0 %5229 }
0x15e4   : > { %11628 = vst [vmem:[#allocation406_spill] sm:$0xff] %v9917_v13  ;;  %v4965_v13 = vadd.f32 %v9785_v4, %v4885_v9  ;;  %v4888_v9 = vadd.f32 %v9740_v43, %v4808_v52 }
0x15e6   : > { %v5045_v21 = vadd.f32 %v9819_v44, %v4965_v13 }
0x15e8   : > { %v5093_v30 = vadd.f32 %v5085_v36, %v5045_v21 }
0x15ea   : > { %v5173_v0 = vadd.f32 %v9881_v24, %v5093_v30 }
0x15eb   : > { %v5238_v37 = vpop.permute.xlu2 %5237  ;;  %v9920_v26 = vpop.permute.xlu0 %5235 }
0x15ec   : > { %11629 = vst [vmem:[#allocation407_spill] sm:$0xff] %v9920_v26  ;;  %v9922_v55 = vadd.f32 %v5238_v37, %v5175_v63 }
0x15f3   : > { %v5263_v6 = vpop.permute.xlu2 %5262  ;;  %v5228_v35 = vpop.permute.xlu1 %5227 }
0x15f4   : > { %v5290_v32 = vmul.f32 %v5263_v6, %v7056_v39  ;;  %v5250_v63 = vadd.f32 %v5228_v35, %v5170_v7  ;;  %v5259_v37 = vpop.permute.xlu0 %5258  ;;  %v4968_v7 = vadd.f32 %v9789_v41, %v4888_v9  ;;  %v5088_v35 = vmul.f32 %v9840_v1, %v11280_v38 }
0x15f5   : > { %v5289_v26 = vmul.f32 %v5259_v37, %v7073_v61  ;;  %v6736_v9 = vmov 57  }
0x15f6   : > { %5307 = vrot.lane.b32.xlu2 %v5290_v32, %s6698_s12 }
0x15f7   : > { %5305 = vrot.lane.b32.xlu0 %v5289_v26, %s6698_s12  ;;  %v5048_v26 = vadd.f32 %v9823_v58, %v4968_v7 }
0x15f9   : > { %v5096_v51 = vadd.f32 %v5088_v35, %v5048_v26 }
0x15fb   : > { %v5271_v4 = vpop.permute.xlu2 %5270  ;;  %v5234_v6 = vpop.permute.xlu1 %5233  ;;  %v5176_v43 = vadd.f32 %v9886_v10, %v5096_v51  ;;  %v4804_v51 = vmul.f32 %v9703_v50, %v7045_v23 }
0x15fc   : > { %v5292_v44 = vmul.f32 %v5271_v4, %v7070_v56  ;;  %v9943_v13 = vadd.f32 %v5234_v6, %v5173_v0  ;;  %v5279_v58 = vpop.permute.xlu0 %5278  ;;  %v4801_v6 = vmul.f32 %v9699_v29, %v11435_v46  ;;  %v5084_v29 = vmul.f32 %v9846_v60, %v7070_v56 }
0x15fd   : > { %v5294_v21 = vmul.f32 %v5279_v58, %v11241_v27  ;;  %v5083_v58 = vmul.f32 %v9825_v18, %v7063_v48 }
0x15fe   : > { %v4881_v7 = vadd.f32 %v9737_v3, %v4801_v6 }
0x15ff   : > { %5311 = vrot.lane.b32.xlu0 %v5292_v44, %s6698_s12  ;;  %v5081_v44 = vmul.f32 %v9842_v31, %v7073_v61 }
0x1600   : > { %v4961_v35 = vadd.f32 %v9769_v8, %v4881_v7  ;;  %v11641_v7 = vld [vmem:[#allocation400_spill] sm:$0xff] }
0x1602   : > { %v5041_v26 = vadd.f32 %v9817_v42, %v4961_v35  ;;  %v11642_v35 = vld [vmem:[#allocation403_spill] sm:$0xff] }
0x1603   : > { %v5283_v45 = vpop.permute.xlu2 %5282  ;;  %v5240_v24 = vpop.permute.xlu1 %5239 }
0x1604   : > { %v5295_v36 = vmul.f32 %v5283_v45, %v11260_v14  ;;  %v9949_v32 = vadd.f32 %v5240_v24, %v5176_v43  ;;  %v5089_v43 = vadd.f32 %v5081_v44, %v5041_v26  ;;  %v4884_v45 = vadd.f32 %v9743_v49, %v4804_v51  ;;  %v11643_v26 = vld [vmem:[#allocation406_spill] sm:$0xff] }
0x1605   : > { %v5086_v44 = vmul.f32 %v11642_v35, %v11241_v27 }
0x1606   : > { %v4964_v24 = vadd.f32 %v9771_v11, %v4884_v45  ;;  %v11644_v45 = vld [vmem:[#allocation402_spill] sm:$0xff] }
0x1607   : > { %5317 = vrot.lane.b32.xlu0 %v5295_v36, %s6698_s12 }
0x1608   : > { %v5044_v31 = vadd.f32 %v9821_v2, %v4964_v24 }
0x160a   : > { %v5092_v42 = vadd.f32 %v5084_v29, %v5044_v31  ;;  %v11647_v31 = vld [vmem:[#allocation407_spill] sm:$0xff] }
0x160b   : > { %v5267_v41 = vpop.permute.xlu1 %5266 }
0x160c   : > { %v5291_v1 = vmul.f32 %v5267_v41, %v7063_v48  ;;  %v5172_v50 = vadd.f32 %v9889_v54, %v5092_v42  ;;  %v11634_v54 = vld [vmem:[#allocation401_spill] sm:$0xff] }
0x160e   : > { %5309 = vrot.lane.b32.xlu1 %v5291_v1, %s6698_s12  ;;  %v5252_v41 = vadd.f32 %v9915_v62, %v5172_v50 }
0x160f   : > { %5350 = vperm.xlu0 %6509, %v11300_v40  }
0x1613   : > { %v5275_v37 = vpop.permute.xlu1 %5274 }
0x1614   : > { %v5293_v10 = vmul.f32 %v5275_v37, %v11222_v19 }
0x1616   : > { %5313 = vrot.lane.b32.xlu2 %v5293_v10, %s6698_s12  ;;  %5315 = vrot.lane.b32.xlu1 %v5294_v21, %s6698_s12  ;;  %v11637_v10 = vld [vmem:[#allocation9_spill] sm:$0xff] }
0x1617   : > { %5370 = vperm.xlu0 %6509, %v7658_v16  }
0x161b   : > { %v5287_v52 = vpop.permute.xlu1 %5286 }
0x161c   : > { %v5296_v30 = vmul.f32 %v5287_v52, %v11280_v38  ;;  %v11638_v52 = vld [vmem:[#allocation398_spill] sm:$0xff] }
0x161e   : > { %5319 = vrot.lane.b32.xlu2 %v5296_v30, %s6698_s12  ;;  %5346 = vperm.xlu1 %6508, %v11375_v22   ;;  %v4806_v30 = vmul.f32 %v11638_v52, %v11637_v10 }
0x161f   : > { %6512 = vset.pattern.permute.xlu0 %v6736_v9 }
0x1620   : > { %5390 = vperm.xlu0 %6512, %v11300_v40  }
0x1626   : > { %5354 = vperm.xlu2 %6510, %v11374_v15   ;;  %5358 = vperm.xlu1 %6508, %v11379_v34  }
0x1628   : > { %5410 = vperm.xlu0 %6512, %v7658_v16  }
0x162e   : > { %5362 = vperm.xlu2 %6510, %v11378_v20   ;;  %5366 = vperm.xlu1 %6508, %v7588_v57  }
0x1636   : > { %5374 = vperm.xlu2 %6510, %v7793_v47   ;;  %6511 = vset.pattern.permute.xlu1 %v6736_v9 }
0x1637   : > { %5386 = vperm.xlu1 %6511, %v11375_v22  }
0x163e   : > { %6513 = vset.pattern.permute.xlu2 %v6736_v9 }
0x163f   : > { %5394 = vperm.xlu2 %6513, %v11374_v15   ;;  %5398 = vperm.xlu1 %6511, %v11379_v34  }
0x1647   : > { %5402 = vperm.xlu2 %6513, %v11378_v20   ;;  %5406 = vperm.xlu1 %6511, %v7588_v57  }
0x164f   : > { %5414 = vperm.xlu2 %6513, %v7793_v47  }
0x1650   : > { %v5308_v0 = vpop.permute.xlu2 %5307 }
0x1651   : > { %v9976_v4 = vadd.f32 %v5308_v0, %v5250_v63  ;;  %v5169_v63 = vadd.f32 %v9883_v28, %v5089_v43  ;;  %v4803_v28 = vmul.f32 %v9685_v25, %v7041_v17 }
0x1653   : > { %11630 = vst [vmem:[#allocation408_spill] sm:$0xff] %v9976_v4  ;;  %v5249_v3 = vadd.f32 %v9913_v5, %v5169_v63  ;;  %v4883_v5 = vadd.f32 %v9729_v33, %v4803_v28  ;;  %v11639_v33 = vld [vmem:[#allocation399_spill] sm:$0xff] }
0x1654   : > { %v4886_v0 = vadd.f32 %v11639_v33, %v4806_v30 }
0x1655   : > { %v4963_v2 = vadd.f32 %v9773_v53, %v4883_v5  ;;  %v11640_v53 = vld [vmem:[#allocation404_spill] sm:$0xff] }
0x1656   : > { %v4966_v18 = vadd.f32 %v11641_v7, %v4886_v0 }
0x1657   : > { %v5043_v37 = vadd.f32 %v11634_v54, %v4963_v2 }
0x1659   : > { %v5091_v9 = vadd.f32 %v5083_v58, %v5043_v37  ;;  %v11649_v58 = vld [vmem:[#allocation6_spill] sm:$0xff]  ;;  %v6737_v37 = vmov 58  }
0x165a   : > { %6516 = vset.pattern.permute.xlu0 %v6737_v37  ;;  %6514 = vset.pattern.permute.xlu2 %v6737_v37 }
0x165b   : > { %v5171_v6 = vadd.f32 %v11640_v53, %v5091_v9  ;;  %6515 = vset.pattern.permute.xlu1 %v6737_v37 }
0x1669   : > { %v5306_v8 = vpop.permute.xlu0 %5305 }
0x166a   : > { %v9994_v36 = vadd.f32 %v5306_v8, %v5249_v3  ;;  %v11646_v3 = vld [vmem:[#allocation405_spill] sm:$0xff] }
0x166c   : > { %11631 = vst [vmem:[#allocation409_spill] sm:$0xff] %v9994_v36 }
0x1670   : > { %v5314_v49 = vpop.permute.xlu2 %5313 }
0x1671   : > { %v10001_v11 = vadd.f32 %v5314_v49, %v9943_v13  ;;  %v5312_v60 = vpop.permute.xlu0 %5311 }
0x1672   : > { %v10003_v1 = vadd.f32 %v5312_v60, %v5252_v41 }
0x1673   : > { %11632 = vst [vmem:[#allocation410_spill] sm:$0xff] %v10001_v11  ;;  %v11709_v11 = vld [vmem:[#allocation123_spill] sm:$0xff] }
0x1674   : > { %11633 = vst [vmem:[#allocation411_spill] sm:$0xff] %v10003_v1 }
0x1678   : > { %v5320_v62 = vpop.permute.xlu2 %5319 }
0x1679   : > { %v10011_v21 = vadd.f32 %v5320_v62, %v9949_v32  ;;  %v5318_v25 = vpop.permute.xlu0 %5317  ;;  %v5251_v32 = vadd.f32 %v11643_v26, %v5171_v6 }
0x167a   : > { %v10014_v13 = vadd.f32 %v5318_v25, %v9922_v55  ;;  %v5046_v55 = vadd.f32 %v11644_v45, %v4966_v18 }
0x167b   : > { %11635 = vst [vmem:[#allocation401_spill] sm:$0xff] %v10011_v21 }
0x167c   : > { %11636 = vst [vmem:[#allocation412_spill] sm:$0xff] %v10014_v13  ;;  %v5094_v29 = vadd.f32 %v5086_v44, %v5046_v55 }
0x167e   : > { %v5174_v8 = vadd.f32 %v11646_v3, %v5094_v29 }
0x1680   : > { %v5355_v51 = vpop.permute.xlu2 %5354  ;;  %v5310_v43 = vpop.permute.xlu1 %5309  ;;  %v5254_v42 = vadd.f32 %v11647_v31, %v5174_v8 }
0x1681   : > { %v10025_v63 = vadd.f32 %v5310_v43, %v5251_v32  ;;  %v5351_v24 = vpop.permute.xlu0 %5350  ;;  %v11650_v43 = vld [vmem:[#allocation10_spill] sm:$0xff]  ;;  %v5379_v55 = vmul.f32 %v5355_v51, %v7041_v17 }
0x1682   : > { %v5378_v8 = vmul.f32 %v5351_v24, %v11649_v58 }
0x1683   : > { %11645 = vst [vmem:[#allocation398_spill] sm:$0xff] %v10025_v63 }
0x1688   : > { %v5363_v50 = vpop.permute.xlu2 %5362  ;;  %v5316_v41 = vpop.permute.xlu1 %5315 }
0x1689   : > { %v10029_v49 = vadd.f32 %v5316_v41, %v5254_v42  ;;  %v10031_v28 = vpop.permute.xlu0 %5370  ;;  %v5381_v41 = vmul.f32 %v5363_v50, %v11220_v59 }
0x168b   : > { %11648 = vst [vmem:[#allocation399_spill] sm:$0xff] %v10029_v49 }
0x1690   : > { %v5375_v60 = vpop.permute.xlu2 %5374  ;;  %v5347_v5 = vpop.permute.xlu1 %5346 }
0x1691   : > { %v5377_v51 = vmul.f32 %v5347_v5, %v11435_v46  ;;  %v5384_v24 = vmul.f32 %v5375_v60, %v11275_v12 }
0x1692   : > { %v5391_v2 = vpop.permute.xlu0 %5390 }
0x1693   : > { %v5418_v54 = vmul.f32 %v5391_v2, %v11649_v58 }
0x1695   : > { %5435 = vrot.lane.b32.xlu0 %v5418_v54, %s6699_s21 }
0x1698   : > { %v5359_v62 = vpop.permute.xlu1 %5358 }
0x1699   : > { %v5395_v25 = vpop.permute.xlu2 %5394 }
0x169a   : > { %v5419_v52 = vmul.f32 %v5395_v25, %v7041_v17  ;;  %v5411_v44 = vpop.permute.xlu0 %5410 }
0x169b   : > { %v5423_v45 = vmul.f32 %v5411_v44, %v11650_v43 }
0x169c   : > { %5437 = vrot.lane.b32.xlu2 %v5419_v52, %s6699_s21 }
0x16a0   : > { %v5367_v30 = vpop.permute.xlu1 %5366 }
0x16a1   : > { %v5403_v9 = vpop.permute.xlu2 %5402  ;;  %v5382_v2 = vmul.f32 %v5367_v30, %v11637_v10 }
0x16a2   : > { %v5421_v33 = vmul.f32 %v5403_v9, %v11220_v59  ;;  %v6738_v9 = vmov 59  }
0x16a4   : > { %5441 = vrot.lane.b32.xlu0 %v5421_v33, %s6699_s21 }
0x16a9   : > { %v5415_v0 = vpop.permute.xlu2 %5414  ;;  %v5387_v53 = vpop.permute.xlu1 %5386 }
0x16aa   : > { %v5424_v6 = vmul.f32 %v5415_v0, %v11275_v12  ;;  %v5417_v7 = vmul.f32 %v5387_v53, %v11435_v46 }
0x16ac   : > { %5433 = vrot.lane.b32.xlu1 %v5417_v7, %s6699_s21  ;;  %5447 = vrot.lane.b32.xlu0 %v5424_v6, %s6699_s21  ;;  %v5380_v7 = vmul.f32 %v5359_v62, %v7045_v23 }
0x16b1   : > { %v5399_v18 = vpop.permute.xlu1 %5398 }
0x16b2   : > { %v5420_v35 = vmul.f32 %v5399_v18, %v7045_v23 }
0x16b4   : > { %5439 = vrot.lane.b32.xlu1 %v5420_v35, %s6699_s21  ;;  %5474 = vperm.xlu0 %6516, %v11374_v15  }
0x16b9   : > { %v5407_v26 = vpop.permute.xlu1 %5406 }
0x16ba   : > { %v5422_v32 = vmul.f32 %v5407_v26, %v11637_v10 }
0x16bc   : > { %5443 = vrot.lane.b32.xlu2 %v5422_v32, %s6699_s21  ;;  %5494 = vperm.xlu0 %6516, %v7793_v47   ;;  %v5383_v32 = vmul.f32 %v10031_v28, %v11650_v43 }
0x16bd   : > { %5445 = vrot.lane.b32.xlu1 %v5423_v45, %s6699_s21 }
0x16c4   : > { %5466 = vperm.xlu2 %6514, %v11375_v22   ;;  %6517 = vset.pattern.permute.xlu0 %v6738_v9 }
0x16c5   : > { %5470 = vperm.xlu1 %6515, %v11300_v40  }
0x16cc   : > { %5478 = vperm.xlu2 %6514, %v11379_v34  }
0x16cd   : > { %5482 = vperm.xlu1 %6515, %v11378_v20  }
0x16d4   : > { %5486 = vperm.xlu2 %6514, %v7588_v57  }
0x16d5   : > { %5490 = vperm.xlu1 %6515, %v7658_v16  }
0x16dc   : > { %6518 = vset.pattern.permute.xlu2 %v6738_v9 }
0x16dd   : > { %6519 = vset.pattern.permute.xlu1 %v6738_v9 }
0x16f6   : > { %v5438_v29 = vpop.permute.xlu2 %5437 }
0x16f7   : > { %v10058_v3 = vadd.f32 %v5438_v29, %v5379_v55 }
0x1707   : > { %v5436_v31 = vpop.permute.xlu0 %5435 }
0x1708   : > { %v10061_v42 = vadd.f32 %v5436_v31, %v5378_v8 }
0x1716   : > { %v5444_v54 = vpop.permute.xlu2 %5443  ;;  %v5442_v37 = vpop.permute.xlu0 %5441 }
0x1717   : > { %v5462_v25 = vadd.f32 %v5444_v54, %v5382_v2  ;;  %v10065_v52 = vadd.f32 %v5442_v37, %v5381_v41 }
0x171e   : > { %v5467_v33 = vpop.permute.xlu2 %5466  ;;  %v5434_v0 = vpop.permute.xlu1 %5433 }
0x171f   : > { %v5497_v53 = vmul.f32 %v5467_v33, %v11435_v46  ;;  %v5457_v50 = vadd.f32 %v5434_v0, %v5377_v51  ;;  %v5448_v6 = vpop.permute.xlu0 %5447 }
0x1720   : > { %v10070_v30 = vadd.f32 %v5448_v6, %v5384_v24 }
0x1721   : > { %5513 = vrot.lane.b32.xlu2 %v5497_v53, %s6676_s24 }
0x1726   : > { %v5479_v18 = vpop.permute.xlu2 %5478  ;;  %v5440_v35 = vpop.permute.xlu1 %5439 }
0x1727   : > { %v5500_v44 = vmul.f32 %v5479_v18, %v7045_v23  ;;  %v5460_v26 = vadd.f32 %v5440_v35, %v5380_v7  ;;  %v5475_v5 = vpop.permute.xlu0 %5474 }
0x1728   : > { %v5499_v60 = vmul.f32 %v5475_v5, %v7041_v17  ;;  %v6739_v5 = vmov 60  }
0x1729   : > { %5519 = vrot.lane.b32.xlu2 %v5500_v44, %s6676_s24 }
0x172a   : > { %5517 = vrot.lane.b32.xlu0 %v5499_v60, %s6676_s24 }
0x172e   : > { %v5487_v45 = vpop.permute.xlu2 %5486 }
0x172f   : > { %v5502_v55 = vmul.f32 %v5487_v45, %v11637_v10  ;;  %v5446_v29 = vpop.permute.xlu1 %5445  ;;  %v5495_v28 = vpop.permute.xlu0 %5494 }
0x1730   : > { %v5463_v62 = vadd.f32 %v5446_v29, %v5383_v32  ;;  %v5504_v37 = vmul.f32 %v5495_v28, %v11275_v12 }
0x1732   : > { %5523 = vrot.lane.b32.xlu0 %v5502_v55, %s6676_s24 }
0x1737   : > { %v5471_v8 = vpop.permute.xlu1 %5470 }
0x1738   : > { %v5498_v31 = vmul.f32 %v5471_v8, %v11649_v58 }
0x173a   : > { %5515 = vrot.lane.b32.xlu1 %v5498_v31, %s6676_s24  ;;  %5546 = vperm.xlu0 %6517, %v11375_v22  }
0x173f   : > { %v5483_v41 = vpop.permute.xlu1 %5482 }
0x1740   : > { %v5501_v2 = vmul.f32 %v5483_v41, %v11220_v59 }
0x1742   : > { %5521 = vrot.lane.b32.xlu1 %v5501_v2, %s6676_s24  ;;  %5566 = vperm.xlu0 %6517, %v7588_v57  }
0x1747   : > { %v5491_v54 = vpop.permute.xlu1 %5490 }
0x1748   : > { %v5503_v9 = vmul.f32 %v5491_v54, %v11650_v43 }
0x174a   : > { %5525 = vrot.lane.b32.xlu2 %v5503_v9, %s6676_s24  ;;  %5527 = vrot.lane.b32.xlu1 %v5504_v37, %s6676_s24 }
0x174b   : > { %6521 = vset.pattern.permute.xlu0 %v6739_v5 }
0x1752   : > { %5550 = vperm.xlu2 %6518, %v11300_v40   ;;  %5554 = vperm.xlu1 %6519, %v11374_v15  }
0x175a   : > { %5558 = vperm.xlu2 %6518, %v11379_v34   ;;  %5562 = vperm.xlu1 %6519, %v11378_v20  }
0x1762   : > { %5570 = vperm.xlu2 %6518, %v7658_v16   ;;  %5574 = vperm.xlu1 %6519, %v7793_v47  }
0x176a   : > { %6520 = vset.pattern.permute.xlu1 %v6739_v5  ;;  %6522 = vset.pattern.permute.xlu2 %v6739_v5 }
0x177b   : > { %v5514_v51 = vpop.permute.xlu2 %5513 }
0x177c   : > { %v10098_v24 = vadd.f32 %v5514_v51, %v5457_v50 }
0x1783   : > { %v5520_v33 = vpop.permute.xlu2 %5519 }
0x1784   : > { %v10100_v0 = vadd.f32 %v5520_v33, %v5460_v26  ;;  %v6740_v33 = vmov 61  }
0x179c   : > { %v5518_v53 = vpop.permute.xlu0 %5517 }
0x179d   : > { %v10103_v6 = vadd.f32 %v5518_v53, %v10058_v3 }
0x17a4   : > { %v5526_v7 = vpop.permute.xlu2 %5525  ;;  %v5524_v18 = vpop.permute.xlu0 %5523 }
0x17a5   : > { %v10105_v35 = vadd.f32 %v5526_v7, %v5463_v62  ;;  %v10107_v44 = vadd.f32 %v5524_v18, %v5462_v25 }
0x17ac   : > { %v5551_v60 = vpop.permute.xlu2 %5550  ;;  %v5516_v50 = vpop.permute.xlu1 %5515 }
0x17ad   : > { %v5578_v32 = vmul.f32 %v5551_v60, %v11649_v58  ;;  %v5538_v26 = vadd.f32 %v5516_v50, %v10061_v42  ;;  %v5547_v45 = vpop.permute.xlu0 %5546 }
0x17ae   : > { %v5577_v3 = vmul.f32 %v5547_v45, %v11435_v46 }
0x17af   : > { %5595 = vrot.lane.b32.xlu2 %v5578_v32, %s6698_s12 }
0x17b0   : > { %5593 = vrot.lane.b32.xlu0 %v5577_v3, %s6698_s12 }
0x17b4   : > { %v5559_v55 = vpop.permute.xlu2 %5558  ;;  %v5522_v25 = vpop.permute.xlu1 %5521 }
0x17b5   : > { %v5580_v29 = vmul.f32 %v5559_v55, %v7045_v23  ;;  %v5541_v62 = vadd.f32 %v5522_v25, %v10065_v52  ;;  %v5567_v54 = vpop.permute.xlu0 %5566 }
0x17b6   : > { %v5582_v52 = vmul.f32 %v5567_v54, %v11637_v10 }
0x17b8   : > { %5599 = vrot.lane.b32.xlu0 %v5580_v29, %s6698_s12 }
0x17bc   : > { %v5571_v8 = vpop.permute.xlu2 %5570  ;;  %v5528_v31 = vpop.permute.xlu1 %5527 }
0x17bd   : > { %v5583_v41 = vmul.f32 %v5571_v8, %v11650_v43  ;;  %v5544_v42 = vadd.f32 %v5528_v31, %v10070_v30 }
0x17c0   : > { %5605 = vrot.lane.b32.xlu0 %v5583_v41, %s6698_s12 }
0x17c4   : > { %v5555_v2 = vpop.permute.xlu1 %5554 }
0x17c5   : > { %v5579_v28 = vmul.f32 %v5555_v2, %v7041_v17 }
0x17c7   : > { %5597 = vrot.lane.b32.xlu1 %v5579_v28, %s6698_s12 }
0x17c8   : > { %5630 = vperm.xlu0 %6521, %v11300_v40  }
0x17cc   : > { %v5563_v37 = vpop.permute.xlu1 %5562 }
0x17cd   : > { %v5581_v9 = vmul.f32 %v5563_v37, %v11220_v59 }
0x17cf   : > { %5601 = vrot.lane.b32.xlu2 %v5581_v9, %s6698_s12  ;;  %5603 = vrot.lane.b32.xlu1 %v5582_v52, %s6698_s12 }
0x17d0   : > { %5650 = vperm.xlu0 %6521, %v7658_v16  }
0x17d4   : > { %v5575_v30 = vpop.permute.xlu1 %5574 }
0x17d5   : > { %v5584_v51 = vmul.f32 %v5575_v30, %v11275_v12 }
0x17d7   : > { %5607 = vrot.lane.b32.xlu2 %v5584_v51, %s6698_s12  ;;  %5626 = vperm.xlu1 %6520, %v11375_v22  }
0x17d8   : > { %6524 = vset.pattern.permute.xlu0 %v6740_v33 }
0x17d9   : > { %5678 = vperm.xlu0 %6524, %v11300_v40  }
0x17df   : > { %5634 = vperm.xlu2 %6522, %v11374_v15   ;;  %5638 = vperm.xlu1 %6520, %v11379_v34  }
0x17e1   : > { %5698 = vperm.xlu0 %6524, %v7658_v16  }
0x17e7   : > { %5642 = vperm.xlu2 %6522, %v11378_v20   ;;  %5646 = vperm.xlu1 %6520, %v7588_v57  }
0x17ef   : > { %5654 = vperm.xlu2 %6522, %v7793_v47   ;;  %6523 = vset.pattern.permute.xlu1 %v6740_v33 }
0x17f0   : > { %5674 = vperm.xlu1 %6523, %v11375_v22  }
0x17f7   : > { %6525 = vset.pattern.permute.xlu2 %v6740_v33 }
0x17f8   : > { %5682 = vperm.xlu2 %6525, %v11374_v15   ;;  %5686 = vperm.xlu1 %6523, %v11379_v34  }
0x1800   : > { %5690 = vperm.xlu2 %6525, %v11378_v20   ;;  %5694 = vperm.xlu1 %6523, %v7588_v57  }
0x1808   : > { %5702 = vperm.xlu2 %6525, %v7793_v47  }
0x1809   : > { %v5596_v53 = vpop.permute.xlu2 %5595 }
0x180a   : > { %v5618_v7 = vadd.f32 %v5596_v53, %v5538_v26 }
0x1822   : > { %v5594_v18 = vpop.permute.xlu0 %5593 }
0x1823   : > { %v5617_v5 = vadd.f32 %v5594_v18, %v10098_v24 }
0x1829   : > { %v5602_v60 = vpop.permute.xlu2 %5601 }
0x182a   : > { %v5621_v50 = vadd.f32 %v5602_v60, %v5541_v62  ;;  %v5600_v32 = vpop.permute.xlu0 %5599  ;;  %v6741_v60 = vmov 62  }
0x182b   : > { %v5620_v45 = vadd.f32 %v5600_v32, %v10100_v0  ;;  %6528 = vset.pattern.permute.xlu0 %v6741_v60  ;;  %6526 = vset.pattern.permute.xlu2 %v6741_v60 }
0x182c   : > { %6527 = vset.pattern.permute.xlu1 %v6741_v60 }
0x1831   : > { %v5608_v3 = vpop.permute.xlu2 %5607 }
0x1832   : > { %v5624_v55 = vadd.f32 %v5608_v3, %v5544_v42  ;;  %v5606_v25 = vpop.permute.xlu0 %5605 }
0x1833   : > { %v5623_v29 = vadd.f32 %v5606_v25, %v10105_v35 }
0x1839   : > { %v5635_v8 = vpop.permute.xlu2 %5634  ;;  %v5598_v31 = vpop.permute.xlu1 %5597 }
0x183a   : > { %v5659_v41 = vmul.f32 %v5635_v8, %v7063_v48  ;;  %v5619_v2 = vadd.f32 %v5598_v31, %v10103_v6  ;;  %v5631_v26 = vpop.permute.xlu0 %5630 }
0x183b   : > { %v5658_v28 = vmul.f32 %v5631_v26, %v7056_v39 }
0x183c   : > { %v5667_v24 = vadd.f32 %v5659_v41, %v5619_v2 }
0x183d   : > { %v5666_v54 = vadd.f32 %v5658_v28, %v5618_v7 }
0x1841   : > { %v5643_v62 = vpop.permute.xlu2 %5642  ;;  %v5604_v37 = vpop.permute.xlu1 %5603 }
0x1842   : > { %v5661_v0 = vmul.f32 %v5643_v62, %v11222_v19  ;;  %v5622_v42 = vadd.f32 %v5604_v37, %v10107_v44  ;;  %v5651_v52 = vpop.permute.xlu0 %5650 }
0x1843   : > { %v5663_v35 = vmul.f32 %v5651_v52, %v11260_v14 }
0x1844   : > { %v5669_v9 = vadd.f32 %v5661_v0, %v5621_v50 }
0x1845   : > { %v10153_v30 = vadd.f32 %v5663_v35, %v5623_v29 }
0x1849   : > { %v5655_v51 = vpop.permute.xlu2 %5654  ;;  %v5627_v33 = vpop.permute.xlu1 %5626 }
0x184a   : > { %v5664_v6 = vmul.f32 %v5655_v51, %v11280_v38  ;;  %v5657_v53 = vmul.f32 %v5627_v33, %v7073_v61 }
0x184b   : > { %v5679_v18 = vpop.permute.xlu0 %5678 }
0x184c   : > { %v5706_v7 = vmul.f32 %v5679_v18, %v7056_v39  ;;  %v5665_v32 = vadd.f32 %v5657_v53, %v5617_v5  ;;  %v5672_v44 = vadd.f32 %v5664_v6, %v5624_v55 }
0x184e   : > { %5723 = vrot.lane.b32.xlu0 %v5706_v7, %s6699_s21  ;;  %v6742_v7 = vmov 63  }
0x1851   : > { %v5639_v50 = vpop.permute.xlu1 %5638 }
0x1852   : > { %v5660_v3 = vmul.f32 %v5639_v50, %v7070_v56  ;;  %v5683_v25 = vpop.permute.xlu2 %5682 }
0x1853   : > { %v5707_v29 = vmul.f32 %v5683_v25, %v7063_v48 }
0x1854   : > { %v5668_v8 = vadd.f32 %v5660_v3, %v5620_v45 }
0x1855   : > { %5725 = vrot.lane.b32.xlu2 %v5707_v29, %s6699_s21 }
0x1859   : > { %v5647_v31 = vpop.permute.xlu1 %5646 }
0x185a   : > { %v5662_v41 = vmul.f32 %v5647_v31, %v11241_v27  ;;  %v5691_v2 = vpop.permute.xlu2 %5690 }
0x185b   : > { %v5709_v26 = vmul.f32 %v5691_v2, %v11222_v19 }
0x185c   : > { %v5670_v5 = vadd.f32 %v5662_v41, %v5622_v42  ;;  %v5699_v42 = vpop.permute.xlu0 %5698 }
0x185d   : > { %5729 = vrot.lane.b32.xlu0 %v5709_v26, %s6699_s21  ;;  %v5711_v51 = vmul.f32 %v5699_v42, %v11260_v14 }
0x1862   : > { %v5703_v55 = vpop.permute.xlu2 %5702  ;;  %v5675_v28 = vpop.permute.xlu1 %5674 }
0x1863   : > { %v5712_v62 = vmul.f32 %v5703_v55, %v11280_v38  ;;  %v5705_v37 = vmul.f32 %v5675_v28, %v7073_v61 }
0x1865   : > { %5721 = vrot.lane.b32.xlu1 %v5705_v37, %s6699_s21  ;;  %5735 = vrot.lane.b32.xlu0 %v5712_v62, %s6699_s21 }
0x186a   : > { %v5687_v45 = vpop.permute.xlu1 %5686 }
0x186b   : > { %v5708_v0 = vmul.f32 %v5687_v45, %v7070_v56 }
0x186d   : > { %5727 = vrot.lane.b32.xlu1 %v5708_v0, %s6699_s21  ;;  %5762 = vperm.xlu0 %6528, %v11374_v15  }
0x1872   : > { %v5695_v52 = vpop.permute.xlu1 %5694 }
0x1873   : > { %v5710_v35 = vmul.f32 %v5695_v52, %v11241_v27 }
0x1875   : > { %5731 = vrot.lane.b32.xlu2 %v5710_v35, %s6699_s21  ;;  %5782 = vperm.xlu0 %6528, %v7793_v47  }
0x1876   : > { %5733 = vrot.lane.b32.xlu1 %v5711_v51, %s6699_s21 }
0x187d   : > { %5754 = vperm.xlu2 %6526, %v11375_v22   ;;  %6530 = vset.pattern.permute.xlu0 %v6742_v7 }
0x187e   : > { %5758 = vperm.xlu1 %6527, %v11300_v40  }
0x1885   : > { %5766 = vperm.xlu2 %6526, %v11379_v34  }
0x1886   : > { %5770 = vperm.xlu1 %6527, %v11378_v20  }
0x188d   : > { %5774 = vperm.xlu2 %6526, %v7588_v57  }
0x188e   : > { %5778 = vperm.xlu1 %6527, %v7658_v16  }
0x1895   : > { %6531 = vset.pattern.permute.xlu2 %v6742_v7 }
0x1896   : > { %6529 = vset.pattern.permute.xlu1 %v6742_v7 }
0x18af   : > { %v5726_v33 = vpop.permute.xlu2 %5725 }
0x18b0   : > { %v5747_v6 = vadd.f32 %v5726_v33, %v5667_v24 }
0x18c0   : > { %v5724_v53 = vpop.permute.xlu0 %5723 }
0x18c1   : > { %v10183_v18 = vadd.f32 %v5724_v53, %v5666_v54 }
0x18cf   : > { %v5732_v60 = vpop.permute.xlu2 %5731  ;;  %v5730_v50 = vpop.permute.xlu0 %5729 }
0x18d0   : > { %v10185_v3 = vadd.f32 %v5732_v60, %v5670_v5  ;;  %v10187_v25 = vadd.f32 %v5730_v50, %v5669_v9 }
0x18d2   : > { %11651 = vst [vmem:[#allocation404_spill] sm:$0xff] %v10185_v3  ;;  %v11693_v3 = vld [vmem:[#allocation121_spill] sm:$0xff] }
0x18d3   : > { %11652 = vst [vmem:[#allocation400_spill] sm:$0xff] %v10187_v25  ;;  %v11710_v25 = vld [vmem:[#allocation105_spill] sm:$0xff] }
0x18d7   : > { %v5755_v29 = vpop.permute.xlu2 %5754  ;;  %v5722_v31 = vpop.permute.xlu1 %5721 }
0x18d8   : > { %v5785_v41 = vmul.f32 %v5755_v29, %v7073_v61  ;;  %v5745_v2 = vadd.f32 %v5722_v31, %v5665_v32  ;;  %v5736_v26 = vpop.permute.xlu0 %5735 }
0x18d9   : > { %v10190_v24 = vadd.f32 %v5736_v26, %v5672_v44  ;;  %v11659_v26 = vld [vmem:[#allocation33_spill] sm:$0xff] }
0x18da   : > { %5801 = vrot.lane.b32.xlu2 %v5785_v41, %s6676_s24 }
0x18db   : > { %11653 = vst [vmem:[#allocation403_spill] sm:$0xff] %v10190_v24 }
0x18df   : > { %v5767_v54 = vpop.permute.xlu2 %5766  ;;  %v5728_v55 = vpop.permute.xlu1 %5727 }
0x18e0   : > { %v5788_v28 = vmul.f32 %v5767_v54, %v7070_v56  ;;  %v5748_v62 = vadd.f32 %v5728_v55, %v5668_v8  ;;  %v5763_v37 = vpop.permute.xlu0 %5762 }
0x18e1   : > { %v5787_v5 = vmul.f32 %v5763_v37, %v7063_v48  ;;  %v11661_v37 = vld [vmem:[#allocation71_spill] sm:$0xff] }
0x18e2   : > { %5807 = vrot.lane.b32.xlu2 %v5788_v28, %s6676_s24  ;;  %v11660_v28 = vld [vmem:[#allocation25_spill] sm:$0xff] }
0x18e3   : > { %5805 = vrot.lane.b32.xlu0 %v5787_v5, %s6676_s24 }
0x18e7   : > { %v5775_v8 = vpop.permute.xlu2 %5774 }
0x18e8   : > { %v5734_v9 = vpop.permute.xlu1 %5733  ;;  %v5790_v42 = vmul.f32 %v5775_v8, %v11241_v27  ;;  %v11664_v8 = vld [vmem:[#allocation36_spill] sm:$0xff] }
0x18e9   : > { %v10198_v32 = vadd.f32 %v5734_v9, %v10153_v30 }
0x18ea   : > { %5842 = vperm.xlu2 %6531, %v11374_v15  }
0x18eb   : > { %11654 = vst [vmem:[#allocation406_spill] sm:$0xff] %v10198_v32  ;;  %5838 = vperm.xlu0 %6530, %v11300_v40   ;;  %v11694_v32 = vld [vmem:[#allocation89_spill] sm:$0xff] }
0x18f0   : > { %v5759_v44 = vpop.permute.xlu1 %5758 }
0x18f1   : > { %v5786_v45 = vmul.f32 %v5759_v44, %v7056_v39  ;;  %v11663_v44 = vld [vmem:[#allocation29_spill] sm:$0xff] }
0x18f2   : > { %5850 = vperm.xlu2 %6531, %v11378_v20   ;;  %v5783_v20 = vpop.permute.xlu0 %5782 }
0x18f3   : > { %5803 = vrot.lane.b32.xlu1 %v5786_v45, %s6676_s24  ;;  %5858 = vperm.xlu0 %6530, %v7658_v16   ;;  %v1633_v45 = vmul.f32 %v11663_v44, %v7073_v61  ;;  %v11678_v44 = vld [vmem:[#allocation39_spill] sm:$0xff] }
0x18f8   : > { %v5771_v0 = vpop.permute.xlu1 %5770 }
0x18f9   : > { %v5789_v16 = vmul.f32 %v5771_v0, %v11222_v19  ;;  %v1354_v0 = vmul.f32 %v11664_v8, %v11649_v58 }
0x18fa   : > { %5862 = vperm.xlu2 %6531, %v7793_v47   ;;  %v5792_v47 = vmul.f32 %v5783_v20, %v11280_v38  ;;  %v11667_v20 = vld [vmem:[#allocation41_spill] sm:$0xff] }
0x18fb   : > { %5834 = vperm.xlu1 %6529, %v11375_v22   ;;  %5811 = vrot.lane.b32.xlu0 %v5790_v42, %s6676_s24  ;;  %v11665_v42 = vld [vmem:[#allocation38_spill] sm:$0xff] }
0x1900   : > { %v5779_v40 = vpop.permute.xlu1 %5778 }
0x1901   : > { %v5791_v15 = vmul.f32 %v5779_v40, %v11260_v14  ;;  %v2201_v40 = vmul.f32 %v11665_v42, %v7073_v61 }
0x1903   : > { %5846 = vperm.xlu1 %6529, %v11379_v34   ;;  %5813 = vrot.lane.b32.xlu2 %v5791_v15, %s6676_s24  ;;  %v11666_v15 = vld [vmem:[#allocation47_spill] sm:$0xff] }
0x190b   : > { %5854 = vperm.xlu1 %6529, %v7588_v57  }
0x1913   : > { %5809 = vrot.lane.b32.xlu1 %v5789_v16, %s6676_s24  ;;  %v1922_v16 = vmul.f32 %v11666_v15, %v11649_v58  ;;  %v11679_v15 = vld [vmem:[#allocation62_spill] sm:$0xff] }
0x191b   : > { %5815 = vrot.lane.b32.xlu1 %v5792_v47, %s6676_s24  ;;  %v1634_v47 = vmul.f32 %v11667_v20, %v7056_v39  ;;  %v10284_v20 = vmul.f32 %v11679_v15, %v7056_v39  ;;  %s329_s24 = sand.u32 1, %s6666_s28  }
0x191c   : > { %s6043_s22 = sshll.u32 %s329_s24, 6  ;;  %s5938_s18 = scalar_lea.sflag [#allocation3], %s329_s24 }
0x191d   : > { %s10718_s23 = scalar_lea.vmem [#allocation2], %s6043_s22  ;;  %s6632_s22 = scalar_lea.hbm %s10991_s8, 512 }
0x191e   : > { %s5950_s9 = sshll.u32 %s10718_s23, 4  ;;  %p6634_p1 = scmp.lt.s32.totalorder %s6632_s22, %s6628_s20  ;;  %s5951_s9 = int_to_ptr.vmem [resolvable:$true] %s5950_s9 }
0x1920   : > { %p6635_p2 = por %p6634_p1, %p6633_p0 }
0x1922   : > { %p6636_p3 = pnand %p6635_p2, %p6631_p13 }
0x1934   : > { %v5802_v22 = vpop.permute.xlu2 %5801 }
0x1935   : > { %v10218_v30 = vadd.f32 %v5802_v22, %v5745_v2  ;;  %v11668_v22 = vld [vmem:[#allocation42_spill] sm:$0xff] }
0x1937   : > { %11655 = vst [vmem:[#allocation402_spill] sm:$0xff] %v10218_v30 }
0x193c   : > { %v5808_v52 = vpop.permute.xlu2 %5807 }
0x193d   : > { %v10220_v35 = vadd.f32 %v5808_v52, %v5748_v62  ;;  %v1353_v62 = vmul.f32 %v11660_v28, %v11435_v46  ;;  %v1355_v52 = vmul.f32 %v11668_v22, %v7041_v17  ;;  %v11676_v28 = vld [vmem:[#allocation57_spill] sm:$0xff]  ;;  %v11681_v22 = vld [vmem:[#allocation127_spill] sm:$0xff] }
0x193f   : > { %11656 = vst [vmem:[#allocation405_spill] sm:$0xff] %v10220_v35  ;;  %v10325_v35 = vmul.f32 %v11694_v32, %v7045_v23  ;;  %v11701_v32 = vld [vmem:[#allocation96_spill] sm:$0xff] }
0x1944   : > { %v5843_v34 = vpop.permute.xlu2 %5842 }
0x1945   : > { %v5867_v51 = vmul.f32 %v5843_v34, %v7063_v48  ;;  %v11669_v34 = vld [vmem:[#allocation43_spill] sm:$0xff] }
0x1947   : > { %5885 = vrot.lane.b32.xlu1 %v5867_v51, %s6698_s12  ;;  %v10257_v51 = vmul.f32 %v11669_v34, %v11435_v46 }
0x194c   : > { %v5851_v60 = vpop.permute.xlu2 %5850 }
0x194d   : > { %v5869_v29 = vmul.f32 %v5851_v60, %v11222_v19 }
0x1954   : > { %v5863_v41 = vpop.permute.xlu2 %5862 }
0x1955   : > { %v5806_v57 = vpop.permute.xlu0 %5805  ;;  %v5872_v54 = vmul.f32 %v5863_v41, %v11280_v38  ;;  %v11673_v41 = vld [vmem:[#allocation114_spill] sm:$0xff] }
0x1956   : > { %v10224_v33 = vadd.f32 %v5806_v57, %v5747_v6  ;;  %v1921_v6 = vmul.f32 %v11659_v26, %v11435_v46  ;;  %v11670_v57 = vld [vmem:[#allocation48_spill] sm:$0xff]  ;;  %v11674_v26 = vld [vmem:[#allocation50_spill] sm:$0xff] }
0x1958   : > { %11657 = vst [vmem:[#allocation407_spill] sm:$0xff] %v10224_v33  ;;  %v2001_v5 = vadd.f32 %v11661_v37, %v1921_v6  ;;  %v11677_v37 = vld [vmem:[#allocation58_spill] sm:$0xff] }
0x1959   : > { %v11755_v33 = vld [vmem:[#allocation126_spill] sm:$0xff] }
0x195a   : > { %v2081_v6 = vadd.f32 %v11674_v26, %v2001_v5  ;;  %v11680_v5 = vld [vmem:[#allocation63_spill] sm:$0xff] }
0x195b   : > { %v11684_v26 = vld [vmem:[#allocation79_spill] sm:$0xff] }
0x195d   : > { %v5839_v53 = vpop.permute.xlu0 %5838 }
0x195e   : > { %v5866_v7 = vmul.f32 %v5839_v53, %v7056_v39  ;;  %v10261_v53 = vmul.f32 %v11670_v57, %v7063_v48 }
0x1960   : > { %5883 = vrot.lane.b32.xlu2 %v5866_v7, %s6698_s12  ;;  %v11671_v7 = vld [vmem:[#allocation49_spill] sm:$0xff] }
0x1961   : > { %v10265_v60 = vmul.f32 %v11671_v7, %v7073_v61  ;;  %v11682_v7 = vld [vmem:[#allocation67_spill] sm:$0xff] }
0x1965   : > { %v5804_v50 = vpop.permute.xlu1 %5803  ;;  %v5859_v36 = vpop.permute.xlu0 %5858 }
0x1966   : > { %v10230_v31 = vadd.f32 %v5804_v50, %v10183_v18  ;;  %v11662_v18 = vld [vmem:[#allocation60_spill] sm:$0xff] }
0x1967   : > { %v1433_v9 = vadd.f32 %v11662_v18, %v1353_v62  ;;  %v11672_v50 = vld [vmem:[#allocation52_spill] sm:$0xff]  ;;  %v10275_v62 = vmul.f32 %v11676_v28, %v11649_v58  ;;  %v10279_v18 = vmul.f32 %v11677_v37, %v7063_v48  ;;  %v11685_v28 = vld [vmem:[#allocation113_spill] sm:$0xff] }
0x1968   : > { %11658 = vst [vmem:[#allocation6_spill] sm:$0xff] %v10230_v31  ;;  %5889 = vrot.lane.b32.xlu2 %v5869_v29, %s6698_s12  ;;  %v2202_v29 = vmul.f32 %v11672_v50, %v7056_v39  ;;  %v10294_v50 = vmul.f32 %v11682_v7, %v7063_v48  ;;  %v1434_v37 = vadd.f32 %v11685_v28, %v1354_v0  ;;  %v11689_v7 = vld [vmem:[#allocation75_spill] sm:$0xff]  ;;  %v11691_v0 = vld [vmem:[#allocation88_spill] sm:$0xff]  ;;  %v11720_v31 = vld [vmem:[#allocation154_spill] sm:$0xff] }
0x1969   : > { %v1513_v8 = vadd.f32 %v11678_v44, %v1433_v9  ;;  %v11686_v44 = vld [vmem:[#allocation82_spill] sm:$0xff]  ;;  %v2161_v49 = vadd.f32 %v11689_v7, %v2081_v6  ;;  %v1357_v28 = vmul.f32 %v11691_v0, %v11220_v59  ;;  %v11698_v0 = vld [vmem:[#allocation93_spill] sm:$0xff] }
0x196a   : > { %v1924_v15 = vmul.f32 %v11686_v44, %v7045_v23  ;;  %v11692_v44 = vld [vmem:[#allocation106_spill] sm:$0xff]  ;;  %v10338_v30 = vmul.f32 %v11698_v0, %v7070_v56 }
0x196b   : > { %v1593_v13 = vadd.f32 %v11692_v44, %v1513_v8  ;;  %v11702_v44 = vld [vmem:[#allocation98_spill] sm:$0xff]  ;;  %v2209_v0 = vadd.f32 %v2201_v40, %v2161_v49 }
0x196d   : > { %v5835_v2 = vpop.permute.xlu1 %5834  ;;  %v1641_v46 = vadd.f32 %v1633_v45, %v1593_v13  ;;  %v11712_v13 = vld [vmem:[#allocation109_spill] sm:$0xff] }
0x196e   : > { %v5865_v55 = vmul.f32 %v5835_v2, %v7073_v61  ;;  %v2002_v2 = vadd.f32 %v11673_v41, %v1922_v16  ;;  %v10288_v16 = vmul.f32 %v11680_v5, %v7041_v17  ;;  %v11683_v41 = vld [vmem:[#allocation73_spill] sm:$0xff]  ;;  %v10373_v45 = vmul.f32 %v11712_v13, %v11241_v27 }
0x196f   : > { %v1356_v9 = vmul.f32 %v11683_v41, %v7045_v23  ;;  %v11690_v41 = vld [vmem:[#allocation87_spill] sm:$0xff] }
0x1970   : > { %5881 = vrot.lane.b32.xlu0 %v5865_v55, %s6698_s12  ;;  %5895 = vrot.lane.b32.xlu2 %v5872_v54, %s6698_s12  ;;  %v11675_v54 = vld [vmem:[#allocation53_spill] sm:$0xff]  ;;  %v2082_v34 = vadd.f32 %v11681_v22, %v2002_v2  ;;  %v11687_v2 = vld [vmem:[#allocation84_spill] sm:$0xff] }
0x1971   : > { %v1923_v55 = vmul.f32 %v11675_v54, %v7041_v17  ;;  %v10300_v54 = vmul.f32 %v11684_v26, %v7070_v56  ;;  %v10307_v5 = vmul.f32 %v11687_v2, %v11650_v43  ;;  %v10317_v26 = vmul.f32 %v11690_v41, %v11260_v14  ;;  %v11697_v41 = vld [vmem:[#allocation76_spill] sm:$0xff] }
0x1972   : > { %v1514_v2 = vadd.f32 %v11693_v3, %v1434_v37  ;;  %v2162_v1 = vadd.f32 %v11697_v41, %v2082_v34  ;;  %v11699_v3 = vld [vmem:[#allocation95_spill] sm:$0xff]  ;;  %v1925_v37 = vmul.f32 %v11701_v32, %v11220_v59  ;;  %v11704_v34 = vld [vmem:[#allocation101_spill] sm:$0xff] }
0x1973   : > { %v10342_v8 = vmul.f32 %v11699_v3, %v11260_v14  ;;  %v10354_v41 = vmul.f32 %v11704_v34, %v11260_v14  ;;  %v11707_v3 = vld [vmem:[#allocation102_spill] sm:$0xff]  ;;  %v11708_v32 = vld [vmem:[#allocation17_spill] sm:$0xff]  ;;  %v5871_v34 = vmul.f32 %v5859_v36, %v11260_v14 }
0x1974   : > { %v2501_v21 = vmul.f32 %v11707_v3, %v11220_v59  ;;  %v1594_v24 = vadd.f32 %v11708_v32, %v1514_v2  ;;  %v11715_v3 = vld [vmem:[#allocation59_spill] sm:$0xff]  ;;  %v11716_v32 = vld [vmem:[#allocation78_spill] sm:$0xff] }
0x1975   : > { %v5847_v42 = vpop.permute.xlu1 %5846  ;;  %11700 = vst [vmem:[#allocation33_spill] sm:$0xff] %v10342_v8  ;;  %v10363_v8 = vmul.f32 %v11710_v25, %v11222_v19  ;;  %v1437_v25 = vadd.f32 %v11715_v3, %v1357_v28  ;;  %v11722_v28 = vld [vmem:[#allocation118_spill] sm:$0xff] }
0x1976   : > { %v5868_v57 = vmul.f32 %v5847_v42, %v7070_v56  ;;  %v11688_v42 = vld [vmem:[#allocation85_spill] sm:$0xff]  ;;  %11705 = vst [vmem:[#allocation25_spill] sm:$0xff] %v10354_v41  ;;  %v1642_v14 = vadd.f32 %v1634_v47, %v1594_v24  ;;  %v11719_v41 = vld [vmem:[#allocation27_spill] sm:$0xff]  ;;  %v11727_v47 = vld [vmem:[#allocation74_spill] sm:$0xff] }
0x1977   : > { %v10311_v22 = vmul.f32 %v11688_v42, %v7070_v56  ;;  %v11695_v42 = vld [vmem:[#allocation91_spill] sm:$0xff]  ;;  %v11706_v56 = vld [vmem:[#allocation129_spill] sm:$0xff] }
0x1978   : > { %5887 = vrot.lane.b32.xlu0 %v5868_v57, %s6698_s12  ;;  %v10329_v6 = vmul.f32 %v11695_v42, %v11650_v43  ;;  %v11696_v57 = vld [vmem:[#allocation92_spill] sm:$0xff]  ;;  %v10348_v42 = vmul.f32 %v11702_v44, %v11650_v43  ;;  %v2003_v23 = vadd.f32 %v11706_v56, %v1923_v55  ;;  %v1435_v44 = vadd.f32 %v11709_v11, %v1355_v52  ;;  %v11711_v56 = vld [vmem:[#allocation107_spill] sm:$0xff]  ;;  %v11714_v52 = vld [vmem:[#allocation146_spill] sm:$0xff] }
0x1979   : > { %v10333_v7 = vmul.f32 %v11696_v57, %v11222_v19  ;;  %v11703_v57 = vld [vmem:[#allocation99_spill] sm:$0xff]  ;;  %v10369_v40 = vmul.f32 %v11711_v56, %v11637_v10  ;;  %v11713_v55 = vld [vmem:[#allocation64_spill] sm:$0xff]  ;;  %v1436_v2 = vadd.f32 %v11714_v52, %v1356_v9 }
0x197a   : > { %v2205_v61 = vmul.f32 %v11703_v57, %v11222_v19  ;;  %v2210_v57 = vadd.f32 %v2202_v29, %v2162_v1  ;;  %v2005_v11 = vadd.f32 %v11713_v55, %v1925_v37  ;;  %v2289_v1 = vadd.f32 %v11716_v32, %v2209_v0  ;;  %v11717_v29 = vld [vmem:[#allocation35_spill] sm:$0xff]  ;;  %v11721_v37 = vld [vmem:[#allocation112_spill] sm:$0xff]  ;;  %v11723_v0 = vld [vmem:[#allocation21_spill] sm:$0xff] }
0x197b   : > { %v2083_v36 = vadd.f32 %v11717_v29, %v2003_v23  ;;  %v1515_v13 = vadd.f32 %v11719_v41, %v1435_v44  ;;  %v1926_v9 = vmul.f32 %v11721_v37, %v11637_v10  ;;  %v2577_v55 = vadd.f32 %v11722_v28, %v10257_v51  ;;  %v11724_v23 = vld [vmem:[#allocation140_spill] sm:$0xff]  ;;  %v11730_v29 = vld [vmem:[#allocation23_spill] sm:$0xff]  ;;  %v11732_v37 = vld [vmem:[#allocation149_spill] sm:$0xff] }
0x197c   : > { %v2085_v4 = vadd.f32 %v11720_v31, %v2005_v11  ;;  %v2290_v52 = vadd.f32 %v11723_v0, %v2210_v57  ;;  %v1516_v41 = vadd.f32 %v11727_v47, %v1436_v2  ;;  %v11728_v44 = vld [vmem:[#allocation152_spill] sm:$0xff]  ;;  %v11729_v11 = vld [vmem:[#allocation115_spill] sm:$0xff]  ;;  %v2578_v51 = vadd.f32 %v11730_v29, %v10275_v62  ;;  %v11739_v29 = vld [vmem:[#allocation130_spill] sm:$0xff] }
0x197d   : > { %v5855_v43 = vpop.permute.xlu1 %5854  ;;  %v2163_v3 = vadd.f32 %v11724_v23, %v2083_v36  ;;  %v1517_v31 = vadd.f32 %v11728_v44, %v1437_v25  ;;  %v1360_v32 = vmul.f32 %v11729_v11, %v11275_v12  ;;  %v2004_v36 = vadd.f32 %v11732_v37, %v1924_v15  ;;  %v11733_v28 = vld [vmem:[#allocation116_spill] sm:$0xff]  ;;  %v11738_v11 = vld [vmem:[#allocation11_spill] sm:$0xff] }
0x197e   : > { %v5870_v49 = vmul.f32 %v5855_v43, %v11241_v27  ;;  %v11718_v43 = vld [vmem:[#allocation65_spill] sm:$0xff]  ;;  %v10406_v0 = vmul.f32 %v11733_v28, %v11637_v10  ;;  %v11734_v23 = vld [vmem:[#allocation44_spill] sm:$0xff]  ;;  %v2657_v62 = vadd.f32 %v11738_v11, %v2577_v55  ;;  %v11742_v28 = vld [vmem:[#allocation46_spill] sm:$0xff] }
0x197f   : > { %v1721_v56 = vadd.f32 %v11718_v43, %v1641_v46  ;;  %v11726_v46 = vld [vmem:[#allocation136_spill] sm:$0xff]  ;;  %v11731_v43 = vld [vmem:[#allocation55_spill] sm:$0xff]  ;;  %v2211_v15 = vadd.f32 %v10279_v18, %v2163_v3  ;;  %v11746_v11 = vld [vmem:[#allocation110_spill] sm:$0xff] }
0x1980   : > { %5891 = vrot.lane.b32.xlu1 %v5870_v49, %s6698_s12  ;;  %5893 = vrot.lane.b32.xlu0 %v5871_v34, %s6698_s12  ;;  %v11725_v49 = vld [vmem:[#allocation14_spill] sm:$0xff]  ;;  %v1595_v24 = vadd.f32 %v11726_v46, %v1515_v13  ;;  %v2369_v57 = vadd.f32 %v11731_v43, %v2289_v1  ;;  %v11737_v47 = vld [vmem:[#allocation24_spill] sm:$0xff]  ;;  %v2370_v1 = vadd.f32 %v11739_v29, %v2290_v52 }
0x1981   : > { %v10393_v34 = vmul.f32 %v11725_v49, %v11241_v27  ;;  %v1801_v13 = vadd.f32 %v11734_v23, %v1721_v56  ;;  %v11735_v49 = vld [vmem:[#allocation8_spill] sm:$0xff]  ;;  %v11736_v46 = vld [vmem:[#allocation94_spill] sm:$0xff]  ;;  %v10413_v44 = vmul.f32 %v11737_v47, %v11280_v38 }
0x1982   : > { %v1722_v2 = vadd.f32 %v11735_v49, %v1642_v14  ;;  %v2165_v25 = vadd.f32 %v11736_v46, %v2085_v4  ;;  %v11740_v43 = vld [vmem:[#allocation26_spill] sm:$0xff]  ;;  %v1643_v56 = vadd.f32 %v10261_v53, %v1595_v24  ;;  %v1596_v14 = vadd.f32 %v11742_v28, %v1516_v41  ;;  %v11744_v49 = vld [vmem:[#allocation28_spill] sm:$0xff]  ;;  %v11751_v28 = vld [vmem:[#allocation117_spill] sm:$0xff] }
0x1983   : > { %v10420_v37 = vmul.f32 %v11740_v43, %v11241_v27  ;;  %v11743_v23 = vld [vmem:[#allocation86_spill] sm:$0xff]  ;;  %v1928_v46 = vmul.f32 %v11744_v49, %v11275_v12  ;;  %v11745_v47 = vld [vmem:[#allocation32_spill] sm:$0xff]  ;;  %v10430_v52 = vadd.f32 %v11746_v11, %v2369_v57  ;;  %v11752_v49 = vld [vmem:[#allocation133_spill] sm:$0xff] }
0x1984   : > { %v1597_v4 = vadd.f32 %v11743_v23, %v1517_v31  ;;  %v2208_v55 = vmul.f32 %v11745_v47, %v11280_v38  ;;  %v11747_v18 = vld [vmem:[#allocation80_spill] sm:$0xff]  ;;  %v11748_v29 = vld [vmem:[#allocation54_spill] sm:$0xff]  ;;  %v2213_v31 = vadd.f32 %v2205_v61, %v2165_v25  ;;  %v10440_v23 = vadd.f32 %v11751_v28, %v2370_v1  ;;  %v11754_v57 = vld [vmem:[#allocation111_spill] sm:$0xff] }
0x1985   : > { %11741 = vst [vmem:[#allocation71_spill] sm:$0xff] %v10420_v37  ;;  %v2084_v3 = vadd.f32 %v11747_v18, %v2004_v36  ;;  %v2504_v43 = vmul.f32 %v11748_v29, %v11275_v12  ;;  %v11749_v27 = vld [vmem:[#allocation108_spill] sm:$0xff]  ;;  %v2658_v10 = vadd.f32 %v11752_v49, %v2578_v51  ;;  %v2737_v11 = vadd.f32 %v11754_v57, %v2657_v62  ;;  %v11756_v18 = vld [vmem:[#allocation143_spill] sm:$0xff]  ;;  %v11759_v1 = vld [vmem:[#allocation34_spill] sm:$0xff] }
0x1986   : > { %v10436_v53 = vadd.f32 %v11749_v27, %v1801_v13  ;;  %v11750_v24 = vld [vmem:[#allocation124_spill] sm:$0xff]  ;;  %v1723_v36 = vadd.f32 %v11755_v33, %v1643_v56  ;;  %v2008_v63 = vadd.f32 %v11756_v18, %v1928_v46  ;;  %v1644_v29 = vadd.f32 %v10300_v54, %v1596_v14  ;;  %v11758_v61 = vld [vmem:[#allocation135_spill] sm:$0xff]  ;;  %v11762_v46 = vld [vmem:[#allocation66_spill] sm:$0xff] }
0x1987   : > { %v1802_v41 = vadd.f32 %v11750_v24, %v1722_v2  ;;  %v11753_v47 = vld [vmem:[#allocation132_spill] sm:$0xff]  ;;  %v1645_v27 = vadd.f32 %v10333_v7, %v1597_v4  ;;  %v2579_v25 = vadd.f32 %v11758_v61, %v10288_v16  ;;  %v2164_v24 = vadd.f32 %v11759_v1, %v2084_v3  ;;  %v11761_v33 = vld [vmem:[#allocation151_spill] sm:$0xff]  ;;  %v11769_v61 = vld [vmem:[#allocation61_spill] sm:$0xff] }
0x1988   : > { %v2291_v37 = vadd.f32 %v11753_v47, %v2211_v15  ;;  %v11757_v13 = vld [vmem:[#allocation68_spill] sm:$0xff]  ;;  %v2457_v51 = vmax.f32 %v10436_v53, %v10430_v52  ;;  %v11760_v15 = vld [vmem:[#allocation69_spill] sm:$0xff]  ;;  %v2580_v56 = vadd.f32 %v11761_v33, %v10325_v35  ;;  %v2293_v54 = vadd.f32 %v11762_v46, %v2213_v31  ;;  %v11763_v14 = vld [vmem:[#allocation179_spill] sm:$0xff] }
0x1989   : > { %v2581_v2 = vadd.f32 %v11757_v13, %v2501_v21  ;;  %v10456_v62 = vadd.f32 %v11760_v15, %v1802_v41  ;;  %v2088_v7 = vadd.f32 %v11763_v14, %v2008_v63  ;;  %v11764_v4 = vld [vmem:[#allocation120_spill] sm:$0xff]  ;;  %v11765_v28 = vld [vmem:[#allocation139_spill] sm:$0xff]  ;;  %v10466_v3 = vadd.f32 %v10265_v60, %v2737_v11  ;;  %v11770_v31 = vld [vmem:[#allocation30_spill] sm:$0xff] }
0x198a   : > { %v2738_v21 = vadd.f32 %v11764_v4, %v2658_v10  ;;  %v1440_v49 = vadd.f32 %v11765_v28, %v1360_v32  ;;  %v11766_v16 = vld [vmem:[#allocation40_spill] sm:$0xff]  ;;  %v11767_v57 = vld [vmem:[#allocation31_spill] sm:$0xff]  ;;  %v1725_v1 = vadd.f32 %v11769_v61, %v1645_v27  ;;  %v2659_v63 = vadd.f32 %v11770_v31, %v2579_v25  ;;  %v11777_v27 = vld [vmem:[#allocation142_spill] sm:$0xff] }
0x198b   : > { %v2371_v47 = vadd.f32 %v11766_v16, %v2291_v37  ;;  %v1803_v18 = vadd.f32 %v11767_v57, %v1723_v36  ;;  %v11768_v41 = vld [vmem:[#allocation148_spill] sm:$0xff]  ;;  %v2458_v35 = vmax.f32 %v10456_v62, %v10440_v23  ;;  %v2212_v10 = vadd.f32 %v10311_v22, %v2164_v24  ;;  %v11771_v15 = vld [vmem:[#allocation155_spill] sm:$0xff]  ;;  %v11775_v36 = vld [vmem:[#allocation158_spill] sm:$0xff] }
0x198c   : > { %v1724_v13 = vadd.f32 %v11768_v41, %v1644_v29  ;;  %v2006_v32 = vadd.f32 %v11771_v15, %v1926_v9  ;;  %v11772_v33 = vld [vmem:[#allocation176_spill] sm:$0xff]  ;;  %v11773_v46 = vld [vmem:[#allocation83_spill] sm:$0xff]  ;;  %v2661_v4 = vadd.f32 %v11775_v36, %v2581_v2  ;;  %v11779_v25 = vld [vmem:[#allocation166_spill] sm:$0xff]  ;;  %v2786_v9 = vadd.f32 %v10284_v20, %v2738_v21 }
0x198d   : > { %v1520_v37 = vadd.f32 %v11772_v33, %v1440_v49  ;;  %v2660_v60 = vadd.f32 %v11773_v46, %v2580_v56  ;;  %v11774_v11 = vld [vmem:[#allocation156_spill] sm:$0xff]  ;;  %v11776_v29 = vld [vmem:[#allocation171_spill] sm:$0xff]  ;;  %v10482_v16 = vadd.f32 %v11777_v27, %v2371_v47  ;;  %v1439_v22 = vadd.f32 %v11779_v25, %v10307_v5  ;;  %v11780_v24 = vld [vmem:[#allocation138_spill] sm:$0xff] }
0x198e   : > { %v2373_v14 = vadd.f32 %v11774_v11, %v2293_v54  ;;  %v2168_v28 = vadd.f32 %v11776_v29, %v2088_v7  ;;  %v11778_v57 = vld [vmem:[#allocation144_spill] sm:$0xff]  ;;  %v10489_v49 = vadd.f32 %v11780_v24, %v1803_v18  ;;  %v11781_v56 = vld [vmem:[#allocation147_spill] sm:$0xff]  ;;  %v11782_v54 = vld [vmem:[#allocation77_spill] sm:$0xff] }
0x198f   : > { %v2739_v41 = vadd.f32 %v11778_v57, %v2659_v63  ;;  %v2584_v61 = vadd.f32 %v11781_v56, %v2504_v43  ;;  %v1804_v31 = vadd.f32 %v11782_v54, %v1724_v13  ;;  %v11783_v2 = vld [vmem:[#allocation153_spill] sm:$0xff]  ;;  %v11784_v7 = vld [vmem:[#allocation150_spill] sm:$0xff]  ;;  %v11785_v47 = vld [vmem:[#allocation103_spill] sm:$0xff] }
0x1990   : > { %v1805_v15 = vadd.f32 %v11783_v2, %v1725_v1  ;;  %v2292_v33 = vadd.f32 %v11784_v7, %v2212_v10  ;;  %v1438_v46 = vadd.f32 %v11785_v47, %v10369_v40  ;;  %v11786_v63 = vld [vmem:[#allocation20_spill] sm:$0xff]  ;;  %v11787_v36 = vld [vmem:[#allocation167_spill] sm:$0xff]  ;;  %v11788_v29 = vld [vmem:[#allocation97_spill] sm:$0xff]  ;;  %v2216_v27 = vadd.f32 %v2208_v55, %v2168_v28 }
0x1991   : > { %v2086_v11 = vadd.f32 %v11786_v63, %v2006_v32  ;;  %v1600_v5 = vadd.f32 %v11787_v36, %v1520_v37  ;;  %v2453_v20 = vadd.f32 %v11788_v29, %v2373_v14  ;;  %v11789_v21 = vld [vmem:[#allocation100_spill] sm:$0xff]  ;;  %v2459_v13 = vmax.f32 %v10489_v49, %v10482_v16  ;;  %v11791_v1 = vld [vmem:[#allocation45_spill] sm:$0xff]  ;;  %v11792_v10 = vld [vmem:[#allocation22_spill] sm:$0xff] }
0x1992   : > { %v2741_v18 = vadd.f32 %v11789_v21, %v2661_v4  ;;  %v11790_v57 = vld [vmem:[#allocation56_spill] sm:$0xff]  ;;  %v1519_v24 = vadd.f32 %v11792_v10, %v1439_v22  ;;  %v2787_v40 = vadd.f32 %v10294_v50, %v2739_v41  ;;  %v11793_v56 = vld [vmem:[#allocation51_spill] sm:$0xff]  ;;  %v11794_v37 = vld [vmem:[#allocation90_spill] sm:$0xff] }
0x1993   : > { %v2740_v43 = vadd.f32 %v11790_v57, %v2660_v60  ;;  %v2166_v25 = vadd.f32 %v11791_v1, %v2086_v11  ;;  %v10508_v32 = vadd.f32 %v11793_v56, %v1804_v31  ;;  %v1885_v54 = vadd.f32 %v11794_v37, %v1805_v15  ;;  %v11795_v14 = vld [vmem:[#allocation159_spill] sm:$0xff]  ;;  %v11796_v55 = vld [vmem:[#allocation181_spill] sm:$0xff]  ;;  %v11798_v16 = vld [vmem:[#allocation70_spill] sm:$0xff] }
0x1994   : > { %v2582_v4 = vadd.f32 %v11795_v14, %v10406_v0  ;;  %v2664_v28 = vadd.f32 %v11796_v55, %v2584_v61  ;;  %v11797_v60 = vld [vmem:[#allocation81_spill] sm:$0xff]  ;;  %v1518_v49 = vadd.f32 %v11798_v16, %v1438_v46  ;;  %v11799_v7 = vld [vmem:[#allocation170_spill] sm:$0xff]  ;;  %v1648_v50 = vadd.f32 %v10413_v44, %v1600_v5  ;;  %v11801_v63 = vld [vmem:[#allocation160_spill] sm:$0xff] }
0x1995   : > { %v10515_v2 = vadd.f32 %v11797_v60, %v2292_v33  ;;  %v2007_v22 = vadd.f32 %v11799_v7, %v10329_v6  ;;  %v11800_v41 = vld [vmem:[#allocation145_spill] sm:$0xff]  ;;  %v2789_v47 = vadd.f32 %v10363_v8, %v2741_v18  ;;  %v10524_v15 = vadd.f32 %v10338_v30, %v2740_v43  ;;  %v11803_v46 = vld [vmem:[#allocation182_spill] sm:$0xff]  ;;  %v11805_v44 = vld [vmem:[#allocation175_spill] sm:$0xff] }
0x1996   : > { %v2296_v31 = vadd.f32 %v11800_v41, %v2216_v27  ;;  %v2461_v0 = vmax.f32 %v1885_v54, %v2453_v20  ;;  %v1598_v61 = vadd.f32 %v11801_v63, %v1518_v49  ;;  %v2214_v33 = vadd.f32 %v10393_v34, %v2166_v25  ;;  %v11802_v11 = vld [vmem:[#allocation125_spill] sm:$0xff]  ;;  %v11804_v21 = vld [vmem:[#allocation122_spill] sm:$0xff]  ;;  %v11806_v27 = vld [vmem:[#allocation183_spill] sm:$0xff] }
0x1997   : > { %v1599_v36 = vadd.f32 %v11802_v11, %v1519_v24  ;;  %v2866_v29 = vadd.f32 %v11803_v46, %v2786_v9  ;;  %v10531_v6 = vadd.f32 %v11804_v21, %v2582_v4  ;;  %v2744_v5 = vadd.f32 %v11805_v44, %v2664_v28  ;;  %v11807_v8 = vld [vmem:[#allocation184_spill] sm:$0xff]  ;;  %v11808_v30 = vld [vmem:[#allocation161_spill] sm:$0xff]  ;;  %v11809_v20 = vld [vmem:[#allocation174_spill] sm:$0xff] }
0x1998   : > { %v2867_v57 = vadd.f32 %v11806_v27, %v2787_v40  ;;  %v2869_v18 = vadd.f32 %v11807_v8, %v2789_v47  ;;  %v2087_v43 = vadd.f32 %v11808_v30, %v2007_v22  ;;  %v2583_v1 = vadd.f32 %v11809_v20, %v10348_v42  ;;  %v11810_v10 = vld [vmem:[#allocation141_spill] sm:$0xff]  ;;  %v11811_v25 = vld [vmem:[#allocation195_spill] sm:$0xff]  ;;  %v11813_v37 = vld [vmem:[#allocation180_spill] sm:$0xff] }
0x1999   : > { %v1728_v34 = vadd.f32 %v11810_v10, %v1648_v50  ;;  %v2946_v24 = vadd.f32 %v11811_v25, %v2866_v29  ;;  %v11812_v9 = vld [vmem:[#allocation177_spill] sm:$0xff]  ;;  %v2376_v54 = vadd.f32 %v11813_v37, %v2296_v31  ;;  %v11814_v14 = vld [vmem:[#allocation192_spill] sm:$0xff]  ;;  %v10547_v28 = vadd.f32 %v10373_v45, %v1598_v61  ;;  %v11817_v49 = vld [vmem:[#allocation198_spill] sm:$0xff] }
0x199a   : > { %v2784_v56 = vmul.f32 %v11812_v9, %v11280_v38  ;;  %v2947_v4 = vadd.f32 %v11814_v14, %v2867_v57  ;;  %v11815_v55 = vld [vmem:[#allocation196_spill] sm:$0xff]  ;;  %v11816_v60 = vld [vmem:[#allocation157_spill] sm:$0xff]  ;;  %v10553_v42 = vadd.f32 %v10317_v26, %v1599_v36  ;;  %v11821_v46 = vld [vmem:[#allocation131_spill] sm:$0xff] }
0x199b   : > { %v2949_v40 = vadd.f32 %v11815_v55, %v2869_v18  ;;  %v10550_v16 = vadd.f32 %v11816_v60, %v2214_v33  ;;  %v3026_v7 = vadd.f32 %v11817_v49, %v2946_v24  ;;  %v11818_v50 = vld [vmem:[#allocation200_spill] sm:$0xff]  ;;  %v11820_v63 = vld [vmem:[#allocation205_spill] sm:$0xff]  ;;  %v10561_v29 = vadd.f32 %v11821_v46, %v2087_v43  ;;  %v11823_v33 = vld [vmem:[#allocation178_spill] sm:$0xff] }
0x199c   : > { %v2792_v22 = vadd.f32 %v2784_v56, %v2744_v5  ;;  %v11819_v31 = vld [vmem:[#allocation204_spill] sm:$0xff]  ;;  %v3027_v11 = vadd.f32 %v11820_v63, %v2947_v4  ;;  %v11822_v45 = vld [vmem:[#allocation165_spill] sm:$0xff]  ;;  %v10567_v21 = vadd.f32 %v11823_v33, %v1728_v34  ;;  %v11824_v26 = vld [vmem:[#allocation206_spill] sm:$0xff] }
0x199d   : > { %v3029_v41 = vadd.f32 %v11818_v50, %v2949_v40  ;;  %v3075_v47 = vmul.f32 %v11819_v31, %v7041_v17  ;;  %v10564_v61 = vadd.f32 %v11822_v45, %v2583_v1  ;;  %v3074_v36 = vmul.f32 %v11824_v26, %v11649_v58  ;;  %v11825_v44 = vld [vmem:[#allocation173_spill] sm:$0xff]  ;;  %v11826_v27 = vld [vmem:[#allocation186_spill] sm:$0xff]  ;;  %v11827_v8 = vld [vmem:[#allocation207_spill] sm:$0xff] }
0x199e   : > { %v10572_v5 = vadd.f32 %v11825_v44, %v2376_v54  ;;  %v10575_v57 = vadd.f32 %v11826_v27, %v2792_v22  ;;  %v3077_v18 = vmul.f32 %v11827_v8, %v11220_v59  ;;  %v11828_v30 = vld [vmem:[#allocation214_spill] sm:$0xff]  ;;  %v10583_v20 = vmax.f32 %v2458_v35, %v3026_v7  ;;  %v11830_v34 = vld [vmem:[#allocation215_spill] sm:$0xff]  ;;  %v11831_v24 = vld [vmem:[#allocation268_spill] sm:$0xff] }
0x199f   : > { %v3155_v43 = vadd.f32 %v11828_v30, %v3075_v47  ;;  %v11829_v1 = vld [vmem:[#allocation210_spill] sm:$0xff]  ;;  %v3154_v25 = vadd.f32 %v11830_v34, %v3074_v36  ;;  %v3651_v9 = vmul.f32 %v11831_v24, %v7041_v17  ;;  %v10590_v56 = vmax.f32 %v2461_v0, %v3029_v41  ;;  %v11832_v54 = vld [vmem:[#allocation217_spill] sm:$0xff]  ;;  %v11833_v4 = vld [vmem:[#allocation224_spill] sm:$0xff]  ;;  %v10617_v24 = vpop.permute.xlu1 %5809 }
0x19a0   : > { %v3080_v10 = vmul.f32 %v11829_v1, %v11275_v12  ;;  %v10592_v37 = vmax.f32 %v2459_v13, %v3027_v11  ;;  %v3157_v14 = vadd.f32 %v11832_v54, %v3077_v18  ;;  %v11834_v40 = vld [vmem:[#allocation219_spill] sm:$0xff]  ;;  %v11836_v60 = vld [vmem:[#allocation278_spill] sm:$0xff]  ;;  %v11837_v7 = vld [vmem:[#allocation332_spill] sm:$0xff] }
0x19a1   : > { %v3235_v55 = vadd.f32 %v11833_v4, %v3155_v43  ;;  %v11835_v62 = vld [vmem:[#allocation227_spill] sm:$0xff]  ;;  %v3731_v49 = vadd.f32 %v11836_v60, %v3651_v9  ;;  %v4227_v22 = vmul.f32 %v11837_v7, %v7041_v17  ;;  %v11838_v50 = vld [vmem:[#allocation228_spill] sm:$0xff]  ;;  %v11840_v13 = vld [vmem:[#allocation237_spill] sm:$0xff] }
0x19a2   : > { %v3160_v23 = vadd.f32 %v11834_v40, %v3080_v10  ;;  %v3234_v35 = vadd.f32 %v11835_v62, %v3154_v25  ;;  %v3237_v31 = vadd.f32 %v11838_v50, %v3157_v14  ;;  %v11839_v0 = vld [vmem:[#allocation236_spill] sm:$0xff]  ;;  %v11841_v63 = vld [vmem:[#allocation270_spill] sm:$0xff]  ;;  %v11842_v46 = vld [vmem:[#allocation229_spill] sm:$0xff] }
0x19a3   : > { %v3355_v41 = vmul.f32 %v11839_v0, %v7063_v48  ;;  %v3315_v47 = vadd.f32 %v11840_v13, %v3235_v55  ;;  %v3650_v11 = vmul.f32 %v11841_v63, %v11649_v58  ;;  %v11843_v33 = vld [vmem:[#allocation238_spill] sm:$0xff]  ;;  %v11844_v36 = vld [vmem:[#allocation288_spill] sm:$0xff]  ;;  %v11848_v1 = vld [vmem:[#allocation279_spill] sm:$0xff] }
0x19a4   : > { %v3240_v45 = vadd.f32 %v11842_v46, %v3160_v23  ;;  %v3354_v26 = vmul.f32 %v11843_v33, %v7056_v39  ;;  %v3811_v44 = vadd.f32 %v11844_v36, %v3731_v49  ;;  %v11845_v27 = vld [vmem:[#allocation342_spill] sm:$0xff]  ;;  %v11847_v30 = vld [vmem:[#allocation232_spill] sm:$0xff]  ;;  %v11850_v9 = vld [vmem:[#allocation239_spill] sm:$0xff] }
0x19a5   : > { %v4307_v8 = vadd.f32 %v11845_v27, %v4227_v22  ;;  %v11846_v17 = vld [vmem:[#allocation230_spill] sm:$0xff]  ;;  %v3317_v43 = vadd.f32 %v11847_v30, %v3237_v31  ;;  %v3730_v10 = vadd.f32 %v11848_v1, %v3650_v11  ;;  %v3357_v54 = vmul.f32 %v11850_v9, %v11222_v19  ;;  %v11851_v14 = vld [vmem:[#allocation300_spill] sm:$0xff]  ;;  %v11852_v55 = vld [vmem:[#allocation301_spill] sm:$0xff] }
0x19a6   : > { %v3314_v18 = vadd.f32 %v11846_v17, %v3234_v35  ;;  %v11849_v34 = vld [vmem:[#allocation334_spill] sm:$0xff]  ;;  %v3931_v4 = vmul.f32 %v11851_v14, %v7063_v48  ;;  %v3891_v40 = vadd.f32 %v11852_v55, %v3811_v44  ;;  %v11853_v23 = vld [vmem:[#allocation352_spill] sm:$0xff]  ;;  %v3363_v35 = vadd.f32 %v3355_v41, %v3315_v47  ;;  %v11854_v60 = vld [vmem:[#allocation291_spill] sm:$0xff] }
0x19a7   : > { %v4226_v25 = vmul.f32 %v11849_v34, %v11649_v58  ;;  %v4387_v62 = vadd.f32 %v11853_v23, %v4307_v8  ;;  %v3810_v49 = vadd.f32 %v11854_v60, %v3730_v10  ;;  %v11855_v7 = vld [vmem:[#allocation302_spill] sm:$0xff]  ;;  %v11856_v50 = vld [vmem:[#allocation343_spill] sm:$0xff]  ;;  %v11858_v63 = vld [vmem:[#allocation364_spill] sm:$0xff]  ;;  %v3365_v34 = vadd.f32 %v3357_v54, %v3317_v43 }
0x19a8   : > { %v3930_v22 = vmul.f32 %v11855_v7, %v7056_v39  ;;  %v11857_v31 = vld [vmem:[#allocation234_spill] sm:$0xff]  ;;  %v3362_v13 = vadd.f32 %v3354_v26, %v3314_v18  ;;  %v4507_v11 = vmul.f32 %v11858_v63, %v7063_v48  ;;  %v11859_v46 = vld [vmem:[#allocation365_spill] sm:$0xff]  ;;  %v11862_v41 = vld [vmem:[#allocation355_spill] sm:$0xff]  ;;  %v3939_v18 = vadd.f32 %v3931_v4, %v3891_v40 }
0x19a9   : > { %v4306_v58 = vadd.f32 %v11856_v50, %v4226_v25  ;;  %v3320_v0 = vadd.f32 %v11857_v31, %v3240_v45  ;;  %v4467_v33 = vadd.f32 %v11859_v46, %v4387_v62  ;;  %v11860_v36 = vld [vmem:[#allocation246_spill] sm:$0xff]  ;;  %v11864_v1 = vld [vmem:[#allocation247_spill] sm:$0xff]  ;;  %v11867_v9 = vld [vmem:[#allocation256_spill] sm:$0xff] }
0x19aa   : > { %v3443_v44 = vadd.f32 %v11860_v36, %v3363_v35  ;;  %v11861_v27 = vld [vmem:[#allocation294_spill] sm:$0xff]  ;;  %v3442_v10 = vadd.f32 %v11864_v1, %v3362_v13  ;;  %v11865_v45 = vld [vmem:[#allocation271_spill] sm:$0xff]  ;;  %v11872_v43 = vld [vmem:[#allocation269_spill] sm:$0xff] }
0x19ab   : > { %v3890_v8 = vadd.f32 %v11861_v27, %v3810_v49  ;;  %v4386_v47 = vadd.f32 %v11862_v41, %v4306_v58  ;;  %v11863_v17 = vld [vmem:[#allocation366_spill] sm:$0xff]  ;;  %v3653_v26 = vmul.f32 %v11865_v45, %v11220_v59  ;;  %v11869_v35 = vld [vmem:[#allocation259_spill] sm:$0xff]  ;;  %v11870_v49 = vld [vmem:[#allocation281_spill] sm:$0xff]  ;;  %v4515_v58 = vadd.f32 %v4507_v11, %v4467_v33 }
0x19ac   : > { %v4506_v30 = vmul.f32 %v11863_v17, %v7056_v39  ;;  %v11866_v48 = vld [vmem:[#allocation242_spill] sm:$0xff]  ;;  %v3523_v14 = vadd.f32 %v11867_v9, %v3443_v44  ;;  %v3522_v60 = vadd.f32 %v11869_v35, %v3442_v10  ;;  %v11873_v31 = vld [vmem:[#allocation311_spill] sm:$0xff]  ;;  %v11875_v46 = vld [vmem:[#allocation292_spill] sm:$0xff] }
0x19ad   : > { %v3360_v25 = vmul.f32 %v11866_v48, %v11280_v38  ;;  %v3938_v55 = vadd.f32 %v3930_v22, %v3890_v8  ;;  %v11868_v23 = vld [vmem:[#allocation358_spill] sm:$0xff]  ;;  %v3733_v7 = vadd.f32 %v11870_v49, %v3653_v26  ;;  %v11874_v4 = vld [vmem:[#allocation335_spill] sm:$0xff]  ;;  %v11877_v27 = vld [vmem:[#allocation320_spill] sm:$0xff]  ;;  %v10661_v48 = vpop.permute.xlu1 %5815  ;;  %v10668_v49 = vpop.permute.xlu2 %5813 }
0x19ae   : > { %v4466_v62 = vadd.f32 %v11868_v23, %v4386_v47  ;;  %v11871_v39 = vld [vmem:[#allocation310_spill] sm:$0xff]  ;;  %v3603_v54 = vadd.f32 %v11872_v43, %v3523_v14  ;;  %v4229_v40 = vmul.f32 %v11874_v4, %v11220_v59  ;;  %v11876_v22 = vld [vmem:[#allocation303_spill] sm:$0xff]  ;;  %v11881_v10 = vld [vmem:[#allocation345_spill] sm:$0xff] }
0x19af   : > { %v4019_v50 = vadd.f32 %v11871_v39, %v3939_v18  ;;  %v4018_v13 = vadd.f32 %v11873_v31, %v3938_v55  ;;  %v3813_v36 = vadd.f32 %v11875_v46, %v3733_v7  ;;  %v3933_v44 = vmul.f32 %v11876_v22, %v11222_v19  ;;  %v11878_v41 = vld [vmem:[#allocation374_spill] sm:$0xff]  ;;  %v11880_v11 = vld [vmem:[#allocation323_spill] sm:$0xff]  ;;  %v11884_v9 = vld [vmem:[#allocation296_spill] sm:$0xff] }
0x19b0   : > { %v4514_v63 = vadd.f32 %v4506_v30, %v4466_v62  ;;  %v4595_v47 = vadd.f32 %v11878_v41, %v4515_v58  ;;  %v11879_v17 = vld [vmem:[#allocation262_spill] sm:$0xff]  ;;  %v4309_v45 = vadd.f32 %v11881_v10, %v4229_v40  ;;  %v11882_v26 = vld [vmem:[#allocation375_spill] sm:$0xff]  ;;  %v11885_v55 = vld [vmem:[#allocation333_spill] sm:$0xff] }
0x19b1   : > { %v4099_v8 = vadd.f32 %v11877_v27, %v4019_v50  ;;  %v3602_v1 = vadd.f32 %v11879_v17, %v3522_v60  ;;  %v4098_v33 = vadd.f32 %v11880_v11, %v4018_v13  ;;  %v11883_v59 = vld [vmem:[#allocation274_spill] sm:$0xff]  ;;  %v3893_v14 = vadd.f32 %v11884_v9, %v3813_v36  ;;  %v11886_v62 = vld [vmem:[#allocation384_spill] sm:$0xff]  ;;  %v11889_v58 = vld [vmem:[#allocation367_spill] sm:$0xff] }
0x19b2   : > { %v4594_v18 = vadd.f32 %v11882_v26, %v4514_v63  ;;  %v3656_v30 = vmul.f32 %v11883_v59, %v11275_v12  ;;  %v4675_v35 = vadd.f32 %v11886_v62, %v4595_v47  ;;  %v11887_v60 = vld [vmem:[#allocation326_spill] sm:$0xff]  ;;  %v11888_v39 = vld [vmem:[#allocation356_spill] sm:$0xff]  ;;  %v4509_v43 = vmul.f32 %v11889_v58, %v11222_v19  ;;  %v11890_v31 = vld [vmem:[#allocation387_spill] sm:$0xff] }
0x19b3   : > { %v4179_v23 = vadd.f32 %v11885_v55, %v4099_v8  ;;  %v4178_v7 = vadd.f32 %v11887_v60, %v4098_v33  ;;  %v4389_v50 = vadd.f32 %v11888_v39, %v4309_v45  ;;  %v11891_v4 = vld [vmem:[#allocation249_spill] sm:$0xff]  ;;  %v3611_v63 = vmax.f32 %v10592_v37, %v3603_v54  ;;  %v11892_v36 = vld [vmem:[#allocation396_spill] sm:$0xff]  ;;  %v11893_v8 = vld [vmem:[#allocation283_spill] sm:$0xff] }
0x19b4   : > { %v4674_v13 = vadd.f32 %v11890_v31, %v4594_v18  ;;  %v3445_v40 = vadd.f32 %v11891_v4, %v3365_v34  ;;  %v3941_v46 = vadd.f32 %v3933_v44, %v3893_v14  ;;  %v4755_v22 = vadd.f32 %v11892_v36, %v4675_v35  ;;  %v11894_v47 = vld [vmem:[#allocation360_spill] sm:$0xff]  ;;  %v11895_v11 = vld [vmem:[#allocation390_spill] sm:$0xff]  ;;  %v11897_v19 = vld [vmem:[#allocation313_spill] sm:$0xff] }
0x19b5   : > { %v3610_v27 = vmax.f32 %v10583_v20, %v3602_v1  ;;  %v3736_v41 = vadd.f32 %v11893_v8, %v3656_v30  ;;  %v4469_v17 = vadd.f32 %v11894_v47, %v4389_v50  ;;  %v11896_v10 = vld [vmem:[#allocation260_spill] sm:$0xff]  ;;  %v4187_v18 = vmax.f32 %v3611_v63, %v4179_v23  ;;  %v11898_v34 = vld [vmem:[#allocation338_spill] sm:$0xff]  ;;  %v11899_v44 = vld [vmem:[#allocation293_spill] sm:$0xff] }
0x19b6   : > { %v4754_v33 = vadd.f32 %v11895_v11, %v4674_v13  ;;  %v3525_v45 = vadd.f32 %v11896_v10, %v3445_v40  ;;  %v4021_v26 = vadd.f32 %v11897_v19, %v3941_v46  ;;  %v4232_v37 = vmul.f32 %v11898_v34, %v11275_v12  ;;  %v11900_v30 = vld [vmem:[#allocation264_spill] sm:$0xff]  ;;  %v11902_v62 = vld [vmem:[#allocation347_spill] sm:$0xff]  ;;  %v11903_v39 = vld [vmem:[#allocation298_spill] sm:$0xff] }
0x19b7   : > { %v3368_v54 = vadd.f32 %v3360_v25, %v3320_v0  ;;  %v3816_v59 = vadd.f32 %v11899_v44, %v3736_v41  ;;  %v4186_v20 = vmax.f32 %v3610_v27, %v4178_v7  ;;  %v4517_v1 = vadd.f32 %v4509_v43, %v4469_v17  ;;  %v11901_v14 = vld [vmem:[#allocation324_spill] sm:$0xff]  ;;  %v11904_v23 = vld [vmem:[#allocation306_spill] sm:$0xff]  ;;  %v11905_v31 = vld [vmem:[#allocation377_spill] sm:$0xff] }
0x19b8   : > { %v3605_v9 = vadd.f32 %v11900_v30, %v3525_v45  ;;  %v4101_v55 = vadd.f32 %v11901_v14, %v4021_v26  ;;  %v4312_v35 = vadd.f32 %v11902_v62, %v4232_v37  ;;  %v4763_v60 = vmax.f32 %v4187_v18, %v4755_v22  ;;  %v11906_v25 = vld [vmem:[#allocation328_spill] sm:$0xff]  ;;  %v11907_v43 = vld [vmem:[#allocation357_spill] sm:$0xff]  ;;  %v11908_v40 = vld [vmem:[#allocation398_spill] sm:$0xff] }
0x19b9   : > { %v3896_v50 = vadd.f32 %v11903_v39, %v3816_v59  ;;  %v3936_v58 = vmul.f32 %v11904_v23, %v11280_v38  ;;  %v4597_v12 = vadd.f32 %v11905_v31, %v4517_v1  ;;  %v4762_v13 = vmax.f32 %v4186_v20, %v4754_v33  ;;  %v5886_v0 = vpop.permute.xlu1 %5885  ;;  %v11909_v46 = vld [vmem:[#allocation407_spill] sm:$0xff]  ;;  %v11910_v27 = vld [vmem:[#allocation370_spill] sm:$0xff]  ;;  %v11911_v41 = vld [vmem:[#allocation388_spill] sm:$0xff] }
0x19ba   : > { %v4181_v7 = vadd.f32 %v11906_v25, %v4101_v55  ;;  %v4392_v4 = vadd.f32 %v11907_v43, %v4312_v35  ;;  %v5339_v63 = vmax.f32 %v4763_v60, %v11908_v40  ;;  %v5907_v36 = vadd.f32 %v5886_v0, %v11909_v46  ;;  %v5884_v22 = vpop.permute.xlu2 %5883  ;;  %v11912_v17 = vld [vmem:[#allocation408_spill] sm:$0xff]  ;;  %v11913_v33 = vld [vmem:[#allocation6_spill] sm:$0xff]  ;;  %v11914_v45 = vld [vmem:[#allocation197_spill] sm:$0xff] }
0x19bb   : > { %v4512_v8 = vmul.f32 %v11910_v27, %v11280_v38  ;;  %v4677_v47 = vadd.f32 %v11911_v41, %v4597_v12  ;;  %v5338_v11 = vmax.f32 %v4762_v13, %v11912_v17  ;;  %v5906_v10 = vadd.f32 %v5884_v22, %v11913_v33  ;;  %v11915_v26 = vld [vmem:[#allocation251_spill] sm:$0xff]  ;;  %v11916_v59 = vld [vmem:[#allocation362_spill] sm:$0xff]  ;;  %v11917_v1 = vld [vmem:[#allocation392_spill] sm:$0xff] }
0x19bc   : > { %v2952_v19 = vadd.f32 %v11914_v45, %v10575_v57  ;;  %v3448_v18 = vadd.f32 %v11915_v26, %v3368_v54  ;;  %v3613_v34 = vmax.f32 %v10590_v56, %v3605_v9  ;;  %v5915_v37 = vmax.f32 %v5339_v63, %v5907_v36  ;;  %v11918_v14 = vld [vmem:[#allocation169_spill] sm:$0xff]  ;;  %v11919_v62 = vld [vmem:[#allocation202_spill] sm:$0xff]  ;;  %v11921_v23 = vld [vmem:[#allocation315_spill] sm:$0xff] }
0x19bd   : > { %v3944_v44 = vadd.f32 %v3936_v58, %v3896_v50  ;;  %v4472_v20 = vadd.f32 %v11916_v59, %v4392_v4  ;;  %v4757_v30 = vadd.f32 %v11917_v1, %v4677_v47  ;;  %v5914_v38 = vmax.f32 %v5338_v11, %v5906_v10  ;;  %v11920_v60 = vld [vmem:[#allocation261_spill] sm:$0xff]  ;;  %v11922_v50 = vld [vmem:[#allocation104_spill] sm:$0xff]  ;;  %v11924_v0 = vld [vmem:[#allocation266_spill] sm:$0xff] }
0x19be   : > { %v1888_v55 = vadd.f32 %v11918_v14, %v10567_v21  ;;  %v3032_v35 = vadd.f32 %v11919_v62, %v2952_v19  ;;  %v3528_v39 = vadd.f32 %v11920_v60, %v3448_v18  ;;  %v5923_v57 = vsel %vm384_vm0, %v5915_v37, 0.0  ;;  %v11923_v58 = vld [vmem:[#allocation33_spill] sm:$0xff]  ;;  %v11926_v4 = vld [vmem:[#allocation379_spill] sm:$0xff]  ;;  %v11927_v46 = vld [vmem:[#allocation400_spill] sm:$0xff] }
0x19bf   : > { %v4024_v54 = vadd.f32 %v11921_v23, %v3944_v44  ;;  %v4189_v31 = vmax.f32 %v3613_v34, %v4181_v7  ;;  %v4520_v56 = vadd.f32 %v4512_v8, %v4472_v20  ;;  %5931 = vst [vmem:[%s10718_s23 + $0x10] sm:$0xff] %v5923_v57  ;;  %v5922_v9 = vsel %vm384_vm0, %v5914_v38, 0.0  ;;  %v11925_v7 = vld [vmem:[#allocation325_spill] sm:$0xff]  ;;  %v11928_v22 = vld [vmem:[#allocation119_spill] sm:$0xff]  ;;  %v11931_v17 = vld [vmem:[#allocation330_spill] sm:$0xff] }
0x19c0   : > { %v1726_v21 = vadd.f32 %v11922_v50, %v10547_v28  ;;  %v2215_v12 = vadd.f32 %v11923_v58, %v10561_v29  ;;  %v2464_v13 = vmax.f32 %v1888_v55, %v10572_v5  ;;  %v3608_v25 = vadd.f32 %v11924_v0, %v3528_v39  ;;  %5930 = vst [vmem:[%s10718_s23 + $0x8] sm:$0xff] %v5922_v9  ;;  %v11929_v28 = vld [vmem:[#allocation168_spill] sm:$0xff]  ;;  %v11930_v29 = vld [vmem:[#allocation137_spill] sm:$0xff]  ;;  %v11933_v45 = vld [vmem:[#allocation410_spill] sm:$0xff] }
0x19c1   : > { %v4104_v43 = vadd.f32 %v11925_v7, %v4024_v54  ;;  %v4600_v40 = vadd.f32 %v11926_v4, %v4520_v56  ;;  %v4765_v63 = vmax.f32 %v4189_v31, %v4757_v30  ;;  %v5829_v36 = vadd.f32 %v10617_v24, %v11927_v46  ;;  %v11932_v33 = vld [vmem:[#allocation389_spill] sm:$0xff]  ;;  %v11934_v18 = vld [vmem:[#allocation72_spill] sm:$0xff]  ;;  %v11939_v30 = vld [vmem:[#allocation394_spill] sm:$0xff] }
0x19c2   : > { %v2374_v27 = vadd.f32 %v11928_v22, %v10550_v16  ;;  %v1727_v8 = vadd.f32 %v11929_v28, %v10553_v42  ;;  %v2743_v5 = vadd.f32 %v11930_v29, %v10564_v61  ;;  %v3040_v41 = vmax.f32 %v2464_v13, %v3032_v35  ;;  %v5890_v47 = vpop.permute.xlu2 %5889  ;;  %v11935_v34 = vld [vmem:[#allocation164_spill] sm:$0xff]  ;;  %v11937_v42 = vld [vmem:[#allocation187_spill] sm:$0xff]  ;;  %v11940_v55 = vld [vmem:[#allocation37_spill] sm:$0xff] }
0x19c3   : > { %v4184_v11 = vadd.f32 %v11931_v17, %v4104_v43  ;;  %v4680_v10 = vadd.f32 %v11932_v33, %v4600_v40  ;;  %v5341_v19 = vmax.f32 %v4765_v63, %v11933_v45  ;;  %v5909_v26 = vadd.f32 %v5890_v47, %v5829_v36  ;;  %v11936_v37 = vld [vmem:[#allocation172_spill] sm:$0xff]  ;;  %v11941_v35 = vld [vmem:[#allocation162_spill] sm:$0xff]  ;;  %v11944_v54 = vld [vmem:[#allocation25_spill] sm:$0xff] }
0x19c4   : > { %v1806_v24 = vadd.f32 %v11934_v18, %v1726_v21  ;;  %v2742_v16 = vadd.f32 %v11935_v34, %v10531_v6  ;;  %v2295_v44 = vadd.f32 %v11936_v37, %v2215_v12  ;;  %v2865_v59 = vadd.f32 %v11937_v42, %v10466_v3  ;;  %v11938_v61 = vld [vmem:[#allocation188_spill] sm:$0xff]  ;;  %v11942_v6 = vld [vmem:[#allocation19_spill] sm:$0xff]  ;;  %v11943_v57 = vld [vmem:[#allocation190_spill] sm:$0xff] }
0x19c5   : > { %v2868_v20 = vadd.f32 %v11938_v61, %v10524_v15  ;;  %v3616_v1 = vmax.f32 %v3040_v41, %v3608_v25  ;;  %v4760_v38 = vadd.f32 %v11939_v30, %v4680_v10  ;;  %v5917_v14 = vmax.f32 %v5341_v19, %v5909_v26  ;;  %v11945_v31 = vld [vmem:[#allocation191_spill] sm:$0xff]  ;;  %v11946_v50 = vld [vmem:[#allocation18_spill] sm:$0xff]  ;;  %v11950_v7 = vld [vmem:[#allocation189_spill] sm:$0xff] }
0x19c6   : > { %v2452_v62 = vadd.f32 %v11940_v55, %v10515_v2  ;;  %v10754_v60 = vadd.f32 %v11941_v35, %v2374_v27  ;;  %v1807_v39 = vadd.f32 %v11942_v6, %v1727_v8  ;;  %v2945_v23 = vadd.f32 %v11943_v57, %v2865_v59  ;;  %v11947_v58 = vld [vmem:[#allocation163_spill] sm:$0xff]  ;;  %v11951_v4 = vld [vmem:[#allocation201_spill] sm:$0xff]  ;;  %v11956_v17 = vld [vmem:[#allocation128_spill] sm:$0xff] }
0x19c7   : > { %v2791_v3 = vadd.f32 %v11944_v54, %v2743_v5  ;;  %v2948_v56 = vadd.f32 %v11945_v31, %v2868_v20  ;;  %v4192_v15 = vmax.f32 %v3616_v1, %v4184_v11  ;;  %v5925_v9 = vsel %vm384_vm0, %v5917_v14, 0.0  ;;  %v11948_v2 = vld [vmem:[#allocation71_spill] sm:$0xff]  ;;  %v11953_v27 = vld [vmem:[#allocation185_spill] sm:$0xff]  ;;  %v11964_v30 = vld [vmem:[#allocation10_spill] sm:$0xff] }
0x19c8   : > { %v10762_v21 = vadd.f32 %v11946_v50, %v1806_v24  ;;  %v2375_v12 = vadd.f32 %v11947_v58, %v2295_v44  ;;  %v2790_v13 = vadd.f32 %v11948_v2, %v2742_v16  ;;  %v11949_v0 = vld [vmem:[#allocation199_spill] sm:$0xff]  ;;  %5933 = vst [vmem:[%s10718_s23 + $0x20] sm:$0xff] %v5925_v9  ;;  %v2460_v8 = vmax.f32 %v10508_v32, %v2452_v62  ;;  %v11954_v29 = vld [vmem:[#allocation5_spill] sm:$0xff]  ;;  %v11960_v24 = vld [vmem:[#allocation194_spill] sm:$0xff] }
0x19c9   : > { %v3025_v25 = vadd.f32 %v11949_v0, %v2945_v23  ;;  %v2871_v43 = vadd.f32 %v11950_v7, %v2791_v3  ;;  %v3028_v40 = vadd.f32 %v11951_v4, %v2948_v56  ;;  %v4768_v63 = vmax.f32 %v4192_v15, %v4760_v38  ;;  %v11952_v46 = vld [vmem:[#allocation403_spill] sm:$0xff]  ;;  %v11957_v33 = vld [vmem:[#allocation193_spill] sm:$0xff]  ;;  %v11961_v16 = vld [vmem:[#allocation218_spill] sm:$0xff] }
0x19ca   : > { %v5832_v36 = vadd.f32 %v10661_v48, %v11952_v46  ;;  %v2462_v22 = vmax.f32 %v10762_v21, %v10754_v60  ;;  %v2870_v28 = vadd.f32 %v11953_v27, %v2790_v13  ;;  %v11955_v5 = vld [vmem:[#allocation211_spill] sm:$0xff]  ;;  %v5896_v47 = vpop.permute.xlu2 %5895  ;;  %v10779_v11 = vadd.f32 %v11956_v17, %v1807_v39  ;;  %v11958_v45 = vld [vmem:[#allocation401_spill] sm:$0xff]  ;;  %v11959_v48 = vld [vmem:[#allocation134_spill] sm:$0xff] }
0x19cb   : > { %v3073_v41 = vmul.f32 %v11955_v5, %v11954_v29  ;;  %v2951_v10 = vadd.f32 %v11957_v33, %v2871_v43  ;;  %v5344_v19 = vmax.f32 %v4768_v63, %v11958_v45  ;;  %v10784_v18 = vadd.f32 %v11959_v48, %v2375_v12  ;;  %v11962_v42 = vld [vmem:[#allocation203_spill] sm:$0xff]  ;;  %v11965_v38 = vld [vmem:[#allocation209_spill] sm:$0xff]  ;;  %v11967_v62 = vld [vmem:[#allocation212_spill] sm:$0xff] }
0x19cc   : > { %v5912_v26 = vadd.f32 %v5896_v47, %v5832_v36  ;;  %v2950_v34 = vadd.f32 %v11960_v24, %v2870_v28  ;;  %v10790_v32 = vmax.f32 %v2457_v51, %v3025_v25  ;;  %v10793_v44 = vmax.f32 %v2460_v8, %v3028_v40  ;;  %v11963_v61 = vld [vmem:[#allocation275_spill] sm:$0xff]  ;;  %v11968_v53 = vld [vmem:[#allocation222_spill] sm:$0xff]  ;;  %v11969_v35 = vld [vmem:[#allocation13_spill] sm:$0xff] }
0x19cd   : > { %v3153_v37 = vadd.f32 %v11961_v16, %v3073_v41  ;;  %v10796_v59 = vadd.f32 %v11962_v42, %v2951_v10  ;;  %v3649_v20 = vmul.f32 %v11963_v61, %v11954_v29  ;;  %v3079_v14 = vmul.f32 %v11965_v38, %v11964_v30  ;;  %v11966_v55 = vld [vmem:[#allocation7_spill] sm:$0xff]  ;;  %v11971_v57 = vld [vmem:[#allocation9_spill] sm:$0xff]  ;;  %v11973_v3 = vld [vmem:[#allocation282_spill] sm:$0xff] }
0x19ce   : > { %v5920_v1 = vmax.f32 %v5344_v19, %v5912_v26  ;;  %v3076_v52 = vmul.f32 %v11967_v62, %v11966_v55  ;;  %v11970_v6 = vld [vmem:[#allocation243_spill] sm:$0xff]  ;;  %v11972_v23 = vld [vmem:[#allocation213_spill] sm:$0xff]  ;;  %v11975_v50 = vld [vmem:[#allocation208_spill] sm:$0xff] }
0x19cf   : > { %v3233_v51 = vadd.f32 %v11968_v53, %v3153_v37  ;;  %v3353_v39 = vmul.f32 %v11970_v6, %v11969_v35  ;;  %v3078_v54 = vmul.f32 %v11972_v23, %v11971_v57  ;;  %v3729_v31 = vadd.f32 %v11973_v3, %v3649_v20  ;;  %v11974_v56 = vld [vmem:[#allocation339_spill] sm:$0xff]  ;;  %v11976_v12 = vld [vmem:[#allocation220_spill] sm:$0xff]  ;;  %v11977_v13 = vld [vmem:[#allocation221_spill] sm:$0xff] }
0x19d0   : > { %v4225_v15 = vmul.f32 %v11974_v56, %v11954_v29  ;;  %v5928_v9 = vsel %vm384_vm0, %v5920_v1, 0.0  ;;  %v10814_v58 = vadd.f32 %v11975_v50, %v2950_v34  ;;  %v3156_v2 = vadd.f32 %v11976_v12, %v3076_v52  ;;  %v11978_v25 = vld [vmem:[#allocation231_spill] sm:$0xff]  ;;  %v11979_v43 = vld [vmem:[#allocation216_spill] sm:$0xff]  ;;  %v11980_v40 = vld [vmem:[#allocation286_spill] sm:$0xff] }
0x19d1   : > { %v3159_v0 = vadd.f32 %v11977_v13, %v3079_v14  ;;  %v3313_v7 = vadd.f32 %v11978_v25, %v3233_v51  ;;  %5936 = vst [vmem:[%s10718_s23 + $0x38] sm:$0xff] %v5928_v9  ;;  %v3158_v4 = vadd.f32 %v11979_v43, %v3078_v54  ;;  %v3809_v63 = vadd.f32 %v11980_v40, %v3729_v31  ;;  %v11981_v46 = vld [vmem:[#allocation307_spill] sm:$0xff]  ;;  %v11982_v27 = vld [vmem:[#allocation346_spill] sm:$0xff]  ;;  %v11984_v5 = vld [vmem:[#allocation225_spill] sm:$0xff] }
0x19d2   : > { %v3929_v36 = vmul.f32 %v11981_v46, %v11969_v35  ;;  %v4305_v28 = vadd.f32 %v11982_v27, %v4225_v15  ;;  %v11983_v8 = vld [vmem:[#allocation223_spill] sm:$0xff]  ;;  %v11985_v47 = vld [vmem:[#allocation12_spill] sm:$0xff]  ;;  %v11988_v19 = vld [vmem:[#allocation241_spill] sm:$0xff] }
0x19d3   : > { %v3236_v29 = vadd.f32 %v11983_v8, %v3156_v2  ;;  %v3239_v41 = vadd.f32 %v11984_v5, %v3159_v0  ;;  %v11986_v17 = vld [vmem:[#allocation244_spill] sm:$0xff]  ;;  %v3361_v10 = vadd.f32 %v3353_v39, %v3313_v7  ;;  %v11989_v48 = vld [vmem:[#allocation295_spill] sm:$0xff]  ;;  %v11990_v34 = vld [vmem:[#allocation350_spill] sm:$0xff] }
0x19d4   : > { %v3356_v33 = vmul.f32 %v11986_v17, %v11985_v47  ;;  %v11987_v45 = vld [vmem:[#allocation16_spill] sm:$0xff]  ;;  %v3889_v24 = vadd.f32 %v11989_v48, %v3809_v63  ;;  %v4385_v16 = vadd.f32 %v11990_v34, %v4305_v28  ;;  %v11991_v37 = vld [vmem:[#allocation371_spill] sm:$0xff]  ;;  %v11992_v61 = vld [vmem:[#allocation226_spill] sm:$0xff] }
0x19d5   : > { %v3359_v26 = vmul.f32 %v11988_v19, %v11987_v45  ;;  %v4505_v42 = vmul.f32 %v11991_v37, %v11969_v35  ;;  %v3238_v20 = vadd.f32 %v11992_v61, %v3158_v4  ;;  %v11993_v1 = vld [vmem:[#allocation233_spill] sm:$0xff]  ;;  %v11994_v14 = vld [vmem:[#allocation250_spill] sm:$0xff]  ;;  %v11995_v52 = vld [vmem:[#allocation276_spill] sm:$0xff] }
0x19d6   : > { %v3316_v38 = vadd.f32 %v11993_v1, %v3236_v29  ;;  %v3441_v62 = vadd.f32 %v11994_v14, %v3361_v10  ;;  %v3652_v53 = vmul.f32 %v11995_v52, %v11966_v55  ;;  %v11996_v51 = vld [vmem:[#allocation235_spill] sm:$0xff]  ;;  %v11998_v23 = vld [vmem:[#allocation245_spill] sm:$0xff]  ;;  %v3937_v3 = vadd.f32 %v3929_v36, %v3889_v24  ;;  %v12000_v15 = vld [vmem:[#allocation240_spill] sm:$0xff]  ;;  %v10864_v1 = vpop.permute.xlu0 %5811 }
0x19d7   : > { %v3319_v6 = vadd.f32 %v11996_v51, %v3239_v41  ;;  %v11997_v39 = vld [vmem:[#allocation15_spill] sm:$0xff]  ;;  %v3318_v9 = vadd.f32 %v12000_v15, %v3238_v20  ;;  %v12001_v50 = vld [vmem:[#allocation254_spill] sm:$0xff]  ;;  %v12002_v2 = vld [vmem:[#allocation284_spill] sm:$0xff] }
0x19d8   : > { %v3358_v54 = vmul.f32 %v11998_v23, %v11997_v39  ;;  %v11999_v31 = vld [vmem:[#allocation359_spill] sm:$0xff]  ;;  %v3364_v35 = vadd.f32 %v3356_v33, %v3316_v38  ;;  %v3521_v12 = vadd.f32 %v12001_v50, %v3441_v62  ;;  %v3732_v13 = vadd.f32 %v12002_v2, %v3652_v53  ;;  %v12003_v25 = vld [vmem:[#allocation314_spill] sm:$0xff]  ;;  %v12004_v43 = vld [vmem:[#allocation340_spill] sm:$0xff] }
0x19d9   : > { %v4465_v56 = vadd.f32 %v11999_v31, %v4385_v16  ;;  %v3367_v0 = vadd.f32 %v3359_v26, %v3319_v6  ;;  %v4017_v7 = vadd.f32 %v12003_v25, %v3937_v3  ;;  %v4228_v4 = vmul.f32 %v12004_v43, %v11966_v55  ;;  %v12005_v63 = vld [vmem:[#allocation252_spill] sm:$0xff]  ;;  %v12006_v27 = vld [vmem:[#allocation263_spill] sm:$0xff]  ;;  %v12009_v17 = vld [vmem:[#allocation318_spill] sm:$0xff] }
0x19da   : > { %v3444_v46 = vadd.f32 %v12005_v63, %v3364_v35  ;;  %v3601_v36 = vadd.f32 %v12006_v27, %v3521_v12  ;;  %v12007_v28 = vld [vmem:[#allocation287_spill] sm:$0xff]  ;;  %v12008_v29 = vld [vmem:[#allocation308_spill] sm:$0xff]  ;;  %v3366_v41 = vadd.f32 %v3358_v54, %v3318_v9  ;;  %v12011_v26 = vld [vmem:[#allocation378_spill] sm:$0xff] }
0x19db   : > { %v4513_v40 = vadd.f32 %v4505_v42, %v4465_v56  ;;  %v3812_v8 = vadd.f32 %v12007_v28, %v3732_v13  ;;  %v3932_v5 = vmul.f32 %v12008_v29, %v11985_v47  ;;  %v4097_v33 = vadd.f32 %v12009_v17, %v4017_v7  ;;  %v12010_v10 = vld [vmem:[#allocation348_spill] sm:$0xff]  ;;  %v12012_v24 = vld [vmem:[#allocation255_spill] sm:$0xff]  ;;  %v12013_v55 = vld [vmem:[#allocation273_spill] sm:$0xff] }
0x19dc   : > { %v4308_v19 = vadd.f32 %v12010_v10, %v4228_v4  ;;  %v3524_v34 = vadd.f32 %v12012_v24, %v3444_v46  ;;  %v3655_v16 = vmul.f32 %v12013_v55, %v11964_v30  ;;  %v12014_v37 = vld [vmem:[#allocation277_spill] sm:$0xff]  ;;  %v12016_v38 = vld [vmem:[#allocation327_spill] sm:$0xff]  ;;  %v12018_v53 = vld [vmem:[#allocation372_spill] sm:$0xff]  ;;  %v3609_v31 = vmax.f32 %v10790_v32, %v3601_v36 }
0x19dd   : > { %v4593_v48 = vadd.f32 %v12011_v26, %v4513_v40  ;;  %v3654_v42 = vmul.f32 %v12014_v37, %v11971_v57  ;;  %v12015_v61 = vld [vmem:[#allocation297_spill] sm:$0xff]  ;;  %v4177_v14 = vadd.f32 %v12016_v38, %v4097_v33  ;;  %v12017_v62 = vld [vmem:[#allocation351_spill] sm:$0xff]  ;;  %v4508_v51 = vmul.f32 %v12018_v53, %v11985_v47  ;;  %v12019_v6 = vld [vmem:[#allocation382_spill] sm:$0xff] }
0x19de   : > { %v3892_v20 = vadd.f32 %v12015_v61, %v3812_v8  ;;  %v4388_v52 = vadd.f32 %v12017_v62, %v4308_v19  ;;  %v12020_v54 = vld [vmem:[#allocation248_spill] sm:$0xff]  ;;  %v12021_v56 = vld [vmem:[#allocation285_spill] sm:$0xff]  ;;  %v12025_v7 = vld [vmem:[#allocation391_spill] sm:$0xff] }
0x19df   : > { %v4673_v23 = vadd.f32 %v12019_v6, %v4593_v48  ;;  %v3446_v3 = vadd.f32 %v12020_v54, %v3366_v41  ;;  %v3735_v15 = vadd.f32 %v12021_v56, %v3655_v16  ;;  %v12022_v35 = vld [vmem:[#allocation265_spill] sm:$0xff]  ;;  %v12023_v12 = vld [vmem:[#allocation280_spill] sm:$0xff]  ;;  %v12030_v28 = vld [vmem:[#allocation290_spill] sm:$0xff]  ;;  %v4185_v41 = vmax.f32 %v3609_v31, %v4177_v14 }
0x19e0   : > { %v3940_v9 = vadd.f32 %v3932_v5, %v3892_v20  ;;  %v3604_v50 = vadd.f32 %v12022_v35, %v3524_v34  ;;  %v3734_v2 = vadd.f32 %v12023_v12, %v3654_v42  ;;  %v12024_v13 = vld [vmem:[#allocation361_spill] sm:$0xff]  ;;  %v12027_v47 = vld [vmem:[#allocation316_spill] sm:$0xff]  ;;  %v12033_v19 = vld [vmem:[#allocation319_spill] sm:$0xff] }
0x19e1   : > { %v4468_v25 = vadd.f32 %v12024_v13, %v4388_v52  ;;  %v4753_v43 = vadd.f32 %v12025_v7, %v4673_v23  ;;  %v12026_v4 = vld [vmem:[#allocation289_spill] sm:$0xff]  ;;  %v12034_v48 = vld [vmem:[#allocation344_spill] sm:$0xff]  ;;  %v12041_v53 = vld [vmem:[#allocation354_spill] sm:$0xff] }
0x19e2   : > { %v3815_v40 = vadd.f32 %v12026_v4, %v3735_v15  ;;  %v4020_v63 = vadd.f32 %v12027_v47, %v3940_v9  ;;  %v12028_v46 = vld [vmem:[#allocation337_spill] sm:$0xff]  ;;  %v3814_v8 = vadd.f32 %v12030_v28, %v3734_v2  ;;  %v12037_v37 = vld [vmem:[#allocation304_spill] sm:$0xff]  ;;  %v5882_v54 = vpop.permute.xlu0 %5881  ;;  %v12044_v15 = vld [vmem:[#allocation383_spill] sm:$0xff] }
0x19e3   : > { %v4231_v27 = vmul.f32 %v12028_v46, %v11964_v30  ;;  %v12029_v32 = vld [vmem:[#allocation341_spill] sm:$0xff]  ;;  %v4516_v17 = vadd.f32 %v4508_v51, %v4468_v25  ;;  %v12036_v30 = vld [vmem:[#allocation299_spill] sm:$0xff]  ;;  %v12038_v42 = vld [vmem:[#allocation380_spill] sm:$0xff]  ;;  %v4761_v20 = vmax.f32 %v4185_v41, %v4753_v43  ;;  %v3612_v43 = vmax.f32 %v10793_v44, %v3604_v50 }
0x19e4   : > { %v4230_v36 = vmul.f32 %v12029_v32, %v11971_v57  ;;  %v12031_v29 = vld [vmem:[#allocation305_spill] sm:$0xff]  ;;  %v4100_v26 = vadd.f32 %v12033_v19, %v4020_v63  ;;  %v3895_v16 = vadd.f32 %v12036_v30, %v3815_v40  ;;  %v3894_v57 = vadd.f32 %v12037_v37, %v3814_v8  ;;  %v12046_v2 = vld [vmem:[#allocation402_spill] sm:$0xff]  ;;  %v12048_v47 = vld [vmem:[#allocation363_spill] sm:$0xff] }
0x19e5   : > { %v3935_v5 = vmul.f32 %v12031_v29, %v11987_v45  ;;  %v12032_v33 = vld [vmem:[#allocation309_spill] sm:$0xff]  ;;  %v4596_v61 = vadd.f32 %v12038_v42, %v4516_v17  ;;  %v5905_v13 = vadd.f32 %v5882_v54, %v12046_v2  ;;  %v12049_v46 = vld [vmem:[#allocation368_spill] sm:$0xff]  ;;  %v12052_v8 = vld [vmem:[#allocation258_spill] sm:$0xff] }
0x19e6   : > { %v3934_v10 = vmul.f32 %v12032_v33, %v11997_v39  ;;  %v4310_v24 = vadd.f32 %v12034_v48, %v4230_v36  ;;  %v12035_v34 = vld [vmem:[#allocation349_spill] sm:$0xff]  ;;  %v3526_v29 = vadd.f32 %v12052_v8, %v3446_v3  ;;  %v12053_v41 = vld [vmem:[#allocation312_spill] sm:$0xff] }
0x19e7   : > { %v4311_v55 = vadd.f32 %v12035_v34, %v4231_v27  ;;  %v12039_v38 = vld [vmem:[#allocation329_spill] sm:$0xff]  ;;  %v4676_v9 = vadd.f32 %v12044_v15, %v4596_v61  ;;  %v3943_v40 = vadd.f32 %v3935_v5, %v3895_v16  ;;  %v12058_v3 = vld [vmem:[#allocation272_spill] sm:$0xff] }
0x19e8   : > { %v4180_v62 = vadd.f32 %v12039_v38, %v4100_v26  ;;  %v12040_v14 = vld [vmem:[#allocation353_spill] sm:$0xff]  ;;  %v4390_v51 = vadd.f32 %v12041_v53, %v4310_v24  ;;  %v3942_v4 = vadd.f32 %v3934_v10, %v3894_v57  ;;  %v2463_v10 = vmax.f32 %v10779_v11, %v10784_v18  ;;  %v12055_v26 = vld [vmem:[#allocation267_spill] sm:$0xff]  ;;  %v12059_v37 = vld [vmem:[#allocation376_spill] sm:$0xff] }
0x19e9   : > { %v4391_v52 = vadd.f32 %v12040_v14, %v4311_v55  ;;  %v12042_v6 = vld [vmem:[#allocation369_spill] sm:$0xff]  ;;  %v12057_v55 = vld [vmem:[#allocation322_spill] sm:$0xff]  ;;  %v3606_v16 = vadd.f32 %v12058_v3, %v3526_v29  ;;  %v3038_v11 = vmax.f32 %v2462_v22, %v10814_v58  ;;  %v12061_v18 = vld [vmem:[#allocation331_spill] sm:$0xff] }
0x19ea   : > { %v4511_v23 = vmul.f32 %v12042_v6, %v11987_v45  ;;  %v12043_v31 = vld [vmem:[#allocation373_spill] sm:$0xff]  ;;  %v4470_v45 = vadd.f32 %v12049_v46, %v4390_v51  ;;  %v4022_v17 = vadd.f32 %v12053_v41, %v3942_v4  ;;  %v4188_v19 = vmax.f32 %v3612_v43, %v4180_v62  ;;  %v12062_v14 = vld [vmem:[#allocation336_spill] sm:$0xff]  ;;  %v5888_v53 = vpop.permute.xlu0 %5887  ;;  %v12069_v4 = vld [vmem:[#allocation406_spill] sm:$0xff] }
0x19eb   : > { %v4510_v56 = vmul.f32 %v12043_v31, %v11997_v39  ;;  %v12045_v35 = vld [vmem:[#allocation409_spill] sm:$0xff]  ;;  %v4471_v63 = vadd.f32 %v12048_v47, %v4391_v52  ;;  %v3039_v38 = vmax.f32 %v2463_v10, %v10796_v59  ;;  %v12065_v31 = vld [vmem:[#allocation411_spill] sm:$0xff]  ;;  %v12070_v47 = vld [vmem:[#allocation404_spill] sm:$0xff] }
0x19ec   : > { %v5337_v12 = vmax.f32 %v4761_v20, %v12045_v35  ;;  %v12047_v25 = vld [vmem:[#allocation253_spill] sm:$0xff]  ;;  %v4102_v30 = vadd.f32 %v12057_v55, %v4022_v17  ;;  %v3614_v35 = vmax.f32 %v3038_v11, %v3606_v16 }
0x19ed   : > { %v3447_v7 = vadd.f32 %v12047_v25, %v3367_v0  ;;  %v12050_v27 = vld [vmem:[#allocation393_spill] sm:$0xff]  ;;  %v4518_v44 = vadd.f32 %v4510_v56, %v4470_v45  ;;  %v4519_v50 = vadd.f32 %v4511_v23, %v4471_v63  ;;  %v12064_v23 = vld [vmem:[#allocation386_spill] sm:$0xff]  ;;  %v5830_v63 = vadd.f32 %v10864_v1, %v12070_v47 }
0x19ee   : > { %v4756_v32 = vadd.f32 %v12050_v27, %v4676_v9  ;;  %v5913_v39 = vmax.f32 %v5337_v12, %v5905_v13  ;;  %v12051_v36 = vld [vmem:[#allocation257_spill] sm:$0xff]  ;;  %v4182_v52 = vadd.f32 %v12062_v14, %v4102_v30  ;;  %v12067_v12 = vld [vmem:[#allocation395_spill] sm:$0xff]  ;;  %v12071_v27 = vld [vmem:[#allocation412_spill] sm:$0xff] }
0x19ef   : > { %v3527_v28 = vadd.f32 %v12051_v36, %v3447_v7  ;;  %v12054_v33 = vld [vmem:[#allocation317_spill] sm:$0xff]  ;;  %v4598_v57 = vadd.f32 %v12059_v37, %v4518_v44 }
0x19f0   : > { %v4023_v0 = vadd.f32 %v12054_v33, %v3943_v40  ;;  %v5921_v5 = vsel %vm384_vm0, %v5913_v39, 0.0  ;;  %v12056_v24 = vld [vmem:[#allocation321_spill] sm:$0xff]  ;;  %v4764_v20 = vmax.f32 %v4188_v19, %v4756_v32  ;;  %v4190_v13 = vmax.f32 %v3614_v35, %v4182_v52  ;;  %v12072_v39 = vld [vmem:[#allocation399_spill] sm:$0xff] }
0x19f1   : > { %v3607_v48 = vadd.f32 %v12055_v26, %v3527_v28  ;;  %5929 = vst [vmem:[%s10718_s23] sm:$0xff] %v5921_v5  ;;  %v12060_v42 = vld [vmem:[#allocation381_spill] sm:$0xff]  ;;  %v4678_v54 = vadd.f32 %v12064_v23, %v4598_v57  ;;  %v5831_v40 = vadd.f32 %v10668_v49, %v12069_v4 }
0x19f2   : > { %v4103_v34 = vadd.f32 %v12056_v24, %v4023_v0  ;;  %v4599_v61 = vadd.f32 %v12060_v42, %v4519_v50  ;;  %v12063_v51 = vld [vmem:[#allocation385_spill] sm:$0xff]  ;;  %v5340_v56 = vmax.f32 %v4764_v20, %v12065_v31  ;;  %v5892_v46 = vpop.permute.xlu1 %5891  ;;  %v5894_v45 = vpop.permute.xlu0 %5893 }
0x19f3   : > { %v12066_v15 = vld [vmem:[#allocation405_spill] sm:$0xff]  ;;  %v3615_v59 = vmax.f32 %v3039_v38, %v3607_v48  ;;  %v5910_v28 = vadd.f32 %v5892_v46, %v5830_v63  ;;  %v5911_v8 = vadd.f32 %v5894_v45, %v5831_v40 }
0x19f4   : > { %v4183_v62 = vadd.f32 %v12061_v18, %v4103_v34  ;;  %v4679_v6 = vadd.f32 %v12063_v51, %v4599_v61  ;;  %v5908_v9 = vadd.f32 %v5888_v53, %v12066_v15  ;;  %v12068_v60 = vld [vmem:[#allocation397_spill] sm:$0xff] }
0x19f5   : > { %v4758_v21 = vadd.f32 %v12068_v60, %v4678_v54 }
0x19f6   : > { %v4759_v2 = vadd.f32 %v12067_v12, %v4679_v6  ;;  %v5916_v22 = vmax.f32 %v5340_v56, %v5908_v9  ;;  %v4191_v58 = vmax.f32 %v3615_v59, %v4183_v62 }
0x19f7   : > { %v4766_v43 = vmax.f32 %v4190_v13, %v4758_v21 }
0x19f8   : > { %v5924_v25 = vsel %vm384_vm0, %v5916_v22, 0.0  ;;  %v4767_v7 = vmax.f32 %v4191_v58, %v4759_v2 }
0x19f9   : > { %5932 = vst [vmem:[%s10718_s23 + $0x18] sm:$0xff] %v5924_v25  ;;  %v5342_v36 = vmax.f32 %v4766_v43, %v12072_v39 }
0x19fa   : > { %v5343_v32 = vmax.f32 %v4767_v7, %v12071_v27 }
0x19fb   : > { %v5918_v29 = vmax.f32 %v5342_v36, %v5910_v28 }
0x19fc   : > { %v5919_v41 = vmax.f32 %v5343_v32, %v5911_v8 }
0x19fd   : > { %v5926_v49 = vsel %vm384_vm0, %v5918_v29, 0.0 }
0x19fe   : > { %v5927_v1 = vsel %vm384_vm0, %v5919_v41, 0.0  ;;  %5934 = vst [vmem:[%s10718_s23 + $0x28] sm:$0xff] %v5926_v49 }
0x19ff   : > { %5935 = vst [vmem:[%s10718_s23 + $0x30] sm:$0xff] %v5927_v1 }
0x1a00   : > { %6639 = shalt.err (!%p6636_p3)
}
0x1a01   : > { %s6743_s24 = smov 128   ;;  %s6744_s23 = smov 8  }
0x1a02   : > { %6127 = dma.vmem_to_hbm [thread:$0]  (%p6828_p5), %s5951_s9, 1024, %s5953_s17, %s5938_s18, %s6743_s24, %s6743_s24, %s6744_s23  }
0x1a03 PF: > { %p6133_p4 = scmp.ge.s32.totalorder %s6674_s30, 2  ;;  %s5967_s10 = sand.u32 1, %s6662_s27  }
0x1a04   : > { %s5968_s13 = scalar_lea.sflag [#allocation3], %s5967_s10 }
0x1a05   : > { %p6130_p7 = pnand %p6133_p4, %p6832_p6 }
0x1a07   : > { %p6131_p8 = pneg %p6130_p7 }
0x1a09   : > { %6657 = dma.done.wait (%p6131_p8), %s5968_s13, 1024  }
0x1a0a   : > { %6659 = vsyncadd (%p6131_p8), %s5968_s13, 4294966272  ;;  %p18_p9 = scmp.ge.s32.totalorder %s6815_s11, 10   ;;  %s12073_s27 = smov %s6666_s28 }
0x1a0b   : > { %s12074_s28 = smov %s6670_s29  ;;  %s12075_s29 = smov %s6826_s14 }
0x1a0c   : > { %s12076_s30 = smov %s6815_s11  ;;  %20 = sbr.rel (!%p18_p9) target bundleno = 3 (0x3), region = 93 }
0x1a11   :  { %5974 = vsyncpa [#allocation3], 1 }
0x1a12   :  { %5976 = vsyncpa [#allocation3 + $0x1], 1 }

</bundles_post_ra>
